<compile_context>
chip_gen: v7x
topology: tpu7x:2x2x1
jax: 0.10.0
libtpu: 0.0.40
codegen_flags: <defaults>
</compile_context>

<pallas_src>
import functools

import jax
import jax.numpy as jnp
from jax.experimental import pallas as pl
from jax.experimental.pallas import tpu as pltpu


def residual_block_kernel(x_ref, w1_ref, w2_ref, o_ref, *, C, Cp, Wp):
    """One batch block per grid step; everything is 2-D and lane-dense.

    x_ref  : (R, Cp) bf16 — bb flattened, spatially padded images (R = bb*S2,
             S2 = 8-aligned (H+2)*(W+2)).  Lanes 0..C-1 are the real channels,
             lane C is 1.0 exactly on real (interior) pixels, 0 elsewhere.
    w1_ref : (9, Cp, Cp) bf16 — conv1 taps [tap, cin, cout], b1 folded into
             the centre tap's lane-C row.
    w2_ref : (9, Cp, Cp) bf16 — conv2 taps, b2 folded the same way.
    o_ref  : (R, Cp) f32   — y = x + F(x) on the full padded grid (the wrapper
             discards halo rows / padded lanes).
    """
    xv = x_ref[...]                                    # (R, Cp) bf16
    R = xv.shape[0]
    # "valid pixel" indicator (== the constant bias channel), used to zero the
    # halo of the intermediate activation.  f32 column, broadcast over lanes.
    valid = xv[:, C:C + 1].astype(jnp.float32)         # (R, 1)

    def conv3x3(lhs_bf16, w_ref):
        # out[p] = sum_t lhs[p + off_t] @ W_t.  Since the LHS is identical for
        # every tap, compute r_t = lhs @ W_t (one small MXU dot, f32 acc) and
        # shift the *result* by -off_t with an XLU roll: no misaligned window
        # copies, no im2col buffer.  Wrap-around rows only ever land on halo /
        # alignment-padding rows, which the caller masks or discards.
        acc = jnp.dot(lhs_bf16, w_ref[4],
                      preferred_element_type=jnp.float32)       # centre tap
        for t in range(9):
            if t == 4:
                continue
            dh, dw = t // 3, t % 3
            off = (dh - 1) * Wp + (dw - 1)
            part = jnp.dot(lhs_bf16, w_ref[t],
                           preferred_element_type=jnp.float32)  # (R, Cp) f32
            acc = acc + pltpu.roll(part, (-off) % R, 0)
        return acc

    # ---- conv1 (+ folded bias1) -> ReLU -> halo mask -> re-insert bias lane
    acc1 = conv3x3(xv, w1_ref)                                  # (R, Cp) f32
    bias_lane = (jax.lax.broadcasted_iota(jnp.int32, (1, Cp), 1) == C
                 ).astype(jnp.float32)                          # (1, Cp)
    # Lane C of acc1 is exactly 0 (zero weight column), so (+bias_lane)*valid
    # makes lane C the interior indicator again and zeroes the halo rows for
    # the real channels — the "SAME" padding of conv2.
    h1 = (jnp.maximum(acc1, 0.0) + bias_lane) * valid           # (R, Cp) f32

    # ---- conv2 (+ folded bias2)
    acc2 = conv3x3(h1.astype(jnp.bfloat16), w2_ref)             # (R, Cp) f32

    # ---- residual: y = x + F(x)   (halo rows hold junk; wrapper discards them)
    o_ref[...] = (xv.astype(jnp.float32) + acc2).astype(o_ref.dtype)


def residual_block_forward(x_nchw, w1, b1, w2, b2, *, bb=None):
    """y = x + Conv3x3(ReLU(Conv3x3(x))) — x in NCHW, weights HWIO (3,3,C,C)."""
    B, C, H, W = x_nchw.shape
    Cp = 128                                  # lane width; C+1 channels packed in
    assert C + 1 <= Cp, "need a spare lane for the constant bias/valid channel"
    Hp, Wp = H + 2, W + 2
    S = Hp * Wp                               # flattened padded pixels per image
    S2 = ((S + 7) // 8) * 8                   # 8-aligned row count per image

    # batch block: amortize per-step overhead but keep the grid >= 2 so both
    # v7x TensorCores get work; cap so VMEM stays well under the 32 MiB budget.
    if bb is None:
        upper = max(1, min(8, B // 2)) if B >= 2 else 1
        bb = 1
        for cand in range(upper, 0, -1):
            if B % cand == 0:
                bb = cand
                break
    assert B % bb == 0, "batch block must divide batch"

    # NCHW -> NHWC, append the constant bias/valid channel (1.0 on real pixels),
    # channel-pad to 128 lanes, spatial halo pad of 1 (zeros, incl. the valid
    # channel), flatten the padded grid to rows and 8-align the row count.
    # Stored in HBM as bf16 (halves the input DMA; MXU path is bf16 anyway).
    x_nhwc = jnp.transpose(x_nchw, (0, 2, 3, 1)).astype(jnp.float32)
    x_aug = jnp.concatenate(
        [x_nhwc, jnp.ones((B, H, W, 1), jnp.float32)], axis=-1)       # (B,H,W,C+1)
    x_pad = jnp.pad(x_aug, ((0, 0), (1, 1), (1, 1), (0, Cp - (C + 1))))
    x_flat = jnp.pad(x_pad.reshape(B, S, Cp), ((0, 0), (0, S2 - S), (0, 0)))
    x_flat = x_flat.reshape(B * S2, Cp).astype(jnp.bfloat16)

    # Pack each conv as (9, Cp, Cp) [tap, cin, cout]; zero rows/cols for padded
    # channels so the padding is inert.  Fold the bias into the centre tap's
    # row for the constant-1 channel (lane C).
    def pack(w, b):
        wp = jnp.zeros((9, Cp, Cp), jnp.float32)
        wp = wp.at[:, :C, :C].set(w.reshape(9, C, C).astype(jnp.float32))
        wp = wp.at[4, C, :C].set(b.astype(jnp.float32))
        return wp.astype(jnp.bfloat16)

    w1p, w2p = pack(w1, b1), pack(w2, b2)

    kernel = functools.partial(residual_block_kernel, C=C, Cp=Cp, Wp=Wp)

    y_flat = pl.pallas_call(
        kernel,
        out_shape=jax.ShapeDtypeStruct((B * S2, Cp), jnp.float32),
        grid_spec=pltpu.PrefetchScalarGridSpec(
            num_scalar_prefetch=0,
            grid=(B // bb,),
            in_specs=[
                pl.BlockSpec((bb * S2, Cp), lambda n: (n, 0)),
                pl.BlockSpec((9, Cp, Cp), lambda n: (0, 0, 0)),   # fetched once
                pl.BlockSpec((9, Cp, Cp), lambda n: (0, 0, 0)),   # fetched once
            ],
            out_specs=pl.BlockSpec((bb * S2, Cp), lambda n: (n, 0)),
        ),
        compiler_params=pltpu.CompilerParams(
            dimension_semantics=("parallel",),          # megacore / v7x 2-TC
            vmem_limit_bytes=32 * 1024 * 1024),         # << 64 MiB (v7x physical)
    )(x_flat, w1p, w2p)

    # XLA-side layout plumbing: drop alignment rows, halo and padded lanes.
    y = (y_flat.reshape(B, S2, Cp)[:, :S, :]
         .reshape(B, Hp, Wp, Cp)[:, 1:H + 1, 1:W + 1, :C])
    return jnp.transpose(y, (0, 3, 1, 2)).astype(x_nchw.dtype)


def _reference_forward(x_nchw, w1, b1, w2, b2, *, bf16_matched=False):
    """Pure-JAX reference.  bf16_matched mirrors the kernel's policy:
    x/weights/biases stored in bf16, f32 accumulation, h1 rounded to bf16."""
    f32 = jnp.float32
    x = jnp.transpose(x_nchw, (0, 2, 3, 1)).astype(f32)
    if bf16_matched:
        rd = lambda a: a.astype(jnp.bfloat16).astype(f32)
        xr, cw1, cw2, cb1, cb2 = rd(x), rd(w1), rd(w2), rd(b1), rd(b2)
    else:
        xr, cw1, cw2, cb1, cb2 = x, w1.astype(f32), w2.astype(f32), b1, b2
    dn = jax.lax.conv_dimension_numbers(x.shape, w1.shape, ("NHWC", "HWIO", "NHWC"))

    def conv(a, w):
        return jax.lax.conv_general_dilated(
            a, w, (1, 1), "SAME", dimension_numbers=dn,
            preferred_element_type=f32)

    h1 = jnp.maximum(conv(xr, cw1) + cb1, 0.0)
    if bf16_matched:
        h1 = h1.astype(jnp.bfloat16).astype(f32)
    fx = conv(h1, cw2) + cb2
    return jnp.transpose(xr + fx, (0, 3, 1, 2))


if __name__ == "__main__":
    B, C, H, W = 2, 4, 16, 16
    key = jax.random.PRNGKey(0)
    kx, kw1, kb1, kw2, kb2 = jax.random.split(key, 5)

    x = jax.random.normal(kx, (B, C, H, W), dtype=jnp.float32)

    # Synthetic parameters for F = Conv3x3 -> ReLU -> Conv3x3, scaled small so
    # F is ~1-Lipschitz (as the invertible layer expects).
    scale = 0.1
    w1 = scale * jax.random.normal(kw1, (3, 3, C, C), dtype=jnp.float32)
    b1 = scale * jax.random.normal(kb1, (C,), dtype=jnp.float32)
    w2 = scale * jax.random.normal(kw2, (3, 3, C, C), dtype=jnp.float32)
    b2 = scale * jax.random.normal(kb2, (C,), dtype=jnp.float32)

    y = jax.block_until_ready(residual_block_forward(x, w1, b1, w2, b2))
    assert y.shape == (B, C, H, W)

    # Tight check against a reference using the same bf16-storage / f32-acc
    # policy (remaining differences: accumulation order, rare 1-ulp roundings).
    y_ref_bf16 = _reference_forward(x, w1, b1, w2, b2, bf16_matched=True)
    assert jnp.allclose(y, y_ref_bf16, atol=5e-3), "mismatch vs bf16-matched reference"

    # Sanity bound against the full-f32 reference (tolerance relaxed for the
    # deliberate bf16 storage of x / weights on the MXU path).
    y_ref_f32 = _reference_forward(x, w1, b1, w2, b2, bf16_matched=False)
    assert jnp.allclose(y, y_ref_f32, atol=5e-2), "mismatch vs f32 reference"

    print("KERNEL_OK")
</pallas_src>

<mosaic_0001>
module attributes {stable_mosaic.version = 11 : i64} {
  func.func @residual_block_kernel(%arg0: i32, %arg1: memref<328x128xbf16, #tpu.memory_space<vmem>>, %arg2: memref<9x128x128xbf16, #tpu.memory_space<vmem>>, %arg3: memref<9x128x128xbf16, #tpu.memory_space<vmem>>, %arg4: memref<328x128xf32, #tpu.memory_space<vmem>>) attributes {dimension_semantics = [#tpu.dimension_semantics<parallel>], iteration_bounds = array<i64: 2>, scalar_prefetch = 0 : i64, scratch_operands = 0 : i64, tpu.core_type = #tpu.core_type<tc>, window_params = [{transform_indices = @transform_0, window_bounds = array<i64: 328, 128>}, {pipeline_mode = #tpu.pipeline_mode<synchronous>, transform_indices = @transform_1, window_bounds = array<i64: 9, 128, 128>}, {pipeline_mode = #tpu.pipeline_mode<synchronous>, transform_indices = @transform_2, window_bounds = array<i64: 9, 128, 128>}, {transform_indices = @transform_3, window_bounds = array<i64: 328, 128>}]} {
    %c0 = arith.constant 0 : index
    %c0_0 = arith.constant 0 : index
    %0 = vector.load %arg1[%c0, %c0_0] : memref<328x128xbf16, #tpu.memory_space<vmem>>, vector<328x128xbf16>
    %1 = vector.extract_strided_slice %0 {offsets = [0, 4], sizes = [328, 1], strides = [1, 1]} : vector<328x128xbf16> to vector<328x1xbf16>
    %2 = arith.extf %1 : vector<328x1xbf16> to vector<328x1xf32>
    %c4 = arith.constant 4 : index
    %c0_1 = arith.constant 0 : index
    %c0_2 = arith.constant 0 : index
    %3 = vector.load %arg2[%c4, %c0_1, %c0_2] : memref<9x128x128xbf16, #tpu.memory_space<vmem>>, vector<1x128x128xbf16>
    %4 = vector.shape_cast %3 : vector<1x128x128xbf16> to vector<128x128xbf16>
    %cst = arith.constant dense<0.000000e+00> : vector<328x128xf32>
    %5 = tpu.matmul %0, %4, %cst {dimension_numbers = #tpu.dot_dimension_numbers<[1], [0], [0], [1], [0, 0, 1, 1], [], []>} : vector<328x128xbf16>, vector<128x128xbf16>, vector<328x128xf32> -> vector<328x128xf32>
    %c0_3 = arith.constant 0 : index
    %c0_4 = arith.constant 0 : index
    %c0_5 = arith.constant 0 : index
    %6 = vector.load %arg2[%c0_3, %c0_4, %c0_5] : memref<9x128x128xbf16, #tpu.memory_space<vmem>>, vector<1x128x128xbf16>
    %7 = vector.shape_cast %6 : vector<1x128x128xbf16> to vector<128x128xbf16>
    %cst_6 = arith.constant dense<0.000000e+00> : vector<328x128xf32>
    %8 = tpu.matmul %0, %7, %cst_6 {dimension_numbers = #tpu.dot_dimension_numbers<[1], [0], [0], [1], [0, 0, 1, 1], [], []>} : vector<328x128xbf16>, vector<128x128xbf16>, vector<328x128xf32> -> vector<328x128xf32>
    %c19_i32 = arith.constant 19 : i32
    %9 = tpu.dynamic_rotate %8 by %c19_i32 dim 0 : vector<328x128xf32>, i32 -> vector<328x128xf32>
    %10 = arith.addf %5, %9 : vector<328x128xf32>
    %c1 = arith.constant 1 : index
    %c0_7 = arith.constant 0 : index
    %c0_8 = arith.constant 0 : index
    %11 = vector.load %arg2[%c1, %c0_7, %c0_8] : memref<9x128x128xbf16, #tpu.memory_space<vmem>>, vector<1x128x128xbf16>
    %12 = vector.shape_cast %11 : vector<1x128x128xbf16> to vector<128x128xbf16>
    %cst_9 = arith.constant dense<0.000000e+00> : vector<328x128xf32>
    %13 = tpu.matmul %0, %12, %cst_9 {dimension_numbers = #tpu.dot_dimension_numbers<[1], [0], [0], [1], [0, 0, 1, 1], [], []>} : vector<328x128xbf16>, vector<128x128xbf16>, vector<328x128xf32> -> vector<328x128xf32>
    %c18_i32 = arith.constant 18 : i32
    %14 = tpu.dynamic_rotate %13 by %c18_i32 dim 0 : vector<328x128xf32>, i32 -> vector<328x128xf32>
    %15 = arith.addf %10, %14 : vector<328x128xf32>
    %c2 = arith.constant 2 : index
    %c0_10 = arith.constant 0 : index
    %c0_11 = arith.constant 0 : index
    %16 = vector.load %arg2[%c2, %c0_10, %c0_11] : memref<9x128x128xbf16, #tpu.memory_space<vmem>>, vector<1x128x128xbf16>
    %17 = vector.shape_cast %16 : vector<1x128x128xbf16> to vector<128x128xbf16>
    %cst_12 = arith.constant dense<0.000000e+00> : vector<328x128xf32>
    %18 = tpu.matmul %0, %17, %cst_12 {dimension_numbers = #tpu.dot_dimension_numbers<[1], [0], [0], [1], [0, 0, 1, 1], [], []>} : vector<328x128xbf16>, vector<128x128xbf16>, vector<328x128xf32> -> vector<328x128xf32>
    %c17_i32 = arith.constant 17 : i32
    %19 = tpu.dynamic_rotate %18 by %c17_i32 dim 0 : vector<328x128xf32>, i32 -> vector<328x128xf32>
    %20 = arith.addf %15, %19 : vector<328x128xf32>
    %c3 = arith.constant 3 : index
    %c0_13 = arith.constant 0 : index
    %c0_14 = arith.constant 0 : index
    %21 = vector.load %arg2[%c3, %c0_13, %c0_14] : memref<9x128x128xbf16, #tpu.memory_space<vmem>>, vector<1x128x128xbf16>
    %22 = vector.shape_cast %21 : vector<1x128x128xbf16> to vector<128x128xbf16>
    %cst_15 = arith.constant dense<0.000000e+00> : vector<328x128xf32>
    %23 = tpu.matmul %0, %22, %cst_15 {dimension_numbers = #tpu.dot_dimension_numbers<[1], [0], [0], [1], [0, 0, 1, 1], [], []>} : vector<328x128xbf16>, vector<128x128xbf16>, vector<328x128xf32> -> vector<328x128xf32>
    %c1_i32 = arith.constant 1 : i32
    %24 = tpu.dynamic_rotate %23 by %c1_i32 dim 0 : vector<328x128xf32>, i32 -> vector<328x128xf32>
    %25 = arith.addf %20, %24 : vector<328x128xf32>
    %c5 = arith.constant 5 : index
    %c0_16 = arith.constant 0 : index
    %c0_17 = arith.constant 0 : index
    %26 = vector.load %arg2[%c5, %c0_16, %c0_17] : memref<9x128x128xbf16, #tpu.memory_space<vmem>>, vector<1x128x128xbf16>
    %27 = vector.shape_cast %26 : vector<1x128x128xbf16> to vector<128x128xbf16>
    %cst_18 = arith.constant dense<0.000000e+00> : vector<328x128xf32>
    %28 = tpu.matmul %0, %27, %cst_18 {dimension_numbers = #tpu.dot_dimension_numbers<[1], [0], [0], [1], [0, 0, 1, 1], [], []>} : vector<328x128xbf16>, vector<128x128xbf16>, vector<328x128xf32> -> vector<328x128xf32>
    %c327_i32 = arith.constant 327 : i32
    %29 = tpu.dynamic_rotate %28 by %c327_i32 dim 0 : vector<328x128xf32>, i32 -> vector<328x128xf32>
    %30 = arith.addf %25, %29 : vector<328x128xf32>
    %c6 = arith.constant 6 : index
    %c0_19 = arith.constant 0 : index
    %c0_20 = arith.constant 0 : index
    %31 = vector.load %arg2[%c6, %c0_19, %c0_20] : memref<9x128x128xbf16, #tpu.memory_space<vmem>>, vector<1x128x128xbf16>
    %32 = vector.shape_cast %31 : vector<1x128x128xbf16> to vector<128x128xbf16>
    %cst_21 = arith.constant dense<0.000000e+00> : vector<328x128xf32>
    %33 = tpu.matmul %0, %32, %cst_21 {dimension_numbers = #tpu.dot_dimension_numbers<[1], [0], [0], [1], [0, 0, 1, 1], [], []>} : vector<328x128xbf16>, vector<128x128xbf16>, vector<328x128xf32> -> vector<328x128xf32>
    %c311_i32 = arith.constant 311 : i32
    %34 = tpu.dynamic_rotate %33 by %c311_i32 dim 0 : vector<328x128xf32>, i32 -> vector<328x128xf32>
    %35 = arith.addf %30, %34 : vector<328x128xf32>
    %c7 = arith.constant 7 : index
    %c0_22 = arith.constant 0 : index
    %c0_23 = arith.constant 0 : index
    %36 = vector.load %arg2[%c7, %c0_22, %c0_23] : memref<9x128x128xbf16, #tpu.memory_space<vmem>>, vector<1x128x128xbf16>
    %37 = vector.shape_cast %36 : vector<1x128x128xbf16> to vector<128x128xbf16>
    %cst_24 = arith.constant dense<0.000000e+00> : vector<328x128xf32>
    %38 = tpu.matmul %0, %37, %cst_24 {dimension_numbers = #tpu.dot_dimension_numbers<[1], [0], [0], [1], [0, 0, 1, 1], [], []>} : vector<328x128xbf16>, vector<128x128xbf16>, vector<328x128xf32> -> vector<328x128xf32>
    %c310_i32 = arith.constant 310 : i32
    %39 = tpu.dynamic_rotate %38 by %c310_i32 dim 0 : vector<328x128xf32>, i32 -> vector<328x128xf32>
    %40 = arith.addf %35, %39 : vector<328x128xf32>
    %c8 = arith.constant 8 : index
    %c0_25 = arith.constant 0 : index
    %c0_26 = arith.constant 0 : index
    %41 = vector.load %arg2[%c8, %c0_25, %c0_26] : memref<9x128x128xbf16, #tpu.memory_space<vmem>>, vector<1x128x128xbf16>
    %42 = vector.shape_cast %41 : vector<1x128x128xbf16> to vector<128x128xbf16>
    %cst_27 = arith.constant dense<0.000000e+00> : vector<328x128xf32>
    %43 = tpu.matmul %0, %42, %cst_27 {dimension_numbers = #tpu.dot_dimension_numbers<[1], [0], [0], [1], [0, 0, 1, 1], [], []>} : vector<328x128xbf16>, vector<128x128xbf16>, vector<328x128xf32> -> vector<328x128xf32>
    %c309_i32 = arith.constant 309 : i32
    %44 = tpu.dynamic_rotate %43 by %c309_i32 dim 0 : vector<328x128xf32>, i32 -> vector<328x128xf32>
    %45 = arith.addf %40, %44 : vector<328x128xf32>
    %46 = tpu.iota {dimensions = array<i32: 1>} : vector<1x128xi32>
    %c4_i32 = arith.constant 4 : i32
    %47 = vector.broadcast %c4_i32 : i32 to vector<1x128xi32>
    %48 = arith.cmpi eq, %46, %47 : vector<1x128xi32>
    %49 = arith.extui %48 : vector<1x128xi1> to vector<1x128xi32>
    %50 = arith.sitofp %49 : vector<1x128xi32> to vector<1x128xf32>
    %cst_28 = arith.constant 0.000000e+00 : f32
    %51 = vector.broadcast %cst_28 : f32 to vector<328x128xf32>
    %52 = arith.maximumf %45, %51 : vector<328x128xf32>
    %53 = vector.broadcast %50 : vector<1x128xf32> to vector<328x128xf32>
    %54 = arith.addf %52, %53 : vector<328x128xf32>
    %55 = vector.broadcast %2 : vector<328x1xf32> to vector<328x128xf32>
    %56 = arith.mulf %54, %55 : vector<328x128xf32>
    %57 = arith.truncf %56 : vector<328x128xf32> to vector<328x128xbf16>
    %c4_29 = arith.constant 4 : index
    %c0_30 = arith.constant 0 : index
    %c0_31 = arith.constant 0 : index
    %58 = vector.load %arg3[%c4_29, %c0_30, %c0_31] : memref<9x128x128xbf16, #tpu.memory_space<vmem>>, vector<1x128x128xbf16>
    %59 = vector.shape_cast %58 : vector<1x128x128xbf16> to vector<128x128xbf16>
    %cst_32 = arith.constant dense<0.000000e+00> : vector<328x128xf32>
    %60 = tpu.matmul %57, %59, %cst_32 {dimension_numbers = #tpu.dot_dimension_numbers<[1], [0], [0], [1], [0, 0, 1, 1], [], []>} : vector<328x128xbf16>, vector<128x128xbf16>, vector<328x128xf32> -> vector<328x128xf32>
    %c0_33 = arith.constant 0 : index
    %c0_34 = arith.constant 0 : index
    %c0_35 = arith.constant 0 : index
    %61 = vector.load %arg3[%c0_33, %c0_34, %c0_35] : memref<9x128x128xbf16, #tpu.memory_space<vmem>>, vector<1x128x128xbf16>
    %62 = vector.shape_cast %61 : vector<1x128x128xbf16> to vector<128x128xbf16>
    %cst_36 = arith.constant dense<0.000000e+00> : vector<328x128xf32>
    %63 = tpu.matmul %57, %62, %cst_36 {dimension_numbers = #tpu.dot_dimension_numbers<[1], [0], [0], [1], [0, 0, 1, 1], [], []>} : vector<328x128xbf16>, vector<128x128xbf16>, vector<328x128xf32> -> vector<328x128xf32>
    %c19_i32_37 = arith.constant 19 : i32
    %64 = tpu.dynamic_rotate %63 by %c19_i32_37 dim 0 : vector<328x128xf32>, i32 -> vector<328x128xf32>
    %65 = arith.addf %60, %64 : vector<328x128xf32>
    %c1_38 = arith.constant 1 : index
    %c0_39 = arith.constant 0 : index
    %c0_40 = arith.constant 0 : index
    %66 = vector.load %arg3[%c1_38, %c0_39, %c0_40] : memref<9x128x128xbf16, #tpu.memory_space<vmem>>, vector<1x128x128xbf16>
    %67 = vector.shape_cast %66 : vector<1x128x128xbf16> to vector<128x128xbf16>
    %cst_41 = arith.constant dense<0.000000e+00> : vector<328x128xf32>
    %68 = tpu.matmul %57, %67, %cst_41 {dimension_numbers = #tpu.dot_dimension_numbers<[1], [0], [0], [1], [0, 0, 1, 1], [], []>} : vector<328x128xbf16>, vector<128x128xbf16>, vector<328x128xf32> -> vector<328x128xf32>
    %c18_i32_42 = arith.constant 18 : i32
    %69 = tpu.dynamic_rotate %68 by %c18_i32_42 dim 0 : vector<328x128xf32>, i32 -> vector<328x128xf32>
    %70 = arith.addf %65, %69 : vector<328x128xf32>
    %c2_43 = arith.constant 2 : index
    %c0_44 = arith.constant 0 : index
    %c0_45 = arith.constant 0 : index
    %71 = vector.load %arg3[%c2_43, %c0_44, %c0_45] : memref<9x128x128xbf16, #tpu.memory_space<vmem>>, vector<1x128x128xbf16>
    %72 = vector.shape_cast %71 : vector<1x128x128xbf16> to vector<128x128xbf16>
    %cst_46 = arith.constant dense<0.000000e+00> : vector<328x128xf32>
    %73 = tpu.matmul %57, %72, %cst_46 {dimension_numbers = #tpu.dot_dimension_numbers<[1], [0], [0], [1], [0, 0, 1, 1], [], []>} : vector<328x128xbf16>, vector<128x128xbf16>, vector<328x128xf32> -> vector<328x128xf32>
    %c17_i32_47 = arith.constant 17 : i32
    %74 = tpu.dynamic_rotate %73 by %c17_i32_47 dim 0 : vector<328x128xf32>, i32 -> vector<328x128xf32>
    %75 = arith.addf %70, %74 : vector<328x128xf32>
    %c3_48 = arith.constant 3 : index
    %c0_49 = arith.constant 0 : index
    %c0_50 = arith.constant 0 : index
    %76 = vector.load %arg3[%c3_48, %c0_49, %c0_50] : memref<9x128x128xbf16, #tpu.memory_space<vmem>>, vector<1x128x128xbf16>
    %77 = vector.shape_cast %76 : vector<1x128x128xbf16> to vector<128x128xbf16>
    %cst_51 = arith.constant dense<0.000000e+00> : vector<328x128xf32>
    %78 = tpu.matmul %57, %77, %cst_51 {dimension_numbers = #tpu.dot_dimension_numbers<[1], [0], [0], [1], [0, 0, 1, 1], [], []>} : vector<328x128xbf16>, vector<128x128xbf16>, vector<328x128xf32> -> vector<328x128xf32>
    %c1_i32_52 = arith.constant 1 : i32
    %79 = tpu.dynamic_rotate %78 by %c1_i32_52 dim 0 : vector<328x128xf32>, i32 -> vector<328x128xf32>
    %80 = arith.addf %75, %79 : vector<328x128xf32>
    %c5_53 = arith.constant 5 : index
    %c0_54 = arith.constant 0 : index
    %c0_55 = arith.constant 0 : index
    %81 = vector.load %arg3[%c5_53, %c0_54, %c0_55] : memref<9x128x128xbf16, #tpu.memory_space<vmem>>, vector<1x128x128xbf16>
    %82 = vector.shape_cast %81 : vector<1x128x128xbf16> to vector<128x128xbf16>
    %cst_56 = arith.constant dense<0.000000e+00> : vector<328x128xf32>
    %83 = tpu.matmul %57, %82, %cst_56 {dimension_numbers = #tpu.dot_dimension_numbers<[1], [0], [0], [1], [0, 0, 1, 1], [], []>} : vector<328x128xbf16>, vector<128x128xbf16>, vector<328x128xf32> -> vector<328x128xf32>
    %c327_i32_57 = arith.constant 327 : i32
    %84 = tpu.dynamic_rotate %83 by %c327_i32_57 dim 0 : vector<328x128xf32>, i32 -> vector<328x128xf32>
    %85 = arith.addf %80, %84 : vector<328x128xf32>
    %c6_58 = arith.constant 6 : index
    %c0_59 = arith.constant 0 : index
    %c0_60 = arith.constant 0 : index
    %86 = vector.load %arg3[%c6_58, %c0_59, %c0_60] : memref<9x128x128xbf16, #tpu.memory_space<vmem>>, vector<1x128x128xbf16>
    %87 = vector.shape_cast %86 : vector<1x128x128xbf16> to vector<128x128xbf16>
    %cst_61 = arith.constant dense<0.000000e+00> : vector<328x128xf32>
    %88 = tpu.matmul %57, %87, %cst_61 {dimension_numbers = #tpu.dot_dimension_numbers<[1], [0], [0], [1], [0, 0, 1, 1], [], []>} : vector<328x128xbf16>, vector<128x128xbf16>, vector<328x128xf32> -> vector<328x128xf32>
    %c311_i32_62 = arith.constant 311 : i32
    %89 = tpu.dynamic_rotate %88 by %c311_i32_62 dim 0 : vector<328x128xf32>, i32 -> vector<328x128xf32>
    %90 = arith.addf %85, %89 : vector<328x128xf32>
    %c7_63 = arith.constant 7 : index
    %c0_64 = arith.constant 0 : index
    %c0_65 = arith.constant 0 : index
    %91 = vector.load %arg3[%c7_63, %c0_64, %c0_65] : memref<9x128x128xbf16, #tpu.memory_space<vmem>>, vector<1x128x128xbf16>
    %92 = vector.shape_cast %91 : vector<1x128x128xbf16> to vector<128x128xbf16>
    %cst_66 = arith.constant dense<0.000000e+00> : vector<328x128xf32>
    %93 = tpu.matmul %57, %92, %cst_66 {dimension_numbers = #tpu.dot_dimension_numbers<[1], [0], [0], [1], [0, 0, 1, 1], [], []>} : vector<328x128xbf16>, vector<128x128xbf16>, vector<328x128xf32> -> vector<328x128xf32>
    %c310_i32_67 = arith.constant 310 : i32
    %94 = tpu.dynamic_rotate %93 by %c310_i32_67 dim 0 : vector<328x128xf32>, i32 -> vector<328x128xf32>
    %95 = arith.addf %90, %94 : vector<328x128xf32>
    %c8_68 = arith.constant 8 : index
    %c0_69 = arith.constant 0 : index
    %c0_70 = arith.constant 0 : index
    %96 = vector.load %arg3[%c8_68, %c0_69, %c0_70] : memref<9x128x128xbf16, #tpu.memory_space<vmem>>, vector<1x128x128xbf16>
    %97 = vector.shape_cast %96 : vector<1x128x128xbf16> to vector<128x128xbf16>
    %cst_71 = arith.constant dense<0.000000e+00> : vector<328x128xf32>
    %98 = tpu.matmul %57, %97, %cst_71 {dimension_numbers = #tpu.dot_dimension_numbers<[1], [0], [0], [1], [0, 0, 1, 1], [], []>} : vector<328x128xbf16>, vector<128x128xbf16>, vector<328x128xf32> -> vector<328x128xf32>
    %c309_i32_72 = arith.constant 309 : i32
    %99 = tpu.dynamic_rotate %98 by %c309_i32_72 dim 0 : vector<328x128xf32>, i32 -> vector<328x128xf32>
    %100 = arith.addf %95, %99 : vector<328x128xf32>
    %101 = arith.extf %0 : vector<328x128xbf16> to vector<328x128xf32>
    %102 = arith.addf %101, %100 : vector<328x128xf32>
    %c0_73 = arith.constant 0 : index
    %c0_74 = arith.constant 0 : index
    %103 = vector.load %arg4[%c0_73, %c0_74] : memref<328x128xf32, #tpu.memory_space<vmem>>, vector<328x128xf32>
    tpu.vector_store %arg4[%c0_73, %c0_74], %102 {strides = array<i32>} : memref<328x128xf32, #tpu.memory_space<vmem>>, vector<328x128xf32>,
    return
  }
  func.func @transform_0(%arg0: i32) -> (i32, i32) {
    %c0_i32 = arith.constant 0 : i32
    %c0_i32_0 = arith.constant 0 : i32
    return %arg0, %c0_i32 : i32, i32
  }
  func.func @transform_1(%arg0: i32) -> (i32, i32, i32) {
    %c0_i32 = arith.constant 0 : i32
    %c0_i32_0 = arith.constant 0 : i32
    %c0_i32_1 = arith.constant 0 : i32
    %c0_i32_2 = arith.constant 0 : i32
    return %c0_i32, %c0_i32_0, %c0_i32_1 : i32, i32, i32
  }
  func.func @transform_2(%arg0: i32) -> (i32, i32, i32) {
    %c0_i32 = arith.constant 0 : i32
    %c0_i32_0 = arith.constant 0 : i32
    %c0_i32_1 = arith.constant 0 : i32
    %c0_i32_2 = arith.constant 0 : i32
    return %c0_i32, %c0_i32_0, %c0_i32_1 : i32, i32, i32
  }
  func.func @transform_3(%arg0: i32) -> (i32, i32) {
    %c0_i32 = arith.constant 0 : i32
    %c0_i32_0 = arith.constant 0 : i32
    return %arg0, %c0_i32 : i32, i32
  }
}

</mosaic_0001>

<bundles_post_ra>
// kernel: tpu_custom_call.1
= control target key start
LH: loop header
LB: loop body
LE: loop exit
PB: predicated region body
PF: predicated region fallthrough
CT: control target
= control target key end

     0   :  { %8 = vsyncpa [#allocation3], 0  ;;  %s15110_s0 = inlined_call_operand.hbm [shape: bf16[656,128], index: 0, kind: input, shape index: {}]   ;;  %s15111_s1 = inlined_call_operand.hbm [shape: bf16[9,128,128], index: 1, kind: input, shape index: {}]   ;;  %s15112_s2 = inlined_call_operand.hbm [shape: bf16[9,128,128], index: 2, kind: input, shape index: {}]   ;;  %s15113_s3 = inlined_call_operand.hbm [shape: f32[656,128], index: 3, kind: output, shape index: {}]  }
   0x1   :  { %10 = vsyncpa [#allocation3 + $0x1], 0 }
   0x2   :  { %11 = vsyncpa [#allocation6], 0 }
   0x3   :  { %12 = vsyncpa [#allocation4], 0 }
   0x4   :  { %14 = vsyncpa [#allocation4 + $0x1], 0  ;;  %s10707_s12 = smov 0   ;;  %s10709_s13 = smov 0  }
   0x5   :  { %s10711_s14 = smov 0   ;;  %s10713_s15 = smov 0  }
   0x6 LB: > { %s10728_s16 = sadd.s32 4294967295, %s10674_s15   ;;  %s7631_s17 = sadd.s32 4294967294, %s10674_s15   ;;  %s10674_s15 = sphi %s10713_s15, %s15584_s15   ;;  %s10670_s14 = sphi %s10711_s14, %s15583_s14   ;;  %s10666_s13 = sphi %s10709_s13, %s15582_s13   ;;  %s10662_s12 = sphi %s10707_s12, %s15581_s12  }
   0x7   : > { %p40_p0 = scmp.ne.s32.totalorder %s10666_s13, %s10662_s12  ;;  %p15114_p1 = scmp.eq.s32.totalorder %s10728_s16, 0 }
   0x8   : > { %p112_p3 = scmp.eq.s32.totalorder %s7631_s17, 1  ;;  %p7632_p5 = scmp.ge.s32.totalorder %s10674_s15, 1 }
   0x9   : > { %p10737_p4 = por %p15114_p1, %p40_p0  ;;  %p119_p7 = scmp.lt.s32.totalorder %s10674_s15, 3 }
   0xa   : > { %p10742_p6 = por %p112_p3, %p40_p0  ;;  %s10676_s21 = smov [#allocation5]  }
   0xb   : > { %s15268_s18 = scalar_select %p10737_p4, 1, 0 }
   0xc   : > { %s15269_s19 = scalar_select %p10742_p6, 1, 0 }
   0xd   : > { %p10747_p8 = pnand %p7632_p5, %p119_p7  ;;  %s131_s22 = sshll.u32 %s10676_s21, 4  ;;  %s10751_s22 = int_to_ptr.vmem [resolvable:$true] %s131_s22 }
   0xe   : > { %s10677_s24 = smov [#allocation7]   ;;  %s10518_s28 = scalar_lea.hbm %s15111_s1, 9216 }
   0xf   : > { %p10148_p9 = pneg %p10747_p8  ;;  %s144_s25 = sshll.u32 %s10677_s24, 4  ;;  %s10762_s25 = int_to_ptr.vmem [resolvable:$true] %s144_s25 }
  0x10   : > { %p10519_p12 = scmp.ne.s32.totalorder %s15111_s1, %s10518_s28  ;;  %p10525_p5 = scmp.lt.u32.totalorder %s10518_s28, %s15111_s1 }
  0x11   : > { %p10758_p11 = pnand %p10148_p9, %p15114_p1 }
  0x13   : > { %p10520_p13 = pneg %p10758_p11 }
  0x15   : > { %p10521_p0 = pnand %p10520_p13, %p10519_p12 }
  0x17   : > { %p10522_p3 = pneg %p10521_p0 }
  0x19   : > { %p10527_p7 = pnand %p10525_p5, %p10522_p3 }
  0x1b   : > { %10530 = shalt.err (!%p10527_p7)
}
  0x1c   : > { %s10531_s6 = scalar_lea.vmem %s10751_s22, 9216  ;;  %p10539_p2 = scmp.lt.s32.totalorder %s10751_s22, %s10751_s22 }
  0x1d   : > { %p10532_p9 = scmp.ne.s32.totalorder %s10751_s22, %s10531_s6  ;;  %p10540_p12 = scmp.lt.s32.totalorder %s10531_s6, %s10531_s6 }
  0x1f   : > { %p10534_p10 = pnand %p10532_p9, %p10520_p13  ;;  %p10541_p0 = por %p10540_p12, %p10539_p2 }
  0x21   : > { %p10535_p1 = pneg %p10534_p10 }
  0x23   : > { %p10542_p6 = pnand %p10541_p0, %p10535_p1 }
  0x25   : > { %10545 = shalt.err (!%p10542_p6)
}
  0x26   : > { %s10678_s7 = smov 64   ;;  %s10679_s8 = smov 4  }
  0x27   : > { %10151 = dma.hbm_to_vmem [thread:$0]  (!%p10758_p11), %s15111_s1, 9216, %s10751_s22, [#allocation6], %s10678_s7, %s10678_s7, %s10679_s8  }
  0x28   : > { %s10546_s21 = scalar_lea.hbm %s15112_s2, 9216 }
  0x29   : > { %p10547_p1 = scmp.ne.s32.totalorder %s15112_s2, %s10546_s21  ;;  %p10553_p10 = scmp.lt.u32.totalorder %s10546_s21, %s15112_s2 }
  0x2b   : > { %p10549_p2 = pnand %p10547_p1, %p10520_p13 }
  0x2d   : > { %p10550_p6 = pneg %p10549_p2 }
  0x2f   : > { %p10555_p3 = pnand %p10553_p10, %p10550_p6 }
  0x31   : > { %10558 = shalt.err (!%p10555_p3)
}
  0x32   : > { %s10559_s22 = scalar_lea.vmem %s10762_s25, 9216  ;;  %p10567_p12 = scmp.lt.s32.totalorder %s10762_s25, %s10762_s25 }
  0x33   : > { %p10560_p5 = scmp.ne.s32.totalorder %s10762_s25, %s10559_s22  ;;  %p10568_p0 = scmp.lt.s32.totalorder %s10559_s22, %s10559_s22 }
  0x35   : > { %p10562_p7 = pnand %p10560_p5, %p10520_p13  ;;  %p10569_p1 = por %p10568_p0, %p10567_p12 }
  0x37   : > { %p10563_p9 = pneg %p10562_p7 }
  0x39   : > { %p10570_p2 = pnand %p10569_p1, %p10563_p9 }
  0x3b   : > { %10573 = shalt.err (!%p10570_p2)
}
  0x3c   : > { %10154 = dma.hbm_to_vmem [thread:$0]  (!%p10758_p11), %s15112_s2, 9216, %s10762_s25, [#allocation6], %s10678_s7, %s10678_s7, %s10679_s8  }
  0x3d   : > { %s10823_s23 = sadd.s32 1, %s10674_s15   ;;  %s27_s4 = sadd.s32 1, %s10670_s14 }
  0x3e   : > { %s24_s5 = ssub.s32 %s10674_s15, %s10823_s23  ;;  %p34_p13 = scmp.ne.s32.totalorder %s10670_s14, %s10666_s13 }
  0x3f   : > { %p25_p6 = scmp.eq.s32.totalorder %s24_s5, 0  ;;  %p35_p10 = scmp.eq.s32.totalorder %s10674_s15, 0 }
  0x40   : > { %p15272_p3 = scmp.eq.s32.totalorder %s10728_s16, 1  ;;  %p10165_p7 = scmp.lt.s32.totalorder %s10674_s15, 2 }
  0x41   : > { %s10839_s9 = scalar_select %p25_p6, %s10670_s14, %s27_s4  }
  0x42   : > { %p10833_p5 = por %p15272_p3, %p34_p13  ;;  %p36_p9 = por %p35_p10, %p34_p13 }
  0x43   : > { %s158_s10 = sand.u32 1, %s10670_s14   ;;  %s7809_s25 = smul.u32 2624, %s10674_s15 }
  0x44   : > { %s15273_s6 = scalar_select %p10833_p5, 1, 0 }
  0x45   : > { %s10133_s11 = smul.u32 164, %s158_s10  ;;  %p10843_p11 = pnand %p10165_p7, %p36_p9 }
  0x46   : > { %s10850_s26 = scalar_lea.hbm %s15110_s0, %s7809_s25  ;;  %s10854_s22 = scalar_lea.sflag [#allocation3], %s158_s10 }
  0x47   : > { %s162_s27 = scalar_lea.vmem [#allocation2], %s10133_s11  ;;  %s10574_s29 = scalar_lea.hbm %s10850_s26, 2624 }
  0x48   : > { %s169_s28 = sshll.u32 %s162_s27, 4  ;;  %p10575_p12 = scmp.ne.s32.totalorder %s10850_s26, %s10574_s29  ;;  %s10852_s28 = int_to_ptr.vmem [resolvable:$true] %s169_s28 }
  0x49   : > { %p10576_p0 = pneg %p10843_p11  ;;  %s10579_s5 = scalar_lea.hbm %s15110_s0, 5248 }
  0x4a   : > { %p10580_p13 = scmp.lt.u32.totalorder %s10850_s26, %s15110_s0  ;;  %p10581_p6 = scmp.lt.u32.totalorder %s10579_s5, %s10574_s29 }
  0x4b   : > { %p10577_p1 = pnand %p10576_p0, %p10575_p12  ;;  %p10583_p3 = scmp.lt.u32.totalorder %s10574_s29, %s10850_s26 }
  0x4c   : > { %p10582_p10 = por %p10581_p6, %p10580_p13 }
  0x4d   : > { %p10578_p2 = pneg %p10577_p1 }
  0x4e   : > { %p10584_p7 = por %p10583_p3, %p10582_p10 }
  0x50   : > { %p10585_p9 = pnand %p10584_p7, %p10578_p2 }
  0x52   : > { %10588 = shalt.err (!%p10585_p9)
}
  0x53   : > { %s10589_s10 = scalar_lea.vmem %s10852_s28, 2624  ;;  %s10680_s11 = smov [#allocation2]  }
  0x54   : > { %p10590_p12 = scmp.ne.s32.totalorder %s10852_s28, %s10589_s10  ;;  %s10594_s24 = sshll.u32 %s10680_s11, 4  ;;  %s10595_s24 = int_to_ptr.vmem [resolvable:$false] %s10594_s24 }
  0x55   : > { %s10596_s27 = scalar_lea.vmem %s10595_s24, 5248  ;;  %p10597_p4 = scmp.lt.s32.totalorder %s10852_s28, %s10595_s24 }
  0x56   : > { %p10592_p1 = pnand %p10590_p12, %p10576_p0  ;;  %p10598_p13 = scmp.lt.s32.totalorder %s10596_s27, %s10589_s10 }
  0x58   : > { %p10593_p5 = pneg %p10592_p1  ;;  %p10599_p6 = por %p10598_p13, %p10597_p4 }
  0x5a   : > { %p10600_p10 = pnand %p10599_p6, %p10593_p5 }
  0x5c   : > { %10603 = shalt.err (!%p10600_p10)
}
  0x5d   : > { %10158 = dma.hbm_to_vmem [thread:$0]  (!%p10843_p11), %s10850_s26, 2624, %s10852_s28, %s10854_s22, %s10678_s7, %s10678_s7, %s10679_s8  }
  0x5e   : > { %181 = sbr.rel (%p10747_p8) target bundleno = 2122 (0x84a), region = 32 }
  0x65   : > { %s10888_s29 = sand.u32 1, %s10666_s13   ;;  %p15275_p4 = scmp.ne.s32.totalorder %s15268_s18, 0 }
  0x66   : > { %s10134_s30 = smul.u32 164, %s10888_s29  ;;  %s184_s4 = scalar_lea.sflag [#allocation3], %s10888_s29 }
  0x68   : > { %s10892_s5 = scalar_lea.vmem [#allocation2], %s10134_s30 }
  0x69   : > { %10649 = dma.done.wait (%p15275_p4), %s184_s4, 2624  }
  0x6a   : > { %10651 = vsyncadd (%p15275_p4), %s184_s4, 4294964672  ;;  %p15276_p5 = scmp.eq.s32.totalorder %s10728_s16, 0 }
  0x6c   : > { %10653 = dma.done.wait (%p15276_p5), [#allocation6], 18432   ;;  %p15277_p8 = pmov %p15276_p5 }
  0x6d   : > { %v15139_v0 = vmov 0.0   ;;  %vm10682_vm0 = vmmov 0   ;;  %v10312_v1 = vld [vmem:[#allocation5] sm:$0xff]   ;;  %v10314_v3 = vld [vmem:[#allocation5 + $0x8] sm:$0xff]   ;;  %v10316_v5 = vld [vmem:[#allocation5 + $0x10] sm:$0xff]   ;;  %s10135_s18 = smul.u32 328, %s10888_s29 }
  0x6e   : > { %10655 = vsyncadd (%p15277_p8), [#allocation6], 4294948864  ;;  %8333 = vmatprep.subr.bf16.mxu0 %v15139_v0  ;;  %8433 = vmatprep.subr.bf16.mxu1 %v15139_v0  ;;  %v10313_v2 = vld [vmem:[#allocation5 + $0x100] sm:$0xff]   ;;  %v10315_v4 = vld [vmem:[#allocation5 + $0x108] sm:$0xff]   ;;  %s7810_s7 = smul.u32 5248, %s10728_s16  ;;  %s7526_s28 = scalar_lea.sflag [#allocation4], %s10888_s29 }
  0x6f   : > { %8349 = vmatprep.mubr.msk.bf16.mxu0 %vm10682_vm0, %v15139_v0  ;;  %8449 = vmatprep.mubr.msk.bf16.mxu1 %vm10682_vm0, %v15139_v0  ;;  %v10317_v6 = vld [vmem:[#allocation5 + $0x110] sm:$0xff]   ;;  %v10318_v7 = vld [vmem:[#allocation5 + $0x18] sm:$0xff]   ;;  %v10320_v9 = vld [vmem:[#allocation5 + $0x20] sm:$0xff]   ;;  %s14814_s20 = scalar_lea.vmem [#allocation8], %s10135_s18  ;;  %p15578_p0 = scmp.ne.s32.totalorder %s15273_s6, 0 }
  0x70   : > { %8334 = vmatpush3.bf16.msra.mxu0 %v10312_v1  ;;  %8434 = vmatpush3.bf16.msra.mxu1 %v10313_v2  ;;  %v10319_v8 = vld [vmem:[#allocation5 + $0x118] sm:$0xff]   ;;  %v10321_v10 = vld [vmem:[#allocation5 + $0x120] sm:$0xff]   ;;  %v10322_v11 = vld [vmem:[#allocation5 + $0x28] sm:$0xff]   ;;  %s7539_s8 = sshll.u32 %s14814_s20, 4  ;;  %s15058_s16 = scalar_lea.hbm %s15113_s3, %s7810_s7  ;;  %s15060_s8 = int_to_ptr.vmem [resolvable:$true] %s7539_s8 }
  0x71   : > { %8335 = vmatprep.subr.bf16.mxu0 %v15139_v0  ;;  %8435 = vmatprep.subr.bf16.mxu1 %v15139_v0  ;;  %v10323_v12 = vld [vmem:[#allocation5 + $0x128] sm:$0xff]   ;;  %v10324_v13 = vld [vmem:[#allocation5 + $0x30] sm:$0xff]   ;;  %v10326_v15 = vld [vmem:[#allocation5 + $0x38] sm:$0xff]   ;;  %s10604_s22 = scalar_lea.vmem %s15060_s8, 5248  ;;  %s10684_s25 = smov [#allocation8]  }
  0x72   : > { %v10325_v14 = vld [vmem:[#allocation5 + $0x130] sm:$0xff]   ;;  %v10921_v16 = vld [vmem:[%s10892_s5] sm:$0xff]   ;;  %v10927_v19 = vld [vmem:[%s10892_s5 + $0x8] sm:$0xff]   ;;  %p10605_p11 = scmp.ne.s32.totalorder %s15060_s8, %s10604_s22  ;;  %s10608_s21 = sshll.u32 %s10684_s25, 4  ;;  %s10609_s21 = int_to_ptr.vmem [resolvable:$false] %s10608_s21 }
  0x73   : > { %15278 = vst [vmem:[#allocation12_spill] sm:$0xff] %v10921_v16  ;;  %v10327_v17 = vld [vmem:[#allocation5 + $0x138] sm:$0xff]   ;;  %v10329_v18 = vld [vmem:[#allocation5 + $0x40] sm:$0xff]   ;;  %15279 = vst [vmem:[#allocation13_spill] sm:$0xff] %v10927_v19  ;;  %s10610_s10 = scalar_lea.vmem %s10609_s21, 10496  ;;  %p10611_p7 = scmp.lt.s32.totalorder %s15060_s8, %s10609_s21 }
  0x74   : > { %8336 = vmatpush3.bf16.msra.mxu0 %v10314_v3  ;;  %8436 = vmatpush3.bf16.msra.mxu1 %v10315_v4  ;;  %v10332_v20 = vld [vmem:[#allocation5 + $0x48] sm:$0xff]   ;;  %v10336_v21 = vld [vmem:[#allocation5 + $0x50] sm:$0xff]   ;;  %v10353_v23 = vld [vmem:[#allocation5 + $0x80] sm:$0xff]   ;;  %p10606_p2 = pnand %p10605_p11, %p15578_p0  ;;  %p10612_p9 = scmp.lt.s32.totalorder %s10610_s10, %s10604_s22 }
  0x75   : > { %8337 = vmatprep.subr.bf16.mxu0 %v15139_v0  ;;  %8437 = vmatprep.subr.bf16.mxu1 %v15139_v0  ;;  %v10939_v22 = vld [vmem:[%s10892_s5 + $0x10] sm:$0xff]   ;;  %v10340_v24 = vld [vmem:[#allocation5 + $0x58] sm:$0xff]   ;;  %v10343_v26 = vld [vmem:[#allocation5 + $0x60] sm:$0xff]  }
  0x76   : > { %15280 = vst [vmem:[#allocation14_spill] sm:$0xff] %v10939_v22  ;;  %v10354_v25 = vld [vmem:[#allocation5 + $0x88] sm:$0xff]   ;;  %v10356_v27 = vld [vmem:[#allocation5 + $0x90] sm:$0xff]   ;;  %v10358_v30 = vld [vmem:[#allocation5 + $0x98] sm:$0xff]   ;;  %p10607_p3 = pneg %p10606_p2  ;;  %p10613_p12 = por %p10612_p9, %p10611_p7 }
  0x77   : > { %v10956_v28 = vld [vmem:[%s10892_s5 + $0x18] sm:$0xff]   ;;  %v10347_v29 = vld [vmem:[#allocation5 + $0x68] sm:$0xff]   ;;  %v10963_v32 = vld [vmem:[%s10892_s5 + $0x20] sm:$0xff]  }
  0x78   : > { %8338 = vmatpush3.bf16.msra.mxu0 %v10316_v5  ;;  %8438 = vmatpush3.bf16.msra.mxu1 %v10317_v6  ;;  %15281 = vst [vmem:[#allocation15_spill] sm:$0xff] %v10956_v28  ;;  %v10350_v31 = vld [vmem:[#allocation5 + $0x70] sm:$0xff]   ;;  %v10360_v33 = vld [vmem:[#allocation5 + $0xa0] sm:$0xff]   ;;  %v10357_v34 = vld [vmem:[#allocation5 + $0x78] sm:$0xff]   ;;  %p10614_p1 = pnand %p10613_p12, %p10607_p3 }
  0x79   : > { %8339 = vmatprep.subr.bf16.mxu0 %v15139_v0  ;;  %8439 = vmatprep.subr.bf16.mxu1 %v15139_v0  ;;  %v10361_v35 = vld [vmem:[#allocation5 + $0xa8] sm:$0xff]   ;;  %v10363_v37 = vld [vmem:[#allocation5 + $0xb0] sm:$0xff]   ;;  %v10364_v38 = vld [vmem:[#allocation5 + $0xb8] sm:$0xff]  }
  0x7a   : > { %v10976_v36 = vld [vmem:[%s10892_s5 + $0x28] sm:$0xff]   ;;  %v10993_v39 = vld [vmem:[%s10892_s5 + $0x30] sm:$0xff]   ;;  %v10998_v40 = vld [vmem:[%s10892_s5 + $0x38] sm:$0xff]  }
  0x7b   : > { %15282 = vst [vmem:[#allocation16_spill] sm:$0xff] %v10976_v36  ;;  %15283 = vst [vmem:[#allocation17_spill] sm:$0xff] %v10993_v39  ;;  %v11011_v41 = vld [vmem:[%s10892_s5 + $0x40] sm:$0xff]   ;;  %v11016_v42 = vld [vmem:[%s10892_s5 + $0x48] sm:$0xff]  }
  0x7c   : > { %8340 = vmatpush3.bf16.msra.mxu0 %v10318_v7  ;;  %8440 = vmatpush3.bf16.msra.mxu1 %v10319_v8  ;;  %v11025_v43 = vld [vmem:[%s10892_s5 + $0x50] sm:$0xff]   ;;  %v11038_v44 = vld [vmem:[%s10892_s5 + $0x58] sm:$0xff]   ;;  %v11047_v45 = vld [vmem:[%s10892_s5 + $0x60] sm:$0xff]   ;;  %v15117_v8 = vlaneseq }
  0x7d   : > { %8341 = vmatprep.subr.bf16.mxu0 %v15139_v0  ;;  %8441 = vmatprep.subr.bf16.mxu1 %v15139_v0  ;;  %v11056_v46 = vld [vmem:[%s10892_s5 + $0x68] sm:$0xff]   ;;  %v11065_v47 = vld [vmem:[%s10892_s5 + $0x70] sm:$0xff]   ;;  %v11074_v48 = vld [vmem:[%s10892_s5 + $0x78] sm:$0xff]  }
  0x7e   : > { %v11083_v49 = vld [vmem:[%s10892_s5 + $0x80] sm:$0xff]   ;;  %v11092_v50 = vld [vmem:[%s10892_s5 + $0x88] sm:$0xff]   ;;  %v11101_v51 = vld [vmem:[%s10892_s5 + $0x90] sm:$0xff]  }
  0x7f   : > { %15284 = vst [vmem:[#allocation18_spill] sm:$0xff] %v11101_v51  ;;  %v11110_v52 = vld [vmem:[%s10892_s5 + $0x98] sm:$0xff]   ;;  %v261_v53 = vld [vmem:[%s10892_s5 + $0xa0] sm:$0xf]  ;;  %v10365_v55 = vld [vmem:[#allocation5 + $0xc0] sm:$0xff]  }
  0x80   : > { %8342 = vmatpush3.bf16.msra.mxu0 %v10320_v9  ;;  %8442 = vmatpush3.bf16.msra.mxu1 %v10321_v10  ;;  %15285 = vst [vmem:[#allocation19_spill] sm:$0xff] %v11110_v52  ;;  %v11121_v54 = vcombine.low %v261_v53, %v261_v53  ;;  %v10366_v56 = vld [vmem:[#allocation5 + $0xc8] sm:$0xff]   ;;  %v10367_v57 = vld [vmem:[#allocation5 + $0xd0] sm:$0xff]   ;;  %v10372_v58 = vld [vmem:[#allocation5 + $0x140] sm:$0xff]   ;;  %v11180_v9 = vshrl.u32 %v15117_v8, 7 }
  0x81   : > { %8343 = vmatprep.subr.bf16.mxu0 %v15139_v0  ;;  %8443 = vmatprep.subr.bf16.mxu1 %v15139_v0  ;;  %v10368_v59 = vld [vmem:[#allocation5 + $0xd8] sm:$0xff]   ;;  %v10373_v60 = vld [vmem:[#allocation5 + $0x148] sm:$0xff]   ;;  %v10369_v61 = vld [vmem:[#allocation5 + $0xe0] sm:$0xff]  }
  0x82   : > { %15286 = vst [vmem:[#allocation20_spill] sm:$0xff] %v11121_v54  ;;  %v10374_v62 = vld [vmem:[#allocation5 + $0x150] sm:$0xff]   ;;  %v10370_v63 = vld [vmem:[#allocation5 + $0xe8] sm:$0xff]   ;;  %v10376_v1 = vld [vmem:[#allocation5 + $0x158] sm:$0xff]   ;;  %vm751_vm1 = vcmp.lt.s32.totalorder %v11180_v9, 3  ;;  %vm1347_vm2 = vcmp.lt.s32.totalorder %v11180_v9, 2 }
  0x83   : > { %v10371_v2 = vld [vmem:[#allocation5 + $0xf0] sm:$0xff]   ;;  %v10377_v3 = vld [vmem:[#allocation5 + $0x160] sm:$0xff]   ;;  %v10375_v4 = vld [vmem:[#allocation5 + $0xf8] sm:$0xff]   ;;  %vm1736_vm3 = vcmp.lt.s32.totalorder %v11180_v9, 1  ;;  %vm2513_vm4 = vcmp.lt.s32.totalorder %v11180_v9, 7  ;;  %vm3290_vm5 = vcmp.lt.s32.totalorder %v11180_v9, 6 }
  0x84   : > { %8344 = vmatpush3.bf16.msra.mxu0 %v10322_v11  ;;  %8444 = vmatpush3.bf16.msra.mxu1 %v10323_v12  ;;  %v10378_v5 = vld [vmem:[#allocation5 + $0x168] sm:$0xff]   ;;  %v10379_v6 = vld [vmem:[#allocation5 + $0x170] sm:$0xff]   ;;  %v10380_v7 = vld [vmem:[#allocation5 + $0x178] sm:$0xff]   ;;  %vm3679_vm6 = vcmp.lt.s32.totalorder %v11180_v9, 5 }
  0x85   : > { %8345 = vmatprep.subr.bf16.mxu0 %v15139_v0  ;;  %8445 = vmatprep.subr.bf16.mxu1 %v15139_v0 }
  0x88   : > { %8346 = vmatpush3.bf16.msra.mxu0 %v10324_v13  ;;  %8446 = vmatpush3.bf16.msra.mxu1 %v10325_v14 }
  0x89   : > { %8347 = vmatprep.subr.bf16.mxu0 %v15139_v0  ;;  %8447 = vmatprep.subr.bf16.mxu1 %v15139_v0 }
  0x8c   : > { %8348 = vmatpush3.bf16.msra.mxu0 %v10326_v15  ;;  %8448 = vmatpush3.bf16.msra.mxu1 %v10327_v17 }
  0x8d   : > { %8533 = vmatprep.subr.bf16.mxu0 %v15139_v0  ;;  %8633 = vmatprep.subr.bf16.mxu1 %v15139_v0 }
  0x8f   : > { %8350 = vmatmul.mubr.bf16.vlgmr.msra.gmra.mrb[0].mxu0 %v10921_v16  ;;  %8450 = vmatmul.mubr.bf16.vlgmr.msra.gmra.mrb[0].mxu1 %v10921_v16 }
  0x90   : > { %8534 = vmatpush3.bf16.msra.mxu0 %v10329_v18  ;;  %8353 = vmatprep.mubr.msk.bf16.mxu0 %vm10682_vm0, %v15139_v0 }
  0x91   : > { %8453 = vmatprep.mubr.msk.bf16.mxu1 %vm10682_vm0, %v15139_v0  ;;  %8535 = vmatprep.subr.bf16.mxu0 %v15139_v0 }
  0x92   : > { %8634 = vmatpush3.bf16.msra.mxu1 %v10353_v23 }
  0x93   : > { %8635 = vmatprep.subr.bf16.mxu1 %v15139_v0 }
  0x94   : > { %8536 = vmatpush3.bf16.msra.mxu0 %v10332_v20 }
  0x95   : > { %8537 = vmatprep.subr.bf16.mxu0 %v15139_v0 }
  0x96   : > { %8636 = vmatpush3.bf16.msra.mxu1 %v10354_v25 }
  0x97   : > { %8354 = vmatmul.mubr.bf16.gmra.mrb[4].mxu0 %v10927_v19  ;;  %8454 = vmatmul.mubr.bf16.gmra.mrb[4].mxu1 %v10927_v19 }
  0x98   : > { %8357 = vmatprep.mubr.msk.bf16.mxu0 %vm10682_vm0, %v15139_v0  ;;  %8457 = vmatprep.mubr.msk.bf16.mxu1 %vm10682_vm0, %v15139_v0 }
  0x99   : > { %8538 = vmatpush3.bf16.msra.mxu0 %v10336_v21  ;;  %8637 = vmatprep.subr.bf16.mxu1 %v15139_v0 }
  0x9a   : > { %8539 = vmatprep.subr.bf16.mxu0 %v15139_v0  ;;  %8638 = vmatpush3.bf16.msra.mxu1 %v10356_v27 }
  0x9b   : > { %8639 = vmatprep.subr.bf16.mxu1 %v15139_v0 }
  0x9d   : > { %8540 = vmatpush3.bf16.msra.mxu0 %v10340_v24 }
  0x9e   : > { %8541 = vmatprep.subr.bf16.mxu0 %v15139_v0  ;;  %8640 = vmatpush3.bf16.msra.mxu1 %v10358_v30 }
  0x9f   : > { %8358 = vmatmul.mubr.bf16.gmra.mrb[8].mxu0 %v10939_v22  ;;  %8458 = vmatmul.mubr.bf16.gmra.mrb[8].mxu1 %v10939_v22 }
  0xa0   : > { %8361 = vmatprep.mubr.msk.bf16.mxu0 %vm10682_vm0, %v15139_v0  ;;  %8461 = vmatprep.mubr.msk.bf16.mxu1 %vm10682_vm0, %v15139_v0 }
  0xa1   : > { %8542 = vmatpush3.bf16.msra.mxu0 %v10343_v26  ;;  %8641 = vmatprep.subr.bf16.mxu1 %v15139_v0 }
  0xa2   : > { %8543 = vmatprep.subr.bf16.mxu0 %v15139_v0  ;;  %8642 = vmatpush3.bf16.msra.mxu1 %v10360_v33 }
  0xa3   : > { %8643 = vmatprep.subr.bf16.mxu1 %v15139_v0 }
  0xa5   : > { %8544 = vmatpush3.bf16.msra.mxu0 %v10347_v29 }
  0xa6   : > { %8545 = vmatprep.subr.bf16.mxu0 %v15139_v0  ;;  %8644 = vmatpush3.bf16.msra.mxu1 %v10361_v35 }
  0xa7   : > { %8362 = vmatmul.mubr.bf16.gmra.mrb[12].mxu0 %v10956_v28  ;;  %8462 = vmatmul.mubr.bf16.gmra.mrb[12].mxu1 %v10956_v28 }
  0xa8   : > { %8365 = vmatprep.mubr.msk.bf16.mxu0 %vm10682_vm0, %v15139_v0  ;;  %8465 = vmatprep.mubr.msk.bf16.mxu1 %vm10682_vm0, %v15139_v0 }
  0xa9   : > { %8546 = vmatpush3.bf16.msra.mxu0 %v10350_v31  ;;  %8645 = vmatprep.subr.bf16.mxu1 %v15139_v0 }
  0xaa   : > { %8547 = vmatprep.subr.bf16.mxu0 %v15139_v0  ;;  %8646 = vmatpush3.bf16.msra.mxu1 %v10363_v37 }
  0xab   : > { %8647 = vmatprep.subr.bf16.mxu1 %v15139_v0 }
  0xad   : > { %8548 = vmatpush3.bf16.msra.mxu0 %v10357_v34 }
  0xae   : > { %8733 = vmatprep.subr.bf16.mxu0 %v15139_v0  ;;  %8648 = vmatpush3.bf16.msra.mxu1 %v10364_v38 }
  0xaf   : > { %8366 = vmatmul.mubr.bf16.gmra.mrb[16].mxu0 %v10963_v32  ;;  %8466 = vmatmul.mubr.bf16.gmra.mrb[16].mxu1 %v10963_v32 }
  0xb0   : > { %8369 = vmatprep.mubr.msk.bf16.mxu0 %vm10682_vm0, %v15139_v0  ;;  %8469 = vmatprep.mubr.msk.bf16.mxu1 %vm10682_vm0, %v15139_v0 }
  0xb1   : > { %8833 = vmatprep.subr.bf16.mxu1 %v15139_v0 }
  0xb7   : > { %8370 = vmatmul.mubr.bf16.gmra.mrb[20].mxu0 %v10976_v36  ;;  %8470 = vmatmul.mubr.bf16.gmra.mrb[20].mxu1 %v10976_v36 }
  0xb8   : > { %8373 = vmatprep.mubr.msk.bf16.mxu0 %vm10682_vm0, %v15139_v0  ;;  %8473 = vmatprep.mubr.msk.bf16.mxu1 %vm10682_vm0, %v15139_v0 }
  0xbf   : > { %8374 = vmatmul.mubr.bf16.gmra.mrb[24].mxu0 %v10993_v39  ;;  %8474 = vmatmul.mubr.bf16.gmra.mrb[24].mxu1 %v10993_v39 }
  0xc0   : > { %8377 = vmatprep.mubr.msk.bf16.mxu0 %vm10682_vm0, %v15139_v0  ;;  %8477 = vmatprep.mubr.msk.bf16.mxu1 %vm10682_vm0, %v15139_v0 }
  0xc7   : > { %8378 = vmatmul.mubr.bf16.gmra.mrb[28].mxu0 %v10998_v40  ;;  %8478 = vmatmul.mubr.bf16.gmra.mrb[28].mxu1 %v10998_v40 }
  0xc8   : > { %8381 = vmatprep.mubr.msk.bf16.mxu0 %vm10682_vm0, %v15139_v0  ;;  %8481 = vmatprep.mubr.msk.bf16.mxu1 %vm10682_vm0, %v15139_v0 }
  0xcf   : > { %8382 = vmatmul.mubr.bf16.gmra.mrb[32].mxu0 %v11011_v41  ;;  %8482 = vmatmul.mubr.bf16.gmra.mrb[32].mxu1 %v11011_v41 }
  0xd0   : > { %8385 = vmatprep.mubr.msk.bf16.mxu0 %vm10682_vm0, %v15139_v0  ;;  %8485 = vmatprep.mubr.msk.bf16.mxu1 %vm10682_vm0, %v15139_v0 }
  0xd7   : > { %8386 = vmatmul.mubr.bf16.gmra.mrb[36].mxu0 %v11016_v42  ;;  %8486 = vmatmul.mubr.bf16.gmra.mrb[36].mxu1 %v11016_v42 }
  0xd8   : > { %8389 = vmatprep.mubr.msk.bf16.mxu0 %vm10682_vm0, %v15139_v0  ;;  %8489 = vmatprep.mubr.msk.bf16.mxu1 %vm10682_vm0, %v15139_v0 }
  0xdf   : > { %8390 = vmatmul.mubr.bf16.gmra.mrb[40].mxu0 %v11025_v43  ;;  %8490 = vmatmul.mubr.bf16.gmra.mrb[40].mxu1 %v11025_v43 }
  0xe0   : > { %8393 = vmatprep.mubr.msk.bf16.mxu0 %vm10682_vm0, %v15139_v0  ;;  %8493 = vmatprep.mubr.msk.bf16.mxu1 %vm10682_vm0, %v15139_v0 }
  0xe7   : > { %8394 = vmatmul.mubr.bf16.gmra.mrb[44].mxu0 %v11038_v44  ;;  %8494 = vmatmul.mubr.bf16.gmra.mrb[44].mxu1 %v11038_v44 }
  0xe8   : > { %8397 = vmatprep.mubr.msk.bf16.mxu0 %vm10682_vm0, %v15139_v0  ;;  %8497 = vmatprep.mubr.msk.bf16.mxu1 %vm10682_vm0, %v15139_v0 }
  0xef   : > { %8398 = vmatmul.mubr.bf16.gmra.mrb[48].mxu0 %v11047_v45  ;;  %8498 = vmatmul.mubr.bf16.gmra.mrb[48].mxu1 %v11047_v45 }
  0xf0   : > { %8401 = vmatprep.mubr.msk.bf16.mxu0 %vm10682_vm0, %v15139_v0  ;;  %8501 = vmatprep.mubr.msk.bf16.mxu1 %vm10682_vm0, %v15139_v0 }
  0xf7   : > { %8402 = vmatmul.mubr.bf16.gmra.mrb[52].mxu0 %v11056_v46  ;;  %8502 = vmatmul.mubr.bf16.gmra.mrb[52].mxu1 %v11056_v46 }
  0xf8   : > { %8405 = vmatprep.mubr.msk.bf16.mxu0 %vm10682_vm0, %v15139_v0  ;;  %8505 = vmatprep.mubr.msk.bf16.mxu1 %vm10682_vm0, %v15139_v0 }
  0xff   : > { %8406 = vmatmul.mubr.bf16.gmra.mrb[56].mxu0 %v11065_v47  ;;  %8506 = vmatmul.mubr.bf16.gmra.mrb[56].mxu1 %v11065_v47 }
 0x100   : > { %8409 = vmatprep.mubr.msk.bf16.mxu0 %vm10682_vm0, %v15139_v0  ;;  %8509 = vmatprep.mubr.msk.bf16.mxu1 %vm10682_vm0, %v15139_v0 }
 0x107   : > { %8410 = vmatmul.mubr.bf16.gmra.mrb[60].mxu0 %v11074_v48  ;;  %8510 = vmatmul.mubr.bf16.gmra.mrb[60].mxu1 %v11074_v48 }
 0x108   : > { %8413 = vmatprep.mubr.msk.bf16.mxu0 %vm10682_vm0, %v15139_v0  ;;  %8513 = vmatprep.mubr.msk.bf16.mxu1 %vm10682_vm0, %v15139_v0 }
 0x10f   : > { %8414 = vmatmul.mubr.bf16.gmra.mrb[64].mxu0 %v11083_v49  ;;  %8514 = vmatmul.mubr.bf16.gmra.mrb[64].mxu1 %v11083_v49 }
 0x110   : > { %8417 = vmatprep.mubr.msk.bf16.mxu0 %vm10682_vm0, %v15139_v0  ;;  %8517 = vmatprep.mubr.msk.bf16.mxu1 %vm10682_vm0, %v15139_v0 }
 0x117   : > { %8418 = vmatmul.mubr.bf16.gmra.mrb[68].mxu0 %v11092_v50  ;;  %8518 = vmatmul.mubr.bf16.gmra.mrb[68].mxu1 %v11092_v50 }
 0x118   : > { %8421 = vmatprep.mubr.msk.bf16.mxu0 %vm10682_vm0, %v15139_v0  ;;  %8521 = vmatprep.mubr.msk.bf16.mxu1 %vm10682_vm0, %v15139_v0 }
 0x11f   : > { %8422 = vmatmul.mubr.bf16.gmra.mrb[72].mxu0 %v11101_v51  ;;  %8522 = vmatmul.mubr.bf16.gmra.mrb[72].mxu1 %v11101_v51 }
 0x120   : > { %8425 = vmatprep.mubr.msk.bf16.mxu0 %vm10682_vm0, %v15139_v0  ;;  %8525 = vmatprep.mubr.msk.bf16.mxu1 %vm10682_vm0, %v15139_v0 }
 0x127   : > { %8426 = vmatmul.mubr.bf16.gmra.mrb[76].mxu0 %v11110_v52  ;;  %8526 = vmatmul.mubr.bf16.gmra.mrb[76].mxu1 %v11110_v52 }
 0x128   : > { %8429 = vmatprep.mubr.msk.bf16.mxu0 %vm10682_vm0, %v15139_v0  ;;  %8529 = vmatprep.mubr.msk.bf16.mxu1 %vm10682_vm0, %v15139_v0 }
 0x12f   : > { %8430 = vmatmul.mubr.bf16.gmra.mrb[80].mxu0 %v11121_v54  ;;  %8530 = vmatmul.mubr.bf16.gmra.mrb[80].mxu1 %v11121_v54 }
 0x130   : > { %8549 = vmatprep.mubr.msk.bf16.mxu0 %vm10682_vm0, %v15139_v0  ;;  %8649 = vmatprep.mubr.msk.bf16.mxu1 %vm10682_vm0, %v15139_v0 }
 0x137   : > { %8550 = vmatmul.mubr.bf16.vlgmr.msra.gmra.mrb[84].mxu0 %v10921_v16  ;;  %8650 = vmatmul.mubr.bf16.vlgmr.msra.gmra.mrb[84].mxu1 %v10921_v16 }
 0x138   : > { %8734 = vmatpush3.bf16.msra.mxu0 %v10365_v55  ;;  %8553 = vmatprep.mubr.msk.bf16.mxu0 %vm10682_vm0, %v15139_v0 }
 0x139   : > { %8653 = vmatprep.mubr.msk.bf16.mxu1 %vm10682_vm0, %v15139_v0  ;;  %8735 = vmatprep.subr.bf16.mxu0 %v15139_v0 }
 0x13a   : > { %8834 = vmatpush3.bf16.msra.mxu1 %v10372_v58 }
 0x13b   : > { %8835 = vmatprep.subr.bf16.mxu1 %v15139_v0 }
 0x13c   : > { %8736 = vmatpush3.bf16.msra.mxu0 %v10366_v56 }
 0x13d   : > { %8737 = vmatprep.subr.bf16.mxu0 %v15139_v0 }
 0x13e   : > { %8836 = vmatpush3.bf16.msra.mxu1 %v10373_v60 }
 0x13f   : > { %8554 = vmatmul.mubr.bf16.gmra.mrb[88].mxu0 %v10927_v19  ;;  %8654 = vmatmul.mubr.bf16.gmra.mrb[88].mxu1 %v10927_v19 }
 0x140   : > { %8557 = vmatprep.mubr.msk.bf16.mxu0 %vm10682_vm0, %v15139_v0  ;;  %8657 = vmatprep.mubr.msk.bf16.mxu1 %vm10682_vm0, %v15139_v0 }
 0x141   : > { %8738 = vmatpush3.bf16.msra.mxu0 %v10367_v57  ;;  %8837 = vmatprep.subr.bf16.mxu1 %v15139_v0 }
 0x142   : > { %8739 = vmatprep.subr.bf16.mxu0 %v15139_v0  ;;  %8838 = vmatpush3.bf16.msra.mxu1 %v10374_v62 }
 0x143   : > { %8839 = vmatprep.subr.bf16.mxu1 %v15139_v0 }
 0x145   : > { %8740 = vmatpush3.bf16.msra.mxu0 %v10368_v59 }
 0x146   : > { %8741 = vmatprep.subr.bf16.mxu0 %v15139_v0  ;;  %8840 = vmatpush3.bf16.msra.mxu1 %v10376_v1 }
 0x147   : > { %8558 = vmatmul.mubr.bf16.gmra.mrb[92].mxu0 %v10939_v22  ;;  %8658 = vmatmul.mubr.bf16.gmra.mrb[92].mxu1 %v10939_v22 }
 0x148   : > { %8561 = vmatprep.mubr.msk.bf16.mxu0 %vm10682_vm0, %v15139_v0  ;;  %8661 = vmatprep.mubr.msk.bf16.mxu1 %vm10682_vm0, %v15139_v0 }
 0x149   : > { %8742 = vmatpush3.bf16.msra.mxu0 %v10369_v61  ;;  %8841 = vmatprep.subr.bf16.mxu1 %v15139_v0 }
 0x14a   : > { %8743 = vmatprep.subr.bf16.mxu0 %v15139_v0  ;;  %8842 = vmatpush3.bf16.msra.mxu1 %v10377_v3 }
 0x14b   : > { %8843 = vmatprep.subr.bf16.mxu1 %v15139_v0 }
 0x14d   : > { %8744 = vmatpush3.bf16.msra.mxu0 %v10370_v63 }
 0x14e   : > { %8745 = vmatprep.subr.bf16.mxu0 %v15139_v0  ;;  %8844 = vmatpush3.bf16.msra.mxu1 %v10378_v5 }
 0x14f   : > { %8562 = vmatmul.mubr.bf16.gmra.mrb[96].mxu0 %v10956_v28  ;;  %8662 = vmatmul.mubr.bf16.gmra.mrb[96].mxu1 %v10956_v28 }
 0x150   : > { %8565 = vmatprep.mubr.msk.bf16.mxu0 %vm10682_vm0, %v15139_v0  ;;  %8665 = vmatprep.mubr.msk.bf16.mxu1 %vm10682_vm0, %v15139_v0 }
 0x151   : > { %8746 = vmatpush3.bf16.msra.mxu0 %v10371_v2  ;;  %8845 = vmatprep.subr.bf16.mxu1 %v15139_v0 }
 0x152   : > { %8747 = vmatprep.subr.bf16.mxu0 %v15139_v0  ;;  %8846 = vmatpush3.bf16.msra.mxu1 %v10379_v6 }
 0x153   : > { %8847 = vmatprep.subr.bf16.mxu1 %v15139_v0 }
 0x155   : > { %8748 = vmatpush3.bf16.msra.mxu0 %v10375_v4 }
 0x156   : > { %8933 = vmatprep.subr.bf16.mxu0 %v15139_v0  ;;  %8848 = vmatpush3.bf16.msra.mxu1 %v10380_v7 }
 0x157   : > { %8566 = vmatmul.mubr.bf16.gmra.mrb[100].mxu0 %v10963_v32  ;;  %8666 = vmatmul.mubr.bf16.gmra.mrb[100].mxu1 %v10963_v32 }
 0x158   : > { %8569 = vmatprep.mubr.msk.bf16.mxu0 %vm10682_vm0, %v15139_v0  ;;  %8669 = vmatprep.mubr.msk.bf16.mxu1 %vm10682_vm0, %v15139_v0 }
 0x159   : > { %9033 = vmatprep.subr.bf16.mxu1 %v15139_v0 }
 0x15f   : > { %8570 = vmatmul.mubr.bf16.gmra.mrb[104].mxu0 %v10976_v36  ;;  %8670 = vmatmul.mubr.bf16.gmra.mrb[104].mxu1 %v10976_v36 }
 0x160   : > { %8573 = vmatprep.mubr.msk.bf16.mxu0 %vm10682_vm0, %v15139_v0  ;;  %8673 = vmatprep.mubr.msk.bf16.mxu1 %vm10682_vm0, %v15139_v0 }
 0x162   : > { %v11184_v10 = vpop.f32.mrb[0].mxu0  ;;  %v11186_v12 = vpop.f32.mrb[0].mxu1 }
 0x163   : > { %v8351_v11 = vpop.f32.mrb[1].mxu0  ;;  %v8451_v14 = vpop.f32.mrb[1].mxu1  ;;  %v15118_v15 = vrot.slane %v11184_v10, 5 }
 0x164   : > { %v545_v13 = vpop.f32.mrb[2].mxu0  ;;  %v11190_v20 = vpop.f32.mrb[2].mxu1 }
 0x165   : > { %v709_v17 = vrot.slane %v545_v13, 5  ;;  %v8352_v18 = vpop.f32.mrb[3].mxu0  ;;  %v8452_v21 = vpop.f32.mrb[3].mxu1 }
 0x167   : > { %8574 = vmatmul.mubr.bf16.gmra.mrb[108].mxu0 %v10993_v39  ;;  %v791_v23 = vsel %vm751_vm1, %v15118_v15, %v709_v17  ;;  %8674 = vmatmul.mubr.bf16.gmra.mrb[108].mxu1 %v10993_v39 }
 0x168   : > { %8577 = vmatprep.mubr.msk.bf16.mxu0 %vm10682_vm0, %v15139_v0  ;;  %8677 = vmatprep.mubr.msk.bf16.mxu1 %vm10682_vm0, %v15139_v0 }
 0x16a   : > { %v550_v24 = vpop.f32.mrb[4].mxu0  ;;  %v11202_v26 = vpop.f32.mrb[4].mxu1 }
 0x16b   : > { %v710_v25 = vrot.slane %v550_v24, 5  ;;  %v8355_v27 = vpop.f32.mrb[5].mxu0  ;;  %v8455_v29 = vpop.f32.mrb[5].mxu1 }
 0x16c   : > { %v553_v30 = vpop.f32.mrb[6].mxu0  ;;  %v886_v33 = vpop.f32.mrb[6].mxu1 }
 0x16d   : > { %v711_v31 = vrot.slane %v553_v30, 5  ;;  %v8356_v34 = vpop.f32.mrb[7].mxu0  ;;  %v790_v35 = vsel %vm751_vm1, %v709_v17, %v710_v25  ;;  %v11206_v37 = vadd.f32 %v886_v33, %v791_v23  ;;  %v8456_v38 = vpop.f32.mrb[7].mxu1 }
 0x16f   : > { %8578 = vmatmul.mubr.bf16.gmra.mrb[112].mxu0 %v10998_v40  ;;  %v789_v53 = vsel %vm751_vm1, %v710_v25, %v711_v31  ;;  %8678 = vmatmul.mubr.bf16.gmra.mrb[112].mxu1 %v10998_v40 }
 0x170   : > { %8581 = vmatprep.mubr.msk.bf16.mxu0 %vm10682_vm0, %v15139_v0  ;;  %8681 = vmatprep.mubr.msk.bf16.mxu1 %vm10682_vm0, %v15139_v0 }
 0x172   : > { %v558_v55 = vpop.f32.mrb[8].mxu0  ;;  %v891_v57 = vpop.f32.mrb[8].mxu1 }
 0x173   : > { %v712_v56 = vrot.slane %v558_v55, 5  ;;  %v8359_v58 = vpop.f32.mrb[9].mxu0  ;;  %v11216_v59 = vadd.f32 %v891_v57, %v790_v35  ;;  %v8459_v60 = vpop.f32.mrb[9].mxu1 }
 0x174   : > { %v561_v61 = vpop.f32.mrb[10].mxu0  ;;  %v894_v63 = vpop.f32.mrb[10].mxu1 }
 0x175   : > { %v713_v62 = vrot.slane %v561_v61, 5  ;;  %v8360_v1 = vpop.f32.mrb[11].mxu0  ;;  %v788_v2 = vsel %vm751_vm1, %v711_v31, %v712_v56  ;;  %v11220_v3 = vadd.f32 %v894_v63, %v789_v53  ;;  %v8460_v4 = vpop.f32.mrb[11].mxu1 }
 0x177   : > { %8582 = vmatmul.mubr.bf16.gmra.mrb[116].mxu0 %v11011_v41  ;;  %v787_v5 = vsel %vm751_vm1, %v712_v56, %v713_v62  ;;  %8682 = vmatmul.mubr.bf16.gmra.mrb[116].mxu1 %v11011_v41 }
 0x178   : > { %8585 = vmatprep.mubr.msk.bf16.mxu0 %vm10682_vm0, %v15139_v0  ;;  %8685 = vmatprep.mubr.msk.bf16.mxu1 %vm10682_vm0, %v15139_v0 }
 0x17a   : > { %v566_v6 = vpop.f32.mrb[12].mxu0  ;;  %v899_v11 = vpop.f32.mrb[12].mxu1 }
 0x17b   : > { %v714_v7 = vrot.slane %v566_v6, 5  ;;  %v8363_v13 = vpop.f32.mrb[13].mxu0  ;;  %v11230_v14 = vadd.f32 %v899_v11, %v788_v2  ;;  %v8463_v17 = vpop.f32.mrb[13].mxu1 }
 0x17c   : > { %v569_v18 = vpop.f32.mrb[14].mxu0  ;;  %v902_v23 = vpop.f32.mrb[14].mxu1 }
 0x17d   : > { %v715_v21 = vrot.slane %v569_v18, 5  ;;  %v8364_v24 = vpop.f32.mrb[15].mxu0  ;;  %v786_v25 = vsel %vm751_vm1, %v713_v62, %v714_v7  ;;  %v11234_v27 = vadd.f32 %v902_v23, %v787_v5  ;;  %v8464_v29 = vpop.f32.mrb[15].mxu1 }
 0x17f   : > { %8586 = vmatmul.mubr.bf16.gmra.mrb[120].mxu0 %v11016_v42  ;;  %v785_v30 = vsel %vm751_vm1, %v714_v7, %v715_v21  ;;  %8686 = vmatmul.mubr.bf16.gmra.mrb[120].mxu1 %v11016_v42 }
 0x180   : > { %8589 = vmatprep.mubr.msk.bf16.mxu0 %vm10682_vm0, %v15139_v0  ;;  %8689 = vmatprep.mubr.msk.bf16.mxu1 %vm10682_vm0, %v15139_v0 }
 0x182   : > { %v574_v31 = vpop.f32.mrb[16].mxu0  ;;  %v907_v34 = vpop.f32.mrb[16].mxu1 }
 0x183   : > { %v716_v33 = vrot.slane %v574_v31, 5  ;;  %v8367_v35 = vpop.f32.mrb[17].mxu0  ;;  %v11244_v38 = vadd.f32 %v907_v34, %v786_v25  ;;  %v8467_v53 = vpop.f32.mrb[17].mxu1 }
 0x184   : > { %v577_v55 = vpop.f32.mrb[18].mxu0  ;;  %v910_v57 = vpop.f32.mrb[18].mxu1 }
 0x185   : > { %v717_v56 = vrot.slane %v577_v55, 5  ;;  %v8368_v58 = vpop.f32.mrb[19].mxu0  ;;  %v784_v60 = vsel %vm751_vm1, %v715_v21, %v716_v33  ;;  %v11248_v61 = vadd.f32 %v910_v57, %v785_v30  ;;  %v8468_v62 = vpop.f32.mrb[19].mxu1 }
 0x187   : > { %8590 = vmatmul.mubr.bf16.gmra.mrb[124].mxu0 %v11025_v43  ;;  %v783_v63 = vsel %vm751_vm1, %v716_v33, %v717_v56  ;;  %8690 = vmatmul.mubr.bf16.gmra.mrb[124].mxu1 %v11025_v43 }
 0x188   : > { %8593 = vmatprep.mubr.msk.bf16.mxu0 %vm10682_vm0, %v15139_v0  ;;  %8693 = vmatprep.mubr.msk.bf16.mxu1 %vm10682_vm0, %v15139_v0 }
 0x18a   : > { %v582_v1 = vpop.f32.mrb[20].mxu0  ;;  %v915_v4 = vpop.f32.mrb[20].mxu1 }
 0x18b   : > { %v718_v2 = vrot.slane %v582_v1, 5  ;;  %v8371_v5 = vpop.f32.mrb[21].mxu0  ;;  %v11258_v6 = vadd.f32 %v915_v4, %v784_v60  ;;  %v8471_v7 = vpop.f32.mrb[21].mxu1 }
 0x18c   : > { %v585_v11 = vpop.f32.mrb[22].mxu0  ;;  %v918_v17 = vpop.f32.mrb[22].mxu1 }
 0x18d   : > { %v719_v13 = vrot.slane %v585_v11, 5  ;;  %v8372_v18 = vpop.f32.mrb[23].mxu0  ;;  %v782_v21 = vsel %vm751_vm1, %v717_v56, %v718_v2  ;;  %v11262_v23 = vadd.f32 %v918_v17, %v783_v63  ;;  %v8472_v24 = vpop.f32.mrb[23].mxu1 }
 0x18f   : > { %8594 = vmatmul.mubr.bf16.gmra.mrb[128].mxu0 %v11038_v44  ;;  %v781_v25 = vsel %vm751_vm1, %v718_v2, %v719_v13  ;;  %8694 = vmatmul.mubr.bf16.gmra.mrb[128].mxu1 %v11038_v44 }
 0x190   : > { %8597 = vmatprep.mubr.msk.bf16.mxu0 %vm10682_vm0, %v15139_v0  ;;  %8697 = vmatprep.mubr.msk.bf16.mxu1 %vm10682_vm0, %v15139_v0 }
 0x192   : > { %v590_v29 = vpop.f32.mrb[24].mxu0  ;;  %v923_v31 = vpop.f32.mrb[24].mxu1 }
 0x193   : > { %v720_v30 = vrot.slane %v590_v29, 5  ;;  %v8375_v33 = vpop.f32.mrb[25].mxu0  ;;  %v11272_v34 = vadd.f32 %v923_v31, %v782_v21  ;;  %v8475_v35 = vpop.f32.mrb[25].mxu1 }
 0x194   : > { %v593_v53 = vpop.f32.mrb[26].mxu0  ;;  %v926_v56 = vpop.f32.mrb[26].mxu1 }
 0x195   : > { %v721_v55 = vrot.slane %v593_v53, 5  ;;  %v8376_v57 = vpop.f32.mrb[27].mxu0  ;;  %v780_v58 = vsel %vm751_vm1, %v719_v13, %v720_v30  ;;  %v11276_v60 = vadd.f32 %v926_v56, %v781_v25  ;;  %v8476_v62 = vpop.f32.mrb[27].mxu1 }
 0x197   : > { %8598 = vmatmul.mubr.bf16.gmra.mrb[132].mxu0 %v11047_v45  ;;  %v779_v63 = vsel %vm751_vm1, %v720_v30, %v721_v55  ;;  %8698 = vmatmul.mubr.bf16.gmra.mrb[132].mxu1 %v11047_v45 }
 0x198   : > { %8601 = vmatprep.mubr.msk.bf16.mxu0 %vm10682_vm0, %v15139_v0  ;;  %8701 = vmatprep.mubr.msk.bf16.mxu1 %vm10682_vm0, %v15139_v0 }
 0x19a   : > { %v598_v1 = vpop.f32.mrb[28].mxu0  ;;  %v931_v4 = vpop.f32.mrb[28].mxu1 }
 0x19b   : > { %v722_v2 = vrot.slane %v598_v1, 5  ;;  %v8379_v5 = vpop.f32.mrb[29].mxu0  ;;  %v11286_v7 = vadd.f32 %v931_v4, %v780_v58  ;;  %v8479_v11 = vpop.f32.mrb[29].mxu1 }
 0x19c   : > { %v601_v13 = vpop.f32.mrb[30].mxu0  ;;  %v934_v18 = vpop.f32.mrb[30].mxu1 }
 0x19d   : > { %v723_v17 = vrot.slane %v601_v13, 5  ;;  %v8380_v21 = vpop.f32.mrb[31].mxu0  ;;  %v778_v24 = vsel %vm751_vm1, %v721_v55, %v722_v2  ;;  %v11290_v25 = vadd.f32 %v934_v18, %v779_v63  ;;  %v8480_v29 = vpop.f32.mrb[31].mxu1 }
 0x19f   : > { %8602 = vmatmul.mubr.bf16.gmra.mrb[136].mxu0 %v11056_v46  ;;  %v777_v30 = vsel %vm751_vm1, %v722_v2, %v723_v17  ;;  %8702 = vmatmul.mubr.bf16.gmra.mrb[136].mxu1 %v11056_v46 }
 0x1a0   : > { %8605 = vmatprep.mubr.msk.bf16.mxu0 %vm10682_vm0, %v15139_v0  ;;  %8705 = vmatprep.mubr.msk.bf16.mxu1 %vm10682_vm0, %v15139_v0 }
 0x1a2   : > { %v606_v31 = vpop.f32.mrb[32].mxu0  ;;  %v939_v35 = vpop.f32.mrb[32].mxu1 }
 0x1a3   : > { %v724_v33 = vrot.slane %v606_v31, 5  ;;  %v8383_v53 = vpop.f32.mrb[33].mxu0  ;;  %v11300_v55 = vadd.f32 %v939_v35, %v778_v24  ;;  %v8483_v56 = vpop.f32.mrb[33].mxu1 }
 0x1a4   : > { %v609_v57 = vpop.f32.mrb[34].mxu0  ;;  %v942_v62 = vpop.f32.mrb[34].mxu1 }
 0x1a5   : > { %v725_v58 = vrot.slane %v609_v57, 5  ;;  %v8384_v63 = vpop.f32.mrb[35].mxu0  ;;  %v776_v1 = vsel %vm751_vm1, %v723_v17, %v724_v33  ;;  %v11304_v2 = vadd.f32 %v942_v62, %v777_v30  ;;  %v8484_v4 = vpop.f32.mrb[35].mxu1 }
 0x1a7   : > { %8606 = vmatmul.mubr.bf16.gmra.mrb[140].mxu0 %v11065_v47  ;;  %v775_v5 = vsel %vm751_vm1, %v724_v33, %v725_v58  ;;  %8706 = vmatmul.mubr.bf16.gmra.mrb[140].mxu1 %v11065_v47 }
 0x1a8   : > { %8609 = vmatprep.mubr.msk.bf16.mxu0 %vm10682_vm0, %v15139_v0  ;;  %8709 = vmatprep.mubr.msk.bf16.mxu1 %vm10682_vm0, %v15139_v0 }
 0x1aa   : > { %v614_v11 = vpop.f32.mrb[36].mxu0  ;;  %v947_v18 = vpop.f32.mrb[36].mxu1 }
 0x1ab   : > { %v726_v13 = vrot.slane %v614_v11, 5  ;;  %v8387_v17 = vpop.f32.mrb[37].mxu0  ;;  %v11314_v21 = vadd.f32 %v947_v18, %v776_v1  ;;  %v8487_v24 = vpop.f32.mrb[37].mxu1 }
 0x1ac   : > { %v617_v29 = vpop.f32.mrb[38].mxu0  ;;  %v950_v31 = vpop.f32.mrb[38].mxu1 }
 0x1ad   : > { %v727_v30 = vrot.slane %v617_v29, 5  ;;  %v8388_v35 = vpop.f32.mrb[39].mxu0  ;;  %v774_v33 = vsel %vm751_vm1, %v725_v58, %v726_v13  ;;  %v11318_v53 = vadd.f32 %v950_v31, %v775_v5  ;;  %v8488_v56 = vpop.f32.mrb[39].mxu1 }
 0x1af   : > { %8610 = vmatmul.mubr.bf16.gmra.mrb[144].mxu0 %v11074_v48  ;;  %v773_v57 = vsel %vm751_vm1, %v726_v13, %v727_v30  ;;  %8710 = vmatmul.mubr.bf16.gmra.mrb[144].mxu1 %v11074_v48 }
 0x1b0   : > { %8613 = vmatprep.mubr.msk.bf16.mxu0 %vm10682_vm0, %v15139_v0  ;;  %8713 = vmatprep.mubr.msk.bf16.mxu1 %vm10682_vm0, %v15139_v0 }
 0x1b2   : > { %v622_v62 = vpop.f32.mrb[40].mxu0  ;;  %v955_v1 = vpop.f32.mrb[40].mxu1 }
 0x1b3   : > { %v728_v63 = vrot.slane %v622_v62, 5  ;;  %v8391_v58 = vpop.f32.mrb[41].mxu0  ;;  %v11328_v4 = vadd.f32 %v955_v1, %v774_v33  ;;  %v8491_v5 = vpop.f32.mrb[41].mxu1 }
 0x1b4   : > { %v625_v11 = vpop.f32.mrb[42].mxu0  ;;  %v958_v17 = vpop.f32.mrb[42].mxu1 }
 0x1b5   : > { %v729_v18 = vrot.slane %v625_v11, 5  ;;  %v8392_v24 = vpop.f32.mrb[43].mxu0  ;;  %v772_v13 = vsel %vm751_vm1, %v727_v30, %v728_v63  ;;  %v11332_v29 = vadd.f32 %v958_v17, %v773_v57  ;;  %v8492_v31 = vpop.f32.mrb[43].mxu1 }
 0x1b7   : > { %8614 = vmatmul.mubr.bf16.gmra.mrb[148].mxu0 %v11083_v49  ;;  %v771_v35 = vsel %vm751_vm1, %v728_v63, %v729_v18  ;;  %8714 = vmatmul.mubr.bf16.gmra.mrb[148].mxu1 %v11083_v49 }
 0x1b8   : > { %8617 = vmatprep.mubr.msk.bf16.mxu0 %vm10682_vm0, %v15139_v0  ;;  %8717 = vmatprep.mubr.msk.bf16.mxu1 %vm10682_vm0, %v15139_v0 }
 0x1ba   : > { %v630_v33 = vpop.f32.mrb[44].mxu0  ;;  %v963_v62 = vpop.f32.mrb[44].mxu1 }
 0x1bb   : > { %v730_v56 = vrot.slane %v630_v33, 5  ;;  %v8395_v30 = vpop.f32.mrb[45].mxu0  ;;  %v11342_v57 = vadd.f32 %v963_v62, %v772_v13  ;;  %v8495_v1 = vpop.f32.mrb[45].mxu1 }
 0x1bc   : > { %v633_v58 = vpop.f32.mrb[46].mxu0  ;;  %v966_v11 = vpop.f32.mrb[46].mxu1 }
 0x1bd   : > { %v731_v5 = vrot.slane %v633_v58, 5  ;;  %v8396_v17 = vpop.f32.mrb[47].mxu0  ;;  %v770_v63 = vsel %vm751_vm1, %v729_v18, %v730_v56  ;;  %v11346_v24 = vadd.f32 %v966_v11, %v771_v35  ;;  %v8496_v31 = vpop.f32.mrb[47].mxu1 }
 0x1bf   : > { %8618 = vmatmul.mubr.bf16.gmra.mrb[152].mxu0 %v11092_v50  ;;  %v769_v33 = vsel %vm751_vm1, %v730_v56, %v731_v5  ;;  %8718 = vmatmul.mubr.bf16.gmra.mrb[152].mxu1 %v11092_v50 }
 0x1c0   : > { %8621 = vmatprep.mubr.msk.bf16.mxu0 %vm10682_vm0, %v15139_v0  ;;  %8721 = vmatprep.mubr.msk.bf16.mxu1 %vm10682_vm0, %v15139_v0 }
 0x1c2   : > { %v638_v13 = vpop.f32.mrb[48].mxu0  ;;  %v971_v30 = vpop.f32.mrb[48].mxu1 }
 0x1c3   : > { %v732_v62 = vrot.slane %v638_v13, 5  ;;  %v8399_v18 = vpop.f32.mrb[49].mxu0  ;;  %v11356_v35 = vadd.f32 %v971_v30, %v770_v63  ;;  %v8499_v1 = vpop.f32.mrb[49].mxu1 }
 0x1c4   : > { %v641_v58 = vpop.f32.mrb[50].mxu0  ;;  %v974_v17 = vpop.f32.mrb[50].mxu1 }
 0x1c5   : > { %v733_v11 = vrot.slane %v641_v58, 5  ;;  %v8400_v31 = vpop.f32.mrb[51].mxu0  ;;  %v768_v56 = vsel %vm751_vm1, %v731_v5, %v732_v62  ;;  %v11360_v8 = vadd.f32 %v974_v17, %v769_v33  ;;  %v8500_v15 = vpop.f32.mrb[51].mxu1 }
 0x1c7   : > { %15287 = vst [vmem:[#allocation21_spill] sm:$0xff] %v11360_v8  ;;  %8622 = vmatmul.mubr.bf16.gmra.mrb[156].mxu0 %v11101_v51  ;;  %v767_v13 = vsel %vm751_vm1, %v732_v62, %v733_v11  ;;  %8722 = vmatmul.mubr.bf16.gmra.mrb[156].mxu1 %v11101_v51 }
 0x1c8   : > { %8625 = vmatprep.mubr.msk.bf16.mxu0 %vm10682_vm0, %v15139_v0  ;;  %8725 = vmatprep.mubr.msk.bf16.mxu1 %vm10682_vm0, %v15139_v0 }
 0x1ca   : > { %v646_v63 = vpop.f32.mrb[52].mxu0  ;;  %v979_v18 = vpop.f32.mrb[52].mxu1 }
 0x1cb   : > { %v734_v30 = vrot.slane %v646_v63, 5  ;;  %v8403_v5 = vpop.f32.mrb[53].mxu0  ;;  %v11370_v33 = vadd.f32 %v979_v18, %v768_v56  ;;  %v8503_v15 = vpop.f32.mrb[53].mxu1 }
 0x1cc   : > { %v649_v1 = vpop.f32.mrb[54].mxu0  ;;  %v982_v17 = vpop.f32.mrb[54].mxu1 }
 0x1cd   : > { %v735_v58 = vrot.slane %v649_v1, 5  ;;  %v8404_v31 = vpop.f32.mrb[55].mxu0  ;;  %v766_v62 = vsel %vm751_vm1, %v733_v11, %v734_v30  ;;  %v11374_v51 = vadd.f32 %v982_v17, %v767_v13  ;;  %v8504_v8 = vpop.f32.mrb[55].mxu1 }
 0x1cf   : > { %15288 = vst [vmem:[#allocation22_spill] sm:$0xff] %v11374_v51  ;;  %8626 = vmatmul.mubr.bf16.gmra.mrb[160].mxu0 %v11110_v52  ;;  %v765_v63 = vsel %vm751_vm1, %v734_v30, %v735_v58  ;;  %8726 = vmatmul.mubr.bf16.gmra.mrb[160].mxu1 %v11110_v52 }
 0x1d0   : > { %8629 = vmatprep.mubr.msk.bf16.mxu0 %vm10682_vm0, %v15139_v0  ;;  %8729 = vmatprep.mubr.msk.bf16.mxu1 %vm10682_vm0, %v15139_v0 }
 0x1d2   : > { %v654_v56 = vpop.f32.mrb[56].mxu0  ;;  %v987_v5 = vpop.f32.mrb[56].mxu1 }
 0x1d3   : > { %v736_v18 = vrot.slane %v654_v56, 5  ;;  %v8407_v11 = vpop.f32.mrb[57].mxu0  ;;  %v11384_v13 = vadd.f32 %v987_v5, %v766_v62  ;;  %v8507_v8 = vpop.f32.mrb[57].mxu1 }
 0x1d4   : > { %v657_v15 = vpop.f32.mrb[58].mxu0  ;;  %v990_v17 = vpop.f32.mrb[58].mxu1 }
 0x1d5   : > { %15289 = vst [vmem:[#allocation23_spill] sm:$0xff] %v11384_v13  ;;  %v737_v1 = vrot.slane %v657_v15, 5  ;;  %v8408_v31 = vpop.f32.mrb[59].mxu0  ;;  %v764_v30 = vsel %vm751_vm1, %v735_v58, %v736_v18  ;;  %v11388_v52 = vadd.f32 %v990_v17, %v765_v63  ;;  %v8508_v51 = vpop.f32.mrb[59].mxu1  ;;  %v10381_v15 = vld [vmem:[#allocation5 + $0x180] sm:$0xff]  }
 0x1d7   : > { %15290 = vst [vmem:[#allocation24_spill] sm:$0xff] %v11388_v52  ;;  %8630 = vmatmul.mubr.bf16.gmra.mrb[164].mxu0 %v11121_v54  ;;  %v763_v56 = vsel %vm751_vm1, %v736_v18, %v737_v1  ;;  %8730 = vmatmul.mubr.bf16.gmra.mrb[164].mxu1 %v11121_v54 }
 0x1d8   : > { %8749 = vmatprep.mubr.msk.bf16.mxu0 %vm10682_vm0, %v15139_v0  ;;  %8849 = vmatprep.mubr.msk.bf16.mxu1 %vm10682_vm0, %v15139_v0 }
 0x1da   : > { %v662_v62 = vpop.f32.mrb[60].mxu0  ;;  %v995_v11 = vpop.f32.mrb[60].mxu1 }
 0x1db   : > { %v738_v5 = vrot.slane %v662_v62, 5  ;;  %v8411_v58 = vpop.f32.mrb[61].mxu0  ;;  %v11398_v63 = vadd.f32 %v995_v11, %v764_v30  ;;  %v8511_v51 = vpop.f32.mrb[61].mxu1  ;;  %v10382_v30 = vld [vmem:[#allocation5 + $0x188] sm:$0xff]  }
 0x1dc   : > { %v665_v8 = vpop.f32.mrb[62].mxu0  ;;  %v998_v31 = vpop.f32.mrb[62].mxu1 }
 0x1dd   : > { %15291 = vst [vmem:[#allocation25_spill] sm:$0xff] %v11398_v63  ;;  %v739_v17 = vrot.slane %v665_v8, 5  ;;  %v8412_v18 = vpop.f32.mrb[63].mxu0  ;;  %v762_v54 = vsel %vm751_vm1, %v737_v1, %v738_v5  ;;  %v11402_v52 = vadd.f32 %v998_v31, %v763_v56  ;;  %v8512_v13 = vpop.f32.mrb[63].mxu1 }
 0x1df   : > { %15292 = vst [vmem:[#allocation26_spill] sm:$0xff] %v11402_v52  ;;  %8750 = vmatmul.mubr.bf16.vlgmr.msra.gmra.mrb[168].mxu0 %v10921_v16  ;;  %v761_v62 = vsel %vm751_vm1, %v738_v5, %v739_v17  ;;  %8850 = vmatmul.mubr.bf16.vlgmr.msra.gmra.mrb[168].mxu1 %v10921_v16  ;;  %v10383_v16 = vld [vmem:[#allocation5 + $0x190] sm:$0xff]  }
 0x1e0   : > { %8934 = vmatpush3.bf16.msra.mxu0 %v10381_v15  ;;  %8753 = vmatprep.mubr.msk.bf16.mxu0 %vm10682_vm0, %v15139_v0 }
 0x1e1   : > { %8853 = vmatprep.mubr.msk.bf16.mxu1 %vm10682_vm0, %v15139_v0  ;;  %8935 = vmatprep.subr.bf16.mxu0 %v15139_v0 }
 0x1e2   : > { %v670_v11 = vpop.f32.mrb[64].mxu0  ;;  %v1003_v13 = vpop.f32.mrb[64].mxu1 }
 0x1e3   : > { %v740_v1 = vrot.slane %v670_v11, 5  ;;  %v8415_v56 = vpop.f32.mrb[65].mxu0  ;;  %v11413_v58 = vadd.f32 %v1003_v13, %v762_v54  ;;  %v8515_v51 = vpop.f32.mrb[65].mxu1 }
 0x1e4   : > { %v673_v5 = vpop.f32.mrb[66].mxu0  ;;  %8936 = vmatpush3.bf16.msra.mxu0 %v10382_v30  ;;  %v1006_v15 = vpop.f32.mrb[66].mxu1  ;;  %v10388_v30 = vld [vmem:[#allocation5 + $0x1c0] sm:$0xff]  }
 0x1e5   : > { %15293 = vst [vmem:[#allocation27_spill] sm:$0xff] %v11413_v58  ;;  %v741_v8 = vrot.slane %v673_v5, 5  ;;  %v8416_v31 = vpop.f32.mrb[67].mxu0  ;;  %v760_v18 = vsel %vm751_vm1, %v739_v17, %v740_v1  ;;  %8937 = vmatprep.subr.bf16.mxu0 %v15139_v0  ;;  %v11418_v52 = vadd.f32 %v1006_v15, %v761_v62  ;;  %v8516_v63 = vpop.f32.mrb[67].mxu1  ;;  %v10384_v17 = vld [vmem:[#allocation5 + $0x198] sm:$0xff]   ;;  %9034 = vmatpush3.bf16.msra.mxu1 %v10388_v30 }
 0x1e6   : > { %9035 = vmatprep.subr.bf16.mxu1 %v15139_v0 }
 0x1e7   : > { %15294 = vst [vmem:[#allocation28_spill] sm:$0xff] %v11418_v52  ;;  %8754 = vmatmul.mubr.bf16.gmra.mrb[172].mxu0 %v10927_v19  ;;  %v759_v54 = vsel %vm751_vm1, %v740_v1, %v741_v8  ;;  %8854 = vmatmul.mubr.bf16.gmra.mrb[172].mxu1 %v10927_v19  ;;  %v10385_v19 = vld [vmem:[#allocation5 + $0x1a0] sm:$0xff]   ;;  %v10389_v52 = vld [vmem:[#allocation5 + $0x1c8] sm:$0xff]  }
 0x1e8   : > { %8757 = vmatprep.mubr.msk.bf16.mxu0 %vm10682_vm0, %v15139_v0  ;;  %8857 = vmatprep.mubr.msk.bf16.mxu1 %vm10682_vm0, %v15139_v0 }
 0x1e9   : > { %8938 = vmatpush3.bf16.msra.mxu0 %v10383_v16  ;;  %9036 = vmatpush3.bf16.msra.mxu1 %v10389_v52 }
 0x1ea   : > { %v678_v11 = vpop.f32.mrb[68].mxu0  ;;  %8939 = vmatprep.subr.bf16.mxu0 %v15139_v0  ;;  %v1011_v62 = vpop.f32.mrb[68].mxu1  ;;  %9037 = vmatprep.subr.bf16.mxu1 %v15139_v0 }
 0x1eb   : > { %v742_v63 = vrot.slane %v678_v11, 5  ;;  %v8419_v13 = vpop.f32.mrb[69].mxu0  ;;  %v11429_v56 = vadd.f32 %v1011_v62, %v760_v18  ;;  %v8519_v1 = vpop.f32.mrb[69].mxu1 }
 0x1ec   : > { %v681_v51 = vpop.f32.mrb[70].mxu0  ;;  %v1014_v15 = vpop.f32.mrb[70].mxu1 }
 0x1ed   : > { %v743_v5 = vrot.slane %v681_v51, 5  ;;  %v8420_v31 = vpop.f32.mrb[71].mxu0  ;;  %v758_v16 = vsel %vm751_vm1, %v741_v8, %v742_v63  ;;  %8940 = vmatpush3.bf16.msra.mxu0 %v10384_v17  ;;  %v11434_v58 = vadd.f32 %v1014_v15, %v759_v54  ;;  %v8520_v11 = vpop.f32.mrb[71].mxu1  ;;  %v10386_v8 = vld [vmem:[#allocation5 + $0x1a8] sm:$0xff]   ;;  %v10390_v54 = vld [vmem:[#allocation5 + $0x1d0] sm:$0xff]  }
 0x1ee   : > { %8941 = vmatprep.subr.bf16.mxu0 %v15139_v0  ;;  %9038 = vmatpush3.bf16.msra.mxu1 %v10390_v54  ;;  %v10387_v11 = vld [vmem:[#allocation5 + $0x1b0] sm:$0xff]  }
 0x1ef   : > { %15295 = vst [vmem:[#allocation29_spill] sm:$0xff] %v11434_v58  ;;  %8758 = vmatmul.mubr.bf16.gmra.mrb[176].mxu0 %v10939_v22  ;;  %v757_v18 = vsel %vm751_vm1, %v742_v63, %v743_v5  ;;  %8858 = vmatmul.mubr.bf16.gmra.mrb[176].mxu1 %v10939_v22  ;;  %v10392_v22 = vld [vmem:[#allocation5 + $0x1d8] sm:$0xff]  }
 0x1f0   : > { %8761 = vmatprep.mubr.msk.bf16.mxu0 %vm10682_vm0, %v15139_v0  ;;  %8861 = vmatprep.mubr.msk.bf16.mxu1 %vm10682_vm0, %v15139_v0 }
 0x1f1   : > { %8942 = vmatpush3.bf16.msra.mxu0 %v10385_v19  ;;  %9039 = vmatprep.subr.bf16.mxu1 %v15139_v0 }
 0x1f2   : > { %v686_v17 = vpop.f32.mrb[72].mxu0  ;;  %8943 = vmatprep.subr.bf16.mxu0 %v15139_v0  ;;  %v1019_v62 = vpop.f32.mrb[72].mxu1  ;;  %9040 = vmatpush3.bf16.msra.mxu1 %v10392_v22 }
 0x1f3   : > { %v744_v30 = vrot.slane %v686_v17, 5  ;;  %v8423_v63 = vpop.f32.mrb[73].mxu0  ;;  %v11447_v52 = vadd.f32 %v1019_v62, %v758_v16  ;;  %v8523_v13 = vpop.f32.mrb[73].mxu1  ;;  %9041 = vmatprep.subr.bf16.mxu1 %v15139_v0 }
 0x1f4   : > { %v689_v1 = vpop.f32.mrb[74].mxu0  ;;  %v1022_v15 = vpop.f32.mrb[74].mxu1 }
 0x1f5   : > { %v745_v51 = vrot.slane %v689_v1, 5  ;;  %v8424_v19 = vpop.f32.mrb[75].mxu0  ;;  %v756_v31 = vsel %vm751_vm1, %v743_v5, %v744_v30  ;;  %8944 = vmatpush3.bf16.msra.mxu0 %v10386_v8  ;;  %v11452_v58 = vadd.f32 %v1022_v15, %v757_v18  ;;  %v8524_v17 = vpop.f32.mrb[75].mxu1  ;;  %v10391_v5 = vld [vmem:[#allocation5 + $0x1b8] sm:$0xff]   ;;  %v10393_v18 = vld [vmem:[#allocation5 + $0x1e0] sm:$0xff]  }
 0x1f6   : > { %8945 = vmatprep.subr.bf16.mxu0 %v15139_v0  ;;  %9042 = vmatpush3.bf16.msra.mxu1 %v10393_v18  ;;  %v10394_v17 = vld [vmem:[#allocation5 + $0x1e8] sm:$0xff]  }
 0x1f7   : > { %8762 = vmatmul.mubr.bf16.gmra.mrb[180].mxu0 %v10956_v28  ;;  %v755_v16 = vsel %vm751_vm1, %v744_v30, %v745_v51  ;;  %8862 = vmatmul.mubr.bf16.gmra.mrb[180].mxu1 %v10956_v28 }
 0x1f8   : > { %8765 = vmatprep.mubr.msk.bf16.mxu0 %vm10682_vm0, %v15139_v0  ;;  %8865 = vmatprep.mubr.msk.bf16.mxu1 %vm10682_vm0, %v15139_v0 }
 0x1f9   : > { %8946 = vmatpush3.bf16.msra.mxu0 %v10387_v11  ;;  %9043 = vmatprep.subr.bf16.mxu1 %v15139_v0 }
 0x1fa   : > { %v694_v8 = vpop.f32.mrb[76].mxu0  ;;  %8947 = vmatprep.subr.bf16.mxu0 %v15139_v0  ;;  %v1027_v62 = vpop.f32.mrb[76].mxu1  ;;  %9044 = vmatpush3.bf16.msra.mxu1 %v10394_v17 }
 0x1fb   : > { %v746_v54 = vrot.slane %v694_v8, 5  ;;  %v8427_v30 = vpop.f32.mrb[77].mxu0  ;;  %v11465_v22 = vadd.f32 %v1027_v62, %v756_v31  ;;  %v8527_v63 = vpop.f32.mrb[77].mxu1  ;;  %9045 = vmatprep.subr.bf16.mxu1 %v15139_v0 }
 0x1fc   : > { %v697_v13 = vpop.f32.mrb[78].mxu0  ;;  %v1030_v15 = vpop.f32.mrb[78].mxu1 }
 0x1fd   : > { %v747_v1 = vrot.slane %v697_v13, 5  ;;  %v8428_v19 = vpop.f32.mrb[79].mxu0  ;;  %v754_v11 = vsel %vm751_vm1, %v745_v51, %v746_v54  ;;  %8948 = vmatpush3.bf16.msra.mxu0 %v10391_v5  ;;  %v11470_v28 = vadd.f32 %v1030_v15, %v755_v16  ;;  %v8528_v8 = vpop.f32.mrb[79].mxu1  ;;  %v10395_v51 = vld [vmem:[#allocation5 + $0x1f0] sm:$0xff]   ;;  %v15296_v15 = vrot.slane %v11184_v10, 5 }
 0x1fe   : > { %9133 = vmatprep.subr.bf16.mxu0 %v15139_v0  ;;  %9046 = vmatpush3.bf16.msra.mxu1 %v10395_v51 }
 0x1ff   : > { %v753_v31 = vsel %vm751_vm1, %v746_v54, %v747_v1  ;;  %8766 = vmatmul.mubr.bf16.gmra.mrb[184].mxu0 %v10963_v32  ;;  %8866 = vmatmul.mubr.bf16.gmra.mrb[184].mxu1 %v10963_v32 }
 0x200   : > { %v11477_v18 = vadd.f32 %v11186_v12, %v753_v31  ;;  %8769 = vmatprep.mubr.msk.bf16.mxu0 %vm10682_vm0, %v15139_v0  ;;  %8869 = vmatprep.mubr.msk.bf16.mxu1 %vm10682_vm0, %v15139_v0  ;;  %v10396_v31 = vld [vmem:[#allocation5 + $0x1f8] sm:$0xff]  }
 0x201   : > { %9047 = vmatprep.subr.bf16.mxu1 %v15139_v0 }
 0x202   : > { %v702_v16 = vpop.f32.mrb[80].mxu0  ;;  %v1035_v54 = vpop.f32.mrb[80].mxu1  ;;  %9048 = vmatpush3.bf16.msra.mxu1 %v10396_v31 }
 0x203   : > { %v748_v5 = vrot.slane %v702_v16, 5  ;;  %v8431_v62 = vpop.f32.mrb[81].mxu0  ;;  %v11485_v30 = vadd.f32 %v1035_v54, %v754_v11  ;;  %v8531_v63 = vpop.f32.mrb[81].mxu1  ;;  %9233 = vmatprep.subr.bf16.mxu1 %v15139_v0 }
 0x204   : > { %v705_v12 = vpop.f32.mrb[82].mxu0  ;;  %v1038_v8 = vpop.f32.mrb[82].mxu1 }
 0x205   : > { %v752_v13 = vsel %vm751_vm1, %v747_v1, %v748_v5  ;;  %v792_v19 = vsel %vm751_vm1, %v748_v5, %v15296_v15  ;;  %v8432_v17 = vpop.f32.mrb[83].mxu0  ;;  %v8532_v51 = vpop.f32.mrb[83].mxu1 }
 0x206   : > { %v11495_v16 = vadd.f32 %v11190_v20, %v752_v13  ;;  %v11498_v11 = vadd.f32 %v11202_v26, %v792_v19 }
 0x207   : > { %8770 = vmatmul.mubr.bf16.gmra.mrb[188].mxu0 %v10976_v36  ;;  %8870 = vmatmul.mubr.bf16.gmra.mrb[188].mxu1 %v10976_v36 }
 0x208   : > { %8773 = vmatprep.mubr.msk.bf16.mxu0 %vm10682_vm0, %v15139_v0  ;;  %8873 = vmatprep.mubr.msk.bf16.mxu1 %vm10682_vm0, %v15139_v0 }
 0x20a   : > { %v11507_v10 = vpop.f32.mrb[84].mxu0  ;;  %v11509_v1 = vpop.f32.mrb[84].mxu1 }
 0x20b   : > { %v8551_v20 = vpop.f32.mrb[85].mxu0  ;;  %v15133_v5 = vrot.slane %v11509_v1, 7  ;;  %v8651_v54 = vpop.f32.mrb[85].mxu1  ;;  %v15134_v62 = vrot.slane %v11507_v10, 6 }
 0x20c   : > { %v1143_v26 = vpop.f32.mrb[86].mxu0  ;;  %v1532_v13 = vpop.f32.mrb[86].mxu1 }
 0x20d   : > { %v1307_v12 = vrot.slane %v1143_v26, 6  ;;  %v8552_v63 = vpop.f32.mrb[87].mxu0  ;;  %v1696_v15 = vrot.slane %v1532_v13, 7  ;;  %v8652_v19 = vpop.f32.mrb[87].mxu1 }
 0x20f   : > { %v1387_v17 = vsel %vm1347_vm2, %v15134_v62, %v1307_v12  ;;  %8774 = vmatmul.mubr.bf16.gmra.mrb[192].mxu0 %v10993_v39  ;;  %v1776_v31 = vsel %vm1736_vm3, %v15133_v5, %v1696_v15  ;;  %8874 = vmatmul.mubr.bf16.gmra.mrb[192].mxu1 %v10993_v39 }
 0x210   : > { %v1392_v8 = vadd.f32 %v1387_v17, %v11206_v37  ;;  %8777 = vmatprep.mubr.msk.bf16.mxu0 %vm10682_vm0, %v15139_v0  ;;  %8877 = vmatprep.mubr.msk.bf16.mxu1 %vm10682_vm0, %v15139_v0 }
 0x212   : > { %v11530_v51 = vadd.f32 %v1776_v31, %v1392_v8  ;;  %v1148_v20 = vpop.f32.mrb[88].mxu0  ;;  %v1537_v63 = vpop.f32.mrb[88].mxu1 }
 0x213   : > { %v1308_v26 = vrot.slane %v1148_v20, 6  ;;  %v8555_v54 = vpop.f32.mrb[89].mxu0  ;;  %v1697_v13 = vrot.slane %v1537_v63, 7  ;;  %v8655_v19 = vpop.f32.mrb[89].mxu1 }
 0x214   : > { %v1151_v37 = vpop.f32.mrb[90].mxu0  ;;  %v1540_v39 = vpop.f32.mrb[90].mxu1 }
 0x215   : > { %v1386_v17 = vsel %vm1347_vm2, %v1307_v12, %v1308_v26  ;;  %v1309_v5 = vrot.slane %v1151_v37, 6  ;;  %v8556_v62 = vpop.f32.mrb[91].mxu0  ;;  %v1775_v0 = vsel %vm1736_vm3, %v1696_v15, %v1697_v13  ;;  %v1698_v8 = vrot.slane %v1540_v39, 7  ;;  %v8656_v31 = vpop.f32.mrb[91].mxu1 }
 0x216   : > { %v1393_v36 = vadd.f32 %v1386_v17, %v11216_v59  ;;  %v15298_v59 = vmov 0.0  }
 0x217   : > { %v1385_v20 = vsel %vm1347_vm2, %v1308_v26, %v1309_v5  ;;  %8778 = vmatmul.mubr.bf16.gmra.mrb[196].mxu0 %v10998_v40  ;;  %v1774_v62 = vsel %vm1736_vm3, %v1697_v13, %v1698_v8  ;;  %8878 = vmatmul.mubr.bf16.gmra.mrb[196].mxu1 %v10998_v40 }
 0x218   : > { %v1394_v54 = vadd.f32 %v1385_v20, %v11220_v3  ;;  %v11541_v63 = vadd.f32 %v1775_v0, %v1393_v36  ;;  %8781 = vmatprep.mubr.msk.bf16.mxu0 %vm10682_vm0, %v15298_v59  ;;  %8881 = vmatprep.mubr.msk.bf16.mxu1 %vm10682_vm0, %v15298_v59 }
 0x21a   : > { %15297 = vst [vmem:[#allocation30_spill] sm:$0xff] %v11541_v63  ;;  %v11550_v39 = vadd.f32 %v1774_v62, %v1394_v54  ;;  %v1156_v12 = vpop.f32.mrb[92].mxu0  ;;  %v1545_v37 = vpop.f32.mrb[92].mxu1 }
 0x21b   : > { %v1310_v15 = vrot.slane %v1156_v12, 6  ;;  %v8559_v26 = vpop.f32.mrb[93].mxu0  ;;  %v1699_v0 = vrot.slane %v1545_v37, 7  ;;  %v8659_v36 = vpop.f32.mrb[93].mxu1 }
 0x21c   : > { %v1159_v3 = vpop.f32.mrb[94].mxu0  ;;  %v1548_v31 = vpop.f32.mrb[94].mxu1 }
 0x21d   : > { %v1384_v13 = vsel %vm1347_vm2, %v1309_v5, %v1310_v15  ;;  %v1311_v19 = vrot.slane %v1159_v3, 6  ;;  %v8560_v17 = vpop.f32.mrb[95].mxu0  ;;  %v1773_v63 = vsel %vm1736_vm3, %v1698_v8, %v1699_v0  ;;  %v1700_v54 = vrot.slane %v1548_v31, 7  ;;  %v8660_v62 = vpop.f32.mrb[95].mxu1 }
 0x21e   : > { %v1395_v20 = vadd.f32 %v1384_v13, %v11230_v14 }
 0x21f   : > { %v1383_v12 = vsel %vm1347_vm2, %v1310_v15, %v1311_v19  ;;  %8782 = vmatmul.mubr.bf16.gmra.mrb[200].mxu0 %v11011_v41  ;;  %v1772_v5 = vsel %vm1736_vm3, %v1699_v0, %v1700_v54  ;;  %8882 = vmatmul.mubr.bf16.gmra.mrb[200].mxu1 %v11011_v41 }
 0x220   : > { %v1396_v26 = vadd.f32 %v1383_v12, %v11234_v27  ;;  %v11561_v37 = vadd.f32 %v1773_v63, %v1395_v20  ;;  %8785 = vmatprep.mubr.msk.bf16.mxu0 %vm10682_vm0, %v15298_v59  ;;  %8885 = vmatprep.mubr.msk.bf16.mxu1 %vm10682_vm0, %v15298_v59 }
 0x222   : > { %v11570_v14 = vadd.f32 %v1772_v5, %v1396_v26  ;;  %v1164_v8 = vpop.f32.mrb[96].mxu0  ;;  %v1553_v36 = vpop.f32.mrb[96].mxu1 }
 0x223   : > { %v1312_v15 = vrot.slane %v1164_v8, 6  ;;  %v8563_v3 = vpop.f32.mrb[97].mxu0  ;;  %v1701_v63 = vrot.slane %v1553_v36, 7  ;;  %v8663_v13 = vpop.f32.mrb[97].mxu1 }
 0x224   : > { %v1167_v27 = vpop.f32.mrb[98].mxu0  ;;  %v1556_v20 = vpop.f32.mrb[98].mxu1 }
 0x225   : > { %v1382_v0 = vsel %vm1347_vm2, %v1311_v19, %v1312_v15  ;;  %v1313_v17 = vrot.slane %v1167_v27, 6  ;;  %v8564_v31 = vpop.f32.mrb[99].mxu0  ;;  %v1771_v12 = vsel %vm1736_vm3, %v1700_v54, %v1701_v63  ;;  %v1702_v26 = vrot.slane %v1556_v20, 7  ;;  %v8664_v5 = vpop.f32.mrb[99].mxu1 }
 0x226   : > { %v1397_v62 = vadd.f32 %v1382_v0, %v11244_v38 }
 0x227   : > { %v1381_v8 = vsel %vm1347_vm2, %v1312_v15, %v1313_v17  ;;  %8786 = vmatmul.mubr.bf16.gmra.mrb[204].mxu0 %v11016_v42  ;;  %v1770_v19 = vsel %vm1736_vm3, %v1701_v63, %v1702_v26  ;;  %8886 = vmatmul.mubr.bf16.gmra.mrb[204].mxu1 %v11016_v42 }
 0x228   : > { %v1398_v3 = vadd.f32 %v1381_v8, %v11248_v61  ;;  %v11581_v36 = vadd.f32 %v1771_v12, %v1397_v62  ;;  %8789 = vmatprep.mubr.msk.bf16.mxu0 %vm10682_vm0, %v15298_v59  ;;  %8889 = vmatprep.mubr.msk.bf16.mxu1 %vm10682_vm0, %v15298_v59 }
 0x22a   : > { %v11590_v38 = vadd.f32 %v1770_v19, %v1398_v3  ;;  %v1172_v54 = vpop.f32.mrb[100].mxu0  ;;  %v1561_v13 = vpop.f32.mrb[100].mxu1 }
 0x22b   : > { %v1314_v15 = vrot.slane %v1172_v54, 6  ;;  %v8567_v27 = vpop.f32.mrb[101].mxu0  ;;  %v1703_v0 = vrot.slane %v1561_v13, 7  ;;  %v8667_v31 = vpop.f32.mrb[101].mxu1 }
 0x22c   : > { %v1175_v61 = vpop.f32.mrb[102].mxu0  ;;  %v1564_v12 = vpop.f32.mrb[102].mxu1 }
 0x22d   : > { %v1380_v63 = vsel %vm1347_vm2, %v1313_v17, %v1314_v15  ;;  %v1315_v20 = vrot.slane %v1175_v61, 6  ;;  %v8568_v62 = vpop.f32.mrb[103].mxu0  ;;  %v1769_v8 = vsel %vm1736_vm3, %v1702_v26, %v1703_v0  ;;  %v1704_v3 = vrot.slane %v1564_v12, 7  ;;  %v8668_v19 = vpop.f32.mrb[103].mxu1 }
 0x22e   : > { %v1399_v5 = vadd.f32 %v1380_v63, %v11258_v6 }
 0x22f   : > { %v1379_v54 = vsel %vm1347_vm2, %v1314_v15, %v1315_v20  ;;  %8790 = vmatmul.mubr.bf16.gmra.mrb[208].mxu0 %v11025_v43  ;;  %v1768_v17 = vsel %vm1736_vm3, %v1703_v0, %v1704_v3  ;;  %8890 = vmatmul.mubr.bf16.gmra.mrb[208].mxu1 %v11025_v43 }
 0x230   : > { %v1400_v27 = vadd.f32 %v1379_v54, %v11262_v23  ;;  %v11601_v13 = vadd.f32 %v1769_v8, %v1399_v5  ;;  %8793 = vmatprep.mubr.msk.bf16.mxu0 %vm10682_vm0, %v15298_v59  ;;  %8893 = vmatprep.mubr.msk.bf16.mxu1 %vm10682_vm0, %v15298_v59 }
 0x232   : > { %v11610_v6 = vadd.f32 %v1768_v17, %v1400_v27  ;;  %v1180_v26 = vpop.f32.mrb[104].mxu0  ;;  %v1569_v31 = vpop.f32.mrb[104].mxu1 }
 0x233   : > { %v1316_v15 = vrot.slane %v1180_v26, 6  ;;  %v8571_v61 = vpop.f32.mrb[105].mxu0  ;;  %v1705_v63 = vrot.slane %v1569_v31, 7  ;;  %v8671_v62 = vpop.f32.mrb[105].mxu1 }
 0x234   : > { %v1183_v23 = vpop.f32.mrb[106].mxu0  ;;  %v1572_v8 = vpop.f32.mrb[106].mxu1 }
 0x235   : > { %v1378_v0 = vsel %vm1347_vm2, %v1315_v20, %v1316_v15  ;;  %v1317_v12 = vrot.slane %v1183_v23, 6  ;;  %v8572_v5 = vpop.f32.mrb[107].mxu0  ;;  %v1767_v54 = vsel %vm1736_vm3, %v1704_v3, %v1705_v63  ;;  %v1706_v27 = vrot.slane %v1572_v8, 7  ;;  %v8672_v17 = vpop.f32.mrb[107].mxu1 }
 0x236   : > { %v1401_v19 = vadd.f32 %v1378_v0, %v11272_v34 }
 0x237   : > { %v1377_v26 = vsel %vm1347_vm2, %v1316_v15, %v1317_v12  ;;  %8794 = vmatmul.mubr.bf16.gmra.mrb[212].mxu0 %v11038_v44  ;;  %v1766_v20 = vsel %vm1736_vm3, %v1705_v63, %v1706_v27  ;;  %8894 = vmatmul.mubr.bf16.gmra.mrb[212].mxu1 %v11038_v44 }
 0x238   : > { %v1402_v61 = vadd.f32 %v1377_v26, %v11276_v60  ;;  %v11621_v31 = vadd.f32 %v1767_v54, %v1401_v19  ;;  %8797 = vmatprep.mubr.msk.bf16.mxu0 %vm10682_vm0, %v15298_v59  ;;  %8897 = vmatprep.mubr.msk.bf16.mxu1 %vm10682_vm0, %v15298_v59 }
 0x23a   : > { %v11630_v34 = vadd.f32 %v1766_v20, %v1402_v61  ;;  %v1188_v3 = vpop.f32.mrb[108].mxu0  ;;  %v1577_v62 = vpop.f32.mrb[108].mxu1 }
 0x23b   : > { %v1318_v15 = vrot.slane %v1188_v3, 6  ;;  %v8575_v23 = vpop.f32.mrb[109].mxu0  ;;  %v1707_v0 = vrot.slane %v1577_v62, 7  ;;  %v8675_v5 = vpop.f32.mrb[109].mxu1 }
 0x23c   : > { %v1191_v60 = vpop.f32.mrb[110].mxu0  ;;  %v1580_v54 = vpop.f32.mrb[110].mxu1 }
 0x23d   : > { %v1376_v63 = vsel %vm1347_vm2, %v1317_v12, %v1318_v15  ;;  %v1319_v8 = vrot.slane %v1191_v60, 6  ;;  %v8576_v19 = vpop.f32.mrb[111].mxu0  ;;  %v1765_v26 = vsel %vm1736_vm3, %v1706_v27, %v1707_v0  ;;  %v1708_v61 = vrot.slane %v1580_v54, 7  ;;  %v8676_v20 = vpop.f32.mrb[111].mxu1 }
 0x23e   : > { %v1403_v17 = vadd.f32 %v1376_v63, %v11286_v7 }
 0x23f   : > { %v1375_v3 = vsel %vm1347_vm2, %v1318_v15, %v1319_v8  ;;  %8798 = vmatmul.mubr.bf16.gmra.mrb[216].mxu0 %v11047_v45  ;;  %v1764_v12 = vsel %vm1736_vm3, %v1707_v0, %v1708_v61  ;;  %8898 = vmatmul.mubr.bf16.gmra.mrb[216].mxu1 %v11047_v45 }
 0x240   : > { %v1404_v23 = vadd.f32 %v1375_v3, %v11290_v25  ;;  %v11641_v62 = vadd.f32 %v1765_v26, %v1403_v17  ;;  %8801 = vmatprep.mubr.msk.bf16.mxu0 %vm10682_vm0, %v15298_v59  ;;  %8901 = vmatprep.mubr.msk.bf16.mxu1 %vm10682_vm0, %v15298_v59 }
 0x242   : > { %v11650_v7 = vadd.f32 %v1764_v12, %v1404_v23  ;;  %v1196_v27 = vpop.f32.mrb[112].mxu0  ;;  %v1585_v5 = vpop.f32.mrb[112].mxu1 }
 0x243   : > { %v1320_v15 = vrot.slane %v1196_v27, 6  ;;  %v8579_v60 = vpop.f32.mrb[113].mxu0  ;;  %v1709_v63 = vrot.slane %v1585_v5, 7  ;;  %v8679_v19 = vpop.f32.mrb[113].mxu1 }
 0x244   : > { %v1199_v25 = vpop.f32.mrb[114].mxu0  ;;  %v1588_v26 = vpop.f32.mrb[114].mxu1 }
 0x245   : > { %v1374_v0 = vsel %vm1347_vm2, %v1319_v8, %v1320_v15  ;;  %v1321_v54 = vrot.slane %v1199_v25, 6  ;;  %v8580_v17 = vpop.f32.mrb[115].mxu0  ;;  %v1763_v3 = vsel %vm1736_vm3, %v1708_v61, %v1709_v63  ;;  %v1710_v23 = vrot.slane %v1588_v26, 7  ;;  %v8680_v12 = vpop.f32.mrb[115].mxu1 }
 0x246   : > { %v1405_v20 = vadd.f32 %v1374_v0, %v11300_v55 }
 0x247   : > { %v1373_v27 = vsel %vm1347_vm2, %v1320_v15, %v1321_v54  ;;  %8802 = vmatmul.mubr.bf16.gmra.mrb[220].mxu0 %v11056_v46  ;;  %v1762_v8 = vsel %vm1736_vm3, %v1709_v63, %v1710_v23  ;;  %8902 = vmatmul.mubr.bf16.gmra.mrb[220].mxu1 %v11056_v46 }
 0x248   : > { %v1406_v60 = vadd.f32 %v1373_v27, %v11304_v2  ;;  %v11661_v5 = vadd.f32 %v1763_v3, %v1405_v20  ;;  %8805 = vmatprep.mubr.msk.bf16.mxu0 %vm10682_vm0, %v15298_v59  ;;  %8905 = vmatprep.mubr.msk.bf16.mxu1 %vm10682_vm0, %v15298_v59 }
 0x24a   : > { %v11670_v55 = vadd.f32 %v1762_v8, %v1406_v60  ;;  %v1204_v61 = vpop.f32.mrb[116].mxu0  ;;  %v1593_v19 = vpop.f32.mrb[116].mxu1 }
 0x24b   : > { %v1322_v15 = vrot.slane %v1204_v61, 6  ;;  %v8583_v25 = vpop.f32.mrb[117].mxu0  ;;  %v1711_v0 = vrot.slane %v1593_v19, 7  ;;  %v8683_v17 = vpop.f32.mrb[117].mxu1 }
 0x24c   : > { %v1207_v2 = vpop.f32.mrb[118].mxu0  ;;  %v1596_v3 = vpop.f32.mrb[118].mxu1 }
 0x24d   : > { %v1372_v63 = vsel %vm1347_vm2, %v1321_v54, %v1322_v15  ;;  %v1323_v26 = vrot.slane %v1207_v2, 6  ;;  %v8584_v20 = vpop.f32.mrb[119].mxu0  ;;  %v1761_v27 = vsel %vm1736_vm3, %v1710_v23, %v1711_v0  ;;  %v1712_v60 = vrot.slane %v1596_v3, 7  ;;  %v8684_v8 = vpop.f32.mrb[119].mxu1 }
 0x24e   : > { %v1407_v12 = vadd.f32 %v1372_v63, %v11314_v21 }
 0x24f   : > { %v1371_v61 = vsel %vm1347_vm2, %v1322_v15, %v1323_v26  ;;  %8806 = vmatmul.mubr.bf16.gmra.mrb[224].mxu0 %v11065_v47  ;;  %v1760_v54 = vsel %vm1736_vm3, %v1711_v0, %v1712_v60  ;;  %8906 = vmatmul.mubr.bf16.gmra.mrb[224].mxu1 %v11065_v47 }
 0x250   : > { %v1408_v25 = vadd.f32 %v1371_v61, %v11318_v53  ;;  %v11681_v19 = vadd.f32 %v1761_v27, %v1407_v12  ;;  %8809 = vmatprep.mubr.msk.bf16.mxu0 %vm10682_vm0, %v15298_v59  ;;  %8909 = vmatprep.mubr.msk.bf16.mxu1 %vm10682_vm0, %v15298_v59 }
 0x252   : > { %v11690_v21 = vadd.f32 %v1760_v54, %v1408_v25  ;;  %v1212_v23 = vpop.f32.mrb[120].mxu0  ;;  %v1601_v17 = vpop.f32.mrb[120].mxu1 }
 0x253   : > { %v1324_v15 = vrot.slane %v1212_v23, 6  ;;  %v8587_v2 = vpop.f32.mrb[121].mxu0  ;;  %v1713_v63 = vrot.slane %v1601_v17, 7  ;;  %v8687_v20 = vpop.f32.mrb[121].mxu1 }
 0x254   : > { %v1215_v53 = vpop.f32.mrb[122].mxu0  ;;  %v1604_v27 = vpop.f32.mrb[122].mxu1 }
 0x255   : > { %v1370_v0 = vsel %vm1347_vm2, %v1323_v26, %v1324_v15  ;;  %v1325_v3 = vrot.slane %v1215_v53, 6  ;;  %v8588_v12 = vpop.f32.mrb[123].mxu0  ;;  %v1759_v61 = vsel %vm1736_vm3, %v1712_v60, %v1713_v63  ;;  %v1714_v25 = vrot.slane %v1604_v27, 7  ;;  %v8688_v54 = vpop.f32.mrb[123].mxu1 }
 0x256   : > { %v1409_v8 = vadd.f32 %v1370_v0, %v11328_v4 }
 0x257   : > { %v1369_v23 = vsel %vm1347_vm2, %v1324_v15, %v1325_v3  ;;  %8810 = vmatmul.mubr.bf16.gmra.mrb[228].mxu0 %v11074_v48  ;;  %v1758_v26 = vsel %vm1736_vm3, %v1713_v63, %v1714_v25  ;;  %8910 = vmatmul.mubr.bf16.gmra.mrb[228].mxu1 %v11074_v48 }
 0x258   : > { %v1410_v2 = vadd.f32 %v1369_v23, %v11332_v29  ;;  %v11701_v17 = vadd.f32 %v1759_v61, %v1409_v8  ;;  %8813 = vmatprep.mubr.msk.bf16.mxu0 %vm10682_vm0, %v15298_v59  ;;  %8913 = vmatprep.mubr.msk.bf16.mxu1 %vm10682_vm0, %v15298_v59 }
 0x25a   : > { %v11710_v4 = vadd.f32 %v1758_v26, %v1410_v2  ;;  %v1220_v60 = vpop.f32.mrb[124].mxu0  ;;  %v1609_v20 = vpop.f32.mrb[124].mxu1 }
 0x25b   : > { %v1326_v15 = vrot.slane %v1220_v60, 6  ;;  %v8591_v53 = vpop.f32.mrb[125].mxu0  ;;  %v1715_v0 = vrot.slane %v1609_v20, 7  ;;  %v8691_v12 = vpop.f32.mrb[125].mxu1 }
 0x25c   : > { %v1223_v29 = vpop.f32.mrb[126].mxu0  ;;  %v1612_v61 = vpop.f32.mrb[126].mxu1 }
 0x25d   : > { %v1368_v63 = vsel %vm1347_vm2, %v1325_v3, %v1326_v15  ;;  %v1327_v27 = vrot.slane %v1223_v29, 6  ;;  %v8592_v8 = vpop.f32.mrb[127].mxu0  ;;  %v1757_v23 = vsel %vm1736_vm3, %v1714_v25, %v1715_v0  ;;  %v1716_v2 = vrot.slane %v1612_v61, 7  ;;  %v8692_v26 = vpop.f32.mrb[127].mxu1 }
 0x25e   : > { %v1411_v54 = vadd.f32 %v1368_v63, %v11342_v57 }
 0x25f   : > { %v1367_v60 = vsel %vm1347_vm2, %v1326_v15, %v1327_v27  ;;  %8814 = vmatmul.mubr.bf16.gmra.mrb[232].mxu0 %v11083_v49  ;;  %v1756_v3 = vsel %vm1736_vm3, %v1715_v0, %v1716_v2  ;;  %8914 = vmatmul.mubr.bf16.gmra.mrb[232].mxu1 %v11083_v49 }
 0x260   : > { %v1412_v53 = vadd.f32 %v1367_v60, %v11346_v24  ;;  %v11721_v20 = vadd.f32 %v1757_v23, %v1411_v54  ;;  %8817 = vmatprep.mubr.msk.bf16.mxu0 %vm10682_vm0, %v15298_v59  ;;  %8917 = vmatprep.mubr.msk.bf16.mxu1 %vm10682_vm0, %v15298_v59 }
 0x262   : > { %v11730_v57 = vadd.f32 %v1756_v3, %v1412_v53  ;;  %v1228_v25 = vpop.f32.mrb[128].mxu0  ;;  %v1617_v12 = vpop.f32.mrb[128].mxu1 }
 0x263   : > { %v1328_v15 = vrot.slane %v1228_v25, 6  ;;  %v8595_v29 = vpop.f32.mrb[129].mxu0  ;;  %v1717_v63 = vrot.slane %v1617_v12, 7  ;;  %v8695_v8 = vpop.f32.mrb[129].mxu1 }
 0x264   : > { %15299 = vst [vmem:[#allocation31_spill] sm:$0xff] %v11730_v57  ;;  %v1231_v24 = vpop.f32.mrb[130].mxu0  ;;  %v1620_v23 = vpop.f32.mrb[130].mxu1  ;;  %v15300_v29 = vld [vmem:[#allocation21_spill] sm:$0xff] }
 0x265   : > { %v1366_v0 = vsel %vm1347_vm2, %v1327_v27, %v1328_v15  ;;  %v1329_v61 = vrot.slane %v1231_v24, 6  ;;  %v8596_v54 = vpop.f32.mrb[131].mxu0  ;;  %v1755_v60 = vsel %vm1736_vm3, %v1716_v2, %v1717_v63  ;;  %v1718_v53 = vrot.slane %v1620_v23, 7  ;;  %v8696_v3 = vpop.f32.mrb[131].mxu1 }
 0x266   : > { %v1413_v26 = vadd.f32 %v1366_v0, %v11356_v35 }
 0x267   : > { %v1365_v25 = vsel %vm1347_vm2, %v1328_v15, %v1329_v61  ;;  %8818 = vmatmul.mubr.bf16.gmra.mrb[236].mxu0 %v11092_v50  ;;  %v1754_v27 = vsel %vm1736_vm3, %v1717_v63, %v1718_v53  ;;  %8918 = vmatmul.mubr.bf16.gmra.mrb[236].mxu1 %v11092_v50 }
 0x268   : > { %v1414_v12 = vadd.f32 %v1365_v25, %v15300_v29  ;;  %v11741_v8 = vadd.f32 %v1755_v60, %v1413_v26  ;;  %8821 = vmatprep.mubr.msk.bf16.mxu0 %vm10682_vm0, %v15298_v59  ;;  %8921 = vmatprep.mubr.msk.bf16.mxu1 %vm10682_vm0, %v15298_v59 }
 0x26a   : > { %15301 = vst [vmem:[#allocation21_spill] sm:$0xff] %v11741_v8  ;;  %v11750_v35 = vadd.f32 %v1754_v27, %v1414_v12  ;;  %v1236_v2 = vpop.f32.mrb[132].mxu0  ;;  %v1625_v0 = vpop.f32.mrb[132].mxu1 }
 0x26b   : > { %v1330_v15 = vrot.slane %v1236_v2, 6  ;;  %v8599_v24 = vpop.f32.mrb[133].mxu0  ;;  %v1719_v23 = vrot.slane %v1625_v0, 7  ;;  %v8699_v26 = vpop.f32.mrb[133].mxu1  ;;  %v15304_v0 = vld [vmem:[#allocation22_spill] sm:$0xff] }
 0x26c   : > { %15302 = vst [vmem:[#allocation32_spill] sm:$0xff] %v11750_v35  ;;  %v1239_v54 = vpop.f32.mrb[134].mxu0  ;;  %v1628_v25 = vpop.f32.mrb[134].mxu1  ;;  %v15303_v24 = vld [vmem:[#allocation18_spill] sm:$0xff] }
 0x26d   : > { %v1364_v63 = vsel %vm1347_vm2, %v1329_v61, %v1330_v15  ;;  %v1331_v60 = vrot.slane %v1239_v54, 6  ;;  %v8600_v3 = vpop.f32.mrb[135].mxu0  ;;  %v1753_v8 = vsel %vm1736_vm3, %v1718_v53, %v1719_v23  ;;  %v1720_v12 = vrot.slane %v1628_v25, 7  ;;  %v8700_v27 = vpop.f32.mrb[135].mxu1 }
 0x26e   : > { %v1415_v29 = vadd.f32 %v1364_v63, %v11370_v33 }
 0x26f   : > { %v1363_v2 = vsel %vm1347_vm2, %v1330_v15, %v1331_v60  ;;  %8822 = vmatmul.mubr.bf16.gmra.mrb[240].mxu0 %v15303_v24  ;;  %v1752_v61 = vsel %vm1736_vm3, %v1719_v23, %v1720_v12  ;;  %8922 = vmatmul.mubr.bf16.gmra.mrb[240].mxu1 %v15303_v24 }
 0x270   : > { %v1416_v26 = vadd.f32 %v1363_v2, %v15304_v0  ;;  %v11761_v35 = vadd.f32 %v1753_v8, %v1415_v29  ;;  %8825 = vmatprep.mubr.msk.bf16.mxu0 %vm10682_vm0, %v15298_v59  ;;  %8925 = vmatprep.mubr.msk.bf16.mxu1 %vm10682_vm0, %v15298_v59  ;;  %v15307_v0 = vld [vmem:[#allocation23_spill] sm:$0xff] }
 0x272   : > { %15305 = vst [vmem:[#allocation22_spill] sm:$0xff] %v11761_v35  ;;  %v11770_v33 = vadd.f32 %v1752_v61, %v1416_v26  ;;  %v1244_v53 = vpop.f32.mrb[136].mxu0  ;;  %v1633_v63 = vpop.f32.mrb[136].mxu1 }
 0x273   : > { %v1332_v15 = vrot.slane %v1244_v53, 6  ;;  %v8603_v54 = vpop.f32.mrb[137].mxu0  ;;  %v1721_v8 = vrot.slane %v1633_v63, 7  ;;  %v8703_v25 = vpop.f32.mrb[137].mxu1  ;;  %v15309_v63 = vld [vmem:[#allocation24_spill] sm:$0xff] }
 0x274   : > { %15306 = vst [vmem:[#allocation33_spill] sm:$0xff] %v11770_v33  ;;  %v1247_v3 = vpop.f32.mrb[138].mxu0  ;;  %v1636_v2 = vpop.f32.mrb[138].mxu1  ;;  %v15308_v54 = vld [vmem:[#allocation19_spill] sm:$0xff] }
 0x275   : > { %v1362_v23 = vsel %vm1347_vm2, %v1331_v60, %v1332_v15  ;;  %v1333_v29 = vrot.slane %v1247_v3, 6  ;;  %v8604_v27 = vpop.f32.mrb[139].mxu0  ;;  %v1751_v24 = vsel %vm1736_vm3, %v1720_v12, %v1721_v8  ;;  %v1722_v26 = vrot.slane %v1636_v2, 7  ;;  %v8704_v61 = vpop.f32.mrb[139].mxu1 }
 0x276   : > { %v1417_v35 = vadd.f32 %v1362_v23, %v15307_v0 }
 0x277   : > { %v1361_v53 = vsel %vm1347_vm2, %v1332_v15, %v1333_v29  ;;  %8826 = vmatmul.mubr.bf16.gmra.mrb[244].mxu0 %v15308_v54  ;;  %v1750_v60 = vsel %vm1736_vm3, %v1721_v8, %v1722_v26  ;;  %8926 = vmatmul.mubr.bf16.gmra.mrb[244].mxu1 %v15308_v54 }
 0x278   : > { %v1418_v25 = vadd.f32 %v1361_v53, %v15309_v63  ;;  %v11781_v33 = vadd.f32 %v1751_v24, %v1417_v35  ;;  %8829 = vmatprep.mubr.msk.bf16.mxu0 %vm10682_vm0, %v15298_v59  ;;  %8929 = vmatprep.mubr.msk.bf16.mxu1 %vm10682_vm0, %v15298_v59  ;;  %v15312_v63 = vld [vmem:[#allocation25_spill] sm:$0xff] }
 0x27a   : > { %15310 = vst [vmem:[#allocation23_spill] sm:$0xff] %v11781_v33  ;;  %v11790_v12 = vadd.f32 %v1750_v60, %v1418_v25  ;;  %v1252_v15 = vpop.f32.mrb[140].mxu0  ;;  %v1641_v27 = vpop.f32.mrb[140].mxu1 }
 0x27b   : > { %v1334_v3 = vrot.slane %v1252_v15, 6  ;;  %v8607_v23 = vpop.f32.mrb[141].mxu0  ;;  %v1723_v35 = vrot.slane %v1641_v27, 7  ;;  %v8707_v24 = vpop.f32.mrb[141].mxu1  ;;  %v15314_v27 = vld [vmem:[#allocation26_spill] sm:$0xff] }
 0x27c   : > { %15311 = vst [vmem:[#allocation24_spill] sm:$0xff] %v11790_v12  ;;  %v1255_v2 = vpop.f32.mrb[142].mxu0  ;;  %v1644_v53 = vpop.f32.mrb[142].mxu1  ;;  %v15313_v23 = vld [vmem:[#allocation20_spill] sm:$0xff] }
 0x27d   : > { %v1360_v8 = vsel %vm1347_vm2, %v1333_v29, %v1334_v3  ;;  %v1335_v0 = vrot.slane %v1255_v2, 6  ;;  %v8608_v61 = vpop.f32.mrb[143].mxu0  ;;  %v1749_v54 = vsel %vm1736_vm3, %v1722_v26, %v1723_v35  ;;  %v1724_v25 = vrot.slane %v1644_v53, 7  ;;  %v8708_v60 = vpop.f32.mrb[143].mxu1 }
 0x27e   : > { %v1419_v33 = vadd.f32 %v1360_v8, %v15312_v63  ;;  %v10397_v63 = vld [vmem:[#allocation5 + $0x200] sm:$0xff]  }
 0x27f   : > { %v1359_v15 = vsel %vm1347_vm2, %v1334_v3, %v1335_v0  ;;  %8830 = vmatmul.mubr.bf16.gmra.mrb[248].mxu0 %v15313_v23  ;;  %v1748_v29 = vsel %vm1736_vm3, %v1723_v35, %v1724_v25  ;;  %8930 = vmatmul.mubr.bf16.gmra.mrb[248].mxu1 %v15313_v23 }
 0x280   : > { %v1420_v24 = vadd.f32 %v1359_v15, %v15314_v27  ;;  %v11801_v12 = vadd.f32 %v1749_v54, %v1419_v33  ;;  %8949 = vmatprep.mubr.msk.bf16.mxu0 %vm10682_vm0, %v15298_v59  ;;  %9049 = vmatprep.mubr.msk.bf16.mxu1 %vm10682_vm0, %v15298_v59 }
 0x282   : > { %15315 = vst [vmem:[#allocation25_spill] sm:$0xff] %v11801_v12  ;;  %v11810_v26 = vadd.f32 %v1748_v29, %v1420_v24  ;;  %v1260_v3 = vpop.f32.mrb[144].mxu0  ;;  %v1649_v61 = vpop.f32.mrb[144].mxu1  ;;  %v15317_v12 = vld [vmem:[#allocation27_spill] sm:$0xff] }
 0x283   : > { %v1336_v2 = vrot.slane %v1260_v3, 6  ;;  %v8611_v8 = vpop.f32.mrb[145].mxu0  ;;  %v1725_v33 = vrot.slane %v1649_v61, 7  ;;  %v8711_v54 = vpop.f32.mrb[145].mxu1  ;;  %v15319_v61 = vld [vmem:[#allocation28_spill] sm:$0xff] }
 0x284   : > { %15316 = vst [vmem:[#allocation26_spill] sm:$0xff] %v11810_v26  ;;  %v1263_v53 = vpop.f32.mrb[146].mxu0  ;;  %v1652_v27 = vpop.f32.mrb[146].mxu1  ;;  %v15318_v8 = vld [vmem:[#allocation12_spill] sm:$0xff] }
 0x285   : > { %v1358_v35 = vsel %vm1347_vm2, %v1335_v0, %v1336_v2  ;;  %v1337_v60 = vrot.slane %v1263_v53, 6  ;;  %v8612_v15 = vpop.f32.mrb[147].mxu0  ;;  %v1747_v24 = vsel %vm1736_vm3, %v1724_v25, %v1725_v33  ;;  %v1726_v29 = vrot.slane %v1652_v27, 7  ;;  %v8712_v26 = vpop.f32.mrb[147].mxu1 }
 0x286   : > { %v1421_v23 = vadd.f32 %v1358_v35, %v15317_v12  ;;  %v10398_v12 = vld [vmem:[#allocation5 + $0x208] sm:$0xff]  }
 0x287   : > { %v1357_v3 = vsel %vm1347_vm2, %v1336_v2, %v1337_v60  ;;  %8950 = vmatmul.mubr.bf16.vlgmr.msra.gmra.mrb[252].mxu0 %v15318_v8  ;;  %v1746_v0 = vsel %vm1736_vm3, %v1725_v33, %v1726_v29  ;;  %9050 = vmatmul.mubr.bf16.vlgmr.msra.gmra.mrb[252].mxu1 %v15318_v8 }
 0x288   : > { %v1422_v54 = vadd.f32 %v1357_v3, %v15319_v61  ;;  %v11821_v57 = vadd.f32 %v1747_v24, %v1421_v23  ;;  %9134 = vmatpush3.bf16.msra.mxu0 %v10397_v63  ;;  %8953 = vmatprep.mubr.msk.bf16.mxu0 %vm10682_vm0, %v15298_v59  ;;  %v10399_v61 = vld [vmem:[#allocation5 + $0x210] sm:$0xff]  }
 0x289   : > { %9053 = vmatprep.mubr.msk.bf16.mxu1 %vm10682_vm0, %v15298_v59  ;;  %9135 = vmatprep.subr.bf16.mxu0 %v15298_v59 }
 0x28a   : > { %v11830_v25 = vadd.f32 %v1746_v0, %v1422_v54  ;;  %v1268_v26 = vpop.f32.mrb[148].mxu0  ;;  %v1657_v53 = vpop.f32.mrb[148].mxu1 }
 0x28b   : > { %v1338_v23 = vrot.slane %v1268_v26, 6  ;;  %v8615_v2 = vpop.f32.mrb[149].mxu0  ;;  %v1727_v33 = vrot.slane %v1657_v53, 7  ;;  %v8715_v63 = vpop.f32.mrb[149].mxu1 }
 0x28c   : > { %15320 = vst [vmem:[#allocation27_spill] sm:$0xff] %v11830_v25  ;;  %v1271_v35 = vpop.f32.mrb[150].mxu0  ;;  %9136 = vmatpush3.bf16.msra.mxu0 %v10398_v12  ;;  %v1660_v3 = vpop.f32.mrb[150].mxu1  ;;  %v15321_v12 = vld [vmem:[#allocation13_spill] sm:$0xff] }
 0x28d   : > { %v1356_v15 = vsel %vm1347_vm2, %v1337_v60, %v1338_v23  ;;  %v1339_v27 = vrot.slane %v1271_v35, 6  ;;  %v8616_v24 = vpop.f32.mrb[151].mxu0  ;;  %9137 = vmatprep.subr.bf16.mxu0 %v15298_v59  ;;  %v1745_v0 = vsel %vm1736_vm3, %v1726_v29, %v1727_v33  ;;  %v1728_v26 = vrot.slane %v1660_v3, 7  ;;  %v8716_v2 = vpop.f32.mrb[151].mxu1  ;;  %v15322_v63 = vld [vmem:[#allocation29_spill] sm:$0xff] }
 0x28e   : > { %v1423_v54 = vadd.f32 %v1356_v15, %v11429_v56  ;;  %v10400_v56 = vld [vmem:[#allocation5 + $0x218] sm:$0xff]  }
 0x28f   : > { %v1355_v53 = vsel %vm1347_vm2, %v1338_v23, %v1339_v27  ;;  %8954 = vmatmul.mubr.bf16.gmra.mrb[0].mxu0 %v15321_v12  ;;  %v1744_v24 = vsel %vm1736_vm3, %v1727_v33, %v1728_v26  ;;  %9054 = vmatmul.mubr.bf16.gmra.mrb[0].mxu1 %v15321_v12 }
 0x290   : > { %v1424_v60 = vadd.f32 %v1355_v53, %v15322_v63  ;;  %v11843_v35 = vadd.f32 %v1745_v0, %v1423_v54  ;;  %8957 = vmatprep.mubr.msk.bf16.mxu0 %vm10682_vm0, %v15298_v59  ;;  %9057 = vmatprep.mubr.msk.bf16.mxu1 %vm10682_vm0, %v15298_v59 }
 0x291   : > { %9138 = vmatpush3.bf16.msra.mxu0 %v10399_v61  ;;  %v10401_v61 = vld [vmem:[#allocation5 + $0x220] sm:$0xff]  }
 0x292   : > { %15323 = vst [vmem:[#allocation12_spill] sm:$0xff] %v11843_v35  ;;  %v11852_v29 = vadd.f32 %v1744_v24, %v1424_v60  ;;  %v1276_v23 = vpop.f32.mrb[152].mxu0  ;;  %9139 = vmatprep.subr.bf16.mxu0 %v15298_v59  ;;  %v1665_v54 = vpop.f32.mrb[152].mxu1 }
 0x293   : > { %v1340_v15 = vrot.slane %v1276_v23, 6  ;;  %v8619_v3 = vpop.f32.mrb[153].mxu0  ;;  %v1729_v33 = vrot.slane %v1665_v54, 7  ;;  %v8719_v2 = vpop.f32.mrb[153].mxu1  ;;  %v15325_v54 = vld [vmem:[#allocation14_spill] sm:$0xff] }
 0x294   : > { %15324 = vst [vmem:[#allocation28_spill] sm:$0xff] %v11852_v29  ;;  %v1279_v0 = vpop.f32.mrb[154].mxu0  ;;  %v1668_v25 = vpop.f32.mrb[154].mxu1 }
 0x295   : > { %v1354_v53 = vsel %vm1347_vm2, %v1339_v27, %v1340_v15  ;;  %v1341_v63 = vrot.slane %v1279_v0, 6  ;;  %v8620_v35 = vpop.f32.mrb[155].mxu0  ;;  %9140 = vmatpush3.bf16.msra.mxu0 %v10400_v56  ;;  %v1743_v24 = vsel %vm1736_vm3, %v1728_v26, %v1729_v33  ;;  %v1730_v29 = vrot.slane %v1668_v25, 7  ;;  %v8720_v23 = vpop.f32.mrb[155].mxu1 }
 0x296   : > { %v1425_v60 = vadd.f32 %v1354_v53, %v11447_v52  ;;  %9141 = vmatprep.subr.bf16.mxu0 %v15298_v59  ;;  %v10402_v52 = vld [vmem:[#allocation5 + $0x228] sm:$0xff]  }
 0x297   : > { %v1353_v3 = vsel %vm1347_vm2, %v1340_v15, %v1341_v63  ;;  %8958 = vmatmul.mubr.bf16.gmra.mrb[4].mxu0 %v15325_v54  ;;  %v1742_v56 = vsel %vm1736_vm3, %v1729_v33, %v1730_v29  ;;  %9058 = vmatmul.mubr.bf16.gmra.mrb[4].mxu1 %v15325_v54 }
 0x298   : > { %v1426_v27 = vadd.f32 %v1353_v3, %v11452_v58  ;;  %v11865_v35 = vadd.f32 %v1743_v24, %v1425_v60  ;;  %8961 = vmatprep.mubr.msk.bf16.mxu0 %vm10682_vm0, %v15298_v59  ;;  %9061 = vmatprep.mubr.msk.bf16.mxu1 %vm10682_vm0, %v15298_v59 }
 0x299   : > { %9142 = vmatpush3.bf16.msra.mxu0 %v10401_v61  ;;  %v10403_v61 = vld [vmem:[#allocation5 + $0x230] sm:$0xff]  }
 0x29a   : > { %v11874_v25 = vadd.f32 %v1742_v56, %v1426_v27  ;;  %v1284_v26 = vpop.f32.mrb[156].mxu0  ;;  %9143 = vmatprep.subr.bf16.mxu0 %v15298_v59  ;;  %v1673_v0 = vpop.f32.mrb[156].mxu1 }
 0x29b   : > { %v1342_v58 = vrot.slane %v1284_v26, 6  ;;  %v8623_v15 = vpop.f32.mrb[157].mxu0  ;;  %v1731_v33 = vrot.slane %v1673_v0, 7  ;;  %v8723_v53 = vpop.f32.mrb[157].mxu1  ;;  %v15327_v0 = vld [vmem:[#allocation15_spill] sm:$0xff] }
 0x29c   : > { %15326 = vst [vmem:[#allocation13_spill] sm:$0xff] %v11874_v25  ;;  %v1287_v2 = vpop.f32.mrb[158].mxu0  ;;  %v1676_v3 = vpop.f32.mrb[158].mxu1 }
 0x29d   : > { %v1352_v60 = vsel %vm1347_vm2, %v1341_v63, %v1342_v58  ;;  %v1343_v24 = vrot.slane %v1287_v2, 6  ;;  %v8624_v23 = vpop.f32.mrb[159].mxu0  ;;  %9144 = vmatpush3.bf16.msra.mxu0 %v10402_v52  ;;  %v1741_v56 = vsel %vm1736_vm3, %v1730_v29, %v1731_v33  ;;  %v1732_v25 = vrot.slane %v1676_v3, 7  ;;  %v8724_v26 = vpop.f32.mrb[159].mxu1 }
 0x29e   : > { %v1427_v27 = vadd.f32 %v1352_v60, %v11465_v22  ;;  %9145 = vmatprep.subr.bf16.mxu0 %v15298_v59  ;;  %v10404_v22 = vld [vmem:[#allocation5 + $0x238] sm:$0xff]  }
 0x29f   : > { %v1351_v15 = vsel %vm1347_vm2, %v1342_v58, %v1343_v24  ;;  %8962 = vmatmul.mubr.bf16.gmra.mrb[8].mxu0 %v15327_v0  ;;  %v1740_v52 = vsel %vm1736_vm3, %v1731_v33, %v1732_v25  ;;  %9062 = vmatmul.mubr.bf16.gmra.mrb[8].mxu1 %v15327_v0 }
 0x2a0   : > { %v1428_v63 = vadd.f32 %v1351_v15, %v11470_v28  ;;  %v11887_v2 = vadd.f32 %v1741_v56, %v1427_v27  ;;  %8965 = vmatprep.mubr.msk.bf16.mxu0 %vm10682_vm0, %v15298_v59  ;;  %9065 = vmatprep.mubr.msk.bf16.mxu1 %vm10682_vm0, %v15298_v59 }
 0x2a1   : > { %9146 = vmatpush3.bf16.msra.mxu0 %v10403_v61 }
 0x2a2   : > { %v11896_v29 = vadd.f32 %v1740_v52, %v1428_v63  ;;  %v1292_v58 = vpop.f32.mrb[160].mxu0  ;;  %9147 = vmatprep.subr.bf16.mxu0 %v15298_v59  ;;  %v1681_v60 = vpop.f32.mrb[160].mxu1 }
 0x2a3   : > { %v1344_v28 = vrot.slane %v1292_v58, 6  ;;  %v8627_v53 = vpop.f32.mrb[161].mxu0  ;;  %v1733_v33 = vrot.slane %v1681_v60, 7  ;;  %v8727_v3 = vpop.f32.mrb[161].mxu1 }
 0x2a4   : > { %15328 = vst [vmem:[#allocation29_spill] sm:$0xff] %v11896_v29  ;;  %v1295_v23 = vpop.f32.mrb[162].mxu0  ;;  %v1684_v15 = vpop.f32.mrb[162].mxu1 }
 0x2a5   : > { %v1350_v27 = vsel %vm1347_vm2, %v1343_v24, %v1344_v28  ;;  %v1345_v56 = vrot.slane %v1295_v23, 6  ;;  %v8628_v26 = vpop.f32.mrb[163].mxu0  ;;  %9148 = vmatpush3.bf16.msra.mxu0 %v10404_v22  ;;  %v1739_v63 = vsel %vm1736_vm3, %v1732_v25, %v1733_v33  ;;  %v1734_v52 = vrot.slane %v1684_v15, 7  ;;  %v8728_v29 = vpop.f32.mrb[163].mxu1 }
 0x2a6   : > { %v1429_v61 = vadd.f32 %v1350_v27, %v11485_v30  ;;  %9333 = vmatprep.subr.bf16.mxu0 %v15298_v59  ;;  %v15329_v27 = vrot.slane %v11507_v10, 6 }
 0x2a7   : > { %v1349_v58 = vsel %vm1347_vm2, %v1344_v28, %v1345_v56  ;;  %8966 = vmatmul.mubr.bf16.gmra.mrb[12].mxu0 %v10963_v32  ;;  %v1738_v22 = vsel %vm1736_vm3, %v1733_v33, %v1734_v52  ;;  %9066 = vmatmul.mubr.bf16.gmra.mrb[12].mxu1 %v10963_v32 }
 0x2a8   : > { %v1389_v24 = vadd.f32 %v1349_v58, %v11477_v18  ;;  %v11909_v53 = vadd.f32 %v1739_v63, %v1429_v61  ;;  %8969 = vmatprep.mubr.msk.bf16.mxu0 %vm10682_vm0, %v15298_v59  ;;  %9069 = vmatprep.mubr.msk.bf16.mxu1 %vm10682_vm0, %v15298_v59 }
 0x2aa   : > { %v11918_v30 = vadd.f32 %v1738_v22, %v1389_v24  ;;  %v1300_v25 = vpop.f32.mrb[164].mxu0  ;;  %v1689_v60 = vpop.f32.mrb[164].mxu1  ;;  %v15330_v22 = vrot.slane %v11509_v1, 7 }
 0x2ab   : > { %v1346_v29 = vrot.slane %v1300_v25, 6  ;;  %v8631_v28 = vpop.f32.mrb[165].mxu0  ;;  %v1735_v23 = vrot.slane %v1689_v60, 7  ;;  %v8731_v3 = vpop.f32.mrb[165].mxu1 }
 0x2ac   : > { %v1303_v18 = vpop.f32.mrb[166].mxu0  ;;  %v1692_v61 = vpop.f32.mrb[166].mxu1  ;;  %v15331_v28 = vld [vmem:[#allocation16_spill] sm:$0xff] }
 0x2ad   : > { %v1348_v33 = vsel %vm1347_vm2, %v1345_v56, %v1346_v29  ;;  %v1388_v26 = vsel %vm1347_vm2, %v1346_v29, %v15329_v27  ;;  %v8632_v15 = vpop.f32.mrb[167].mxu0  ;;  %v1737_v24 = vsel %vm1736_vm3, %v1734_v52, %v1735_v23  ;;  %v1777_v25 = vsel %vm1736_vm3, %v1735_v23, %v15330_v22  ;;  %v8732_v56 = vpop.f32.mrb[167].mxu1 }
 0x2ae   : > { %v1390_v63 = vadd.f32 %v1348_v33, %v11495_v16  ;;  %v1391_v58 = vadd.f32 %v1388_v26, %v11498_v11  ;;  %v15332_v15 = vld [vmem:[#allocation17_spill] sm:$0xff] }
 0x2af   : > { %8970 = vmatmul.mubr.bf16.gmra.mrb[16].mxu0 %v15331_v28  ;;  %9070 = vmatmul.mubr.bf16.gmra.mrb[16].mxu1 %v15331_v28 }
 0x2b0   : > { %v1779_v10 = vadd.f32 %v1737_v24, %v1390_v63  ;;  %v1780_v60 = vadd.f32 %v1777_v25, %v1391_v58  ;;  %8973 = vmatprep.mubr.msk.bf16.mxu0 %vm10682_vm0, %v15298_v59  ;;  %9073 = vmatprep.mubr.msk.bf16.mxu1 %vm10682_vm0, %v15298_v59 }
 0x2b2   : > { %v11940_v16 = vpop.f32.mrb[168].mxu0  ;;  %v11942_v1 = vpop.f32.mrb[168].mxu1 }
 0x2b3   : > { %v8751_v11 = vpop.f32.mrb[169].mxu0  ;;  %v8851_v29 = vpop.f32.mrb[169].mxu1  ;;  %v15144_v18 = vrot.slane %v11940_v16, 7 }
 0x2b4   : > { %v1921_v52 = vpop.f32.mrb[170].mxu0  ;;  %v11945_v33 = vpop.f32.mrb[170].mxu1 }
 0x2b5   : > { %v2085_v23 = vrot.slane %v1921_v52, 7  ;;  %v8752_v3 = vpop.f32.mrb[171].mxu0  ;;  %v8852_v27 = vpop.f32.mrb[171].mxu1  ;;  %v15147_v63 = vrot.slane %v11945_v33, 1 }
 0x2b7   : > { %v2164_v26 = vsel %vm1736_vm3, %v15144_v18, %v2085_v23  ;;  %8974 = vmatmul.mubr.bf16.gmra.mrb[20].mxu0 %v15332_v15  ;;  %9074 = vmatmul.mubr.bf16.gmra.mrb[20].mxu1 %v15332_v15 }
 0x2b8   : > { %v2167_v61 = vadd.f32 %v2164_v26, %v1779_v10  ;;  %8977 = vmatprep.mubr.msk.bf16.mxu0 %vm10682_vm0, %v15298_v59  ;;  %9077 = vmatprep.mubr.msk.bf16.mxu1 %vm10682_vm0, %v15298_v59 }
 0x2ba   : > { %v1926_v58 = vpop.f32.mrb[172].mxu0  ;;  %v2314_v22 = vpop.f32.mrb[172].mxu1 }
 0x2bb   : > { %v2086_v24 = vrot.slane %v1926_v58, 7  ;;  %v8755_v25 = vpop.f32.mrb[173].mxu0  ;;  %v2474_v56 = vrot.slane %v2314_v22, 1  ;;  %v8855_v11 = vpop.f32.mrb[173].mxu1 }
 0x2bc   : > { %v1929_v52 = vpop.f32.mrb[174].mxu0  ;;  %v2317_v3 = vpop.f32.mrb[174].mxu1 }
 0x2bd   : > { %v2163_v10 = vsel %vm1736_vm3, %v2085_v23, %v2086_v24  ;;  %v2087_v29 = vrot.slane %v1929_v52, 7  ;;  %v8756_v27 = vpop.f32.mrb[175].mxu0  ;;  %v2552_v18 = vsel %vm2513_vm4, %v15147_v63, %v2474_v56  ;;  %v2475_v15 = vrot.slane %v2317_v3, 1  ;;  %v8856_v28 = vpop.f32.mrb[175].mxu1 }
 0x2be   : > { %v2168_v26 = vadd.f32 %v2163_v10, %v1780_v60  ;;  %v11965_v58 = vadd.f32 %v2552_v18, %v2167_v61 }
 0x2bf   : > { %v2162_v22 = vsel %vm1736_vm3, %v2086_v24, %v2087_v29  ;;  %8978 = vmatmul.mubr.bf16.gmra.mrb[24].mxu0 %v10998_v40  ;;  %v2551_v25 = vsel %vm2513_vm4, %v2474_v56, %v2475_v15  ;;  %9078 = vmatmul.mubr.bf16.gmra.mrb[24].mxu1 %v10998_v40 }
 0x2c0   : > { %15333 = vst [vmem:[#allocation14_spill] sm:$0xff] %v11965_v58  ;;  %v2169_v23 = vadd.f32 %v2162_v22, %v11530_v51  ;;  %8981 = vmatprep.mubr.msk.bf16.mxu0 %vm10682_vm0, %v15298_v59  ;;  %v11976_v60 = vadd.f32 %v2551_v25, %v2168_v26  ;;  %9081 = vmatprep.mubr.msk.bf16.mxu1 %vm10682_vm0, %v15298_v59  ;;  %v15335_v22 = vld [vmem:[#allocation30_spill] sm:$0xff] }
 0x2c2   : > { %15334 = vst [vmem:[#allocation15_spill] sm:$0xff] %v11976_v60  ;;  %v1934_v28 = vpop.f32.mrb[176].mxu0  ;;  %v2322_v61 = vpop.f32.mrb[176].mxu1 }
 0x2c3   : > { %v2088_v18 = vrot.slane %v1934_v28, 7  ;;  %v8759_v24 = vpop.f32.mrb[177].mxu0  ;;  %v2476_v11 = vrot.slane %v2322_v61, 1  ;;  %v8859_v52 = vpop.f32.mrb[177].mxu1 }
 0x2c4   : > { %v1937_v51 = vpop.f32.mrb[178].mxu0  ;;  %v2325_v3 = vpop.f32.mrb[178].mxu1 }
 0x2c5   : > { %v2161_v56 = vsel %vm1736_vm3, %v2087_v29, %v2088_v18  ;;  %v2089_v10 = vrot.slane %v1937_v51, 7  ;;  %v8760_v27 = vpop.f32.mrb[179].mxu0  ;;  %v2550_v26 = vsel %vm2513_vm4, %v2475_v15, %v2476_v11  ;;  %v2477_v25 = vrot.slane %v2325_v3, 1  ;;  %v8860_v60 = vpop.f32.mrb[179].mxu1 }
 0x2c6   : > { %v2170_v63 = vadd.f32 %v2161_v56, %v15335_v22  ;;  %v11985_v58 = vadd.f32 %v2550_v26, %v2169_v23 }
 0x2c7   : > { %v2160_v28 = vsel %vm1736_vm3, %v2088_v18, %v2089_v10  ;;  %8982 = vmatmul.mubr.bf16.gmra.mrb[28].mxu0 %v11011_v41  ;;  %v2549_v29 = vsel %vm2513_vm4, %v2476_v11, %v2477_v25  ;;  %9082 = vmatmul.mubr.bf16.gmra.mrb[28].mxu1 %v11011_v41 }
 0x2c8   : > { %v2171_v61 = vadd.f32 %v2160_v28, %v11550_v39  ;;  %8985 = vmatprep.mubr.msk.bf16.mxu0 %vm10682_vm0, %v15298_v59  ;;  %v11996_v15 = vadd.f32 %v2549_v29, %v2170_v63  ;;  %9085 = vmatprep.mubr.msk.bf16.mxu1 %vm10682_vm0, %v15298_v59 }
 0x2ca   : > { %v1942_v23 = vpop.f32.mrb[180].mxu0  ;;  %v2330_v18 = vpop.f32.mrb[180].mxu1 }
 0x2cb   : > { %v2090_v60 = vrot.slane %v1942_v23, 7  ;;  %v8763_v24 = vpop.f32.mrb[181].mxu0  ;;  %v2478_v52 = vrot.slane %v2330_v18, 1  ;;  %v8863_v51 = vpop.f32.mrb[181].mxu1 }
 0x2cc   : > { %v1945_v39 = vpop.f32.mrb[182].mxu0  ;;  %v2333_v3 = vpop.f32.mrb[182].mxu1 }
 0x2cd   : > { %v2159_v11 = vsel %vm1736_vm3, %v2089_v10, %v2090_v60  ;;  %v2091_v56 = vrot.slane %v1945_v39, 7  ;;  %v8764_v27 = vpop.f32.mrb[183].mxu0  ;;  %v2548_v63 = vsel %vm2513_vm4, %v2477_v25, %v2478_v52  ;;  %v2479_v26 = vrot.slane %v2333_v3, 1  ;;  %v8864_v28 = vpop.f32.mrb[183].mxu1 }
 0x2ce   : > { %v2172_v22 = vadd.f32 %v2159_v11, %v11561_v37  ;;  %v12005_v29 = vadd.f32 %v2548_v63, %v2171_v61 }
 0x2cf   : > { %v2158_v23 = vsel %vm1736_vm3, %v2090_v60, %v2091_v56  ;;  %8986 = vmatmul.mubr.bf16.gmra.mrb[32].mxu0 %v11016_v42  ;;  %v2547_v10 = vsel %vm2513_vm4, %v2478_v52, %v2479_v26  ;;  %9086 = vmatmul.mubr.bf16.gmra.mrb[32].mxu1 %v11016_v42 }
 0x2d0   : > { %v2173_v18 = vadd.f32 %v2158_v23, %v11570_v14  ;;  %8989 = vmatprep.mubr.msk.bf16.mxu0 %vm10682_vm0, %v15298_v59  ;;  %v12016_v37 = vadd.f32 %v2547_v10, %v2172_v22  ;;  %9089 = vmatprep.mubr.msk.bf16.mxu1 %vm10682_vm0, %v15298_v59 }
 0x2d2   : > { %v1950_v25 = vpop.f32.mrb[184].mxu0  ;;  %v2338_v60 = vpop.f32.mrb[184].mxu1 }
 0x2d3   : > { %v2092_v61 = vrot.slane %v1950_v25, 7  ;;  %v8767_v24 = vpop.f32.mrb[185].mxu0  ;;  %v2480_v51 = vrot.slane %v2338_v60, 1  ;;  %v8867_v39 = vpop.f32.mrb[185].mxu1 }
 0x2d4   : > { %v1953_v14 = vpop.f32.mrb[186].mxu0  ;;  %v2341_v3 = vpop.f32.mrb[186].mxu1 }
 0x2d5   : > { %v2157_v52 = vsel %vm1736_vm3, %v2091_v56, %v2092_v61  ;;  %v2093_v11 = vrot.slane %v1953_v14, 7  ;;  %v8768_v27 = vpop.f32.mrb[187].mxu0  ;;  %v2546_v22 = vsel %vm2513_vm4, %v2479_v26, %v2480_v51  ;;  %v2481_v28 = vrot.slane %v2341_v3, 1  ;;  %v8868_v23 = vpop.f32.mrb[187].mxu1 }
 0x2d6   : > { %v2174_v63 = vadd.f32 %v2157_v52, %v11581_v36  ;;  %v12025_v10 = vadd.f32 %v2546_v22, %v2173_v18 }
 0x2d7   : > { %v2156_v25 = vsel %vm1736_vm3, %v2092_v61, %v2093_v11  ;;  %8990 = vmatmul.mubr.bf16.gmra.mrb[36].mxu0 %v11025_v43  ;;  %v2545_v56 = vsel %vm2513_vm4, %v2480_v51, %v2481_v28  ;;  %9090 = vmatmul.mubr.bf16.gmra.mrb[36].mxu1 %v11025_v43 }
 0x2d8   : > { %v2175_v60 = vadd.f32 %v2156_v25, %v11590_v38  ;;  %8993 = vmatprep.mubr.msk.bf16.mxu0 %vm10682_vm0, %v15298_v59  ;;  %v12036_v36 = vadd.f32 %v2545_v56, %v2174_v63  ;;  %9093 = vmatprep.mubr.msk.bf16.mxu1 %vm10682_vm0, %v15298_v59 }
 0x2da   : > { %v1958_v26 = vpop.f32.mrb[188].mxu0  ;;  %v2346_v61 = vpop.f32.mrb[188].mxu1 }
 0x2db   : > { %v2094_v18 = vrot.slane %v1958_v26, 7  ;;  %v8771_v24 = vpop.f32.mrb[189].mxu0  ;;  %v2482_v39 = vrot.slane %v2346_v61, 1  ;;  %v8871_v14 = vpop.f32.mrb[189].mxu1 }
 0x2dc   : > { %v1961_v38 = vpop.f32.mrb[190].mxu0  ;;  %v2349_v3 = vpop.f32.mrb[190].mxu1 }
 0x2dd   : > { %v2155_v51 = vsel %vm1736_vm3, %v2093_v11, %v2094_v18  ;;  %v2095_v52 = vrot.slane %v1961_v38, 7  ;;  %v8772_v27 = vpop.f32.mrb[191].mxu0  ;;  %v2544_v63 = vsel %vm2513_vm4, %v2481_v28, %v2482_v39  ;;  %v2483_v23 = vrot.slane %v2349_v3, 1  ;;  %v8872_v25 = vpop.f32.mrb[191].mxu1 }
 0x2de   : > { %v2176_v22 = vadd.f32 %v2155_v51, %v11601_v13  ;;  %v12045_v56 = vadd.f32 %v2544_v63, %v2175_v60  ;;  %v12063_v63 = vld [vmem:[%s10892_s5 + $0x10] sm:$0xff]  }
 0x2df   : > { %v2154_v26 = vsel %vm1736_vm3, %v2094_v18, %v2095_v52  ;;  %8994 = vmatmul.mubr.bf16.gmra.mrb[40].mxu0 %v11038_v44  ;;  %v2543_v11 = vsel %vm2513_vm4, %v2482_v39, %v2483_v23  ;;  %9094 = vmatmul.mubr.bf16.gmra.mrb[40].mxu1 %v11038_v44  ;;  %15336 = vst [vmem:[#allocation30_spill] sm:$0xff] %v12063_v63  ;;  %v15148_v25 = vunpack.c.h.bf16 %v12063_v63 }
 0x2e0   : > { %v2177_v61 = vadd.f32 %v2154_v26, %v11610_v6  ;;  %8997 = vmatprep.mubr.msk.bf16.mxu0 %vm10682_vm0, %v15298_v59  ;;  %v12056_v13 = vadd.f32 %v2543_v11, %v2176_v22  ;;  %9097 = vmatprep.mubr.msk.bf16.mxu1 %vm10682_vm0, %v15298_v59  ;;  %v15149_v22 = vunpack.c.l.bf16 %v12063_v63 }
 0x2e2   : > { %v1966_v28 = vpop.f32.mrb[192].mxu0  ;;  %v2354_v18 = vpop.f32.mrb[192].mxu1 }
 0x2e3   : > { %v2096_v60 = vrot.slane %v1966_v28, 7  ;;  %v8775_v24 = vpop.f32.mrb[193].mxu0  ;;  %v2484_v14 = vrot.slane %v2354_v18, 1  ;;  %v8875_v6 = vpop.f32.mrb[193].mxu1 }
 0x2e4   : > { %v1969_v38 = vpop.f32.mrb[194].mxu0  ;;  %v2357_v3 = vpop.f32.mrb[194].mxu1  ;;  %v10222_v6 = vpack.i.bf16 %v15148_v25, %v15149_v22 }
 0x2e5   : > { %v2153_v39 = vsel %vm1736_vm3, %v2095_v52, %v2096_v60  ;;  %v2097_v51 = vrot.slane %v1969_v38, 7  ;;  %v8776_v27 = vpop.f32.mrb[195].mxu0  ;;  %v2542_v11 = vsel %vm2513_vm4, %v2483_v23, %v2484_v14  ;;  %v2485_v28 = vrot.slane %v2357_v3, 1  ;;  %v8876_v18 = vpop.f32.mrb[195].mxu1  ;;  %v12090_v38 = vld [vmem:[%s10892_s5 + $0x18] sm:$0xff]   ;;  %v12095_v3 = vld [vmem:[%s10892_s5] sm:$0xff]  }
 0x2e6   : > { %v2178_v26 = vadd.f32 %v2153_v39, %v11621_v31  ;;  %v12070_v24 = vadd.f32 %v2542_v11, %v2177_v61  ;;  %15339 = vst [vmem:[#allocation36_spill] sm:$0xff] %v12090_v38  ;;  %v15155_v39 = vunpack.c.l.bf16 %v12090_v38  ;;  %15340 = vst [vmem:[#allocation37_spill] sm:$0xff] %v12095_v3 }
 0x2e7   : > { %v2152_v52 = vsel %vm1736_vm3, %v2096_v60, %v2097_v51  ;;  %8998 = vmatmul.mubr.bf16.gmra.mrb[44].mxu0 %v11047_v45  ;;  %v2541_v23 = vsel %vm2513_vm4, %v2484_v14, %v2485_v28  ;;  %9098 = vmatmul.mubr.bf16.gmra.mrb[44].mxu1 %v11047_v45  ;;  %v10683_v60 = vmov 4   ;;  %v15163_v14 = vunpack.c.l.bf16 %v12095_v3 }
 0x2e8   : > { %15337 = vst [vmem:[#allocation34_spill] sm:$0xff] %v12070_v24  ;;  %v2179_v31 = vadd.f32 %v2152_v52, %v11630_v34  ;;  %9001 = vmatprep.mubr.msk.bf16.mxu0 %vm10682_vm0, %v15298_v59  ;;  %v12085_v61 = vadd.f32 %v2541_v23, %v2178_v26  ;;  %9101 = vmatprep.mubr.msk.bf16.mxu1 %vm10682_vm0, %v15298_v59  ;;  %v15154_v34 = vunpack.c.h.bf16 %v12090_v38  ;;  %v15158_v26 = vunpack.c.h.bf16 %v12095_v3  ;;  %v12110_v24 = vld [vmem:[%s10892_s5 + $0x28] sm:$0xff]  }
 0x2e9   : > { %10221 = vset.pattern.permute.xlu1 %v10683_v60  ;;  %10210 = vset.pattern.permute.xlu0 %v10683_v60  ;;  %15341 = vst [vmem:[#allocation38_spill] sm:$0xff] %v12110_v24  ;;  %v15160_v38 = vunpack.c.l.bf16 %v12110_v24 }
 0x2ea   : > { %15338 = vst [vmem:[#allocation35_spill] sm:$0xff] %v12085_v61  ;;  %v1974_v27 = vpop.f32.mrb[196].mxu0  ;;  %10223 = vperm.xlu1 %10221, %v10222_v6   ;;  %v2362_v18 = vpop.f32.mrb[196].mxu1  ;;  %v10227_v23 = vpack.i.bf16 %v15154_v34, %v15155_v39  ;;  %v10211_v6 = vpack.i.bf16 %v15158_v26, %v15163_v14 }
 0x2eb   : > { %v2098_v11 = vrot.slane %v1974_v27, 7  ;;  %v8779_v52 = vpop.f32.mrb[197].mxu0  ;;  %v2486_v25 = vrot.slane %v2362_v18, 1  ;;  %v8879_v22 = vpop.f32.mrb[197].mxu1  ;;  %v15159_v18 = vunpack.c.h.bf16 %v12110_v24 }
 0x2ec   : > { %v1977_v63 = vpop.f32.mrb[198].mxu0  ;;  %v2365_v61 = vpop.f32.mrb[198].mxu1  ;;  %10212 = vperm.xlu0 %10210, %v10211_v6  }
 0x2ed   : > { %v2151_v60 = vsel %vm1736_vm3, %v2097_v51, %v2098_v11  ;;  %v2099_v27 = vrot.slane %v1977_v63, 7  ;;  %v8780_v52 = vpop.f32.mrb[199].mxu0  ;;  %v2540_v34 = vsel %vm2513_vm4, %v2485_v28, %v2486_v25  ;;  %v2487_v39 = vrot.slane %v2365_v61, 1  ;;  %v8880_v3 = vpop.f32.mrb[199].mxu1  ;;  %v12118_v51 = vld [vmem:[%s10892_s5 + $0x8] sm:$0xff]  }
 0x2ee   : > { %v2180_v22 = vadd.f32 %v2151_v60, %v11641_v62  ;;  %10228 = vperm.xlu1 %10221, %v10227_v23   ;;  %15342 = vst [vmem:[#allocation39_spill] sm:$0xff] %v12118_v51  ;;  %v15162_v63 = vunpack.c.l.bf16 %v12118_v51  ;;  %v12121_v52 = vadd.f32 %v2540_v34, %v2179_v31  ;;  %v10237_v62 = vpack.i.bf16 %v15159_v18, %v15160_v38  ;;  %v12151_v23 = vld [vmem:[%s10892_s5 + $0x20] sm:$0xff]  }
 0x2ef   : > { %v2150_v26 = vsel %vm1736_vm3, %v2098_v11, %v2099_v27  ;;  %9002 = vmatmul.mubr.bf16.gmra.mrb[48].mxu0 %v11056_v46  ;;  %v15161_v28 = vunpack.c.h.bf16 %v12118_v51  ;;  %v2539_v3 = vsel %vm2513_vm4, %v2486_v25, %v2487_v39  ;;  %9102 = vmatmul.mubr.bf16.gmra.mrb[48].mxu1 %v11056_v46  ;;  %v12146_v11 = vld [vmem:[%s10892_s5 + $0x38] sm:$0xff]   ;;  %15344 = vst [vmem:[#allocation41_spill] sm:$0xff] %v12151_v23  ;;  %v15179_v6 = vunpack.c.l.bf16 %v12151_v23  ;;  %v12166_v51 = vld [vmem:[%s10892_s5 + $0x48] sm:$0xff]  }
 0x2f0   : > { %v2181_v61 = vadd.f32 %v2150_v26, %v11650_v7  ;;  %9005 = vmatprep.mubr.msk.bf16.mxu0 %vm10682_vm0, %v15298_v59  ;;  %v12137_v31 = vadd.f32 %v2539_v3, %v2180_v22  ;;  %9105 = vmatprep.mubr.msk.bf16.mxu1 %vm10682_vm0, %v15298_v59  ;;  %15343 = vst [vmem:[#allocation40_spill] sm:$0xff] %v12146_v11  ;;  %v15171_v7 = vunpack.c.l.bf16 %v12146_v11  ;;  %v15170_v25 = vunpack.c.h.bf16 %v12146_v11 }
 0x2f1   : > { %v10216_v34 = vpack.i.bf16 %v15161_v28, %v15162_v63  ;;  %v15174_v60 = vunpack.c.h.bf16 %v12151_v23  ;;  %15345 = vst [vmem:[#allocation42_spill] sm:$0xff] %v12166_v51  ;;  %v15176_v11 = vunpack.c.l.bf16 %v12166_v51 }
 0x2f2   : > { %v1982_v26 = vpop.f32.mrb[200].mxu0  ;;  %10238 = vperm.xlu1 %10221, %v10237_v62   ;;  %v2370_v3 = vpop.f32.mrb[200].mxu1  ;;  %v10247_v38 = vpack.i.bf16 %v15170_v25, %v15171_v7 }
 0x2f3   : > { %v2100_v22 = vrot.slane %v1982_v26, 7  ;;  %v8783_v18 = vpop.f32.mrb[201].mxu0  ;;  %10217 = vperm.xlu0 %10210, %v10216_v34   ;;  %v2488_v28 = vrot.slane %v2370_v3, 1  ;;  %v8883_v63 = vpop.f32.mrb[201].mxu1  ;;  %v10232_v14 = vpack.i.bf16 %v15174_v60, %v15179_v6  ;;  %v15175_v3 = vunpack.c.h.bf16 %v12166_v51  ;;  %v12174_v60 = vld [vmem:[%s10892_s5 + $0x30] sm:$0xff]  }
 0x2f4   : > { %v1985_v62 = vpop.f32.mrb[202].mxu0  ;;  %v2373_v18 = vpop.f32.mrb[202].mxu1  ;;  %15346 = vst [vmem:[#allocation43_spill] sm:$0xff] %v12174_v60 }
 0x2f5   : > { %v2149_v26 = vsel %vm1736_vm3, %v2099_v27, %v2100_v22  ;;  %v2101_v24 = vrot.slane %v1985_v62, 7  ;;  %v8784_v34 = vpop.f32.mrb[203].mxu0  ;;  %v2538_v25 = vsel %vm2513_vm4, %v2487_v39, %v2488_v28  ;;  %v2489_v7 = vrot.slane %v2373_v18, 1  ;;  %v8884_v23 = vpop.f32.mrb[203].mxu1  ;;  %v12207_v18 = vld [vmem:[%s10892_s5 + $0x40] sm:$0xff]  }
 0x2f6   : > { %v2182_v63 = vadd.f32 %v2149_v26, %v11661_v5  ;;  %10248 = vperm.xlu1 %10221, %v10247_v38   ;;  %v15178_v27 = vunpack.c.l.bf16 %v12174_v60  ;;  %v12177_v62 = vadd.f32 %v2538_v25, %v2181_v61  ;;  %v10257_v5 = vpack.i.bf16 %v15175_v3, %v15176_v11  ;;  %v12202_v23 = vld [vmem:[%s10892_s5 + $0x58] sm:$0xff]   ;;  %v10405_v26 = vld [vmem:[#allocation7] sm:$0xff]   ;;  %15349 = vst [vmem:[#allocation46_spill] sm:$0xff] %v12207_v18 }
 0x2f7   : > { %v2148_v34 = vsel %vm1736_vm3, %v2100_v22, %v2101_v24  ;;  %9006 = vmatmul.mubr.bf16.gmra.mrb[52].mxu0 %v11065_v47  ;;  %10233 = vperm.xlu0 %10210, %v10232_v14   ;;  %v15177_v38 = vunpack.c.h.bf16 %v12174_v60  ;;  %v2537_v61 = vsel %vm2513_vm4, %v2488_v28, %v2489_v7  ;;  %15348 = vst [vmem:[#allocation45_spill] sm:$0xff] %v12202_v23  ;;  %v15184_v28 = vunpack.c.h.bf16 %v12202_v23 }
 0x2f8   : > { %v2183_v39 = vadd.f32 %v2148_v34, %v11670_v55  ;;  %9106 = vmatmul.mubr.bf16.gmra.mrb[52].mxu1 %v11065_v47  ;;  %9009 = vmatprep.mubr.msk.bf16.mxu0 %vm10682_vm0, %v15298_v59  ;;  %v12193_v25 = vadd.f32 %v2537_v61, %v2182_v63  ;;  %v15185_v55 = vunpack.c.l.bf16 %v12202_v23  ;;  %v15187_v63 = vunpack.c.l.bf16 %v12207_v18 }
 0x2f9   : > { %9109 = vmatprep.mubr.msk.bf16.mxu1 %vm10682_vm0, %v15298_v59  ;;  %v10242_v14 = vpack.i.bf16 %v15177_v38, %v15178_v27  ;;  %v15186_v34 = vunpack.c.h.bf16 %v12207_v18  ;;  %9234 = vmatpush3.bf16.msra.mxu1 %v10405_v26 }
 0x2fa   : > { %15347 = vst [vmem:[#allocation44_spill] sm:$0xff] %v12193_v25  ;;  %v1990_v22 = vpop.f32.mrb[204].mxu0  ;;  %10258 = vperm.xlu1 %10221, %v10257_v5   ;;  %v2378_v3 = vpop.f32.mrb[204].mxu1  ;;  %v10267_v38 = vpack.i.bf16 %v15184_v28, %v15185_v55  ;;  %v12222_v25 = vld [vmem:[%s10892_s5 + $0x68] sm:$0xff]   ;;  %9235 = vmatprep.subr.bf16.mxu1 %v15298_v59 }
 0x2fb   : > { %v2102_v61 = vrot.slane %v1990_v22, 7  ;;  %v8787_v11 = vpop.f32.mrb[205].mxu0  ;;  %10243 = vperm.xlu0 %10210, %v10242_v14   ;;  %v2490_v27 = vrot.slane %v2378_v3, 1  ;;  %v8887_v6 = vpop.f32.mrb[205].mxu1  ;;  %v10252_v51 = vpack.i.bf16 %v15186_v34, %v15187_v63  ;;  %15350 = vst [vmem:[#allocation47_spill] sm:$0xff] %v12222_v25  ;;  %v15189_v28 = vunpack.c.l.bf16 %v12222_v25 }
 0x2fc   : > { %v1993_v5 = vpop.f32.mrb[206].mxu0  ;;  %v2381_v14 = vpop.f32.mrb[206].mxu1  ;;  %v15188_v6 = vunpack.c.h.bf16 %v12222_v25 }
 0x2fd   : > { %v2147_v22 = vsel %vm1736_vm3, %v2101_v24, %v2102_v61  ;;  %v2103_v11 = vrot.slane %v1993_v5, 7  ;;  %v8788_v60 = vpop.f32.mrb[207].mxu0  ;;  %v2536_v26 = vsel %vm2513_vm4, %v2489_v7, %v2490_v27  ;;  %v2491_v55 = vrot.slane %v2381_v14, 1  ;;  %v8888_v34 = vpop.f32.mrb[207].mxu1  ;;  %v12231_v24 = vld [vmem:[%s10892_s5 + $0x50] sm:$0xff]  }
 0x2fe   : > { %v2184_v3 = vadd.f32 %v2147_v22, %v11681_v19  ;;  %10268 = vperm.xlu1 %10221, %v10267_v38   ;;  %15351 = vst [vmem:[#allocation48_spill] sm:$0xff] %v12231_v24  ;;  %v15191_v60 = vunpack.c.l.bf16 %v12231_v24  ;;  %v12234_v5 = vadd.f32 %v2536_v26, %v2183_v39  ;;  %v10277_v19 = vpack.i.bf16 %v15188_v6, %v15189_v28  ;;  %v12264_v22 = vld [vmem:[%s10892_s5 + $0x60] sm:$0xff]  }
 0x2ff   : > { %v2146_v63 = vsel %vm1736_vm3, %v2102_v61, %v2103_v11  ;;  %9010 = vmatmul.mubr.bf16.gmra.mrb[56].mxu0 %v11074_v48  ;;  %10253 = vperm.xlu0 %10210, %v10252_v51   ;;  %v15190_v7 = vunpack.c.h.bf16 %v12231_v24  ;;  %v2535_v39 = vsel %vm2513_vm4, %v2490_v27, %v2491_v55  ;;  %v12259_v61 = vld [vmem:[%s10892_s5 + $0x78] sm:$0xff]   ;;  %15353 = vst [vmem:[#allocation50_spill] sm:$0xff] %v12264_v22  ;;  %v15209_v14 = vunpack.c.l.bf16 %v12264_v22  ;;  %v12279_v24 = vld [vmem:[%s10892_s5 + $0x88] sm:$0xff]  }
 0x300   : > { %v2185_v38 = vadd.f32 %v2146_v63, %v11690_v21  ;;  %9110 = vmatmul.mubr.bf16.gmra.mrb[56].mxu1 %v11074_v48  ;;  %9013 = vmatprep.mubr.msk.bf16.mxu0 %vm10682_vm0, %v15298_v59  ;;  %v12250_v34 = vadd.f32 %v2535_v39, %v2184_v3  ;;  %15352 = vst [vmem:[#allocation49_spill] sm:$0xff] %v12259_v61  ;;  %v15201_v21 = vunpack.c.l.bf16 %v12259_v61  ;;  %v15200_v27 = vunpack.c.h.bf16 %v12259_v61 }
 0x301   : > { %9113 = vmatprep.mubr.msk.bf16.mxu1 %vm10682_vm0, %v15298_v59  ;;  %v10262_v51 = vpack.i.bf16 %v15190_v7, %v15191_v60  ;;  %v15204_v3 = vunpack.c.h.bf16 %v12264_v22  ;;  %15354 = vst [vmem:[#allocation51_spill] sm:$0xff] %v12279_v24  ;;  %v15206_v61 = vunpack.c.l.bf16 %v12279_v24 }
 0x302   : > { %v1998_v63 = vpop.f32.mrb[208].mxu0  ;;  %10278 = vperm.xlu1 %10221, %v10277_v19   ;;  %v2386_v39 = vpop.f32.mrb[208].mxu1  ;;  %v10287_v28 = vpack.i.bf16 %v15200_v27, %v15201_v21 }
 0x303   : > { %v2104_v26 = vrot.slane %v1998_v63, 7  ;;  %v8791_v6 = vpop.f32.mrb[209].mxu0  ;;  %10263 = vperm.xlu0 %10210, %v10262_v51   ;;  %v2492_v7 = vrot.slane %v2386_v39, 1  ;;  %v8891_v60 = vpop.f32.mrb[209].mxu1  ;;  %v10272_v25 = vpack.i.bf16 %v15204_v3, %v15209_v14  ;;  %v15205_v39 = vunpack.c.h.bf16 %v12279_v24  ;;  %v12287_v3 = vld [vmem:[%s10892_s5 + $0x70] sm:$0xff]  }
 0x304   : > { %v2001_v19 = vpop.f32.mrb[210].mxu0  ;;  %v2389_v6 = vpop.f32.mrb[210].mxu1  ;;  %15355 = vst [vmem:[#allocation52_spill] sm:$0xff] %v12287_v3 }
 0x305   : > { %v2145_v63 = vsel %vm1736_vm3, %v2103_v11, %v2104_v26  ;;  %v2105_v23 = vrot.slane %v2001_v19, 7  ;;  %v8792_v51 = vpop.f32.mrb[211].mxu0  ;;  %v2534_v27 = vsel %vm2513_vm4, %v2491_v55, %v2492_v7  ;;  %v2493_v21 = vrot.slane %v2389_v6, 1  ;;  %v8892_v22 = vpop.f32.mrb[211].mxu1 }
 0x306   : > { %v2186_v60 = vadd.f32 %v2145_v63, %v11701_v17  ;;  %10288 = vperm.xlu1 %10221, %v10287_v28   ;;  %v15208_v11 = vunpack.c.l.bf16 %v12287_v3  ;;  %v12290_v19 = vadd.f32 %v2534_v27, %v2185_v38  ;;  %v10297_v17 = vpack.i.bf16 %v15205_v39, %v15206_v61  ;;  %v12315_v22 = vld [vmem:[%s10892_s5 + $0x98] sm:$0xff]   ;;  %v12320_v63 = vld [vmem:[%s10892_s5 + $0x80] sm:$0xff]  }
 0x307   : > { %v2144_v51 = vsel %vm1736_vm3, %v2104_v26, %v2105_v23  ;;  %9014 = vmatmul.mubr.bf16.gmra.mrb[60].mxu0 %v11083_v49  ;;  %10273 = vperm.xlu0 %10210, %v10272_v25   ;;  %v15207_v55 = vunpack.c.h.bf16 %v12287_v3  ;;  %v2533_v38 = vsel %vm2513_vm4, %v2492_v7, %v2493_v21  ;;  %15356 = vst [vmem:[#allocation53_spill] sm:$0xff] %v12315_v22  ;;  %v15217_v7 = vunpack.c.h.bf16 %v12315_v22 }
 0x308   : > { %v2187_v28 = vadd.f32 %v2144_v51, %v11710_v4  ;;  %9114 = vmatmul.mubr.bf16.gmra.mrb[60].mxu1 %v11083_v49  ;;  %9017 = vmatprep.mubr.msk.bf16.mxu0 %vm10682_vm0, %v15298_v59  ;;  %v12306_v27 = vadd.f32 %v2533_v38, %v2186_v60  ;;  %v15216_v4 = vunpack.c.l.bf16 %v12315_v22  ;;  %15357 = vst [vmem:[#allocation54_spill] sm:$0xff] %v12320_v63  ;;  %v15223_v6 = vunpack.c.l.bf16 %v12320_v63 }
 0x309   : > { %9117 = vmatprep.mubr.msk.bf16.mxu1 %vm10682_vm0, %v15298_v59  ;;  %v10282_v25 = vpack.i.bf16 %v15207_v55, %v15208_v11  ;;  %v15220_v60 = vunpack.c.h.bf16 %v12320_v63 }
 0x30a   : > { %v2006_v26 = vpop.f32.mrb[212].mxu0  ;;  %10298 = vperm.xlu1 %10221, %v10297_v17   ;;  %v2394_v38 = vpop.f32.mrb[212].mxu1  ;;  %v10307_v61 = vpack.i.bf16 %v15217_v7, %v15216_v4 }
 0x30b   : > { %v2106_v51 = vrot.slane %v2006_v26, 7  ;;  %v8795_v39 = vpop.f32.mrb[213].mxu0  ;;  %10283 = vperm.xlu0 %10210, %v10282_v25   ;;  %v2494_v55 = vrot.slane %v2394_v38, 1  ;;  %v8895_v11 = vpop.f32.mrb[213].mxu1  ;;  %v10292_v17 = vpack.i.bf16 %v15220_v60, %v15223_v6  ;;  %v12335_v25 = vld [vmem:[%s10892_s5 + $0x90] sm:$0xff]  }
 0x30c   : > { %v2009_v14 = vpop.f32.mrb[214].mxu0  ;;  %v2397_v3 = vpop.f32.mrb[214].mxu1  ;;  %15358 = vst [vmem:[#allocation55_spill] sm:$0xff] %v12335_v25  ;;  %v15222_v18 = vunpack.c.l.bf16 %v12335_v25  ;;  %v15221_v4 = vunpack.c.h.bf16 %v12335_v25 }
 0x30d   : > { %v2143_v24 = vsel %vm1736_vm3, %v2105_v23, %v2106_v51  ;;  %v2107_v26 = vrot.slane %v2009_v14, 7  ;;  %v8796_v39 = vpop.f32.mrb[215].mxu0  ;;  %v2532_v38 = vsel %vm2513_vm4, %v2493_v21, %v2494_v55  ;;  %v2495_v7 = vrot.slane %v2397_v3, 1  ;;  %v8896_v63 = vpop.f32.mrb[215].mxu1 }
 0x30e   : > { %v2188_v11 = vadd.f32 %v2143_v24, %v11721_v20  ;;  %10308 = vperm.xlu1 %10221, %v10307_v61   ;;  %v12342_v60 = vadd.f32 %v2532_v38, %v2187_v28  ;;  %v10302_v20 = vpack.i.bf16 %v15221_v4, %v15222_v18  ;;  %v15359_v24 = vld [vmem:[#allocation31_spill] sm:$0xff]  ;;  %v12362_v39 = vld [vmem:[%s10892_s5 + $0xa0] sm:$0xf] }
 0x30f   : > { %v2142_v23 = vsel %vm1736_vm3, %v2106_v51, %v2107_v26  ;;  %9018 = vmatmul.mubr.bf16.gmra.mrb[64].mxu0 %v11092_v50  ;;  %10293 = vperm.xlu0 %10210, %v10292_v17   ;;  %v2531_v21 = vsel %vm2513_vm4, %v2494_v55, %v2495_v7  ;;  %v10406_v28 = vld [vmem:[#allocation7 + $0x8] sm:$0xff]   ;;  %15360 = vst [vmem:[#allocation31_spill] sm:$0xff] %v12362_v39 }
 0x310   : > { %v2189_v14 = vadd.f32 %v2142_v23, %v15359_v24  ;;  %9118 = vmatmul.mubr.bf16.gmra.mrb[64].mxu1 %v11092_v50  ;;  %9021 = vmatprep.mubr.msk.bf16.mxu0 %vm10682_vm0, %v15298_v59  ;;  %v12357_v61 = vadd.f32 %v2531_v21, %v2188_v11 }
 0x311   : > { %9121 = vmatprep.mubr.msk.bf16.mxu1 %vm10682_vm0, %v15298_v59  ;;  %9236 = vmatpush3.bf16.msra.mxu1 %v10406_v28 }
 0x312   : > { %v2014_v3 = vpop.f32.mrb[216].mxu0  ;;  %v2402_v51 = vpop.f32.mrb[216].mxu1  ;;  %9237 = vmatprep.subr.bf16.mxu1 %v15298_v59 }
 0x313   : > { %v2108_v63 = vrot.slane %v2014_v3, 7  ;;  %v8799_v17 = vpop.f32.mrb[217].mxu0  ;;  %10303 = vperm.xlu0 %10210, %v10302_v20   ;;  %v2496_v38 = vrot.slane %v2402_v51, 1  ;;  %v8899_v23 = vpop.f32.mrb[217].mxu1  ;;  %v15361_v3 = vld [vmem:[#allocation21_spill] sm:$0xff]  ;;  %v15363_v51 = vld [vmem:[#allocation18_spill] sm:$0xff] }
 0x314   : > { %v2017_v24 = vpop.f32.mrb[218].mxu0  ;;  %v2405_v4 = vpop.f32.mrb[218].mxu1 }
 0x315   : > { %v2141_v11 = vsel %vm1736_vm3, %v2107_v26, %v2108_v63  ;;  %v2109_v21 = vrot.slane %v2017_v24, 7  ;;  %v8800_v18 = vpop.f32.mrb[219].mxu0  ;;  %v2530_v20 = vsel %vm2513_vm4, %v2495_v7, %v2496_v38  ;;  %v2497_v17 = vrot.slane %v2405_v4, 1  ;;  %v8900_v25 = vpop.f32.mrb[219].mxu1 }
 0x316   : > { %v2190_v6 = vadd.f32 %v2141_v11, %v15361_v3  ;;  %v12371_v55 = vadd.f32 %v2530_v20, %v2189_v14  ;;  %v15364_v26 = vunpack.c.l.bf16 %v12362_v39  ;;  %v15365_v18 = vld [vmem:[#allocation32_spill] sm:$0xff]  ;;  %v15367_v39 = vld [vmem:[#allocation22_spill] sm:$0xff] }
 0x317   : > { %v2140_v28 = vsel %vm1736_vm3, %v2108_v63, %v2109_v21  ;;  %9022 = vmatmul.mubr.bf16.gmra.mrb[68].mxu0 %v15363_v51  ;;  %v2529_v24 = vsel %vm2513_vm4, %v2496_v38, %v2497_v17 }
 0x318   : > { %15362 = vst [vmem:[#allocation21_spill] sm:$0xff] %v12371_v55  ;;  %4051 = vperm.xlu0 %10210, %v15364_v26   ;;  %v2191_v23 = vadd.f32 %v2140_v28, %v15365_v18  ;;  %9122 = vmatmul.mubr.bf16.gmra.mrb[68].mxu1 %v15363_v51  ;;  %v12384_v4 = vadd.f32 %v2529_v24, %v2190_v6 }
 0x319   : > { %9025 = vmatprep.mubr.msk.bf16.mxu0 %vm10682_vm0, %v15298_v59  ;;  %9125 = vmatprep.mubr.msk.bf16.mxu1 %vm10682_vm0, %v15298_v59 }
 0x31a   : > { %15366 = vst [vmem:[#allocation18_spill] sm:$0xff] %v12384_v4  ;;  %v2022_v7 = vpop.f32.mrb[220].mxu0  ;;  %v2410_v14 = vpop.f32.mrb[220].mxu1 }
 0x31b   : > { %v2110_v25 = vrot.slane %v2022_v7, 7  ;;  %v8803_v63 = vpop.f32.mrb[221].mxu0  ;;  %v2498_v11 = vrot.slane %v2410_v14, 1  ;;  %v8903_v3 = vpop.f32.mrb[221].mxu1  ;;  %v15369_v14 = vld [vmem:[#allocation19_spill] sm:$0xff] }
 0x31c   : > { %v2025_v20 = vpop.f32.mrb[222].mxu0  ;;  %v2413_v26 = vpop.f32.mrb[222].mxu1  ;;  %v15370_v63 = vld [vmem:[#allocation33_spill] sm:$0xff] }
 0x31d   : > { %v2139_v38 = vsel %vm1736_vm3, %v2109_v21, %v2110_v25  ;;  %v2111_v28 = vrot.slane %v2025_v20, 7  ;;  %v8804_v18 = vpop.f32.mrb[223].mxu0  ;;  %v2528_v6 = vsel %vm2513_vm4, %v2497_v17, %v2498_v11  ;;  %v2499_v24 = vrot.slane %v2413_v26, 1  ;;  %v8904_v4 = vpop.f32.mrb[223].mxu1 }
 0x31e   : > { %v2192_v22 = vadd.f32 %v2139_v38, %v15367_v39  ;;  %v12393_v55 = vadd.f32 %v2528_v6, %v2191_v23 }
 0x31f   : > { %v2138_v7 = vsel %vm1736_vm3, %v2110_v25, %v2111_v28  ;;  %9026 = vmatmul.mubr.bf16.gmra.mrb[72].mxu0 %v15369_v14  ;;  %v2527_v21 = vsel %vm2513_vm4, %v2498_v11, %v2499_v24 }
 0x320   : > { %15368 = vst [vmem:[#allocation32_spill] sm:$0xff] %v12393_v55  ;;  %v2193_v3 = vadd.f32 %v2138_v7, %v15370_v63  ;;  %9126 = vmatmul.mubr.bf16.gmra.mrb[72].mxu1 %v15369_v14  ;;  %9029 = vmatprep.mubr.msk.bf16.mxu0 %vm10682_vm0, %v15298_v59  ;;  %v12404_v39 = vadd.f32 %v2527_v21, %v2192_v22  ;;  %v15372_v63 = vld [vmem:[#allocation23_spill] sm:$0xff]  ;;  %v10407_v14 = vld [vmem:[#allocation7 + $0x10] sm:$0xff]  }
 0x321   : > { %9129 = vmatprep.mubr.msk.bf16.mxu1 %vm10682_vm0, %v15298_v59  ;;  %9238 = vmatpush3.bf16.msra.mxu1 %v10407_v14 }
 0x322   : > { %15371 = vst [vmem:[#allocation22_spill] sm:$0xff] %v12404_v39  ;;  %v2030_v17 = vpop.f32.mrb[224].mxu0  ;;  %v2418_v4 = vpop.f32.mrb[224].mxu1  ;;  %9239 = vmatprep.subr.bf16.mxu1 %v15298_v59 }
 0x323   : > { %v2112_v23 = vrot.slane %v2030_v17, 7  ;;  %v8807_v25 = vpop.f32.mrb[225].mxu0  ;;  %v2500_v20 = vrot.slane %v2418_v4, 1  ;;  %v8907_v38 = vpop.f32.mrb[225].mxu1 }
 0x324   : > { %v2033_v26 = vpop.f32.mrb[226].mxu0  ;;  %v2421_v6 = vpop.f32.mrb[226].mxu1  ;;  %v15374_v25 = vld [vmem:[#allocation20_spill] sm:$0xff] }
 0x325   : > { %v2137_v11 = vsel %vm1736_vm3, %v2111_v28, %v2112_v23  ;;  %v2113_v18 = vrot.slane %v2033_v26, 7  ;;  %v8808_v7 = vpop.f32.mrb[227].mxu0  ;;  %v2526_v22 = vsel %vm2513_vm4, %v2499_v24, %v2500_v20  ;;  %v2501_v21 = vrot.slane %v2421_v6, 1  ;;  %v8908_v39 = vpop.f32.mrb[227].mxu1  ;;  %v15375_v38 = vld [vmem:[#allocation24_spill] sm:$0xff] }
 0x326   : > { %v2194_v55 = vadd.f32 %v2137_v11, %v15372_v63  ;;  %v12413_v17 = vadd.f32 %v2526_v22, %v2193_v3 }
 0x327   : > { %v2136_v4 = vsel %vm1736_vm3, %v2112_v23, %v2113_v18  ;;  %9030 = vmatmul.mubr.bf16.gmra.mrb[76].mxu0 %v15374_v25  ;;  %v2525_v26 = vsel %vm2513_vm4, %v2500_v20, %v2501_v21 }
 0x328   : > { %15373 = vst [vmem:[#allocation33_spill] sm:$0xff] %v12413_v17  ;;  %v2195_v28 = vadd.f32 %v2136_v4, %v15375_v38  ;;  %9130 = vmatmul.mubr.bf16.gmra.mrb[76].mxu1 %v15374_v25  ;;  %9149 = vmatprep.mubr.msk.bf16.mxu0 %vm10682_vm0, %v15298_v59  ;;  %v12424_v24 = vadd.f32 %v2525_v26, %v2194_v55  ;;  %v15377_v38 = vld [vmem:[#allocation25_spill] sm:$0xff] }
 0x329   : > { %9249 = vmatprep.mubr.msk.bf16.mxu1 %vm10682_vm0, %v15298_v59 }
 0x32a   : > { %15376 = vst [vmem:[#allocation23_spill] sm:$0xff] %v12424_v24  ;;  %v2038_v3 = vpop.f32.mrb[228].mxu0  ;;  %v2426_v23 = vpop.f32.mrb[228].mxu1 }
 0x32b   : > { %v2114_v39 = vrot.slane %v2038_v3, 7  ;;  %v8811_v11 = vpop.f32.mrb[229].mxu0  ;;  %v2502_v6 = vrot.slane %v2426_v23, 1  ;;  %v8911_v7 = vpop.f32.mrb[229].mxu1  ;;  %v15378_v23 = vld [vmem:[#allocation26_spill] sm:$0xff] }
 0x32c   : > { %v2041_v20 = vpop.f32.mrb[230].mxu0  ;;  %v2429_v4 = vpop.f32.mrb[230].mxu1 }
 0x32d   : > { %v2135_v63 = vsel %vm1736_vm3, %v2113_v18, %v2114_v39  ;;  %v2115_v22 = vrot.slane %v2041_v20, 7  ;;  %v8812_v55 = vpop.f32.mrb[231].mxu0  ;;  %v2524_v26 = vsel %vm2513_vm4, %v2501_v21, %v2502_v6  ;;  %v2503_v24 = vrot.slane %v2429_v4, 1  ;;  %v8912_v17 = vpop.f32.mrb[231].mxu1 }
 0x32e   : > { %v2196_v14 = vadd.f32 %v2135_v63, %v15377_v38  ;;  %v12434_v25 = vadd.f32 %v2524_v26, %v2195_v28 }
 0x32f   : > { %v2134_v3 = vsel %vm1736_vm3, %v2114_v39, %v2115_v22  ;;  %9150 = vmatmul.mubr.bf16.vlgmr.msra.gmra.mrb[80].mxu0 %v15318_v8  ;;  %v2523_v18 = vsel %vm2513_vm4, %v2502_v6, %v2503_v24 }
 0x330   : > { %v2197_v11 = vadd.f32 %v2134_v3, %v15378_v23  ;;  %9153 = vmatprep.mubr.msk.bf16.mxu0 %vm10682_vm0, %v15298_v59  ;;  %v12444_v7 = vadd.f32 %v2523_v18, %v2196_v14 }
 0x332   : > { %v2046_v21 = vpop.f32.mrb[232].mxu0  ;;  %v2434_v17 = vpop.f32.mrb[232].mxu1 }
 0x333   : > { %v2116_v20 = vrot.slane %v2046_v21, 7  ;;  %v8815_v28 = vpop.f32.mrb[233].mxu0  ;;  %v2504_v63 = vrot.slane %v2434_v17, 1  ;;  %v8915_v4 = vpop.f32.mrb[233].mxu1  ;;  %v15379_v17 = vld [vmem:[#allocation27_spill] sm:$0xff] }
 0x334   : > { %v2049_v55 = vpop.f32.mrb[234].mxu0  ;;  %v2437_v38 = vpop.f32.mrb[234].mxu1  ;;  %v10408_v4 = vld [vmem:[#allocation7 + $0x18] sm:$0xff]  }
 0x335   : > { %v2133_v8 = vsel %vm1736_vm3, %v2115_v22, %v2116_v20  ;;  %v2117_v39 = vrot.slane %v2049_v55, 7  ;;  %v8816_v26 = vpop.f32.mrb[235].mxu0  ;;  %v2522_v3 = vsel %vm2513_vm4, %v2503_v24, %v2504_v63  ;;  %v2505_v14 = vrot.slane %v2437_v38, 1  ;;  %v8916_v23 = vpop.f32.mrb[235].mxu1  ;;  %9240 = vmatpush3.bf16.msra.mxu1 %v10408_v4 }
 0x336   : > { %v2198_v6 = vadd.f32 %v2133_v8, %v11821_v57  ;;  %v12451_v18 = vadd.f32 %v2522_v3, %v2197_v11  ;;  %9241 = vmatprep.subr.bf16.mxu1 %v15298_v59 }
 0x337   : > { %v2132_v21 = vsel %vm1736_vm3, %v2116_v20, %v2117_v39  ;;  %9154 = vmatmul.mubr.bf16.gmra.mrb[84].mxu0 %v15321_v12  ;;  %v2521_v22 = vsel %vm2513_vm4, %v2504_v63, %v2505_v14 }
 0x338   : > { %v2199_v28 = vadd.f32 %v2132_v21, %v15379_v17  ;;  %9157 = vmatprep.mubr.msk.bf16.mxu0 %vm10682_vm0, %v15298_v59  ;;  %v12461_v57 = vadd.f32 %v2521_v22, %v2198_v6  ;;  %v15380_v21 = vld [vmem:[#allocation12_spill] sm:$0xff] }
 0x33a   : > { %v2054_v24 = vpop.f32.mrb[236].mxu0  ;;  %v2442_v11 = vpop.f32.mrb[236].mxu1 }
 0x33b   : > { %v2118_v55 = vrot.slane %v2054_v24, 7  ;;  %v8819_v8 = vpop.f32.mrb[237].mxu0  ;;  %v2506_v38 = vrot.slane %v2442_v11, 1  ;;  %v8919_v26 = vpop.f32.mrb[237].mxu1 }
 0x33c   : > { %v2057_v20 = vpop.f32.mrb[238].mxu0  ;;  %v2445_v23 = vpop.f32.mrb[238].mxu1 }
 0x33d   : > { %v2131_v12 = vsel %vm1736_vm3, %v2117_v39, %v2118_v55  ;;  %v2119_v3 = vrot.slane %v2057_v20, 7  ;;  %v8820_v63 = vpop.f32.mrb[239].mxu0  ;;  %v2520_v17 = vsel %vm2513_vm4, %v2505_v14, %v2506_v38  ;;  %v2507_v22 = vrot.slane %v2445_v23, 1  ;;  %v8920_v24 = vpop.f32.mrb[239].mxu1  ;;  %v15381_v39 = vld [vmem:[#allocation28_spill] sm:$0xff] }
 0x33e   : > { %v2200_v6 = vadd.f32 %v2131_v12, %v15380_v21  ;;  %v12469_v8 = vadd.f32 %v2520_v17, %v2199_v28 }
 0x33f   : > { %v2130_v4 = vsel %vm1736_vm3, %v2118_v55, %v2119_v3  ;;  %9158 = vmatmul.mubr.bf16.gmra.mrb[88].mxu0 %v15325_v54  ;;  %v2519_v26 = vsel %vm2513_vm4, %v2506_v38, %v2507_v22 }
 0x340   : > { %v2201_v11 = vadd.f32 %v2130_v4, %v15381_v39  ;;  %9161 = vmatprep.mubr.msk.bf16.mxu0 %vm10682_vm0, %v15298_v59  ;;  %v12479_v20 = vadd.f32 %v2519_v26, %v2200_v6 }
 0x342   : > { %15382 = vst [vmem:[#allocation24_spill] sm:$0xff] %v12479_v20  ;;  %v2062_v14 = vpop.f32.mrb[240].mxu0  ;;  %v2450_v23 = vpop.f32.mrb[240].mxu1 }
 0x343   : > { %v2120_v12 = vrot.slane %v2062_v14, 7  ;;  %v8823_v28 = vpop.f32.mrb[241].mxu0  ;;  %v2508_v63 = vrot.slane %v2450_v23, 1  ;;  %v8923_v21 = vpop.f32.mrb[241].mxu1  ;;  %v15383_v23 = vld [vmem:[#allocation13_spill] sm:$0xff] }
 0x344   : > { %v2065_v17 = vpop.f32.mrb[242].mxu0  ;;  %v2453_v24 = vpop.f32.mrb[242].mxu1 }
 0x345   : > { %v2129_v54 = vsel %vm1736_vm3, %v2119_v3, %v2120_v12  ;;  %v2121_v55 = vrot.slane %v2065_v17, 7  ;;  %v8824_v4 = vpop.f32.mrb[243].mxu0  ;;  %v2518_v39 = vsel %vm2513_vm4, %v2507_v22, %v2508_v63  ;;  %v2509_v6 = vrot.slane %v2453_v24, 1  ;;  %v8924_v26 = vpop.f32.mrb[243].mxu1 }
 0x346   : > { %v2202_v38 = vadd.f32 %v2129_v54, %v11865_v35  ;;  %v12486_v20 = vadd.f32 %v2518_v39, %v2201_v11 }
 0x347   : > { %v2128_v14 = vsel %vm1736_vm3, %v2120_v12, %v2121_v55  ;;  %9162 = vmatmul.mubr.bf16.gmra.mrb[92].mxu0 %v15327_v0  ;;  %v2517_v3 = vsel %vm2513_vm4, %v2508_v63, %v2509_v6 }
 0x348   : > { %v2203_v28 = vadd.f32 %v2128_v14, %v15383_v23  ;;  %9165 = vmatprep.mubr.msk.bf16.mxu0 %vm10682_vm0, %v15298_v59  ;;  %v12496_v35 = vadd.f32 %v2517_v3, %v2202_v38 }
 0x34a   : > { %v2070_v22 = vpop.f32.mrb[244].mxu0  ;;  %v2458_v17 = vpop.f32.mrb[244].mxu1 }
 0x34b   : > { %v2122_v21 = vrot.slane %v2070_v22, 7  ;;  %v8827_v11 = vpop.f32.mrb[245].mxu0  ;;  %v2510_v54 = vrot.slane %v2458_v17, 1  ;;  %v8927_v24 = vpop.f32.mrb[245].mxu1  ;;  %v15384_v17 = vld [vmem:[#allocation29_spill] sm:$0xff] }
 0x34c   : > { %v2073_v4 = vpop.f32.mrb[246].mxu0  ;;  %v2461_v39 = vpop.f32.mrb[246].mxu1 }
 0x34d   : > { %v2127_v0 = vsel %vm1736_vm3, %v2121_v55, %v2122_v21  ;;  %v2123_v12 = vrot.slane %v2073_v4, 7  ;;  %v8828_v26 = vpop.f32.mrb[247].mxu0  ;;  %v2516_v14 = vsel %vm2513_vm4, %v2509_v6, %v2510_v54  ;;  %v2511_v38 = vrot.slane %v2461_v39, 1  ;;  %v8928_v23 = vpop.f32.mrb[247].mxu1 }
 0x34e   : > { %v2204_v63 = vadd.f32 %v2127_v0, %v11887_v2  ;;  %v12503_v3 = vadd.f32 %v2516_v14, %v2203_v28  ;;  %v10409_v2 = vld [vmem:[#allocation7 + $0x20] sm:$0xff]   ;;  %v2472_v6 = vrot.slane %v11942_v1, 1 }
 0x34f   : > { %v2126_v22 = vsel %vm1736_vm3, %v2122_v21, %v2123_v12  ;;  %9166 = vmatmul.mubr.bf16.gmra.mrb[96].mxu0 %v10963_v32  ;;  %v2515_v55 = vsel %vm2513_vm4, %v2510_v54, %v2511_v38  ;;  %9242 = vmatpush3.bf16.msra.mxu1 %v10409_v2  ;;  %v15385_v54 = vrot.slane %v11945_v33, 1 }
 0x350   : > { %v2205_v11 = vadd.f32 %v2126_v22, %v15384_v17  ;;  %9169 = vmatprep.mubr.msk.bf16.mxu0 %vm10682_vm0, %v15298_v59  ;;  %v12514_v24 = vadd.f32 %v2515_v55, %v2204_v63  ;;  %9243 = vmatprep.subr.bf16.mxu1 %v15298_v59  ;;  %v15386_v63 = vrot.slane %v11940_v16, 7 }
 0x351   : > { %v2553_v14 = vsel %vm2513_vm4, %v2472_v6, %v15385_v54 }
 0x352   : > { %v2078_v28 = vpop.f32.mrb[248].mxu0  ;;  %v2466_v0 = vpop.f32.mrb[248].mxu1 }
 0x353   : > { %v2124_v4 = vrot.slane %v2078_v28, 7  ;;  %v8831_v21 = vpop.f32.mrb[249].mxu0  ;;  %v2512_v32 = vrot.slane %v2466_v0, 1  ;;  %v8931_v26 = vpop.f32.mrb[249].mxu1 }
 0x354   : > { %v2081_v39 = vpop.f32.mrb[250].mxu0  ;;  %v2469_v17 = vpop.f32.mrb[250].mxu1 }
 0x355   : > { %v2125_v1 = vsel %vm1736_vm3, %v2123_v12, %v2124_v4  ;;  %v2165_v23 = vsel %vm1736_vm3, %v2124_v4, %v15386_v63  ;;  %v8832_v22 = vpop.f32.mrb[251].mxu0  ;;  %v2514_v33 = vsel %vm2513_vm4, %v2511_v38, %v2512_v32  ;;  %v2554_v28 = vsel %vm2513_vm4, %v2512_v32, %v2472_v6  ;;  %v8932_v0 = vpop.f32.mrb[251].mxu1  ;;  %v15387_v12 = vld [vmem:[#allocation16_spill] sm:$0xff] }
 0x356   : > { %v2166_v55 = vadd.f32 %v2165_v23, %v11918_v30  ;;  %v2206_v2 = vadd.f32 %v2125_v1, %v11909_v53  ;;  %v2594_v21 = vadd.f32 %v2514_v33, %v2205_v11  ;;  %v15388_v22 = vld [vmem:[#allocation17_spill] sm:$0xff] }
 0x357   : > { %9170 = vmatmul.mubr.bf16.gmra.mrb[100].mxu0 %v15387_v12 }
 0x358   : > { %v2595_v16 = vadd.f32 %v2554_v28, %v2206_v2  ;;  %9173 = vmatprep.mubr.msk.bf16.mxu0 %vm10682_vm0, %v15298_v59  ;;  %v2555_v4 = vadd.f32 %v2553_v14, %v2166_v55 }
 0x35a   : > { %v12536_v39 = vpop.f32.mrb[252].mxu0  ;;  %v12538_v26 = vpop.f32.mrb[252].mxu1 }
 0x35b   : > { %v8951_v30 = vpop.f32.mrb[253].mxu0  ;;  %v15231_v38 = vrot.slane %v12538_v26, 2  ;;  %v9051_v54 = vpop.f32.mrb[253].mxu1  ;;  %v15232_v6 = vrot.slane %v12536_v39, 1 }
 0x35c   : > { %v2698_v53 = vpop.f32.mrb[254].mxu0  ;;  %v3086_v1 = vpop.f32.mrb[254].mxu1 }
 0x35d   : > { %v2862_v32 = vrot.slane %v2698_v53, 1  ;;  %v8952_v11 = vpop.f32.mrb[255].mxu0  ;;  %v3250_v63 = vrot.slane %v3086_v1, 2  ;;  %v9052_v23 = vpop.f32.mrb[255].mxu1 }
 0x35f   : > { %v2941_v14 = vsel %vm2513_vm4, %v15232_v6, %v2862_v32  ;;  %9174 = vmatmul.mubr.bf16.gmra.mrb[104].mxu0 %v15388_v22  ;;  %v3330_v55 = vsel %vm3290_vm5, %v15231_v38, %v3250_v63  ;;  %v10410_v38 = vld [vmem:[#allocation7 + $0x28] sm:$0xff]  }
 0x360   : > { %v2982_v17 = vadd.f32 %v2941_v14, %v2594_v21  ;;  %9177 = vmatprep.mubr.msk.bf16.mxu0 %vm10682_vm0, %v15298_v59  ;;  %9244 = vmatpush3.bf16.msra.mxu1 %v10410_v38  ;;  %v15389_v38 = vld [vmem:[#allocation14_spill] sm:$0xff] }
 0x361   : > { %9245 = vmatprep.subr.bf16.mxu1 %v15298_v59 }
 0x362   : > { %v2703_v2 = vpop.f32.mrb[0].mxu0  ;;  %v12554_v33 = vadd.f32 %v3330_v55, %v2982_v17  ;;  %v3091_v12 = vpop.f32.mrb[0].mxu1 }
 0x363   : > { %v2863_v28 = vrot.slane %v2703_v2, 1  ;;  %v8955_v0 = vpop.f32.mrb[1].mxu0  ;;  %v3251_v53 = vrot.slane %v3091_v12, 2  ;;  %v9055_v54 = vpop.f32.mrb[1].mxu1 }
 0x364   : > { %v2706_v30 = vpop.f32.mrb[2].mxu0  ;;  %v3094_v23 = vpop.f32.mrb[2].mxu1 }
 0x365   : > { %v2940_v21 = vsel %vm2513_vm4, %v2862_v32, %v2863_v28  ;;  %v2864_v11 = vrot.slane %v2706_v30, 1  ;;  %v8956_v1 = vpop.f32.mrb[3].mxu0  ;;  %v3252_v14 = vrot.slane %v3094_v23, 2  ;;  %v9056_v22 = vpop.f32.mrb[3].mxu1  ;;  %v3329_v17 = vsel %vm3290_vm5, %v3250_v63, %v3251_v53 }
 0x366   : > { %v2983_v6 = vadd.f32 %v2940_v21, %v2595_v16 }
 0x367   : > { %v2939_v55 = vsel %vm2513_vm4, %v2863_v28, %v2864_v11  ;;  %9178 = vmatmul.mubr.bf16.gmra.mrb[108].mxu0 %v10998_v40  ;;  %v3328_v0 = vsel %vm3290_vm5, %v3251_v53, %v3252_v14 }
 0x368   : > { %v2943_v2 = vadd.f32 %v2939_v55, %v2555_v4  ;;  %9181 = vmatprep.mubr.msk.bf16.mxu0 %vm10682_vm0, %v15298_v59  ;;  %v12567_v32 = vadd.f32 %v3329_v17, %v2983_v6 }
 0x36a   : > { %v12570_v16 = vadd.f32 %v3328_v0, %v2943_v2  ;;  %v2711_v63 = vpop.f32.mrb[4].mxu0  ;;  %v3099_v28 = vpop.f32.mrb[4].mxu1  ;;  %v15390_v0 = vld [vmem:[#allocation15_spill] sm:$0xff] }
 0x36b   : > { %v2865_v12 = vrot.slane %v2711_v63, 1  ;;  %v8959_v30 = vpop.f32.mrb[5].mxu0  ;;  %v3253_v40 = vrot.slane %v3099_v28, 2  ;;  %v9059_v4 = vpop.f32.mrb[5].mxu1 }
 0x36c   : > { %v2714_v54 = vpop.f32.mrb[6].mxu0  ;;  %v3102_v23 = vpop.f32.mrb[6].mxu1 }
 0x36d   : > { %v2938_v53 = vsel %vm2513_vm4, %v2864_v11, %v2865_v12  ;;  %v2866_v21 = vrot.slane %v2714_v54, 1  ;;  %v8960_v1 = vpop.f32.mrb[7].mxu0  ;;  %v3327_v22 = vsel %vm3290_vm5, %v3252_v14, %v3253_v40  ;;  %v3254_v17 = vrot.slane %v3102_v23, 2  ;;  %v9060_v55 = vpop.f32.mrb[7].mxu1 }
 0x36e   : > { %v2944_v6 = vadd.f32 %v2938_v53, %v15389_v38 }
 0x36f   : > { %v2937_v2 = vsel %vm2513_vm4, %v2865_v12, %v2866_v21  ;;  %9182 = vmatmul.mubr.bf16.gmra.mrb[112].mxu0 %v11011_v41  ;;  %v3326_v11 = vsel %vm3290_vm5, %v3253_v40, %v3254_v17 }
 0x370   : > { %v2945_v63 = vadd.f32 %v2937_v2, %v15390_v0  ;;  %v12581_v30 = vadd.f32 %v3327_v22, %v2944_v6  ;;  %9185 = vmatprep.mubr.msk.bf16.mxu0 %vm10682_vm0, %v15298_v59 }
 0x372   : > { %v12587_v28 = vadd.f32 %v3326_v11, %v2945_v63  ;;  %v2719_v14 = vpop.f32.mrb[8].mxu0  ;;  %v3107_v53 = vpop.f32.mrb[8].mxu1 }
 0x373   : > { %v2867_v54 = vrot.slane %v2719_v14, 1  ;;  %v8963_v4 = vpop.f32.mrb[9].mxu0  ;;  %v3255_v12 = vrot.slane %v3107_v53, 2  ;;  %v9063_v23 = vpop.f32.mrb[9].mxu1 }
 0x374   : > { %v2722_v1 = vpop.f32.mrb[10].mxu0  ;;  %v3110_v22 = vpop.f32.mrb[10].mxu1  ;;  %v10411_v4 = vld [vmem:[#allocation7 + $0x30] sm:$0xff]  }
 0x375   : > { %v2936_v41 = vsel %vm2513_vm4, %v2866_v21, %v2867_v54  ;;  %v2868_v38 = vrot.slane %v2722_v1, 1  ;;  %v8964_v6 = vpop.f32.mrb[11].mxu0  ;;  %v3325_v55 = vsel %vm3290_vm5, %v3254_v17, %v3255_v12  ;;  %v3256_v2 = vrot.slane %v3110_v22, 2  ;;  %v9064_v0 = vpop.f32.mrb[11].mxu1  ;;  %9246 = vmatpush3.bf16.msra.mxu1 %v10411_v4 }
 0x376   : > { %v2946_v40 = vadd.f32 %v2936_v41, %v11985_v58  ;;  %9247 = vmatprep.subr.bf16.mxu1 %v15298_v59 }
 0x377   : > { %v2935_v63 = vsel %vm2513_vm4, %v2867_v54, %v2868_v38  ;;  %9186 = vmatmul.mubr.bf16.gmra.mrb[116].mxu0 %v11016_v42  ;;  %v3324_v21 = vsel %vm3290_vm5, %v3255_v12, %v3256_v2 }
 0x378   : > { %v2947_v11 = vadd.f32 %v2935_v63, %v11996_v15  ;;  %v12598_v14 = vadd.f32 %v3325_v55, %v2946_v40  ;;  %9189 = vmatprep.mubr.msk.bf16.mxu0 %vm10682_vm0, %v15298_v59 }
 0x37a   : > { %v12604_v58 = vadd.f32 %v3324_v21, %v2947_v11  ;;  %v2727_v17 = vpop.f32.mrb[12].mxu0  ;;  %v3115_v23 = vpop.f32.mrb[12].mxu1 }
 0x37b   : > { %v2869_v53 = vrot.slane %v2727_v17, 1  ;;  %v8967_v1 = vpop.f32.mrb[13].mxu0  ;;  %v3257_v41 = vrot.slane %v3115_v23, 2  ;;  %v9067_v42 = vpop.f32.mrb[13].mxu1 }
 0x37c   : > { %v2730_v54 = vpop.f32.mrb[14].mxu0  ;;  %v3118_v12 = vpop.f32.mrb[14].mxu1  ;;  %v10413_v42 = vld [vmem:[#allocation7 + $0x108] sm:$0xff]  }
 0x37d   : > { %v2934_v15 = vsel %vm2513_vm4, %v2868_v38, %v2869_v53  ;;  %v2870_v6 = vrot.slane %v2730_v54, 1  ;;  %v8968_v22 = vpop.f32.mrb[15].mxu0  ;;  %v3323_v55 = vsel %vm3290_vm5, %v3256_v2, %v3257_v41  ;;  %v3258_v0 = vrot.slane %v3118_v12, 2  ;;  %v9068_v63 = vpop.f32.mrb[15].mxu1 }
 0x37e   : > { %v2948_v40 = vadd.f32 %v2934_v15, %v12005_v29  ;;  %v10412_v29 = vld [vmem:[#allocation7 + $0x100] sm:$0xff]  }
 0x37f   : > { %v2933_v11 = vsel %vm2513_vm4, %v2869_v53, %v2870_v6  ;;  %9190 = vmatmul.mubr.bf16.gmra.mrb[120].mxu0 %v11025_v43  ;;  %v3322_v17 = vsel %vm3290_vm5, %v3257_v41, %v3258_v0 }
 0x380   : > { %v2949_v21 = vadd.f32 %v2933_v11, %v12016_v37  ;;  %v12616_v38 = vadd.f32 %v3323_v55, %v2948_v40  ;;  %9193 = vmatprep.mubr.msk.bf16.mxu0 %vm10682_vm0, %v15298_v59  ;;  %9334 = vmatpush3.bf16.msra.mxu0 %v10412_v29 }
 0x381   : > { %9335 = vmatprep.subr.bf16.mxu0 %v15298_v59 }
 0x382   : > { %v12622_v4 = vadd.f32 %v3322_v17, %v2949_v21  ;;  %v2735_v2 = vpop.f32.mrb[16].mxu0  ;;  %v3123_v53 = vpop.f32.mrb[16].mxu1  ;;  %v10414_v21 = vld [vmem:[#allocation7 + $0x110] sm:$0xff]  }
 0x383   : > { %v2871_v1 = vrot.slane %v2735_v2, 1  ;;  %v8971_v23 = vpop.f32.mrb[17].mxu0  ;;  %v3259_v37 = vrot.slane %v3123_v53, 2  ;;  %v9071_v54 = vpop.f32.mrb[17].mxu1 }
 0x384   : > { %v2738_v43 = vpop.f32.mrb[18].mxu0  ;;  %v3126_v12 = vpop.f32.mrb[18].mxu1  ;;  %9336 = vmatpush3.bf16.msra.mxu0 %v10413_v42  ;;  %v10416_v54 = vld [vmem:[#allocation7 + $0x118] sm:$0xff]  }
 0x385   : > { %v2932_v41 = vsel %vm2513_vm4, %v2870_v6, %v2871_v1  ;;  %v2872_v15 = vrot.slane %v2738_v43, 1  ;;  %v8972_v22 = vpop.f32.mrb[19].mxu0  ;;  %v3321_v55 = vsel %vm3290_vm5, %v3258_v0, %v3259_v37  ;;  %v3260_v63 = vrot.slane %v3126_v12, 2  ;;  %v9072_v11 = vpop.f32.mrb[19].mxu1  ;;  %9337 = vmatprep.subr.bf16.mxu0 %v15298_v59 }
 0x386   : > { %v2950_v40 = vadd.f32 %v2932_v41, %v12025_v10 }
 0x387   : > { %v2931_v17 = vsel %vm2513_vm4, %v2871_v1, %v2872_v15  ;;  %9194 = vmatmul.mubr.bf16.gmra.mrb[124].mxu0 %v11038_v44  ;;  %v3320_v10 = vsel %vm3290_vm5, %v3259_v37, %v3260_v63 }
 0x388   : > { %v2951_v6 = vadd.f32 %v2931_v17, %v12036_v36  ;;  %v12635_v29 = vadd.f32 %v3321_v55, %v2950_v40  ;;  %9197 = vmatprep.mubr.msk.bf16.mxu0 %vm10682_vm0, %v15298_v59  ;;  %9338 = vmatpush3.bf16.msra.mxu0 %v10414_v21 }
 0x389   : > { %9339 = vmatprep.subr.bf16.mxu0 %v15298_v59 }
 0x38a   : > { %v12641_v0 = vadd.f32 %v3320_v10, %v2951_v6  ;;  %v2743_v2 = vpop.f32.mrb[20].mxu0  ;;  %v3131_v53 = vpop.f32.mrb[20].mxu1 }
 0x38b   : > { %v2873_v23 = vrot.slane %v2743_v2, 1  ;;  %v8975_v1 = vpop.f32.mrb[21].mxu0  ;;  %v3261_v43 = vrot.slane %v3131_v53, 2  ;;  %v9075_v36 = vpop.f32.mrb[21].mxu1 }
 0x38c   : > { %v2746_v44 = vpop.f32.mrb[22].mxu0  ;;  %v3134_v22 = vpop.f32.mrb[22].mxu1  ;;  %9340 = vmatpush3.bf16.msra.mxu0 %v10416_v54 }
 0x38d   : > { %v2930_v42 = vsel %vm2513_vm4, %v2872_v15, %v2873_v23  ;;  %v2874_v37 = vrot.slane %v2746_v44, 1  ;;  %v8976_v41 = vpop.f32.mrb[23].mxu0  ;;  %v3319_v40 = vsel %vm3290_vm5, %v3260_v63, %v3261_v43  ;;  %v3262_v55 = vrot.slane %v3134_v22, 2  ;;  %v9076_v11 = vpop.f32.mrb[23].mxu1  ;;  %9341 = vmatprep.subr.bf16.mxu0 %v15298_v59  ;;  %v10417_v63 = vld [vmem:[#allocation7 + $0x120] sm:$0xff]   ;;  %v10418_v44 = vld [vmem:[#allocation7 + $0x128] sm:$0xff]  }
 0x38e   : > { %v2952_v12 = vadd.f32 %v2930_v42, %v12045_v56  ;;  %v15391_v41 = vld [vmem:[#allocation34_spill] sm:$0xff] }
 0x38f   : > { %v2929_v21 = vsel %vm2513_vm4, %v2873_v23, %v2874_v37  ;;  %9198 = vmatmul.mubr.bf16.gmra.mrb[128].mxu0 %v11047_v45  ;;  %v3318_v56 = vsel %vm3290_vm5, %v3261_v43, %v3262_v55 }
 0x390   : > { %v2953_v15 = vadd.f32 %v2929_v21, %v12056_v13  ;;  %v12654_v17 = vadd.f32 %v3319_v40, %v2952_v12  ;;  %9201 = vmatprep.mubr.msk.bf16.mxu0 %vm10682_vm0, %v15298_v59  ;;  %9342 = vmatpush3.bf16.msra.mxu0 %v10417_v63  ;;  %v10415_v21 = vld [vmem:[#allocation7 + $0x38] sm:$0xff]  }
 0x391   : > { %9343 = vmatprep.subr.bf16.mxu0 %v15298_v59  ;;  %9248 = vmatpush3.bf16.msra.mxu1 %v10415_v21 }
 0x392   : > { %v12660_v6 = vadd.f32 %v3318_v56, %v2953_v15  ;;  %v2751_v10 = vpop.f32.mrb[24].mxu0  ;;  %v3139_v45 = vpop.f32.mrb[24].mxu1  ;;  %9433 = vmatprep.subr.bf16.mxu1 %v15298_v59 }
 0x393   : > { %v2875_v2 = vrot.slane %v2751_v10, 1  ;;  %v8979_v23 = vpop.f32.mrb[25].mxu0  ;;  %v3263_v13 = vrot.slane %v3139_v45, 2  ;;  %v9079_v53 = vpop.f32.mrb[25].mxu1 }
 0x394   : > { %v2754_v1 = vpop.f32.mrb[26].mxu0  ;;  %v3142_v42 = vpop.f32.mrb[26].mxu1  ;;  %9344 = vmatpush3.bf16.msra.mxu0 %v10418_v44 }
 0x395   : > { %v2928_v43 = vsel %vm2513_vm4, %v2874_v37, %v2875_v2  ;;  %v2876_v36 = vrot.slane %v2754_v1, 1  ;;  %v8980_v54 = vpop.f32.mrb[27].mxu0  ;;  %v3317_v12 = vsel %vm3290_vm5, %v3262_v55, %v3263_v13  ;;  %v3264_v40 = vrot.slane %v3142_v42, 2  ;;  %v9080_v11 = vpop.f32.mrb[27].mxu1  ;;  %9345 = vmatprep.subr.bf16.mxu0 %v15298_v59  ;;  %v15392_v37 = vld [vmem:[#allocation35_spill] sm:$0xff]  ;;  %v10419_v55 = vld [vmem:[#allocation7 + $0x130] sm:$0xff]  }
 0x396   : > { %v2954_v22 = vadd.f32 %v2928_v43, %v15391_v41 }
 0x397   : > { %v2927_v15 = vsel %vm2513_vm4, %v2875_v2, %v2876_v36  ;;  %9202 = vmatmul.mubr.bf16.gmra.mrb[132].mxu0 %v11056_v46  ;;  %v3316_v10 = vsel %vm3290_vm5, %v3263_v13, %v3264_v40  ;;  %v10420_v13 = vld [vmem:[#allocation7 + $0x138] sm:$0xff]  }
 0x398   : > { %v2955_v56 = vadd.f32 %v2927_v15, %v15392_v37  ;;  %v12673_v63 = vadd.f32 %v3317_v12, %v2954_v22  ;;  %9205 = vmatprep.mubr.msk.bf16.mxu0 %vm10682_vm0, %v15298_v59  ;;  %9346 = vmatpush3.bf16.msra.mxu0 %v10419_v55 }
 0x399   : > { %9347 = vmatprep.subr.bf16.mxu0 %v15298_v59 }
 0x39a   : > { %v12680_v23 = vadd.f32 %v3316_v10, %v2955_v56  ;;  %v2759_v2 = vpop.f32.mrb[28].mxu0  ;;  %v3147_v1 = vpop.f32.mrb[28].mxu1 }
 0x39b   : > { %v2877_v46 = vrot.slane %v2759_v2, 1  ;;  %v8983_v45 = vpop.f32.mrb[29].mxu0  ;;  %v3265_v44 = vrot.slane %v3147_v1, 2  ;;  %v9083_v43 = vpop.f32.mrb[29].mxu1 }
 0x39c   : > { %v2762_v53 = vpop.f32.mrb[30].mxu0  ;;  %v3150_v22 = vpop.f32.mrb[30].mxu1  ;;  %9348 = vmatpush3.bf16.msra.mxu0 %v10420_v13 }
 0x39d   : > { %v2926_v54 = vsel %vm2513_vm4, %v2876_v36, %v2877_v46  ;;  %v2878_v42 = vrot.slane %v2762_v53, 1  ;;  %v8984_v41 = vpop.f32.mrb[31].mxu0  ;;  %v3315_v11 = vsel %vm3290_vm5, %v3264_v40, %v3265_v44  ;;  %v3266_v21 = vrot.slane %v3150_v22, 2  ;;  %v9084_v15 = vpop.f32.mrb[31].mxu1  ;;  %9533 = vmatprep.subr.bf16.mxu0 %v15298_v59 }
 0x39e   : > { %v2956_v12 = vadd.f32 %v2926_v54, %v12121_v52 }
 0x39f   : > { %v2925_v37 = vsel %vm2513_vm4, %v2877_v46, %v2878_v42  ;;  %9206 = vmatmul.mubr.bf16.gmra.mrb[136].mxu0 %v11065_v47  ;;  %v3314_v52 = vsel %vm3290_vm5, %v3265_v44, %v3266_v21 }
 0x3a0   : > { %v2957_v36 = vadd.f32 %v2925_v37, %v12137_v31  ;;  %v12693_v56 = vadd.f32 %v3315_v11, %v2956_v12  ;;  %9209 = vmatprep.mubr.msk.bf16.mxu0 %vm10682_vm0, %v15298_v59  ;;  %v15393_v11 = vld [vmem:[#allocation44_spill] sm:$0xff] }
 0x3a2   : > { %v12699_v40 = vadd.f32 %v3314_v52, %v2957_v36  ;;  %v2767_v10 = vpop.f32.mrb[32].mxu0  ;;  %v3155_v46 = vpop.f32.mrb[32].mxu1 }
 0x3a3   : > { %v2879_v55 = vrot.slane %v2767_v10, 1  ;;  %v8987_v2 = vpop.f32.mrb[33].mxu0  ;;  %v3267_v47 = vrot.slane %v3155_v46, 2  ;;  %v9087_v1 = vpop.f32.mrb[33].mxu1 }
 0x3a4   : > { %v2770_v45 = vpop.f32.mrb[34].mxu0  ;;  %v3158_v13 = vpop.f32.mrb[34].mxu1 }
 0x3a5   : > { %v2924_v31 = vsel %vm2513_vm4, %v2878_v42, %v2879_v55  ;;  %v2880_v53 = vrot.slane %v2770_v45, 1  ;;  %v8988_v43 = vpop.f32.mrb[35].mxu0  ;;  %v3313_v54 = vsel %vm3290_vm5, %v3266_v21, %v3267_v47  ;;  %v3268_v41 = vrot.slane %v3158_v13, 2  ;;  %v9088_v22 = vpop.f32.mrb[35].mxu1 }
 0x3a6   : > { %v2958_v44 = vadd.f32 %v2924_v31, %v12177_v62 }
 0x3a7   : > { %v2923_v12 = vsel %vm2513_vm4, %v2879_v55, %v2880_v53  ;;  %9210 = vmatmul.mubr.bf16.gmra.mrb[140].mxu0 %v11074_v48  ;;  %v3312_v42 = vsel %vm3290_vm5, %v3267_v47, %v3268_v41 }
 0x3a8   : > { %v2959_v15 = vadd.f32 %v2923_v12, %v15393_v11  ;;  %v12710_v37 = vadd.f32 %v3313_v54, %v2958_v44  ;;  %9213 = vmatprep.mubr.msk.bf16.mxu0 %vm10682_vm0, %v15298_v59 }
 0x3aa   : > { %v12716_v62 = vadd.f32 %v3312_v42, %v2959_v15  ;;  %v2775_v21 = vpop.f32.mrb[36].mxu0  ;;  %v3163_v10 = vpop.f32.mrb[36].mxu1 }
 0x3ab   : > { %v2881_v36 = vrot.slane %v2775_v21, 1  ;;  %v8991_v52 = vpop.f32.mrb[37].mxu0  ;;  %v3269_v55 = vrot.slane %v3163_v10, 2  ;;  %v9091_v46 = vpop.f32.mrb[37].mxu1 }
 0x3ac   : > { %v2778_v2 = vpop.f32.mrb[38].mxu0  ;;  %v3166_v31 = vpop.f32.mrb[38].mxu1 }
 0x3ad   : > { %v2922_v48 = vsel %vm2513_vm4, %v2880_v53, %v2881_v36  ;;  %v2882_v45 = vrot.slane %v2778_v2, 1  ;;  %v8992_v1 = vpop.f32.mrb[39].mxu0  ;;  %v3311_v43 = vsel %vm3290_vm5, %v3268_v41, %v3269_v55  ;;  %v3270_v13 = vrot.slane %v3166_v31, 2  ;;  %v9092_v44 = vpop.f32.mrb[39].mxu1 }
 0x3ae   : > { %v2960_v47 = vadd.f32 %v2922_v48, %v12234_v5 }
 0x3af   : > { %v2921_v54 = vsel %vm2513_vm4, %v2881_v36, %v2882_v45  ;;  %9214 = vmatmul.mubr.bf16.gmra.mrb[144].mxu0 %v11083_v49  ;;  %v3310_v53 = vsel %vm3290_vm5, %v3269_v55, %v3270_v13 }
 0x3b0   : > { %v2961_v22 = vadd.f32 %v2921_v54, %v12250_v34  ;;  %v12727_v12 = vadd.f32 %v3311_v43, %v2960_v47  ;;  %9217 = vmatprep.mubr.msk.bf16.mxu0 %vm10682_vm0, %v15298_v59 }
 0x3b2   : > { %v12733_v5 = vadd.f32 %v3310_v53, %v2961_v22  ;;  %v2783_v41 = vpop.f32.mrb[40].mxu0  ;;  %v3171_v42 = vpop.f32.mrb[40].mxu1 }
 0x3b3   : > { %v2883_v11 = vrot.slane %v2783_v41, 1  ;;  %v8995_v15 = vpop.f32.mrb[41].mxu0  ;;  %v3271_v36 = vrot.slane %v3171_v42, 2  ;;  %v9095_v52 = vpop.f32.mrb[41].mxu1 }
 0x3b4   : > { %v2786_v21 = vpop.f32.mrb[42].mxu0  ;;  %v3174_v2 = vpop.f32.mrb[42].mxu1 }
 0x3b5   : > { %v2920_v49 = vsel %vm2513_vm4, %v2882_v45, %v2883_v11  ;;  %v2884_v34 = vrot.slane %v2786_v21, 1  ;;  %v8996_v10 = vpop.f32.mrb[43].mxu0  ;;  %v3309_v46 = vsel %vm3290_vm5, %v3270_v13, %v3271_v36  ;;  %v3272_v48 = vrot.slane %v3174_v2, 2  ;;  %v9096_v1 = vpop.f32.mrb[43].mxu1 }
 0x3b6   : > { %v2962_v55 = vadd.f32 %v2920_v49, %v12290_v19 }
 0x3b7   : > { %v2919_v31 = vsel %vm2513_vm4, %v2883_v11, %v2884_v34  ;;  %9218 = vmatmul.mubr.bf16.gmra.mrb[148].mxu0 %v11092_v50  ;;  %v3308_v45 = vsel %vm3290_vm5, %v3271_v36, %v3272_v48 }
 0x3b8   : > { %v2963_v47 = vadd.f32 %v2919_v31, %v12306_v27  ;;  %v12744_v43 = vadd.f32 %v3309_v46, %v2962_v55  ;;  %9221 = vmatprep.mubr.msk.bf16.mxu0 %vm10682_vm0, %v15298_v59 }
 0x3ba   : > { %v12750_v19 = vadd.f32 %v3308_v45, %v2963_v47  ;;  %v2791_v13 = vpop.f32.mrb[44].mxu0  ;;  %v3179_v22 = vpop.f32.mrb[44].mxu1 }
 0x3bb   : > { %v2885_v44 = vrot.slane %v2791_v13, 1  ;;  %v8999_v54 = vpop.f32.mrb[45].mxu0  ;;  %v3273_v41 = vrot.slane %v3179_v22, 2  ;;  %v9099_v11 = vpop.f32.mrb[45].mxu1  ;;  %v15394_v22 = vld [vmem:[#allocation21_spill] sm:$0xff] }
 0x3bc   : > { %v2794_v53 = vpop.f32.mrb[46].mxu0  ;;  %v3182_v42 = vpop.f32.mrb[46].mxu1 }
 0x3bd   : > { %v2918_v50 = vsel %vm2513_vm4, %v2884_v34, %v2885_v44  ;;  %v2886_v27 = vrot.slane %v2794_v53, 1  ;;  %v9000_v15 = vpop.f32.mrb[47].mxu0  ;;  %v3307_v36 = vsel %vm3290_vm5, %v3272_v48, %v3273_v41  ;;  %v3274_v52 = vrot.slane %v3182_v42, 2  ;;  %v9100_v49 = vpop.f32.mrb[47].mxu1  ;;  %v15395_v42 = vld [vmem:[#allocation19_spill] sm:$0xff] }
 0x3be   : > { %v2964_v21 = vadd.f32 %v2918_v50, %v12342_v60 }
 0x3bf   : > { %v2917_v10 = vsel %vm2513_vm4, %v2885_v44, %v2886_v27  ;;  %9222 = vmatmul.mubr.bf16.gmra.mrb[152].mxu0 %v15363_v51  ;;  %v3306_v34 = vsel %vm3290_vm5, %v3273_v41, %v3274_v52 }
 0x3c0   : > { %v2965_v2 = vadd.f32 %v2917_v10, %v12357_v61  ;;  %v12761_v55 = vadd.f32 %v3307_v36, %v2964_v21  ;;  %9225 = vmatprep.mubr.msk.bf16.mxu0 %vm10682_vm0, %v15298_v59  ;;  %v15396_v21 = vld [vmem:[#allocation18_spill] sm:$0xff] }
 0x3c2   : > { %v12767_v60 = vadd.f32 %v3306_v34, %v2965_v2  ;;  %v2799_v46 = vpop.f32.mrb[48].mxu0  ;;  %v3187_v31 = vpop.f32.mrb[48].mxu1 }
 0x3c3   : > { %v2887_v48 = vrot.slane %v2799_v46, 1  ;;  %v9003_v1 = vpop.f32.mrb[49].mxu0  ;;  %v3275_v45 = vrot.slane %v3187_v31, 2  ;;  %v9103_v13 = vpop.f32.mrb[49].mxu1 }
 0x3c4   : > { %v2802_v47 = vpop.f32.mrb[50].mxu0  ;;  %v3190_v54 = vpop.f32.mrb[50].mxu1 }
 0x3c5   : > { %v2916_v61 = vsel %vm2513_vm4, %v2886_v27, %v2887_v48  ;;  %v2888_v51 = vrot.slane %v2802_v47, 1  ;;  %v9004_v44 = vpop.f32.mrb[51].mxu0  ;;  %v3305_v41 = vsel %vm3290_vm5, %v3274_v52, %v3275_v45  ;;  %v3276_v11 = vrot.slane %v3190_v54, 2  ;;  %v9104_v50 = vpop.f32.mrb[51].mxu1  ;;  %v15397_v54 = vld [vmem:[#allocation32_spill] sm:$0xff] }
 0x3c6   : > { %v2966_v53 = vadd.f32 %v2916_v61, %v15394_v22 }
 0x3c7   : > { %v2915_v15 = vsel %vm2513_vm4, %v2887_v48, %v2888_v51  ;;  %9226 = vmatmul.mubr.bf16.gmra.mrb[156].mxu0 %v15395_v42  ;;  %v3304_v27 = vsel %vm3290_vm5, %v3275_v45, %v3276_v11  ;;  %v15399_v42 = vld [vmem:[#allocation22_spill] sm:$0xff] }
 0x3c8   : > { %v2967_v36 = vadd.f32 %v2915_v15, %v15396_v21  ;;  %v12778_v49 = vadd.f32 %v3305_v41, %v2966_v53  ;;  %9229 = vmatprep.mubr.msk.bf16.mxu0 %vm10682_vm0, %v15298_v59  ;;  %v15398_v15 = vld [vmem:[#allocation20_spill] sm:$0xff] }
 0x3ca   : > { %v12784_v10 = vadd.f32 %v3304_v27, %v2967_v36  ;;  %v2807_v52 = vpop.f32.mrb[52].mxu0 }
 0x3cb   : > { %v2889_v2 = vrot.slane %v2807_v52, 1  ;;  %v9007_v34 = vpop.f32.mrb[53].mxu0  ;;  %v3195_v46 = vpop.f32.mrb[52].mxu1 }
 0x3cc   : > { %v2810_v1 = vpop.f32.mrb[54].mxu0  ;;  %v3277_v48 = vrot.slane %v3195_v46, 2  ;;  %v9107_v31 = vpop.f32.mrb[53].mxu1 }
 0x3cd   : > { %v2914_v47 = vsel %vm2513_vm4, %v2888_v51, %v2889_v2  ;;  %v2890_v13 = vrot.slane %v2810_v1, 1  ;;  %v9008_v61 = vpop.f32.mrb[55].mxu0  ;;  %v3198_v44 = vpop.f32.mrb[54].mxu1 }
 0x3ce   : > { %v2968_v45 = vadd.f32 %v2914_v47, %v15397_v54  ;;  %v3303_v22 = vsel %vm3290_vm5, %v3276_v11, %v3277_v48  ;;  %v3278_v53 = vrot.slane %v3198_v44, 2  ;;  %v9108_v41 = vpop.f32.mrb[55].mxu1 }
 0x3cf   : > { %v2913_v50 = vsel %vm2513_vm4, %v2889_v2, %v2890_v13  ;;  %9230 = vmatmul.mubr.bf16.gmra.mrb[160].mxu0 %v15398_v15 }
 0x3d0   : > { %v2969_v21 = vadd.f32 %v2913_v50, %v15399_v42  ;;  %v12795_v36 = vadd.f32 %v3303_v22, %v2968_v45  ;;  %v3302_v51 = vsel %vm3290_vm5, %v3277_v48, %v3278_v53  ;;  %9349 = vmatprep.mubr.msk.bf16.mxu0 %vm10682_vm0, %v15298_v59  ;;  %v15400_v45 = vld [vmem:[#allocation33_spill] sm:$0xff]  ;;  %v15401_v42 = vld [vmem:[#allocation23_spill] sm:$0xff] }
 0x3d2   : > { %v12801_v27 = vadd.f32 %v3302_v51, %v2969_v21  ;;  %v2815_v11 = vpop.f32.mrb[56].mxu0 }
 0x3d3   : > { %v2891_v52 = vrot.slane %v2815_v11, 1  ;;  %v9011_v34 = vpop.f32.mrb[57].mxu0  ;;  %v3203_v46 = vpop.f32.mrb[56].mxu1 }
 0x3d4   : > { %v2818_v1 = vpop.f32.mrb[58].mxu0  ;;  %v3279_v2 = vrot.slane %v3203_v46, 2  ;;  %v9111_v31 = vpop.f32.mrb[57].mxu1 }
 0x3d5   : > { %v2912_v47 = vsel %vm2513_vm4, %v2890_v13, %v2891_v52  ;;  %v2892_v61 = vrot.slane %v2818_v1, 1  ;;  %v9012_v44 = vpop.f32.mrb[59].mxu0  ;;  %v3206_v54 = vpop.f32.mrb[58].mxu1 }
 0x3d6   : > { %v2970_v48 = vadd.f32 %v2912_v47, %v15400_v45  ;;  %v3301_v22 = vsel %vm3290_vm5, %v3278_v53, %v3279_v2  ;;  %v3280_v41 = vrot.slane %v3206_v54, 2  ;;  %v9112_v50 = vpop.f32.mrb[59].mxu1 }
 0x3d7   : > { %v2911_v15 = vsel %vm2513_vm4, %v2891_v52, %v2892_v61 }
 0x3d8   : > { %v2971_v21 = vadd.f32 %v2911_v15, %v15401_v42  ;;  %v12811_v51 = vadd.f32 %v3301_v22, %v2970_v48  ;;  %v3300_v13 = vsel %vm3290_vm5, %v3279_v2, %v3280_v41 }
 0x3da   : > { %v12815_v11 = vadd.f32 %v3300_v13, %v2971_v21  ;;  %v2823_v34 = vpop.f32.mrb[60].mxu0 }
 0x3db   : > { %v2893_v46 = vrot.slane %v2823_v34, 1  ;;  %v9015_v1 = vpop.f32.mrb[61].mxu0  ;;  %v3211_v31 = vpop.f32.mrb[60].mxu1 }
 0x3dc   : > { %v2826_v47 = vpop.f32.mrb[62].mxu0  ;;  %v3281_v53 = vrot.slane %v3211_v31, 2  ;;  %v9115_v44 = vpop.f32.mrb[61].mxu1 }
 0x3dd   : > { %v2910_v54 = vsel %vm2513_vm4, %v2892_v61, %v2893_v46  ;;  %v2894_v52 = vrot.slane %v2826_v47, 1  ;;  %v9016_v45 = vpop.f32.mrb[63].mxu0  ;;  %v3214_v50 = vpop.f32.mrb[62].mxu1 }
 0x3de   : > { %v2972_v48 = vadd.f32 %v2910_v54, %v12434_v25  ;;  %v3299_v2 = vsel %vm3290_vm5, %v3280_v41, %v3281_v53  ;;  %v3282_v22 = vrot.slane %v3214_v50, 2  ;;  %v9116_v15 = vpop.f32.mrb[63].mxu1 }
 0x3df   : > { %v2909_v42 = vsel %vm2513_vm4, %v2893_v46, %v2894_v52 }
 0x3e0   : > { %v2973_v21 = vadd.f32 %v2909_v42, %v12444_v7  ;;  %v12825_v13 = vadd.f32 %v3299_v2, %v2972_v48  ;;  %v3298_v61 = vsel %vm3290_vm5, %v3281_v53, %v3282_v22 }
 0x3e2   : > { %v12829_v34 = vadd.f32 %v3298_v61, %v2973_v21  ;;  %v2831_v1 = vpop.f32.mrb[64].mxu0 }
 0x3e3   : > { %v2895_v31 = vrot.slane %v2831_v1, 1  ;;  %v9019_v25 = vpop.f32.mrb[65].mxu0  ;;  %v3219_v47 = vpop.f32.mrb[64].mxu1 }
 0x3e4   : > { %v2834_v44 = vpop.f32.mrb[66].mxu0  ;;  %v3283_v41 = vrot.slane %v3219_v47, 2  ;;  %v9119_v54 = vpop.f32.mrb[65].mxu1 }
 0x3e5   : > { %v2908_v45 = vsel %vm2513_vm4, %v2894_v52, %v2895_v31  ;;  %v2896_v46 = vrot.slane %v2834_v44, 1  ;;  %v9020_v50 = vpop.f32.mrb[67].mxu0  ;;  %v3222_v7 = vpop.f32.mrb[66].mxu1 }
 0x3e6   : > { %v2974_v48 = vadd.f32 %v2908_v45, %v12451_v18  ;;  %v3297_v53 = vsel %vm3290_vm5, %v3282_v22, %v3283_v41  ;;  %v3284_v2 = vrot.slane %v3222_v7, 2  ;;  %v9120_v15 = vpop.f32.mrb[67].mxu1 }
 0x3e7   : > { %v2907_v42 = vsel %vm2513_vm4, %v2895_v31, %v2896_v46 }
 0x3e8   : > { %v2975_v21 = vadd.f32 %v2907_v42, %v12461_v57  ;;  %v12839_v61 = vadd.f32 %v3297_v53, %v2974_v48  ;;  %v3296_v52 = vsel %vm3290_vm5, %v3283_v41, %v3284_v2 }
 0x3ea   : > { %v12843_v1 = vadd.f32 %v3296_v52, %v2975_v21  ;;  %v2839_v25 = vpop.f32.mrb[68].mxu0  ;;  %v15402_v21 = vld [vmem:[#allocation24_spill] sm:$0xff] }
 0x3eb   : > { %v2897_v47 = vrot.slane %v2839_v25, 1  ;;  %v9023_v18 = vpop.f32.mrb[69].mxu0  ;;  %v3227_v44 = vpop.f32.mrb[68].mxu1 }
 0x3ec   : > { %v2842_v54 = vpop.f32.mrb[70].mxu0  ;;  %v3285_v22 = vrot.slane %v3227_v44, 2  ;;  %v9123_v45 = vpop.f32.mrb[69].mxu1 }
 0x3ed   : > { %v2906_v50 = vsel %vm2513_vm4, %v2896_v46, %v2897_v47  ;;  %v2898_v31 = vrot.slane %v2842_v54, 1  ;;  %v9024_v7 = vpop.f32.mrb[71].mxu0  ;;  %v3230_v57 = vpop.f32.mrb[70].mxu1 }
 0x3ee   : > { %v2976_v48 = vadd.f32 %v2906_v50, %v12469_v8  ;;  %v3295_v41 = vsel %vm3290_vm5, %v3284_v2, %v3285_v22  ;;  %v3286_v53 = vrot.slane %v3230_v57, 2  ;;  %v9124_v15 = vpop.f32.mrb[71].mxu1 }
 0x3ef   : > { %v2905_v42 = vsel %vm2513_vm4, %v2897_v47, %v2898_v31 }
 0x3f0   : > { %v2977_v52 = vadd.f32 %v2905_v42, %v15402_v21  ;;  %v12853_v25 = vadd.f32 %v3295_v41, %v2976_v48  ;;  %v3294_v46 = vsel %vm3290_vm5, %v3285_v22, %v3286_v53 }
 0x3f2   : > { %v12857_v18 = vadd.f32 %v3294_v46, %v2977_v52  ;;  %v2847_v44 = vpop.f32.mrb[72].mxu0 }
 0x3f3   : > { %v2899_v54 = vrot.slane %v2847_v44, 1  ;;  %v9027_v8 = vpop.f32.mrb[73].mxu0  ;;  %v3235_v45 = vpop.f32.mrb[72].mxu1 }
 0x3f4   : > { %v2850_v50 = vpop.f32.mrb[74].mxu0  ;;  %v3287_v2 = vrot.slane %v3235_v45, 2  ;;  %v9127_v7 = vpop.f32.mrb[73].mxu1 }
 0x3f5   : > { %v2904_v57 = vsel %vm2513_vm4, %v2898_v31, %v2899_v54  ;;  %v2900_v47 = vrot.slane %v2850_v50, 1  ;;  %v9028_v15 = vpop.f32.mrb[75].mxu0  ;;  %v3238_v42 = vpop.f32.mrb[74].mxu1 }
 0x3f6   : > { %v2978_v48 = vadd.f32 %v2904_v57, %v12486_v20  ;;  %v3293_v22 = vsel %vm3290_vm5, %v3286_v53, %v3287_v2  ;;  %v3288_v41 = vrot.slane %v3238_v42, 2  ;;  %v9128_v21 = vpop.f32.mrb[75].mxu1 }
 0x3f7   : > { %v2903_v52 = vsel %vm2513_vm4, %v2899_v54, %v2900_v47  ;;  %v15403_v54 = vrot.slane %v12536_v39, 1 }
 0x3f8   : > { %v2979_v46 = vadd.f32 %v2903_v52, %v12496_v35  ;;  %v12867_v44 = vadd.f32 %v3293_v22, %v2978_v48  ;;  %v3292_v31 = vsel %vm3290_vm5, %v3287_v2, %v3288_v41 }
 0x3fa   : > { %v12871_v8 = vadd.f32 %v3292_v31, %v2979_v46  ;;  %v2855_v45 = vpop.f32.mrb[76].mxu0  ;;  %v15404_v46 = vrot.slane %v12538_v26, 2 }
 0x3fb   : > { %v2901_v50 = vrot.slane %v2855_v45, 1  ;;  %v9031_v20 = vpop.f32.mrb[77].mxu0  ;;  %v3243_v7 = vpop.f32.mrb[76].mxu1 }
 0x3fc   : > { %v2858_v57 = vpop.f32.mrb[78].mxu0  ;;  %v3289_v53 = vrot.slane %v3243_v7, 2  ;;  %v9131_v15 = vpop.f32.mrb[77].mxu1 }
 0x3fd   : > { %v2902_v42 = vsel %vm2513_vm4, %v2900_v47, %v2901_v50  ;;  %v2942_v35 = vsel %vm2513_vm4, %v2901_v50, %v15403_v54  ;;  %v9032_v48 = vpop.f32.mrb[79].mxu0  ;;  %v3246_v22 = vpop.f32.mrb[78].mxu1 }
 0x3fe   : > { %v2980_v2 = vadd.f32 %v2902_v42, %v12503_v3  ;;  %v2981_v21 = vadd.f32 %v2942_v35, %v12514_v24  ;;  %v3291_v52 = vsel %vm3290_vm5, %v3288_v41, %v3289_v53  ;;  %v3331_v31 = vsel %vm3290_vm5, %v3289_v53, %v15404_v46  ;;  %v9132_v47 = vpop.f32.mrb[79].mxu1 }
 0x400   : > { %v12887_v45 = vadd.f32 %v3291_v52, %v2980_v2  ;;  %v12889_v39 = vadd.f32 %v3331_v31, %v2981_v21  ;;  %v15406_v52 = vlaneseq }
 0x402   : > { %v12891_v50 = vpop.f32.mrb[80].mxu0  ;;  %v3763_v46 = vand.u32 127, %v15406_v52 }
 0x403   : > { %v9151_v20 = vpop.f32.mrb[81].mxu0  ;;  %v15233_v3 = vrot.slane %v12891_v50, 3 }
 0x404   : > { %v3475_v7 = vpop.f32.mrb[82].mxu0  ;;  %vm3764_vm7 = vcmp.eq.s32.totalorder %v3763_v46, 4 }
 0x405   : > { %v3639_v24 = vrot.slane %v3475_v7, 3  ;;  %v9152_v41 = vpop.f32.mrb[83].mxu0 }
 0x407   : > { %v3719_v26 = vsel %vm3679_vm6, %v15233_v3, %v3639_v24 }
 0x408   : > { %v12900_v57 = vadd.f32 %v3719_v26, %v12554_v33 }
 0x40a   : > { %v3480_v53 = vpop.f32.mrb[84].mxu0 }
 0x40b   : > { %v3640_v15 = vrot.slane %v3480_v53, 3  ;;  %v9155_v42 = vpop.f32.mrb[85].mxu0 }
 0x40c   : > { %v3483_v54 = vpop.f32.mrb[86].mxu0 }
 0x40d   : > { %v3641_v35 = vrot.slane %v3483_v54, 3  ;;  %v9156_v48 = vpop.f32.mrb[87].mxu0  ;;  %v3718_v22 = vsel %vm3679_vm6, %v3639_v24, %v3640_v15 }
 0x40e   : > { %v12905_v2 = vadd.f32 %v3718_v22, %v12567_v32  ;;  %v10213_v32 = vpop.permute.xlu0 %10212 }
 0x40f   : > { %v3717_v21 = vsel %vm3679_vm6, %v3640_v15, %v3641_v35  ;;  %v10215_v54 = vunpack.i.h.bf16 %v10213_v32  ;;  %v12915_v15 = vsel %vm3764_vm7, 1.0, %v15298_v59  ;;  %v10214_v48 = vunpack.i.l.bf16 %v10213_v32  ;;  %v10421_v32 = vld [vmem:[#allocation7 + $0x40] sm:$0xff]  }
 0x410   : > { %15405 = vst [vmem:[#allocation25_spill] sm:$0xff] %v12905_v2  ;;  %v3721_v33 = vadd.f32 %v3717_v21, %v12570_v16 }
 0x412   : > { %v3488_v31 = vpop.f32.mrb[88].mxu0  ;;  %v3767_v7 = vmax.f32 %v3721_v33, 0.0 }
 0x413   : > { %v3642_v47 = vrot.slane %v3488_v31, 3  ;;  %v9159_v20 = vpop.f32.mrb[89].mxu0 }
 0x414   : > { %v3491_v41 = vpop.f32.mrb[90].mxu0  ;;  %v3808_v22 = vadd.f32 %v12915_v15, %v3767_v7 }
 0x415   : > { %v3716_v26 = vsel %vm3679_vm6, %v3641_v35, %v3642_v47  ;;  %v3643_v24 = vrot.slane %v3491_v41, 3  ;;  %v9160_v53 = vpop.f32.mrb[91].mxu0 }
 0x416   : > { %v3722_v42 = vadd.f32 %v3716_v26, %v12581_v30  ;;  %v4054_v20 = vmul.f32 %v10214_v48, %v3808_v22  ;;  %v10422_v48 = vld [vmem:[#allocation7 + $0x48] sm:$0xff]  }
 0x417   : > { %v3715_v16 = vsel %vm3679_vm6, %v3642_v47, %v3643_v24 }
 0x418   : > { %v3768_v21 = vmax.f32 %v3722_v42, 0.0  ;;  %v3723_v52 = vadd.f32 %v3715_v16, %v12587_v28 }
 0x41a   : > { %v3809_v35 = vadd.f32 %v12915_v15, %v3768_v21  ;;  %v3496_v46 = vpop.f32.mrb[92].mxu0  ;;  %v3769_v41 = vmax.f32 %v3723_v52, 0.0 }
 0x41b   : > { %v3644_v33 = vrot.slane %v3496_v46, 3  ;;  %v9163_v31 = vpop.f32.mrb[93].mxu0 }
 0x41c   : > { %v4055_v30 = vmul.f32 %v10215_v54, %v3809_v35  ;;  %v3499_v26 = vpop.f32.mrb[94].mxu0  ;;  %v3810_v42 = vadd.f32 %v12915_v15, %v3769_v41 }
 0x41d   : > { %v3714_v53 = vsel %vm3679_vm6, %v3643_v24, %v3644_v33  ;;  %v3645_v3 = vrot.slane %v3499_v26, 3  ;;  %v9164_v47 = vpop.f32.mrb[95].mxu0  ;;  %v10218_v24 = vpop.permute.xlu0 %10217 }
 0x41e   : > { %v12924_v2 = vpack.c.bf16 %v4055_v30, %v4054_v20  ;;  %v3724_v7 = vadd.f32 %v3714_v53, %v12598_v14  ;;  %v10220_v22 = vunpack.i.h.bf16 %v10218_v24  ;;  %v10219_v14 = vunpack.i.l.bf16 %v10218_v24  ;;  %v10224_v53 = vpop.permute.xlu1 %10223 }
 0x41f   : > { %v3713_v28 = vsel %vm3679_vm6, %v3644_v33, %v3645_v3 }
 0x420   : > { %15407 = vst [vmem:[#allocation26_spill] sm:$0xff] %v12924_v2  ;;  %v3770_v16 = vmax.f32 %v3724_v7, 0.0  ;;  %v3725_v54 = vadd.f32 %v3713_v28, %v12604_v58  ;;  %9250 = vmatmul.mubr.bf16.vlgmr.msra.gmra.mrb[80].mxu1 %v12924_v2  ;;  %9350 = vmatmul.mubr.bf16.vlgmr.msra.gmra.mrb[164].mxu0 %v12924_v2  ;;  %v4056_v46 = vmul.f32 %v10219_v14, %v3810_v42  ;;  %v10423_v7 = vld [vmem:[#allocation7 + $0x50] sm:$0xff]   ;;  %v10226_v28 = vunpack.i.h.bf16 %v10224_v53  ;;  %v10424_v14 = vld [vmem:[#allocation7 + $0x58] sm:$0xff]  }
 0x421   : > { %9434 = vmatpush3.bf16.msra.mxu1 %v10421_v32  ;;  %9253 = vmatprep.mubr.msk.bf16.mxu1 %vm10682_vm0, %v15298_v59 }
 0x422   : > { %v3811_v21 = vadd.f32 %v12915_v15, %v3770_v16  ;;  %v3504_v52 = vpop.f32.mrb[96].mxu0  ;;  %9353 = vmatprep.mubr.msk.bf16.mxu0 %vm10682_vm0, %v15298_v59  ;;  %9435 = vmatprep.subr.bf16.mxu1 %v15298_v59  ;;  %v3771_v31 = vmax.f32 %v3725_v54, 0.0  ;;  %v10225_v16 = vunpack.i.l.bf16 %v10224_v53 }
 0x423   : > { %v3646_v58 = vrot.slane %v3504_v52, 3  ;;  %v9167_v35 = vpop.f32.mrb[97].mxu0 }
 0x424   : > { %v4057_v33 = vmul.f32 %v10220_v22, %v3811_v21  ;;  %v3507_v20 = vpop.f32.mrb[98].mxu0  ;;  %v3812_v54 = vadd.f32 %v12915_v15, %v3771_v31 }
 0x425   : > { %v3712_v30 = vsel %vm3679_vm6, %v3645_v3, %v3646_v58  ;;  %v3647_v41 = vrot.slane %v3507_v20, 3  ;;  %v9168_v26 = vpop.f32.mrb[99].mxu0  ;;  %9436 = vmatpush3.bf16.msra.mxu1 %v10422_v48  ;;  %v10428_v48 = vld [vmem:[#allocation7 + $0x80] sm:$0xff]  }
 0x426   : > { %v12941_v47 = vpack.c.bf16 %v4057_v33, %v4056_v46  ;;  %v3726_v32 = vadd.f32 %v3712_v30, %v12616_v38  ;;  %9437 = vmatprep.subr.bf16.mxu1 %v15298_v59  ;;  %9534 = vmatpush3.bf16.msra.mxu0 %v10428_v48  ;;  %v10429_v33 = vld [vmem:[#allocation7 + $0x88] sm:$0xff]  }
 0x427   : > { %v3711_v42 = vsel %vm3679_vm6, %v3646_v58, %v3647_v41  ;;  %9535 = vmatprep.subr.bf16.mxu0 %v15298_v59 }
 0x428   : > { %15408 = vst [vmem:[#allocation27_spill] sm:$0xff] %v12941_v47  ;;  %v3772_v24 = vmax.f32 %v3726_v32, 0.0  ;;  %v3727_v3 = vadd.f32 %v3711_v42, %v12622_v4  ;;  %9254 = vmatmul.mubr.bf16.gmra.mrb[84].mxu1 %v12941_v47  ;;  %9354 = vmatmul.mubr.bf16.gmra.mrb[168].mxu0 %v12941_v47  ;;  %v4058_v4 = vmul.f32 %v10225_v16, %v3812_v54  ;;  %v10425_v32 = vld [vmem:[#allocation7 + $0x60] sm:$0xff]   ;;  %v10229_v16 = vpop.permute.xlu1 %10228 }
 0x429   : > { %9257 = vmatprep.mubr.msk.bf16.mxu1 %vm10682_vm0, %v15298_v59  ;;  %9357 = vmatprep.mubr.msk.bf16.mxu0 %vm10682_vm0, %v15298_v59  ;;  %v10231_v54 = vunpack.i.h.bf16 %v10229_v16 }
 0x42a   : > { %v3813_v38 = vadd.f32 %v12915_v15, %v3772_v24  ;;  %v3512_v22 = vpop.f32.mrb[100].mxu0  ;;  %9438 = vmatpush3.bf16.msra.mxu1 %v10423_v7  ;;  %v3773_v35 = vmax.f32 %v3727_v3, 0.0  ;;  %9536 = vmatpush3.bf16.msra.mxu0 %v10429_v33  ;;  %v10230_v24 = vunpack.i.l.bf16 %v10229_v16 }
 0x42b   : > { %v3648_v21 = vrot.slane %v3512_v22, 3  ;;  %v9171_v52 = vpop.f32.mrb[101].mxu0  ;;  %9439 = vmatprep.subr.bf16.mxu1 %v15298_v59  ;;  %9537 = vmatprep.subr.bf16.mxu0 %v15298_v59 }
 0x42c   : > { %v4059_v58 = vmul.f32 %v10226_v28, %v3813_v38  ;;  %v3515_v46 = vpop.f32.mrb[102].mxu0  ;;  %v3814_v28 = vadd.f32 %v12915_v15, %v3773_v35  ;;  %v10426_v38 = vld [vmem:[#allocation7 + $0x68] sm:$0xff]  }
 0x42d   : > { %v3710_v31 = vsel %vm3679_vm6, %v3647_v41, %v3648_v21  ;;  %v3649_v20 = vrot.slane %v3515_v46, 3  ;;  %v9172_v30 = vpop.f32.mrb[103].mxu0 }
 0x42e   : > { %v12960_v26 = vpack.c.bf16 %v4059_v58, %v4058_v4  ;;  %v3728_v53 = vadd.f32 %v3710_v31, %v12635_v29  ;;  %9440 = vmatpush3.bf16.msra.mxu1 %v10424_v14  ;;  %v10430_v29 = vld [vmem:[#allocation7 + $0x90] sm:$0xff]  }
 0x42f   : > { %v3709_v7 = vsel %vm3679_vm6, %v3648_v21, %v3649_v20  ;;  %9441 = vmatprep.subr.bf16.mxu1 %v15298_v59  ;;  %9538 = vmatpush3.bf16.msra.mxu0 %v10430_v29  ;;  %v4060_v21 = vmul.f32 %v10230_v24, %v3814_v28  ;;  %v10431_v24 = vld [vmem:[#allocation7 + $0x78] sm:$0xff]  }
 0x430   : > { %15409 = vst [vmem:[#allocation12_spill] sm:$0xff] %v12960_v26  ;;  %v3774_v42 = vmax.f32 %v3728_v53, 0.0  ;;  %v3729_v41 = vadd.f32 %v3709_v7, %v12641_v0  ;;  %9258 = vmatmul.mubr.bf16.gmra.mrb[88].mxu1 %v12960_v26  ;;  %9358 = vmatmul.mubr.bf16.gmra.mrb[172].mxu0 %v12960_v26  ;;  %v10432_v0 = vld [vmem:[#allocation7 + $0x98] sm:$0xff]   ;;  %v10427_v53 = vld [vmem:[#allocation7 + $0x70] sm:$0xff]  }
 0x431   : > { %9261 = vmatprep.mubr.msk.bf16.mxu1 %vm10682_vm0, %v15298_v59  ;;  %9361 = vmatprep.mubr.msk.bf16.mxu0 %vm10682_vm0, %v15298_v59 }
 0x432   : > { %v3815_v3 = vadd.f32 %v12915_v15, %v3774_v42  ;;  %v3520_v48 = vpop.f32.mrb[104].mxu0  ;;  %9442 = vmatpush3.bf16.msra.mxu1 %v10425_v32  ;;  %9539 = vmatprep.subr.bf16.mxu0 %v15298_v59  ;;  %v3775_v4 = vmax.f32 %v3729_v41, 0.0  ;;  %v10234_v42 = vpop.permute.xlu0 %10233 }
 0x433   : > { %v3650_v22 = vrot.slane %v3520_v48, 3  ;;  %v9175_v14 = vpop.f32.mrb[105].mxu0  ;;  %9443 = vmatprep.subr.bf16.mxu1 %v15298_v59  ;;  %9540 = vmatpush3.bf16.msra.mxu0 %v10432_v0  ;;  %v10236_v41 = vunpack.i.h.bf16 %v10234_v42  ;;  %v10235_v29 = vunpack.i.l.bf16 %v10234_v42  ;;  %v10436_v42 = vld [vmem:[#allocation7 + $0xb8] sm:$0xff]  }
 0x434   : > { %v4061_v52 = vmul.f32 %v10231_v54, %v3815_v3  ;;  %v3523_v58 = vpop.f32.mrb[106].mxu0  ;;  %9541 = vmatprep.subr.bf16.mxu0 %v15298_v59  ;;  %v3816_v7 = vadd.f32 %v12915_v15, %v3775_v4 }
 0x435   : > { %v3708_v35 = vsel %vm3679_vm6, %v3649_v20, %v3650_v22  ;;  %v3651_v46 = vrot.slane %v3523_v58, 3  ;;  %v9176_v33 = vpop.f32.mrb[107].mxu0 }
 0x436   : > { %v12980_v31 = vpack.c.bf16 %v4061_v52, %v4060_v21  ;;  %v3730_v30 = vadd.f32 %v3708_v35, %v12654_v17  ;;  %9444 = vmatpush3.bf16.msra.mxu1 %v10426_v38  ;;  %v10433_v17 = vld [vmem:[#allocation7 + $0xa0] sm:$0xff]   ;;  %v4062_v38 = vmul.f32 %v10235_v29, %v3816_v7 }
 0x437   : > { %v3707_v32 = vsel %vm3679_vm6, %v3650_v22, %v3651_v46  ;;  %9445 = vmatprep.subr.bf16.mxu1 %v15298_v59  ;;  %9542 = vmatpush3.bf16.msra.mxu0 %v10433_v17 }
 0x438   : > { %15410 = vst [vmem:[#allocation28_spill] sm:$0xff] %v12980_v31  ;;  %v3776_v28 = vmax.f32 %v3730_v30, 0.0  ;;  %v3731_v20 = vadd.f32 %v3707_v32, %v12660_v6  ;;  %9262 = vmatmul.mubr.bf16.gmra.mrb[92].mxu1 %v12980_v31  ;;  %9362 = vmatmul.mubr.bf16.gmra.mrb[176].mxu0 %v12980_v31  ;;  %v10434_v6 = vld [vmem:[#allocation7 + $0xa8] sm:$0xff]   ;;  %v10435_v32 = vld [vmem:[#allocation7 + $0xb0] sm:$0xff]  }
 0x439   : > { %9265 = vmatprep.mubr.msk.bf16.mxu1 %vm10682_vm0, %v15298_v59  ;;  %9365 = vmatprep.mubr.msk.bf16.mxu0 %vm10682_vm0, %v15298_v59 }
 0x43a   : > { %v3817_v16 = vadd.f32 %v12915_v15, %v3776_v28  ;;  %v3528_v54 = vpop.f32.mrb[108].mxu0  ;;  %9446 = vmatpush3.bf16.msra.mxu1 %v10427_v53  ;;  %9543 = vmatprep.subr.bf16.mxu0 %v15298_v59  ;;  %v3777_v22 = vmax.f32 %v3731_v20, 0.0 }
 0x43b   : > { %v3652_v3 = vrot.slane %v3528_v54, 3  ;;  %v9179_v48 = vpop.f32.mrb[109].mxu0  ;;  %9447 = vmatprep.subr.bf16.mxu1 %v15298_v59  ;;  %9544 = vmatpush3.bf16.msra.mxu0 %v10434_v6 }
 0x43c   : > { %v4063_v0 = vmul.f32 %v10236_v41, %v3817_v16  ;;  %v3531_v14 = vpop.f32.mrb[110].mxu0  ;;  %9545 = vmatprep.subr.bf16.mxu0 %v15298_v59  ;;  %v3818_v30 = vadd.f32 %v12915_v15, %v3777_v22 }
 0x43d   : > { %v3706_v21 = vsel %vm3679_vm6, %v3651_v46, %v3652_v3  ;;  %v3653_v52 = vrot.slane %v3531_v14, 3  ;;  %v9180_v4 = vpop.f32.mrb[111].mxu0 }
 0x43e   : > { %v13000_v58 = vpack.c.bf16 %v4063_v0, %v4062_v38  ;;  %v3732_v35 = vadd.f32 %v3706_v21, %v12673_v63  ;;  %9448 = vmatpush3.bf16.msra.mxu1 %v10431_v24  ;;  %v10239_v63 = vpop.permute.xlu1 %10238 }
 0x43f   : > { %v3705_v33 = vsel %vm3679_vm6, %v3652_v3, %v3653_v52  ;;  %9633 = vmatprep.subr.bf16.mxu1 %v15298_v59  ;;  %v10241_v7 = vunpack.i.h.bf16 %v10239_v63  ;;  %v10240_v28 = vunpack.i.l.bf16 %v10239_v63  ;;  %9546 = vmatpush3.bf16.msra.mxu0 %v10435_v32 }
 0x440   : > { %v3778_v53 = vmax.f32 %v3732_v35, 0.0  ;;  %v3733_v46 = vadd.f32 %v3705_v33, %v12680_v23  ;;  %9266 = vmatmul.mubr.bf16.gmra.mrb[96].mxu1 %v13000_v58  ;;  %9366 = vmatmul.mubr.bf16.gmra.mrb[180].mxu0 %v13000_v58 }
 0x441   : > { %9269 = vmatprep.mubr.msk.bf16.mxu1 %vm10682_vm0, %v15298_v59  ;;  %9369 = vmatprep.mubr.msk.bf16.mxu0 %vm10682_vm0, %v15298_v59  ;;  %v4064_v29 = vmul.f32 %v10240_v28, %v3818_v30 }
 0x442   : > { %v3819_v20 = vadd.f32 %v12915_v15, %v3778_v53  ;;  %v3536_v17 = vpop.f32.mrb[112].mxu0  ;;  %9547 = vmatprep.subr.bf16.mxu0 %v15298_v59  ;;  %v3779_v54 = vmax.f32 %v3733_v46, 0.0 }
 0x443   : > { %v3654_v23 = vrot.slane %v3536_v17, 3  ;;  %v9183_v41 = vpop.f32.mrb[113].mxu0  ;;  %9548 = vmatpush3.bf16.msra.mxu0 %v10436_v42 }
 0x444   : > { %v4065_v16 = vmul.f32 %v10241_v7, %v3819_v20  ;;  %v3539_v24 = vpop.f32.mrb[114].mxu0  ;;  %9733 = vmatprep.subr.bf16.mxu0 %v15298_v59  ;;  %v3820_v14 = vadd.f32 %v12915_v15, %v3779_v54 }
 0x445   : > { %v3704_v6 = vsel %vm3679_vm6, %v3653_v52, %v3654_v23  ;;  %v3655_v3 = vrot.slane %v3539_v24, 3  ;;  %v9184_v48 = vpop.f32.mrb[115].mxu0  ;;  %v10244_v52 = vpop.permute.xlu0 %10243 }
 0x446   : > { %v13019_v38 = vpack.c.bf16 %v4065_v16, %v4064_v29  ;;  %v3734_v0 = vadd.f32 %v3704_v6, %v12693_v56  ;;  %v10246_v56 = vunpack.i.h.bf16 %v10244_v52  ;;  %v10245_v35 = vunpack.i.l.bf16 %v10244_v52  ;;  %v10249_v24 = vpop.permute.xlu1 %10248 }
 0x447   : > { %v3703_v22 = vsel %vm3679_vm6, %v3654_v23, %v3655_v3  ;;  %v10250_v6 = vunpack.i.l.bf16 %v10249_v24 }
 0x448   : > { %15411 = vst [vmem:[#allocation13_spill] sm:$0xff] %v13019_v38  ;;  %v3780_v21 = vmax.f32 %v3734_v0, 0.0  ;;  %v3735_v4 = vadd.f32 %v3703_v22, %v12699_v40  ;;  %9270 = vmatmul.mubr.bf16.gmra.mrb[100].mxu1 %v13019_v38  ;;  %9370 = vmatmul.mubr.bf16.gmra.mrb[184].mxu0 %v13019_v38  ;;  %v4066_v32 = vmul.f32 %v10245_v35, %v3820_v14 }
 0x449   : > { %9273 = vmatprep.mubr.msk.bf16.mxu1 %vm10682_vm0, %v15298_v59  ;;  %9373 = vmatprep.mubr.msk.bf16.mxu0 %vm10682_vm0, %v15298_v59 }
 0x44a   : > { %v3821_v33 = vadd.f32 %v12915_v15, %v3780_v21  ;;  %v3544_v30 = vpop.f32.mrb[116].mxu0  ;;  %v3781_v63 = vmax.f32 %v3735_v4, 0.0 }
 0x44b   : > { %v3656_v53 = vrot.slane %v3544_v30, 3  ;;  %v9187_v46 = vpop.f32.mrb[117].mxu0 }
 0x44c   : > { %v4067_v40 = vmul.f32 %v10246_v56, %v3821_v33  ;;  %v3547_v7 = vpop.f32.mrb[118].mxu0  ;;  %v3822_v29 = vadd.f32 %v12915_v15, %v3781_v63  ;;  %v10254_v63 = vpop.permute.xlu0 %10253 }
 0x44d   : > { %v3702_v28 = vsel %vm3679_vm6, %v3655_v3, %v3656_v53  ;;  %v3657_v20 = vrot.slane %v3547_v7, 3  ;;  %v9188_v17 = vpop.f32.mrb[119].mxu0  ;;  %v10255_v7 = vunpack.i.l.bf16 %v10254_v63 }
 0x44e   : > { %v13036_v42 = vpack.c.bf16 %v4067_v40, %v4066_v32  ;;  %v3736_v23 = vadd.f32 %v3702_v28, %v12710_v37  ;;  %v10251_v37 = vunpack.i.h.bf16 %v10249_v24  ;;  %v4068_v14 = vmul.f32 %v10250_v6, %v3822_v29 }
 0x44f   : > { %v3701_v41 = vsel %vm3679_vm6, %v3656_v53, %v3657_v20 }
 0x450   : > { %15412 = vst [vmem:[#allocation29_spill] sm:$0xff] %v13036_v42  ;;  %v3782_v16 = vmax.f32 %v3736_v23, 0.0  ;;  %v3737_v54 = vadd.f32 %v3701_v41, %v12716_v62  ;;  %9274 = vmatmul.mubr.bf16.gmra.mrb[104].mxu1 %v13036_v42  ;;  %9374 = vmatmul.mubr.bf16.gmra.mrb[188].mxu0 %v13036_v42 }
 0x451   : > { %9277 = vmatprep.mubr.msk.bf16.mxu1 %vm10682_vm0, %v15298_v59  ;;  %9377 = vmatprep.mubr.msk.bf16.mxu0 %vm10682_vm0, %v15298_v59 }
 0x452   : > { %v3823_v3 = vadd.f32 %v12915_v15, %v3782_v16  ;;  %v3552_v48 = vpop.f32.mrb[120].mxu0  ;;  %v3783_v21 = vmax.f32 %v3737_v54, 0.0 }
 0x453   : > { %v3658_v0 = vrot.slane %v3552_v48, 3  ;;  %v9191_v22 = vpop.f32.mrb[121].mxu0 }
 0x454   : > { %v4069_v62 = vmul.f32 %v10251_v37, %v3823_v3  ;;  %v3555_v4 = vpop.f32.mrb[122].mxu0  ;;  %v3824_v46 = vadd.f32 %v12915_v15, %v3783_v21 }
 0x455   : > { %v3700_v52 = vsel %vm3679_vm6, %v3657_v20, %v3658_v0  ;;  %v3659_v56 = vrot.slane %v3555_v4, 3  ;;  %v9192_v35 = vpop.f32.mrb[123].mxu0 }
 0x456   : > { %v13052_v33 = vpack.c.bf16 %v4069_v62, %v4068_v14  ;;  %v3738_v30 = vadd.f32 %v3700_v52, %v12727_v12  ;;  %v10256_v12 = vunpack.i.h.bf16 %v10254_v63  ;;  %v4070_v41 = vmul.f32 %v10255_v7, %v3824_v46  ;;  %v10259_v62 = vpop.permute.xlu1 %10258 }
 0x457   : > { %v3699_v53 = vsel %vm3679_vm6, %v3658_v0, %v3659_v56  ;;  %v10260_v21 = vunpack.i.l.bf16 %v10259_v62 }
 0x458   : > { %v3784_v32 = vmax.f32 %v3738_v30, 0.0  ;;  %v3739_v40 = vadd.f32 %v3699_v53, %v12733_v5  ;;  %9278 = vmatmul.mubr.bf16.gmra.mrb[108].mxu1 %v13052_v33  ;;  %9378 = vmatmul.mubr.bf16.gmra.mrb[192].mxu0 %v13052_v33 }
 0x459   : > { %9281 = vmatprep.mubr.msk.bf16.mxu1 %vm10682_vm0, %v15298_v59  ;;  %9381 = vmatprep.mubr.msk.bf16.mxu0 %vm10682_vm0, %v15298_v59 }
 0x45a   : > { %v3825_v28 = vadd.f32 %v12915_v15, %v3784_v32  ;;  %v3560_v20 = vpop.f32.mrb[124].mxu0  ;;  %v3785_v29 = vmax.f32 %v3739_v40, 0.0 }
 0x45b   : > { %v3660_v17 = vrot.slane %v3560_v20, 3  ;;  %v9195_v23 = vpop.f32.mrb[125].mxu0 }
 0x45c   : > { %v4071_v5 = vmul.f32 %v10256_v12, %v3825_v28  ;;  %v3563_v16 = vpop.f32.mrb[126].mxu0  ;;  %v3826_v0 = vadd.f32 %v12915_v15, %v3785_v29 }
 0x45d   : > { %v3698_v54 = vsel %vm3679_vm6, %v3659_v56, %v3660_v17  ;;  %v3661_v24 = vrot.slane %v3563_v16, 3  ;;  %v9196_v37 = vpop.f32.mrb[127].mxu0 }
 0x45e   : > { %v13068_v6 = vpack.c.bf16 %v4071_v5, %v4070_v41  ;;  %v3740_v3 = vadd.f32 %v3698_v54, %v12744_v43  ;;  %v10261_v43 = vunpack.i.h.bf16 %v10259_v62  ;;  %v4072_v30 = vmul.f32 %v10260_v21, %v3826_v0  ;;  %v10264_v41 = vpop.permute.xlu0 %10263 }
 0x45f   : > { %v3697_v48 = vsel %vm3679_vm6, %v3660_v17, %v3661_v24  ;;  %v10265_v5 = vunpack.i.l.bf16 %v10264_v41 }
 0x460   : > { %v3786_v22 = vmax.f32 %v3740_v3, 0.0  ;;  %v3741_v14 = vadd.f32 %v3697_v48, %v12750_v19  ;;  %9282 = vmatmul.mubr.bf16.gmra.mrb[112].mxu1 %v13068_v6  ;;  %9382 = vmatmul.mubr.bf16.gmra.mrb[196].mxu0 %v13068_v6 }
 0x461   : > { %9285 = vmatprep.mubr.msk.bf16.mxu1 %vm10682_vm0, %v15298_v59  ;;  %9385 = vmatprep.mubr.msk.bf16.mxu0 %vm10682_vm0, %v15298_v59 }
 0x462   : > { %v3827_v4 = vadd.f32 %v12915_v15, %v3786_v22  ;;  %v3568_v52 = vpop.f32.mrb[128].mxu0  ;;  %v3787_v53 = vmax.f32 %v3741_v14, 0.0 }
 0x463   : > { %v3662_v56 = vrot.slane %v3568_v52, 3  ;;  %v9199_v35 = vpop.f32.mrb[129].mxu0 }
 0x464   : > { %v4073_v19 = vmul.f32 %v10261_v43, %v3827_v4  ;;  %v3571_v46 = vpop.f32.mrb[130].mxu0  ;;  %v3828_v20 = vadd.f32 %v12915_v15, %v3787_v53  ;;  %v10269_v35 = vpop.permute.xlu1 %10268 }
 0x465   : > { %v3696_v32 = vsel %vm3679_vm6, %v3661_v24, %v3662_v56  ;;  %v3663_v40 = vrot.slane %v3571_v46, 3  ;;  %v9200_v63 = vpop.f32.mrb[131].mxu0 }
 0x466   : > { %v13084_v12 = vpack.c.bf16 %v4073_v19, %v4072_v30  ;;  %v3742_v7 = vadd.f32 %v3696_v32, %v12761_v55  ;;  %v10266_v55 = vunpack.i.h.bf16 %v10264_v41  ;;  %v4074_v37 = vmul.f32 %v10265_v5, %v3828_v20 }
 0x467   : > { %v3695_v28 = vsel %vm3679_vm6, %v3662_v56, %v3663_v40  ;;  %v10270_v30 = vunpack.i.l.bf16 %v10269_v35 }
 0x468   : > { %v3788_v17 = vmax.f32 %v3742_v7, 0.0  ;;  %v3743_v23 = vadd.f32 %v3695_v28, %v12767_v60  ;;  %9286 = vmatmul.mubr.bf16.gmra.mrb[116].mxu1 %v13084_v12  ;;  %9386 = vmatmul.mubr.bf16.gmra.mrb[200].mxu0 %v13084_v12 }
 0x469   : > { %9289 = vmatprep.mubr.msk.bf16.mxu1 %vm10682_vm0, %v15298_v59  ;;  %9389 = vmatprep.mubr.msk.bf16.mxu0 %vm10682_vm0, %v15298_v59 }
 0x46a   : > { %v3829_v29 = vadd.f32 %v12915_v15, %v3788_v17  ;;  %v3576_v16 = vpop.f32.mrb[132].mxu0  ;;  %v3789_v3 = vmax.f32 %v3743_v23, 0.0 }
 0x46b   : > { %v3664_v54 = vrot.slane %v3576_v16, 3  ;;  %v9203_v24 = vpop.f32.mrb[133].mxu0 }
 0x46c   : > { %v4075_v60 = vmul.f32 %v10266_v55, %v3829_v29  ;;  %v3579_v48 = vpop.f32.mrb[134].mxu0  ;;  %v3830_v4 = vadd.f32 %v12915_v15, %v3789_v3 }
 0x46d   : > { %v3694_v0 = vsel %vm3679_vm6, %v3663_v40, %v3664_v54  ;;  %v3665_v22 = vrot.slane %v3579_v48, 3  ;;  %v9204_v14 = vpop.f32.mrb[135].mxu0 }
 0x46e   : > { %v13100_v62 = vpack.c.bf16 %v4075_v60, %v4074_v37  ;;  %v3744_v43 = vadd.f32 %v3694_v0, %v12778_v49  ;;  %v10271_v49 = vunpack.i.h.bf16 %v10269_v35  ;;  %v4076_v40 = vmul.f32 %v10270_v30, %v3830_v4 }
 0x46f   : > { %v3693_v21 = vsel %vm3679_vm6, %v3664_v54, %v3665_v22  ;;  %v10274_v54 = vpop.permute.xlu0 %10273 }
 0x470   : > { %v3790_v52 = vmax.f32 %v3744_v43, 0.0  ;;  %v3745_v56 = vadd.f32 %v3693_v21, %v12784_v10  ;;  %9290 = vmatmul.mubr.bf16.gmra.mrb[120].mxu1 %v13100_v62  ;;  %9390 = vmatmul.mubr.bf16.gmra.mrb[204].mxu0 %v13100_v62  ;;  %v10275_v24 = vunpack.i.l.bf16 %v10274_v54 }
 0x471   : > { %9293 = vmatprep.mubr.msk.bf16.mxu1 %vm10682_vm0, %v15298_v59  ;;  %9393 = vmatprep.mubr.msk.bf16.mxu0 %vm10682_vm0, %v15298_v59 }
 0x472   : > { %v3831_v19 = vadd.f32 %v12915_v15, %v3790_v52  ;;  %v3584_v53 = vpop.f32.mrb[136].mxu0  ;;  %v3791_v63 = vmax.f32 %v3745_v56, 0.0 }
 0x473   : > { %v3666_v46 = vrot.slane %v3584_v53, 3  ;;  %v9207_v32 = vpop.f32.mrb[137].mxu0  ;;  %v10279_v53 = vpop.permute.xlu1 %10278 }
 0x474   : > { %v4077_v10 = vmul.f32 %v10271_v49, %v3831_v19  ;;  %v3587_v7 = vpop.f32.mrb[138].mxu0  ;;  %v3832_v5 = vadd.f32 %v12915_v15, %v3791_v63 }
 0x475   : > { %v3692_v28 = vsel %vm3679_vm6, %v3665_v22, %v3666_v46  ;;  %v3667_v20 = vrot.slane %v3587_v7, 3  ;;  %v9208_v17 = vpop.f32.mrb[139].mxu0 }
 0x476   : > { %v13116_v23 = vpack.c.bf16 %v4077_v10, %v4076_v40  ;;  %v3746_v41 = vadd.f32 %v3692_v28, %v12795_v36  ;;  %v10276_v36 = vunpack.i.h.bf16 %v10274_v54  ;;  %v4078_v0 = vmul.f32 %v10275_v24, %v3832_v5 }
 0x477   : > { %v3691_v55 = vsel %vm3679_vm6, %v3666_v46, %v3667_v20  ;;  %v10280_v46 = vunpack.i.l.bf16 %v10279_v53 }
 0x478   : > { %v3792_v29 = vmax.f32 %v3746_v41, 0.0  ;;  %v3747_v16 = vadd.f32 %v3691_v55, %v12801_v27  ;;  %9294 = vmatmul.mubr.bf16.gmra.mrb[124].mxu1 %v13116_v23  ;;  %9394 = vmatmul.mubr.bf16.gmra.mrb[208].mxu0 %v13116_v23 }
 0x479   : > { %9297 = vmatprep.mubr.msk.bf16.mxu1 %vm10682_vm0, %v15298_v59  ;;  %9397 = vmatprep.mubr.msk.bf16.mxu0 %vm10682_vm0, %v15298_v59 }
 0x47a   : > { %v3833_v37 = vadd.f32 %v12915_v15, %v3792_v29  ;;  %v3592_v60 = vpop.f32.mrb[140].mxu0  ;;  %v3793_v22 = vmax.f32 %v3747_v16, 0.0 }
 0x47b   : > { %v3668_v3 = vrot.slane %v3592_v60, 3  ;;  %v9211_v48 = vpop.f32.mrb[141].mxu0 }
 0x47c   : > { %v4079_v27 = vmul.f32 %v10276_v36, %v3833_v37  ;;  %v3595_v14 = vpop.f32.mrb[142].mxu0  ;;  %v3834_v49 = vadd.f32 %v12915_v15, %v3793_v22  ;;  %v10284_v37 = vpop.permute.xlu0 %10283 }
 0x47d   : > { %v3690_v43 = vsel %vm3679_vm6, %v3667_v20, %v3668_v3  ;;  %v3669_v21 = vrot.slane %v3595_v14, 3  ;;  %v9212_v4 = vpop.f32.mrb[143].mxu0  ;;  %v10285_v60 = vunpack.i.l.bf16 %v10284_v37 }
 0x47e   : > { %v13132_v52 = vpack.c.bf16 %v4079_v27, %v4078_v0  ;;  %v3748_v56 = vadd.f32 %v3690_v43, %v12811_v51  ;;  %v10281_v51 = vunpack.i.h.bf16 %v10279_v53  ;;  %v4080_v7 = vmul.f32 %v10280_v46, %v3834_v49  ;;  %v10289_v46 = vpop.permute.xlu1 %10288 }
 0x47f   : > { %v3689_v35 = vsel %vm3679_vm6, %v3668_v3, %v3669_v21 }
 0x480   : > { %v3794_v30 = vmax.f32 %v3748_v56, 0.0  ;;  %v3749_v19 = vadd.f32 %v3689_v35, %v12815_v11  ;;  %9298 = vmatmul.mubr.bf16.gmra.mrb[128].mxu1 %v13132_v52  ;;  %9398 = vmatmul.mubr.bf16.gmra.mrb[212].mxu0 %v13132_v52 }
 0x481   : > { %9301 = vmatprep.mubr.msk.bf16.mxu1 %vm10682_vm0, %v15298_v59  ;;  %9401 = vmatprep.mubr.msk.bf16.mxu0 %vm10682_vm0, %v15298_v59 }
 0x482   : > { %v3835_v32 = vadd.f32 %v12915_v15, %v3794_v30  ;;  %v3600_v40 = vpop.f32.mrb[144].mxu0  ;;  %v3795_v28 = vmax.f32 %v3749_v19, 0.0 }
 0x483   : > { %v3670_v10 = vrot.slane %v3600_v40, 3  ;;  %v9215_v63 = vpop.f32.mrb[145].mxu0 }
 0x484   : > { %v4081_v11 = vmul.f32 %v10281_v51, %v3835_v32  ;;  %v3603_v20 = vpop.f32.mrb[146].mxu0  ;;  %v3836_v54 = vadd.f32 %v12915_v15, %v3795_v28  ;;  %v10290_v32 = vunpack.i.l.bf16 %v10289_v46 }
 0x485   : > { %v3688_v17 = vsel %vm3679_vm6, %v3669_v21, %v3670_v10  ;;  %v3671_v41 = vrot.slane %v3603_v20, 3  ;;  %v9216_v55 = vpop.f32.mrb[147].mxu0 }
 0x486   : > { %v13148_v5 = vpack.c.bf16 %v4081_v11, %v4080_v7  ;;  %v3750_v29 = vadd.f32 %v3688_v17, %v12825_v13  ;;  %v10286_v13 = vunpack.i.h.bf16 %v10284_v37  ;;  %v4082_v22 = vmul.f32 %v10285_v60, %v3836_v54 }
 0x487   : > { %v3687_v16 = vsel %vm3679_vm6, %v3670_v10, %v3671_v41 }
 0x488   : > { %v3796_v36 = vmax.f32 %v3750_v29, 0.0  ;;  %v3751_v24 = vadd.f32 %v3687_v16, %v12829_v34  ;;  %9302 = vmatmul.mubr.bf16.gmra.mrb[132].mxu1 %v13148_v5  ;;  %9402 = vmatmul.mubr.bf16.gmra.mrb[216].mxu0 %v13148_v5 }
 0x489   : > { %9305 = vmatprep.mubr.msk.bf16.mxu1 %vm10682_vm0, %v15298_v59  ;;  %9405 = vmatprep.mubr.msk.bf16.mxu0 %vm10682_vm0, %v15298_v59 }
 0x48a   : > { %v3837_v3 = vadd.f32 %v12915_v15, %v3796_v36  ;;  %v3608_v48 = vpop.f32.mrb[148].mxu0  ;;  %v3797_v14 = vmax.f32 %v3751_v24, 0.0 }
 0x48b   : > { %v3672_v0 = vrot.slane %v3608_v48, 3  ;;  %v9219_v27 = vpop.f32.mrb[149].mxu0 }
 0x48c   : > { %v4083_v34 = vmul.f32 %v10286_v13, %v3837_v3  ;;  %v3611_v43 = vpop.f32.mrb[150].mxu0  ;;  %v3838_v19 = vadd.f32 %v12915_v15, %v3797_v14  ;;  %v10294_v13 = vpop.permute.xlu0 %10293 }
 0x48d   : > { %v3686_v21 = vsel %vm3679_vm6, %v3671_v41, %v3672_v0  ;;  %v3673_v4 = vrot.slane %v3611_v43, 3  ;;  %v9220_v56 = vpop.f32.mrb[151].mxu0  ;;  %v10295_v60 = vunpack.i.l.bf16 %v10294_v13 }
 0x48e   : > { %v13164_v35 = vpack.c.bf16 %v4083_v34, %v4082_v22  ;;  %v3752_v49 = vadd.f32 %v3686_v21, %v12839_v61  ;;  %v10291_v61 = vunpack.i.h.bf16 %v10289_v46  ;;  %v4084_v11 = vmul.f32 %v10290_v32, %v3838_v19  ;;  %v10299_v56 = vpop.permute.xlu1 %10298 }
 0x48f   : > { %v3685_v30 = vsel %vm3679_vm6, %v3672_v0, %v3673_v4 }
 0x490   : > { %v3798_v53 = vmax.f32 %v3752_v49, 0.0  ;;  %v3753_v51 = vadd.f32 %v3685_v30, %v12843_v1  ;;  %9306 = vmatmul.mubr.bf16.gmra.mrb[136].mxu1 %v13164_v35  ;;  %9406 = vmatmul.mubr.bf16.gmra.mrb[220].mxu0 %v13164_v35 }
 0x491   : > { %9309 = vmatprep.mubr.msk.bf16.mxu1 %vm10682_vm0, %v15298_v59  ;;  %9409 = vmatprep.mubr.msk.bf16.mxu0 %vm10682_vm0, %v15298_v59 }
 0x492   : > { %v3839_v40 = vadd.f32 %v12915_v15, %v3798_v53  ;;  %v3616_v10 = vpop.f32.mrb[152].mxu0  ;;  %v3799_v28 = vmax.f32 %v3753_v51, 0.0 }
 0x493   : > { %v3674_v63 = vrot.slane %v3616_v10, 3  ;;  %v9223_v7 = vpop.f32.mrb[153].mxu0 }
 0x494   : > { %v4085_v1 = vmul.f32 %v10291_v61, %v3839_v40  ;;  %v3619_v20 = vpop.f32.mrb[154].mxu0  ;;  %v3840_v36 = vadd.f32 %v12915_v15, %v3799_v28  ;;  %v10301_v61 = vunpack.i.h.bf16 %v10299_v56  ;;  %v10309_v7 = vpop.permute.xlu1 %10308 }
 0x495   : > { %v3684_v17 = vsel %vm3679_vm6, %v3673_v4, %v3674_v63  ;;  %v3675_v41 = vrot.slane %v3619_v20, 3  ;;  %v9224_v55 = vpop.f32.mrb[155].mxu0 }
 0x496   : > { %v13180_v29 = vpack.c.bf16 %v4085_v1, %v4084_v11  ;;  %v3754_v16 = vadd.f32 %v3684_v17, %v12853_v25  ;;  %v10296_v25 = vunpack.i.h.bf16 %v10294_v13  ;;  %v4086_v22 = vmul.f32 %v10295_v60, %v3840_v36 }
 0x497   : > { %v3683_v54 = vsel %vm3679_vm6, %v3674_v63, %v3675_v41 }
 0x498   : > { %v3800_v24 = vmax.f32 %v3754_v16, 0.0  ;;  %v3755_v37 = vadd.f32 %v3683_v54, %v12857_v18  ;;  %9310 = vmatmul.mubr.bf16.gmra.mrb[140].mxu1 %v13180_v29  ;;  %9410 = vmatmul.mubr.bf16.gmra.mrb[224].mxu0 %v13180_v29 }
 0x499   : > { %9313 = vmatprep.mubr.msk.bf16.mxu1 %vm10682_vm0, %v15298_v59  ;;  %9413 = vmatprep.mubr.msk.bf16.mxu0 %vm10682_vm0, %v15298_v59 }
 0x49a   : > { %v3841_v3 = vadd.f32 %v12915_v15, %v3800_v24  ;;  %v3624_v48 = vpop.f32.mrb[156].mxu0  ;;  %v3801_v34 = vmax.f32 %v3755_v37, 0.0 }
 0x49b   : > { %v3676_v0 = vrot.slane %v3624_v48, 3  ;;  %v9227_v27 = vpop.f32.mrb[157].mxu0 }
 0x49c   : > { %v4087_v18 = vmul.f32 %v10296_v25, %v3841_v3  ;;  %v3627_v14 = vpop.f32.mrb[158].mxu0  ;;  %v3842_v53 = vadd.f32 %v12915_v15, %v3801_v34  ;;  %v10304_v3 = vpop.permute.xlu0 %10303 }
 0x49d   : > { %v3682_v43 = vsel %vm3679_vm6, %v3675_v41, %v3676_v0  ;;  %v3677_v21 = vrot.slane %v3627_v14, 3  ;;  %v9228_v4 = vpop.f32.mrb[159].mxu0  ;;  %v15413_v41 = vrot.slane %v12891_v50, 3  ;;  %v10310_v50 = vunpack.i.l.bf16 %v10309_v7 }
 0x49e   : > { %v13196_v49 = vpack.c.bf16 %v4087_v18, %v4086_v22  ;;  %v3756_v30 = vadd.f32 %v3682_v43, %v12867_v44  ;;  %v10300_v44 = vunpack.i.l.bf16 %v10299_v56 }
 0x49f   : > { %v3681_v19 = vsel %vm3679_vm6, %v3676_v0, %v3677_v21 }
 0x4a0   : > { %v3802_v51 = vmax.f32 %v3756_v30, 0.0  ;;  %v3757_v46 = vadd.f32 %v3681_v19, %v12871_v8  ;;  %9314 = vmatmul.mubr.bf16.gmra.mrb[144].mxu1 %v13196_v49  ;;  %9414 = vmatmul.mubr.bf16.gmra.mrb[228].mxu0 %v13196_v49  ;;  %v3806_v8 = vmax.f32 %v12900_v57, 0.0  ;;  %v4088_v11 = vmul.f32 %v10300_v44, %v3842_v53  ;;  %v4052_v30 = vpop.permute.xlu0 %4051  ;;  %v10440_v44 = vld [vmem:[#allocation7 + $0xd8] sm:$0xff]  }
 0x4a1   : > { %9317 = vmatprep.mubr.msk.bf16.mxu1 %vm10682_vm0, %v15298_v59  ;;  %9417 = vmatprep.mubr.msk.bf16.mxu0 %vm10682_vm0, %v15298_v59  ;;  %v10311_v57 = vunpack.i.h.bf16 %v10309_v7  ;;  %v10448_v7 = vld [vmem:[#allocation7 + $0x158] sm:$0xff]  }
 0x4a2   : > { %v3843_v32 = vadd.f32 %v12915_v15, %v3802_v51  ;;  %v3632_v40 = vpop.f32.mrb[160].mxu0  ;;  %v3803_v28 = vmax.f32 %v3757_v46, 0.0  ;;  %v3847_v37 = vadd.f32 %v12915_v15, %v3806_v8  ;;  %v10438_v51 = vld [vmem:[#allocation7 + $0xc8] sm:$0xff]   ;;  %v10439_v46 = vld [vmem:[#allocation7 + $0xd0] sm:$0xff]  }
 0x4a3   : > { %v3678_v10 = vrot.slane %v3632_v40, 3  ;;  %v9231_v63 = vpop.f32.mrb[161].mxu0  ;;  %v10441_v40 = vld [vmem:[#allocation7 + $0xe0] sm:$0xff]   ;;  %v10443_v8 = vld [vmem:[#allocation7 + $0xf0] sm:$0xff]  }
 0x4a4   : > { %v4089_v1 = vmul.f32 %v10301_v61, %v3843_v32  ;;  %v3635_v20 = vpop.f32.mrb[162].mxu0  ;;  %v3844_v13 = vadd.f32 %v12915_v15, %v3803_v28  ;;  %v4093_v27 = vmul.f32 %v10311_v57, %v3847_v37  ;;  %v10444_v61 = vld [vmem:[#allocation7 + $0x140] sm:$0xff]   ;;  %v10445_v32 = vld [vmem:[#allocation7 + $0x148] sm:$0xff]  }
 0x4a5   : > { %v3680_v17 = vsel %vm3679_vm6, %v3677_v21, %v3678_v10  ;;  %v3720_v55 = vsel %vm3679_vm6, %v3678_v10, %v15413_v41  ;;  %v9232_v16 = vpop.f32.mrb[163].mxu0  ;;  %v15416_v21 = vld [vmem:[#allocation25_spill] sm:$0xff]  ;;  %v10446_v10 = vld [vmem:[#allocation7 + $0x150] sm:$0xff]   ;;  %v10442_v63 = vld [vmem:[#allocation7 + $0xe8] sm:$0xff]  }
 0x4a6   : > { %v13217_v54 = vpack.c.bf16 %v4089_v1, %v4088_v11  ;;  %v3758_v36 = vadd.f32 %v3680_v17, %v12887_v45  ;;  %v3759_v24 = vadd.f32 %v3720_v55, %v12889_v39  ;;  %v10306_v45 = vunpack.i.h.bf16 %v10304_v3  ;;  %v10449_v11 = vld [vmem:[#allocation7 + $0x160] sm:$0xff]   ;;  %v10447_v1 = vld [vmem:[#allocation7 + $0xf8] sm:$0xff]   ;;  %v10450_v28 = vld [vmem:[#allocation7 + $0x168] sm:$0xff]  }
 0x4a7   : > { %v10305_v39 = vunpack.i.l.bf16 %v10304_v3  ;;  %v3807_v4 = vmax.f32 %v15416_v21, 0.0  ;;  %v10451_v20 = vld [vmem:[#allocation7 + $0x170] sm:$0xff]   ;;  %v10452_v17 = vld [vmem:[#allocation7 + $0x178] sm:$0xff]  }
 0x4a8   : > { %v3804_v25 = vmax.f32 %v3758_v36, 0.0  ;;  %v3805_v60 = vmax.f32 %v3759_v24, 0.0  ;;  %9318 = vmatmul.mubr.bf16.gmra.mrb[148].mxu1 %v13217_v54  ;;  %9418 = vmatmul.mubr.bf16.gmra.mrb[232].mxu0 %v13217_v54 }
 0x4a9   : > { %9321 = vmatprep.mubr.msk.bf16.mxu1 %vm10682_vm0, %v15298_v59  ;;  %9421 = vmatprep.mubr.msk.bf16.mxu0 %vm10682_vm0, %v15298_v59  ;;  %v4090_v22 = vmul.f32 %v10305_v39, %v3844_v13  ;;  %v3848_v56 = vadd.f32 %v12915_v15, %v3807_v4 }
 0x4aa   : > { %v3845_v48 = vadd.f32 %v12915_v15, %v3804_v25  ;;  %v3846_v0 = vadd.f32 %v12915_v15, %v3805_v60  ;;  %v10437_v15 = vld [vmem:[#allocation7 + $0xc0] sm:$0xff]  }
 0x4ab   : > { %v4094_v19 = vmul.f32 %v4052_v30, %v3848_v56 }
 0x4ac   : > { %v4091_v18 = vmul.f32 %v10306_v45, %v3845_v48  ;;  %v4092_v34 = vmul.f32 %v10310_v50, %v3846_v0 }
 0x4ad   : > { %v13249_v53 = vpack.c.bf16 %v4094_v19, %v4094_v19 }
 0x4ae   : > { %v13231_v14 = vpack.c.bf16 %v4091_v18, %v4090_v22  ;;  %v13233_v43 = vpack.c.bf16 %v4093_v27, %v4092_v34 }
 0x4af   : > { %15417 = vst [vmem:[#allocation14_spill] sm:$0xff] %v13249_v53 }
 0x4b0   : > { %15414 = vst [vmem:[#allocation16_spill] sm:$0xff] %v13231_v14  ;;  %15415 = vst [vmem:[#allocation17_spill] sm:$0xff] %v13233_v43  ;;  %9322 = vmatmul.mubr.bf16.gmra.mrb[152].mxu1 %v13231_v14  ;;  %9422 = vmatmul.mubr.bf16.gmra.mrb[236].mxu0 %v13231_v14 }
 0x4b1   : > { %9325 = vmatprep.mubr.msk.bf16.mxu1 %vm10682_vm0, %v15298_v59  ;;  %9425 = vmatprep.mubr.msk.bf16.mxu0 %vm10682_vm0, %v15298_v59 }
 0x4b8   : > { %9326 = vmatmul.mubr.bf16.gmra.mrb[156].mxu1 %v13233_v43  ;;  %9426 = vmatmul.mubr.bf16.gmra.mrb[240].mxu0 %v13233_v43 }
 0x4b9   : > { %9329 = vmatprep.mubr.msk.bf16.mxu1 %vm10682_vm0, %v15298_v59  ;;  %9429 = vmatprep.mubr.msk.bf16.mxu0 %vm10682_vm0, %v15298_v59 }
 0x4c0   : > { %9330 = vmatmul.mubr.bf16.gmra.mrb[160].mxu1 %v13249_v53  ;;  %9430 = vmatmul.mubr.bf16.gmra.mrb[244].mxu0 %v13249_v53 }
 0x4c1   : > { %9449 = vmatprep.mubr.msk.bf16.mxu1 %vm10682_vm0, %v15298_v59  ;;  %9549 = vmatprep.mubr.msk.bf16.mxu0 %vm10682_vm0, %v15298_v59 }
 0x4c8   : > { %9450 = vmatmul.mubr.bf16.vlgmr.msra.gmra.mrb[164].mxu1 %v12924_v2  ;;  %9550 = vmatmul.mubr.bf16.vlgmr.msra.gmra.mrb[248].mxu0 %v12924_v2 }
 0x4c9   : > { %9634 = vmatpush3.bf16.msra.mxu1 %v10437_v15  ;;  %9453 = vmatprep.mubr.msk.bf16.mxu1 %vm10682_vm0, %v15298_v59 }
 0x4ca   : > { %9553 = vmatprep.mubr.msk.bf16.mxu0 %vm10682_vm0, %v15298_v59  ;;  %9635 = vmatprep.subr.bf16.mxu1 %v15298_v59 }
 0x4cb   : > { %9734 = vmatpush3.bf16.msra.mxu0 %v10444_v61 }
 0x4cc   : > { %9735 = vmatprep.subr.bf16.mxu0 %v15298_v59 }
 0x4cd   : > { %9636 = vmatpush3.bf16.msra.mxu1 %v10438_v51 }
 0x4ce   : > { %9637 = vmatprep.subr.bf16.mxu1 %v15298_v59 }
 0x4cf   : > { %9736 = vmatpush3.bf16.msra.mxu0 %v10445_v32 }
 0x4d0   : > { %9454 = vmatmul.mubr.bf16.gmra.mrb[168].mxu1 %v12941_v47  ;;  %9554 = vmatmul.mubr.bf16.gmra.mrb[252].mxu0 %v12941_v47 }
 0x4d1   : > { %9457 = vmatprep.mubr.msk.bf16.mxu1 %vm10682_vm0, %v15298_v59  ;;  %9557 = vmatprep.mubr.msk.bf16.mxu0 %vm10682_vm0, %v15298_v59 }
 0x4d2   : > { %9638 = vmatpush3.bf16.msra.mxu1 %v10439_v46  ;;  %9737 = vmatprep.subr.bf16.mxu0 %v15298_v59 }
 0x4d3   : > { %9639 = vmatprep.subr.bf16.mxu1 %v15298_v59  ;;  %9738 = vmatpush3.bf16.msra.mxu0 %v10446_v10 }
 0x4d4   : > { %9739 = vmatprep.subr.bf16.mxu0 %v15298_v59 }
 0x4d6   : > { %9640 = vmatpush3.bf16.msra.mxu1 %v10440_v44 }
 0x4d7   : > { %9641 = vmatprep.subr.bf16.mxu1 %v15298_v59  ;;  %9740 = vmatpush3.bf16.msra.mxu0 %v10448_v7 }
 0x4d8   : > { %9458 = vmatmul.mubr.bf16.gmra.mrb[172].mxu1 %v12960_v26  ;;  %9558 = vmatmul.mubr.bf16.gmra.mrb[0].mxu0 %v12960_v26 }
 0x4d9   : > { %9461 = vmatprep.mubr.msk.bf16.mxu1 %vm10682_vm0, %v15298_v59  ;;  %9561 = vmatprep.mubr.msk.bf16.mxu0 %vm10682_vm0, %v15298_v59 }
 0x4da   : > { %9642 = vmatpush3.bf16.msra.mxu1 %v10441_v40  ;;  %9741 = vmatprep.subr.bf16.mxu0 %v15298_v59 }
 0x4db   : > { %9643 = vmatprep.subr.bf16.mxu1 %v15298_v59  ;;  %9742 = vmatpush3.bf16.msra.mxu0 %v10449_v11 }
 0x4dc   : > { %9743 = vmatprep.subr.bf16.mxu0 %v15298_v59 }
 0x4de   : > { %9644 = vmatpush3.bf16.msra.mxu1 %v10442_v63 }
 0x4df   : > { %9645 = vmatprep.subr.bf16.mxu1 %v15298_v59  ;;  %9744 = vmatpush3.bf16.msra.mxu0 %v10450_v28 }
 0x4e0   : > { %9462 = vmatmul.mubr.bf16.gmra.mrb[176].mxu1 %v12980_v31  ;;  %9562 = vmatmul.mubr.bf16.gmra.mrb[4].mxu0 %v12980_v31 }
 0x4e1   : > { %9465 = vmatprep.mubr.msk.bf16.mxu1 %vm10682_vm0, %v15298_v59  ;;  %9565 = vmatprep.mubr.msk.bf16.mxu0 %vm10682_vm0, %v15298_v59 }
 0x4e2   : > { %9646 = vmatpush3.bf16.msra.mxu1 %v10443_v8  ;;  %9745 = vmatprep.subr.bf16.mxu0 %v15298_v59 }
 0x4e3   : > { %9647 = vmatprep.subr.bf16.mxu1 %v15298_v59  ;;  %9746 = vmatpush3.bf16.msra.mxu0 %v10451_v20 }
 0x4e4   : > { %9747 = vmatprep.subr.bf16.mxu0 %v15298_v59 }
 0x4e6   : > { %9648 = vmatpush3.bf16.msra.mxu1 %v10447_v1 }
 0x4e7   : > { %9833 = vmatprep.subr.bf16.mxu1 %v15298_v59  ;;  %9748 = vmatpush3.bf16.msra.mxu0 %v10452_v17 }
 0x4e8   : > { %9466 = vmatmul.mubr.bf16.gmra.mrb[180].mxu1 %v13000_v58  ;;  %9566 = vmatmul.mubr.bf16.gmra.mrb[8].mxu0 %v13000_v58 }
 0x4e9   : > { %9469 = vmatprep.mubr.msk.bf16.mxu1 %vm10682_vm0, %v15298_v59  ;;  %9569 = vmatprep.mubr.msk.bf16.mxu0 %vm10682_vm0, %v15298_v59 }
 0x4ea   : > { %9933 = vmatprep.subr.bf16.mxu0 %v15298_v59 }
 0x4f0   : > { %9470 = vmatmul.mubr.bf16.gmra.mrb[184].mxu1 %v13019_v38  ;;  %9570 = vmatmul.mubr.bf16.gmra.mrb[12].mxu0 %v13019_v38 }
 0x4f1   : > { %9473 = vmatprep.mubr.msk.bf16.mxu1 %vm10682_vm0, %v15298_v59  ;;  %9573 = vmatprep.mubr.msk.bf16.mxu0 %vm10682_vm0, %v15298_v59 }
 0x4f3   : > { %v13309_v41 = vpop.f32.mrb[80].mxu1  ;;  %v13311_v55 = vpop.f32.mrb[164].mxu0 }
 0x4f4   : > { %v9251_v16 = vpop.f32.mrb[81].mxu1  ;;  %v9351_v36 = vpop.f32.mrb[165].mxu0  ;;  %v15234_v37 = vrot.slane %v13309_v41, 5 }
 0x4f5   : > { %v4234_v24 = vpop.f32.mrb[82].mxu1  ;;  %v13313_v57 = vpop.f32.mrb[166].mxu0 }
 0x4f6   : > { %v4398_v13 = vrot.slane %v4234_v24, 5  ;;  %v9252_v25 = vpop.f32.mrb[83].mxu1  ;;  %v9352_v60 = vpop.f32.mrb[167].mxu0 }
 0x4f8   : > { %9474 = vmatmul.mubr.bf16.gmra.mrb[188].mxu1 %v13036_v42  ;;  %9574 = vmatmul.mubr.bf16.gmra.mrb[16].mxu0 %v13036_v42  ;;  %v4477_v50 = vsel %vm751_vm1, %v15234_v37, %v4398_v13 }
 0x4f9   : > { %9477 = vmatprep.mubr.msk.bf16.mxu1 %vm10682_vm0, %v15298_v59  ;;  %9577 = vmatprep.mubr.msk.bf16.mxu0 %vm10682_vm0, %v15298_v59 }
 0x4fb   : > { %v4239_v3 = vpop.f32.mrb[84].mxu1  ;;  %v13326_v45 = vpop.f32.mrb[168].mxu0 }
 0x4fc   : > { %v4399_v39 = vrot.slane %v4239_v3, 5  ;;  %v9255_v48 = vpop.f32.mrb[85].mxu1  ;;  %v9355_v0 = vpop.f32.mrb[169].mxu0 }
 0x4fd   : > { %v4242_v27 = vpop.f32.mrb[86].mxu1  ;;  %v4572_v22 = vpop.f32.mrb[170].mxu0 }
 0x4fe   : > { %v4400_v18 = vrot.slane %v4242_v27, 5  ;;  %v13328_v34 = vadd.f32 %v4572_v22, %v4477_v50  ;;  %v9256_v21 = vpop.f32.mrb[87].mxu1  ;;  %v9356_v4 = vpop.f32.mrb[171].mxu0  ;;  %v4476_v56 = vsel %vm751_vm1, %v4398_v13, %v4399_v39 }
 0x500   : > { %9478 = vmatmul.mubr.bf16.gmra.mrb[192].mxu1 %v13052_v33  ;;  %9578 = vmatmul.mubr.bf16.gmra.mrb[20].mxu0 %v13052_v33  ;;  %v4475_v30 = vsel %vm751_vm1, %v4399_v39, %v4400_v18 }
 0x501   : > { %9481 = vmatprep.mubr.msk.bf16.mxu1 %vm10682_vm0, %v15298_v59  ;;  %9581 = vmatprep.mubr.msk.bf16.mxu0 %vm10682_vm0, %v15298_v59 }
 0x503   : > { %v4247_v19 = vpop.f32.mrb[88].mxu1  ;;  %v4577_v15 = vpop.f32.mrb[172].mxu0 }
 0x504   : > { %v4401_v51 = vrot.slane %v4247_v19, 5  ;;  %v13340_v46 = vadd.f32 %v4577_v15, %v4476_v56  ;;  %v9259_v61 = vpop.f32.mrb[89].mxu1  ;;  %v9359_v44 = vpop.f32.mrb[173].mxu0 }
 0x505   : > { %v4250_v32 = vpop.f32.mrb[90].mxu1  ;;  %v4580_v40 = vpop.f32.mrb[174].mxu0 }
 0x506   : > { %v4402_v10 = vrot.slane %v4250_v32, 5  ;;  %v13342_v63 = vadd.f32 %v4580_v40, %v4475_v30  ;;  %v9260_v7 = vpop.f32.mrb[91].mxu1  ;;  %v9360_v8 = vpop.f32.mrb[175].mxu0  ;;  %v4474_v11 = vsel %vm751_vm1, %v4400_v18, %v4401_v51 }
 0x508   : > { %9482 = vmatmul.mubr.bf16.gmra.mrb[196].mxu1 %v13068_v6  ;;  %9582 = vmatmul.mubr.bf16.gmra.mrb[24].mxu0 %v13068_v6  ;;  %v4473_v1 = vsel %vm751_vm1, %v4401_v51, %v4402_v10 }
 0x509   : > { %9485 = vmatprep.mubr.msk.bf16.mxu1 %vm10682_vm0, %v15298_v59  ;;  %9585 = vmatprep.mubr.msk.bf16.mxu0 %vm10682_vm0, %v15298_v59 }
 0x50b   : > { %v4255_v28 = vpop.f32.mrb[92].mxu1  ;;  %v4585_v20 = vpop.f32.mrb[176].mxu0 }
 0x50c   : > { %v4403_v17 = vrot.slane %v4255_v28, 5  ;;  %v13354_v16 = vadd.f32 %v4585_v20, %v4474_v11  ;;  %v9263_v36 = vpop.f32.mrb[93].mxu1  ;;  %v9363_v24 = vpop.f32.mrb[177].mxu0 }
 0x50d   : > { %v4258_v13 = vpop.f32.mrb[94].mxu1  ;;  %v4588_v25 = vpop.f32.mrb[178].mxu0 }
 0x50e   : > { %v4404_v60 = vrot.slane %v4258_v13, 5  ;;  %v13356_v50 = vadd.f32 %v4588_v25, %v4473_v1  ;;  %v9264_v3 = vpop.f32.mrb[95].mxu1  ;;  %v9364_v39 = vpop.f32.mrb[179].mxu0  ;;  %v4472_v48 = vsel %vm751_vm1, %v4402_v10, %v4403_v17 }
 0x510   : > { %9486 = vmatmul.mubr.bf16.gmra.mrb[200].mxu1 %v13084_v12  ;;  %9586 = vmatmul.mubr.bf16.gmra.mrb[28].mxu0 %v13084_v12  ;;  %v4471_v0 = vsel %vm751_vm1, %v4403_v17, %v4404_v60 }
 0x511   : > { %9489 = vmatprep.mubr.msk.bf16.mxu1 %vm10682_vm0, %v15298_v59  ;;  %9589 = vmatprep.mubr.msk.bf16.mxu0 %vm10682_vm0, %v15298_v59 }
 0x513   : > { %v4263_v27 = vpop.f32.mrb[96].mxu1  ;;  %v4593_v22 = vpop.f32.mrb[180].mxu0 }
 0x514   : > { %v4405_v18 = vrot.slane %v4263_v27, 5  ;;  %v13368_v21 = vadd.f32 %v4593_v22, %v4472_v48  ;;  %v9267_v4 = vpop.f32.mrb[97].mxu1  ;;  %v9367_v56 = vpop.f32.mrb[181].mxu0 }
 0x515   : > { %v4266_v30 = vpop.f32.mrb[98].mxu1  ;;  %v4596_v19 = vpop.f32.mrb[182].mxu0 }
 0x516   : > { %v4406_v15 = vrot.slane %v4266_v30, 5  ;;  %v13370_v51 = vadd.f32 %v4596_v19, %v4471_v0  ;;  %v9268_v61 = vpop.f32.mrb[99].mxu1  ;;  %v9368_v44 = vpop.f32.mrb[183].mxu0  ;;  %v4470_v32 = vsel %vm751_vm1, %v4404_v60, %v4405_v18 }
 0x518   : > { %9490 = vmatmul.mubr.bf16.gmra.mrb[204].mxu1 %v13100_v62  ;;  %9590 = vmatmul.mubr.bf16.gmra.mrb[32].mxu0 %v13100_v62  ;;  %v4469_v40 = vsel %vm751_vm1, %v4405_v18, %v4406_v15 }
 0x519   : > { %9493 = vmatprep.mubr.msk.bf16.mxu1 %vm10682_vm0, %v15298_v59  ;;  %9593 = vmatprep.mubr.msk.bf16.mxu0 %vm10682_vm0, %v15298_v59 }
 0x51b   : > { %v4271_v10 = vpop.f32.mrb[100].mxu1  ;;  %v4601_v7 = vpop.f32.mrb[184].mxu0 }
 0x51c   : > { %v4407_v8 = vrot.slane %v4271_v10, 5  ;;  %v13382_v11 = vadd.f32 %v4601_v7, %v4470_v32  ;;  %v9271_v1 = vpop.f32.mrb[101].mxu1  ;;  %v9371_v28 = vpop.f32.mrb[185].mxu0 }
 0x51d   : > { %v4274_v20 = vpop.f32.mrb[102].mxu1  ;;  %v4604_v17 = vpop.f32.mrb[186].mxu0 }
 0x51e   : > { %v4408_v36 = vrot.slane %v4274_v20, 5  ;;  %v13384_v24 = vadd.f32 %v4604_v17, %v4469_v40  ;;  %v9272_v13 = vpop.f32.mrb[103].mxu1  ;;  %v9372_v25 = vpop.f32.mrb[187].mxu0  ;;  %v4468_v60 = vsel %vm751_vm1, %v4406_v15, %v4407_v8 }
 0x520   : > { %9494 = vmatmul.mubr.bf16.gmra.mrb[208].mxu1 %v13116_v23  ;;  %9594 = vmatmul.mubr.bf16.gmra.mrb[36].mxu0 %v13116_v23  ;;  %v4467_v3 = vsel %vm751_vm1, %v4407_v8, %v4408_v36 }
 0x521   : > { %9497 = vmatprep.mubr.msk.bf16.mxu1 %vm10682_vm0, %v15298_v59  ;;  %9597 = vmatprep.mubr.msk.bf16.mxu0 %vm10682_vm0, %v15298_v59 }
 0x523   : > { %v4279_v39 = vpop.f32.mrb[104].mxu1  ;;  %v4609_v48 = vpop.f32.mrb[188].mxu0 }
 0x524   : > { %v4409_v0 = vrot.slane %v4279_v39, 5  ;;  %v13396_v27 = vadd.f32 %v4609_v48, %v4468_v60  ;;  %v9275_v22 = vpop.f32.mrb[105].mxu1  ;;  %v9375_v18 = vpop.f32.mrb[189].mxu0 }
 0x525   : > { %v4282_v4 = vpop.f32.mrb[106].mxu1  ;;  %v4612_v56 = vpop.f32.mrb[190].mxu0 }
 0x526   : > { %v4410_v30 = vrot.slane %v4282_v4, 5  ;;  %v13398_v19 = vadd.f32 %v4612_v56, %v4467_v3  ;;  %v9276_v15 = vpop.f32.mrb[107].mxu1  ;;  %v9376_v61 = vpop.f32.mrb[191].mxu0  ;;  %v4466_v44 = vsel %vm751_vm1, %v4408_v36, %v4409_v0 }
 0x528   : > { %9498 = vmatmul.mubr.bf16.gmra.mrb[212].mxu1 %v13132_v52  ;;  %9598 = vmatmul.mubr.bf16.gmra.mrb[40].mxu0 %v13132_v52  ;;  %v4465_v32 = vsel %vm751_vm1, %v4409_v0, %v4410_v30 }
 0x529   : > { %9501 = vmatprep.mubr.msk.bf16.mxu1 %vm10682_vm0, %v15298_v59  ;;  %9601 = vmatprep.mubr.msk.bf16.mxu0 %vm10682_vm0, %v15298_v59 }
 0x52b   : > { %v4287_v40 = vpop.f32.mrb[108].mxu1  ;;  %v4617_v10 = vpop.f32.mrb[192].mxu0 }
 0x52c   : > { %v4411_v7 = vrot.slane %v4287_v40, 5  ;;  %v13410_v8 = vadd.f32 %v4617_v10, %v4466_v44  ;;  %v9279_v1 = vpop.f32.mrb[109].mxu1  ;;  %v9379_v28 = vpop.f32.mrb[193].mxu0 }
 0x52d   : > { %v4290_v20 = vpop.f32.mrb[110].mxu1  ;;  %v4620_v17 = vpop.f32.mrb[194].mxu0 }
 0x52e   : > { %v4412_v36 = vrot.slane %v4290_v20, 5  ;;  %v13412_v13 = vadd.f32 %v4620_v17, %v4465_v32  ;;  %v9280_v25 = vpop.f32.mrb[111].mxu1  ;;  %v9380_v60 = vpop.f32.mrb[195].mxu0  ;;  %v4464_v3 = vsel %vm751_vm1, %v4410_v30, %v4411_v7 }
 0x530   : > { %9502 = vmatmul.mubr.bf16.gmra.mrb[216].mxu1 %v13148_v5  ;;  %9602 = vmatmul.mubr.bf16.gmra.mrb[44].mxu0 %v13148_v5  ;;  %v4463_v39 = vsel %vm751_vm1, %v4411_v7, %v4412_v36 }
 0x531   : > { %9505 = vmatprep.mubr.msk.bf16.mxu1 %vm10682_vm0, %v15298_v59  ;;  %9605 = vmatprep.mubr.msk.bf16.mxu0 %vm10682_vm0, %v15298_v59 }
 0x533   : > { %v4295_v48 = vpop.f32.mrb[112].mxu1  ;;  %v4625_v0 = vpop.f32.mrb[196].mxu0 }
 0x534   : > { %v4413_v22 = vrot.slane %v4295_v48, 5  ;;  %v13424_v18 = vadd.f32 %v4625_v0, %v4464_v3  ;;  %v9283_v4 = vpop.f32.mrb[113].mxu1  ;;  %v9383_v56 = vpop.f32.mrb[197].mxu0 }
 0x535   : > { %v4298_v30 = vpop.f32.mrb[114].mxu1  ;;  %v4628_v15 = vpop.f32.mrb[198].mxu0 }
 0x536   : > { %v4414_v61 = vrot.slane %v4298_v30, 5  ;;  %v13426_v44 = vadd.f32 %v4628_v15, %v4463_v39  ;;  %v9284_v32 = vpop.f32.mrb[115].mxu1  ;;  %v9384_v40 = vpop.f32.mrb[199].mxu0  ;;  %v4462_v10 = vsel %vm751_vm1, %v4412_v36, %v4413_v22 }
 0x538   : > { %9506 = vmatmul.mubr.bf16.gmra.mrb[220].mxu1 %v13164_v35  ;;  %9606 = vmatmul.mubr.bf16.gmra.mrb[48].mxu0 %v13164_v35  ;;  %v4461_v7 = vsel %vm751_vm1, %v4413_v22, %v4414_v61 }
 0x539   : > { %9509 = vmatprep.mubr.msk.bf16.mxu1 %vm10682_vm0, %v15298_v59  ;;  %9609 = vmatprep.mubr.msk.bf16.mxu0 %vm10682_vm0, %v15298_v59 }
 0x53b   : > { %v4303_v1 = vpop.f32.mrb[116].mxu1  ;;  %v4633_v28 = vpop.f32.mrb[200].mxu0 }
 0x53c   : > { %v4415_v20 = vrot.slane %v4303_v1, 5  ;;  %v13438_v17 = vadd.f32 %v4633_v28, %v4462_v10  ;;  %v9287_v25 = vpop.f32.mrb[117].mxu1  ;;  %v9387_v36 = vpop.f32.mrb[201].mxu0 }
 0x53d   : > { %v4306_v60 = vpop.f32.mrb[118].mxu1  ;;  %v4636_v3 = vpop.f32.mrb[202].mxu0 }
 0x53e   : > { %v4416_v39 = vrot.slane %v4306_v60, 5  ;;  %v13440_v48 = vadd.f32 %v4636_v3, %v4461_v7  ;;  %v9288_v0 = vpop.f32.mrb[119].mxu1  ;;  %v9388_v22 = vpop.f32.mrb[203].mxu0  ;;  %v4460_v4 = vsel %vm751_vm1, %v4414_v61, %v4415_v20 }
 0x540   : > { %9510 = vmatmul.mubr.bf16.gmra.mrb[224].mxu1 %v13180_v29  ;;  %9610 = vmatmul.mubr.bf16.gmra.mrb[52].mxu0 %v13180_v29  ;;  %v4459_v56 = vsel %vm751_vm1, %v4415_v20, %v4416_v39 }
 0x541   : > { %9513 = vmatprep.mubr.msk.bf16.mxu1 %vm10682_vm0, %v15298_v59  ;;  %9613 = vmatprep.mubr.msk.bf16.mxu0 %vm10682_vm0, %v15298_v59 }
 0x543   : > { %v4311_v30 = vpop.f32.mrb[120].mxu1  ;;  %v4641_v15 = vpop.f32.mrb[204].mxu0 }
 0x544   : > { %v4417_v32 = vrot.slane %v4311_v30, 5  ;;  %v13452_v40 = vadd.f32 %v4641_v15, %v4460_v4  ;;  %v9291_v10 = vpop.f32.mrb[121].mxu1  ;;  %v9391_v61 = vpop.f32.mrb[205].mxu0 }
 0x545   : > { %v4314_v7 = vpop.f32.mrb[122].mxu1  ;;  %v4644_v1 = vpop.f32.mrb[206].mxu0 }
 0x546   : > { %v4418_v28 = vrot.slane %v4314_v7, 5  ;;  %v13454_v25 = vadd.f32 %v4644_v1, %v4459_v56  ;;  %v9292_v36 = vpop.f32.mrb[123].mxu1  ;;  %v9392_v20 = vpop.f32.mrb[207].mxu0  ;;  %v4458_v60 = vsel %vm751_vm1, %v4416_v39, %v4417_v32 }
 0x548   : > { %9514 = vmatmul.mubr.bf16.gmra.mrb[228].mxu1 %v13196_v49  ;;  %9614 = vmatmul.mubr.bf16.gmra.mrb[56].mxu0 %v13196_v49  ;;  %v4457_v3 = vsel %vm751_vm1, %v4417_v32, %v4418_v28 }
 0x549   : > { %9517 = vmatprep.mubr.msk.bf16.mxu1 %vm10682_vm0, %v15298_v59  ;;  %9617 = vmatprep.mubr.msk.bf16.mxu0 %vm10682_vm0, %v15298_v59 }
 0x54b   : > { %v4319_v0 = vpop.f32.mrb[124].mxu1  ;;  %v4649_v22 = vpop.f32.mrb[208].mxu0 }
 0x54c   : > { %v4419_v4 = vrot.slane %v4319_v0, 5  ;;  %v13466_v56 = vadd.f32 %v4649_v22, %v4458_v60  ;;  %v9295_v30 = vpop.f32.mrb[125].mxu1  ;;  %v9395_v39 = vpop.f32.mrb[209].mxu0 }
 0x54d   : > { %v4322_v15 = vpop.f32.mrb[126].mxu1  ;;  %v4652_v10 = vpop.f32.mrb[210].mxu0 }
 0x54e   : > { %v4420_v61 = vrot.slane %v4322_v15, 5  ;;  %v13468_v7 = vadd.f32 %v4652_v10, %v4457_v3  ;;  %v9296_v1 = vpop.f32.mrb[127].mxu1  ;;  %v9396_v32 = vpop.f32.mrb[211].mxu0  ;;  %v4456_v36 = vsel %vm751_vm1, %v4418_v28, %v4419_v4 }
 0x550   : > { %9518 = vmatmul.mubr.bf16.gmra.mrb[232].mxu1 %v13217_v54  ;;  %9618 = vmatmul.mubr.bf16.gmra.mrb[60].mxu0 %v13217_v54  ;;  %v4455_v20 = vsel %vm751_vm1, %v4419_v4, %v4420_v61 }
 0x551   : > { %9521 = vmatprep.mubr.msk.bf16.mxu1 %vm10682_vm0, %v15298_v59  ;;  %9621 = vmatprep.mubr.msk.bf16.mxu0 %vm10682_vm0, %v15298_v59 }
 0x553   : > { %v4327_v60 = vpop.f32.mrb[128].mxu1  ;;  %v4657_v3 = vpop.f32.mrb[212].mxu0 }
 0x554   : > { %v4421_v0 = vrot.slane %v4327_v60, 5  ;;  %v13480_v22 = vadd.f32 %v4657_v3, %v4456_v36  ;;  %v9299_v30 = vpop.f32.mrb[129].mxu1  ;;  %v9399_v28 = vpop.f32.mrb[213].mxu0 }
 0x555   : > { %v4330_v39 = vpop.f32.mrb[130].mxu1  ;;  %v4660_v15 = vpop.f32.mrb[214].mxu0 }
 0x556   : > { %v4422_v10 = vrot.slane %v4330_v39, 5  ;;  %v13482_v1 = vadd.f32 %v4660_v15, %v4455_v20  ;;  %v9300_v32 = vpop.f32.mrb[131].mxu1  ;;  %v9400_v4 = vpop.f32.mrb[215].mxu0  ;;  %v4454_v37 = vsel %vm751_vm1, %v4420_v61, %v4421_v0 }
 0x558   : > { %15418 = vst [vmem:[#allocation15_spill] sm:$0xff] %v13482_v1  ;;  %9522 = vmatmul.mubr.bf16.gmra.mrb[236].mxu1 %v13231_v14  ;;  %9622 = vmatmul.mubr.bf16.gmra.mrb[64].mxu0 %v13231_v14  ;;  %v4453_v36 = vsel %vm751_vm1, %v4421_v0, %v4422_v10 }
 0x559   : > { %9525 = vmatprep.mubr.msk.bf16.mxu1 %vm10682_vm0, %v15298_v59  ;;  %9625 = vmatprep.mubr.msk.bf16.mxu0 %vm10682_vm0, %v15298_v59 }
 0x55b   : > { %v4335_v20 = vpop.f32.mrb[132].mxu1  ;;  %v4665_v60 = vpop.f32.mrb[216].mxu0 }
 0x55c   : > { %v4423_v3 = vrot.slane %v4335_v20, 5  ;;  %v13494_v30 = vadd.f32 %v4665_v60, %v4454_v37  ;;  %v9303_v28 = vpop.f32.mrb[133].mxu1  ;;  %v9403_v61 = vpop.f32.mrb[217].mxu0 }
 0x55d   : > { %v4338_v39 = vpop.f32.mrb[134].mxu1  ;;  %v4668_v15 = vpop.f32.mrb[218].mxu0 }
 0x55e   : > { %v4424_v32 = vrot.slane %v4338_v39, 5  ;;  %v13496_v4 = vadd.f32 %v4668_v15, %v4453_v36  ;;  %v9304_v14 = vpop.f32.mrb[135].mxu1  ;;  %v9404_v0 = vpop.f32.mrb[219].mxu0  ;;  %v4452_v1 = vsel %vm751_vm1, %v4422_v10, %v4423_v3 }
 0x560   : > { %15419 = vst [vmem:[#allocation34_spill] sm:$0xff] %v13496_v4  ;;  %9526 = vmatmul.mubr.bf16.gmra.mrb[240].mxu1 %v13233_v43  ;;  %9626 = vmatmul.mubr.bf16.gmra.mrb[68].mxu0 %v13233_v43  ;;  %v4451_v37 = vsel %vm751_vm1, %v4423_v3, %v4424_v32 }
 0x561   : > { %9529 = vmatprep.mubr.msk.bf16.mxu1 %vm10682_vm0, %v15298_v59  ;;  %9629 = vmatprep.mubr.msk.bf16.mxu0 %vm10682_vm0, %v15298_v59 }
 0x563   : > { %v4343_v36 = vpop.f32.mrb[136].mxu1  ;;  %v4673_v20 = vpop.f32.mrb[220].mxu0 }
 0x564   : > { %v4425_v14 = vrot.slane %v4343_v36, 5  ;;  %v13508_v60 = vadd.f32 %v4673_v20, %v4452_v1  ;;  %v9307_v28 = vpop.f32.mrb[137].mxu1  ;;  %v9407_v10 = vpop.f32.mrb[221].mxu0 }
 0x565   : > { %v4346_v61 = vpop.f32.mrb[138].mxu1  ;;  %v4676_v39 = vpop.f32.mrb[222].mxu0 }
 0x566   : > { %15420 = vst [vmem:[#allocation35_spill] sm:$0xff] %v13508_v60  ;;  %v4426_v15 = vrot.slane %v4346_v61, 5  ;;  %v13510_v0 = vadd.f32 %v4676_v39, %v4451_v37  ;;  %v9308_v43 = vpop.f32.mrb[139].mxu1  ;;  %v9408_v3 = vpop.f32.mrb[223].mxu0  ;;  %v4450_v4 = vsel %vm751_vm1, %v4424_v32, %v4425_v14  ;;  %v10453_v39 = vld [vmem:[#allocation7 + $0x180] sm:$0xff]  }
 0x568   : > { %15421 = vst [vmem:[#allocation44_spill] sm:$0xff] %v13510_v0  ;;  %9530 = vmatmul.mubr.bf16.gmra.mrb[244].mxu1 %v13249_v53  ;;  %9630 = vmatmul.mubr.bf16.gmra.mrb[72].mxu0 %v13249_v53  ;;  %v4449_v1 = vsel %vm751_vm1, %v4425_v14, %v4426_v15 }
 0x569   : > { %9649 = vmatprep.mubr.msk.bf16.mxu1 %vm10682_vm0, %v15298_v59  ;;  %9749 = vmatprep.mubr.msk.bf16.mxu0 %vm10682_vm0, %v15298_v59 }
 0x56b   : > { %v4351_v37 = vpop.f32.mrb[140].mxu1  ;;  %v4681_v36 = vpop.f32.mrb[224].mxu0 }
 0x56c   : > { %v4427_v43 = vrot.slane %v4351_v37, 5  ;;  %v13522_v20 = vadd.f32 %v4681_v36, %v4450_v4  ;;  %v9311_v28 = vpop.f32.mrb[141].mxu1  ;;  %v9411_v32 = vpop.f32.mrb[225].mxu0  ;;  %v10454_v37 = vld [vmem:[#allocation7 + $0x188] sm:$0xff]  }
 0x56d   : > { %v4354_v10 = vpop.f32.mrb[142].mxu1  ;;  %v4684_v61 = vpop.f32.mrb[226].mxu0 }
 0x56e   : > { %15422 = vst [vmem:[#allocation21_spill] sm:$0xff] %v13522_v20  ;;  %v4428_v3 = vrot.slane %v4354_v10, 5  ;;  %v13524_v53 = vadd.f32 %v4684_v61, %v4449_v1  ;;  %v9312_v14 = vpop.f32.mrb[143].mxu1  ;;  %v9412_v0 = vpop.f32.mrb[227].mxu0  ;;  %v4448_v60 = vsel %vm751_vm1, %v4426_v15, %v4427_v43  ;;  %v10455_v20 = vld [vmem:[#allocation7 + $0x190] sm:$0xff]  }
 0x570   : > { %15423 = vst [vmem:[#allocation19_spill] sm:$0xff] %v13524_v53  ;;  %9650 = vmatmul.mubr.bf16.vlgmr.msra.gmra.mrb[248].mxu1 %v12924_v2  ;;  %9750 = vmatmul.mubr.bf16.vlgmr.msra.gmra.mrb[76].mxu0 %v12924_v2  ;;  %v4447_v4 = vsel %vm751_vm1, %v4427_v43, %v4428_v3 }
 0x571   : > { %9834 = vmatpush3.bf16.msra.mxu1 %v10453_v39  ;;  %9653 = vmatprep.mubr.msk.bf16.mxu1 %vm10682_vm0, %v15298_v59 }
 0x572   : > { %9753 = vmatprep.mubr.msk.bf16.mxu0 %vm10682_vm0, %v15298_v59  ;;  %9835 = vmatprep.subr.bf16.mxu1 %v15298_v59 }
 0x573   : > { %v4359_v0 = vpop.f32.mrb[144].mxu1  ;;  %v4689_v1 = vpop.f32.mrb[228].mxu0 }
 0x574   : > { %v4429_v15 = vrot.slane %v4359_v0, 5  ;;  %v13537_v36 = vadd.f32 %v4689_v1, %v4448_v60  ;;  %v9315_v28 = vpop.f32.mrb[145].mxu1  ;;  %v9415_v32 = vpop.f32.mrb[229].mxu0  ;;  %v10460_v0 = vld [vmem:[#allocation7 + $0x1c0] sm:$0xff]  }
 0x575   : > { %v4362_v10 = vpop.f32.mrb[146].mxu1  ;;  %v4692_v61 = vpop.f32.mrb[230].mxu0  ;;  %9836 = vmatpush3.bf16.msra.mxu1 %v10454_v37  ;;  %9934 = vmatpush3.bf16.msra.mxu0 %v10460_v0  ;;  %v10461_v32 = vld [vmem:[#allocation7 + $0x1c8] sm:$0xff]  }
 0x576   : > { %15424 = vst [vmem:[#allocation18_spill] sm:$0xff] %v13537_v36  ;;  %v4430_v43 = vrot.slane %v4362_v10, 5  ;;  %v13539_v39 = vadd.f32 %v4692_v61, %v4447_v4  ;;  %v9316_v14 = vpop.f32.mrb[147].mxu1  ;;  %v9416_v2 = vpop.f32.mrb[231].mxu0  ;;  %v4446_v53 = vsel %vm751_vm1, %v4428_v3, %v4429_v15  ;;  %9837 = vmatprep.subr.bf16.mxu1 %v15298_v59  ;;  %9935 = vmatprep.subr.bf16.mxu0 %v15298_v59  ;;  %v10457_v36 = vld [vmem:[#allocation7 + $0x1a0] sm:$0xff]  }
 0x577   : > { %v10456_v2 = vld [vmem:[#allocation7 + $0x198] sm:$0xff]  }
 0x578   : > { %15425 = vst [vmem:[#allocation32_spill] sm:$0xff] %v13539_v39  ;;  %9654 = vmatmul.mubr.bf16.gmra.mrb[252].mxu1 %v12941_v47  ;;  %9754 = vmatmul.mubr.bf16.gmra.mrb[80].mxu0 %v12941_v47  ;;  %v4445_v60 = vsel %vm751_vm1, %v4429_v15, %v4430_v43 }
 0x579   : > { %9657 = vmatprep.mubr.msk.bf16.mxu1 %vm10682_vm0, %v15298_v59  ;;  %9757 = vmatprep.mubr.msk.bf16.mxu0 %vm10682_vm0, %v15298_v59 }
 0x57a   : > { %9838 = vmatpush3.bf16.msra.mxu1 %v10455_v20  ;;  %9936 = vmatpush3.bf16.msra.mxu0 %v10461_v32 }
 0x57b   : > { %v4367_v3 = vpop.f32.mrb[148].mxu1  ;;  %v4697_v4 = vpop.f32.mrb[232].mxu0  ;;  %9839 = vmatprep.subr.bf16.mxu1 %v15298_v59  ;;  %9937 = vmatprep.subr.bf16.mxu0 %v15298_v59 }
 0x57c   : > { %v4431_v37 = vrot.slane %v4367_v3, 5  ;;  %v13554_v1 = vadd.f32 %v4697_v4, %v4446_v53  ;;  %v9319_v15 = vpop.f32.mrb[149].mxu1  ;;  %v9419_v28 = vpop.f32.mrb[233].mxu0 }
 0x57d   : > { %v4370_v10 = vpop.f32.mrb[150].mxu1  ;;  %v4700_v61 = vpop.f32.mrb[234].mxu0  ;;  %v10464_v28 = vld [vmem:[#allocation7 + $0x1d8] sm:$0xff]  }
 0x57e   : > { %v4432_v14 = vrot.slane %v4370_v10, 5  ;;  %v13556_v47 = vadd.f32 %v4700_v61, %v4445_v60  ;;  %v9320_v20 = vpop.f32.mrb[151].mxu1  ;;  %v9420_v39 = vpop.f32.mrb[235].mxu0  ;;  %v4444_v0 = vsel %vm751_vm1, %v4430_v43, %v4431_v37  ;;  %9840 = vmatpush3.bf16.msra.mxu1 %v10456_v2  ;;  %v10462_v60 = vld [vmem:[#allocation7 + $0x1d0] sm:$0xff]   ;;  %v10458_v43 = vld [vmem:[#allocation7 + $0x1a8] sm:$0xff]  }
 0x57f   : > { %9841 = vmatprep.subr.bf16.mxu1 %v15298_v59  ;;  %9938 = vmatpush3.bf16.msra.mxu0 %v10462_v60 }
 0x580   : > { %15426 = vst [vmem:[#allocation20_spill] sm:$0xff] %v13556_v47  ;;  %9658 = vmatmul.mubr.bf16.gmra.mrb[0].mxu1 %v12960_v26  ;;  %9758 = vmatmul.mubr.bf16.gmra.mrb[84].mxu0 %v12960_v26  ;;  %v4443_v53 = vsel %vm751_vm1, %v4431_v37, %v4432_v14  ;;  %v10459_v47 = vld [vmem:[#allocation7 + $0x1b0] sm:$0xff]  }
 0x581   : > { %9661 = vmatprep.mubr.msk.bf16.mxu1 %vm10682_vm0, %v15298_v59  ;;  %9761 = vmatprep.mubr.msk.bf16.mxu0 %vm10682_vm0, %v15298_v59 }
 0x582   : > { %9842 = vmatpush3.bf16.msra.mxu1 %v10457_v36  ;;  %9939 = vmatprep.subr.bf16.mxu0 %v15298_v59 }
 0x583   : > { %v4375_v39 = vpop.f32.mrb[152].mxu1  ;;  %v4705_v2 = vpop.f32.mrb[236].mxu0  ;;  %9843 = vmatprep.subr.bf16.mxu1 %v15298_v59  ;;  %9940 = vmatpush3.bf16.msra.mxu0 %v10464_v28 }
 0x584   : > { %v4433_v3 = vrot.slane %v4375_v39, 5  ;;  %v13572_v4 = vadd.f32 %v4705_v2, %v4444_v0  ;;  %v9323_v37 = vpop.f32.mrb[153].mxu1  ;;  %v9423_v15 = vpop.f32.mrb[237].mxu0  ;;  %9941 = vmatprep.subr.bf16.mxu0 %v15298_v59 }
 0x585   : > { %v4378_v32 = vpop.f32.mrb[154].mxu1  ;;  %v4708_v10 = vpop.f32.mrb[238].mxu0  ;;  %v10466_v15 = vld [vmem:[#allocation7 + $0x1e8] sm:$0xff]  }
 0x586   : > { %v4434_v61 = vrot.slane %v4378_v32, 5  ;;  %v13574_v20 = vadd.f32 %v4708_v10, %v4443_v53  ;;  %v9324_v36 = vpop.f32.mrb[155].mxu1  ;;  %v9424_v26 = vpop.f32.mrb[239].mxu0  ;;  %v4442_v60 = vsel %vm751_vm1, %v4432_v14, %v4433_v3  ;;  %9844 = vmatpush3.bf16.msra.mxu1 %v10458_v43  ;;  %v10465_v53 = vld [vmem:[#allocation7 + $0x1e0] sm:$0xff]  }
 0x587   : > { %9845 = vmatprep.subr.bf16.mxu1 %v15298_v59  ;;  %v10463_v26 = vld [vmem:[#allocation7 + $0x1b8] sm:$0xff]   ;;  %9942 = vmatpush3.bf16.msra.mxu0 %v10465_v53 }
 0x588   : > { %9662 = vmatmul.mubr.bf16.gmra.mrb[4].mxu1 %v12980_v31  ;;  %9762 = vmatmul.mubr.bf16.gmra.mrb[88].mxu0 %v12980_v31  ;;  %v4441_v0 = vsel %vm751_vm1, %v4433_v3, %v4434_v61 }
 0x589   : > { %9665 = vmatprep.mubr.msk.bf16.mxu1 %vm10682_vm0, %v15298_v59  ;;  %9765 = vmatprep.mubr.msk.bf16.mxu0 %vm10682_vm0, %v15298_v59 }
 0x58a   : > { %9846 = vmatpush3.bf16.msra.mxu1 %v10459_v47  ;;  %9943 = vmatprep.subr.bf16.mxu0 %v15298_v59 }
 0x58b   : > { %v4383_v14 = vpop.f32.mrb[156].mxu1  ;;  %v4713_v43 = vpop.f32.mrb[240].mxu0  ;;  %9847 = vmatprep.subr.bf16.mxu1 %v15298_v59  ;;  %9944 = vmatpush3.bf16.msra.mxu0 %v10466_v15 }
 0x58c   : > { %v4435_v39 = vrot.slane %v4383_v14, 5  ;;  %v13590_v2 = vadd.f32 %v4713_v43, %v4442_v60  ;;  %v9327_v3 = vpop.f32.mrb[157].mxu1  ;;  %v9427_v37 = vpop.f32.mrb[241].mxu0  ;;  %9945 = vmatprep.subr.bf16.mxu0 %v15298_v59 }
 0x58d   : > { %v4386_v28 = vpop.f32.mrb[158].mxu1  ;;  %v4716_v32 = vpop.f32.mrb[242].mxu0  ;;  %v10468_v37 = vld [vmem:[#allocation7 + $0x1f8] sm:$0xff]  }
 0x58e   : > { %v4436_v10 = vrot.slane %v4386_v28, 5  ;;  %v13592_v36 = vadd.f32 %v4716_v32, %v4441_v0  ;;  %v9328_v47 = vpop.f32.mrb[159].mxu1  ;;  %v9428_v31 = vpop.f32.mrb[243].mxu0  ;;  %v4440_v53 = vsel %vm751_vm1, %v4434_v61, %v4435_v39  ;;  %9848 = vmatpush3.bf16.msra.mxu1 %v10463_v26  ;;  %v10467_v0 = vld [vmem:[#allocation7 + $0x1f0] sm:$0xff]   ;;  %v15427_v32 = vrot.slane %v13309_v41, 5 }
 0x58f   : > { %10033 = vmatprep.subr.bf16.mxu1 %v15298_v59  ;;  %9946 = vmatpush3.bf16.msra.mxu0 %v10467_v0 }
 0x590   : > { %v4439_v60 = vsel %vm751_vm1, %v4435_v39, %v4436_v10  ;;  %9666 = vmatmul.mubr.bf16.gmra.mrb[8].mxu1 %v13000_v58  ;;  %9766 = vmatmul.mubr.bf16.gmra.mrb[92].mxu0 %v13000_v58 }
 0x591   : > { %v13603_v14 = vadd.f32 %v13311_v55, %v4439_v60  ;;  %9669 = vmatprep.mubr.msk.bf16.mxu1 %vm10682_vm0, %v15298_v59  ;;  %9769 = vmatprep.mubr.msk.bf16.mxu0 %vm10682_vm0, %v15298_v59 }
 0x592   : > { %9947 = vmatprep.subr.bf16.mxu0 %v15298_v59 }
 0x593   : > { %v4391_v31 = vpop.f32.mrb[160].mxu1  ;;  %v4721_v61 = vpop.f32.mrb[244].mxu0  ;;  %9948 = vmatpush3.bf16.msra.mxu0 %v10468_v37 }
 0x594   : > { %v4437_v26 = vrot.slane %v4391_v31, 5  ;;  %v13610_v43 = vadd.f32 %v4721_v61, %v4440_v53  ;;  %v9331_v39 = vpop.f32.mrb[161].mxu1  ;;  %v9431_v3 = vpop.f32.mrb[245].mxu0 }
 0x595   : > { %v4394_v15 = vpop.f32.mrb[162].mxu1  ;;  %v4724_v55 = vpop.f32.mrb[246].mxu0 }
 0x596   : > { %v4438_v28 = vsel %vm751_vm1, %v4436_v10, %v4437_v26  ;;  %v4478_v47 = vsel %vm751_vm1, %v4437_v26, %v15427_v32  ;;  %v9332_v60 = vpop.f32.mrb[163].mxu1  ;;  %v9432_v0 = vpop.f32.mrb[247].mxu0 }
 0x597   : > { %v13619_v31 = vadd.f32 %v13313_v57, %v4438_v28  ;;  %v13622_v53 = vadd.f32 %v13326_v45, %v4478_v47 }
 0x598   : > { %9670 = vmatmul.mubr.bf16.gmra.mrb[12].mxu1 %v13019_v38  ;;  %9770 = vmatmul.mubr.bf16.gmra.mrb[96].mxu0 %v13019_v38 }
 0x599   : > { %15428 = vst [vmem:[#allocation22_spill] sm:$0xff] %v13619_v31  ;;  %15429 = vst [vmem:[#allocation33_spill] sm:$0xff] %v13622_v53  ;;  %9673 = vmatprep.mubr.msk.bf16.mxu1 %vm10682_vm0, %v15298_v59  ;;  %9773 = vmatprep.mubr.msk.bf16.mxu0 %vm10682_vm0, %v15298_v59 }
 0x59b   : > { %v13630_v41 = vpop.f32.mrb[164].mxu1  ;;  %v13632_v10 = vpop.f32.mrb[248].mxu0 }
 0x59c   : > { %v9451_v61 = vpop.f32.mrb[165].mxu1  ;;  %v9551_v57 = vpop.f32.mrb[249].mxu0  ;;  %v15250_v45 = vrot.slane %v13630_v41, 6  ;;  %v15249_v3 = vrot.slane %v13632_v10, 7 }
 0x59d   : > { %v4829_v26 = vpop.f32.mrb[166].mxu1  ;;  %v5217_v39 = vpop.f32.mrb[250].mxu0 }
 0x59e   : > { %v4993_v37 = vrot.slane %v4829_v26, 6  ;;  %v5381_v15 = vrot.slane %v5217_v39, 7  ;;  %v9452_v55 = vpop.f32.mrb[167].mxu1  ;;  %v9552_v28 = vpop.f32.mrb[251].mxu0 }
 0x5a0   : > { %v5072_v32 = vsel %vm1347_vm2, %v15250_v45, %v4993_v37  ;;  %v5460_v47 = vsel %vm1736_vm3, %v15249_v3, %v5381_v15  ;;  %9674 = vmatmul.mubr.bf16.gmra.mrb[16].mxu1 %v13036_v42  ;;  %9774 = vmatmul.mubr.bf16.gmra.mrb[100].mxu0 %v13036_v42 }
 0x5a1   : > { %v5077_v60 = vadd.f32 %v5072_v32, %v13328_v34  ;;  %9677 = vmatprep.mubr.msk.bf16.mxu1 %vm10682_vm0, %v15298_v59  ;;  %9777 = vmatprep.mubr.msk.bf16.mxu0 %vm10682_vm0, %v15298_v59 }
 0x5a3   : > { %v13651_v0 = vadd.f32 %v5460_v47, %v5077_v60  ;;  %v4834_v61 = vpop.f32.mrb[168].mxu1  ;;  %v5222_v57 = vpop.f32.mrb[252].mxu0 }
 0x5a4   : > { %v4994_v26 = vrot.slane %v4834_v61, 6  ;;  %v5382_v39 = vrot.slane %v5222_v57, 7  ;;  %v9455_v55 = vpop.f32.mrb[169].mxu1  ;;  %v9555_v28 = vpop.f32.mrb[253].mxu0 }
 0x5a5   : > { %v4837_v3 = vpop.f32.mrb[170].mxu1  ;;  %v5225_v45 = vpop.f32.mrb[254].mxu0 }
 0x5a6   : > { %v5071_v42 = vsel %vm1347_vm2, %v4993_v37, %v4994_v26  ;;  %v5459_v34 = vsel %vm1736_vm3, %v5381_v15, %v5382_v39  ;;  %v4995_v32 = vrot.slane %v4837_v3, 6  ;;  %v5383_v38 = vrot.slane %v5225_v45, 7  ;;  %v9456_v53 = vpop.f32.mrb[171].mxu1  ;;  %v9556_v31 = vpop.f32.mrb[255].mxu0 }
 0x5a7   : > { %v5078_v47 = vadd.f32 %v5071_v42, %v13340_v46 }
 0x5a8   : > { %v5070_v60 = vsel %vm1347_vm2, %v4994_v26, %v4995_v32  ;;  %v5458_v61 = vsel %vm1736_vm3, %v5382_v39, %v5383_v38  ;;  %9678 = vmatmul.mubr.bf16.gmra.mrb[20].mxu1 %v13052_v33  ;;  %9778 = vmatmul.mubr.bf16.gmra.mrb[104].mxu0 %v13052_v33 }
 0x5a9   : > { %v13664_v37 = vadd.f32 %v5459_v34, %v5078_v47  ;;  %v5079_v15 = vadd.f32 %v5070_v60, %v13342_v63  ;;  %9681 = vmatprep.mubr.msk.bf16.mxu1 %vm10682_vm0, %v15298_v59  ;;  %9781 = vmatprep.mubr.msk.bf16.mxu0 %vm10682_vm0, %v15298_v59 }
 0x5ab   : > { %v13671_v42 = vadd.f32 %v5458_v61, %v5079_v15  ;;  %v4842_v46 = vpop.f32.mrb[172].mxu1  ;;  %v5230_v31 = vpop.f32.mrb[0].mxu0 }
 0x5ac   : > { %v4996_v53 = vrot.slane %v4842_v46, 6  ;;  %v5384_v45 = vrot.slane %v5230_v31, 7  ;;  %v9459_v3 = vpop.f32.mrb[173].mxu1  ;;  %v9559_v57 = vpop.f32.mrb[1].mxu0 }
 0x5ad   : > { %v4845_v26 = vpop.f32.mrb[174].mxu1  ;;  %v5233_v39 = vpop.f32.mrb[2].mxu0 }
 0x5ae   : > { %v5069_v55 = vsel %vm1347_vm2, %v4995_v32, %v4996_v53  ;;  %v5457_v63 = vsel %vm1736_vm3, %v5383_v38, %v5384_v45  ;;  %v4997_v28 = vrot.slane %v4845_v26, 6  ;;  %v5385_v34 = vrot.slane %v5233_v39, 7  ;;  %v9460_v47 = vpop.f32.mrb[175].mxu1  ;;  %v9560_v60 = vpop.f32.mrb[3].mxu0 }
 0x5af   : > { %v5080_v61 = vadd.f32 %v5069_v55, %v13354_v16 }
 0x5b0   : > { %v5068_v15 = vsel %vm1347_vm2, %v4996_v53, %v4997_v28  ;;  %v5456_v46 = vsel %vm1736_vm3, %v5384_v45, %v5385_v34  ;;  %9682 = vmatmul.mubr.bf16.gmra.mrb[24].mxu1 %v13068_v6  ;;  %9782 = vmatmul.mubr.bf16.gmra.mrb[108].mxu0 %v13068_v6 }
 0x5b1   : > { %v13684_v32 = vadd.f32 %v5457_v63, %v5080_v61  ;;  %v5081_v38 = vadd.f32 %v5068_v15, %v13356_v50  ;;  %9685 = vmatprep.mubr.msk.bf16.mxu1 %vm10682_vm0, %v15298_v59  ;;  %9785 = vmatprep.mubr.msk.bf16.mxu0 %vm10682_vm0, %v15298_v59 }
 0x5b3   : > { %v13691_v16 = vadd.f32 %v5456_v46, %v5081_v38  ;;  %v4850_v31 = vpop.f32.mrb[176].mxu1  ;;  %v5238_v53 = vpop.f32.mrb[4].mxu0 }
 0x5b4   : > { %v4998_v3 = vrot.slane %v4850_v31, 6  ;;  %v5386_v45 = vrot.slane %v5238_v53, 7  ;;  %v9463_v57 = vpop.f32.mrb[177].mxu1  ;;  %v9563_v26 = vpop.f32.mrb[5].mxu0 }
 0x5b5   : > { %v4853_v39 = vpop.f32.mrb[178].mxu1  ;;  %v5241_v55 = vpop.f32.mrb[6].mxu0 }
 0x5b6   : > { %v5067_v63 = vsel %vm1347_vm2, %v4997_v28, %v4998_v3  ;;  %v5455_v50 = vsel %vm1736_vm3, %v5385_v34, %v5386_v45  ;;  %v4999_v47 = vrot.slane %v4853_v39, 6  ;;  %v5387_v60 = vrot.slane %v5241_v55, 7  ;;  %v9464_v61 = vpop.f32.mrb[179].mxu1  ;;  %v9564_v15 = vpop.f32.mrb[7].mxu0 }
 0x5b7   : > { %v5082_v46 = vadd.f32 %v5067_v63, %v13368_v21 }
 0x5b8   : > { %v5066_v38 = vsel %vm1347_vm2, %v4998_v3, %v4999_v47  ;;  %v5454_v31 = vsel %vm1736_vm3, %v5386_v45, %v5387_v60  ;;  %9686 = vmatmul.mubr.bf16.gmra.mrb[28].mxu1 %v13084_v12  ;;  %9786 = vmatmul.mubr.bf16.gmra.mrb[112].mxu0 %v13084_v12 }
 0x5b9   : > { %v13704_v28 = vadd.f32 %v5455_v50, %v5082_v46  ;;  %v5083_v34 = vadd.f32 %v5066_v38, %v13370_v51  ;;  %9689 = vmatprep.mubr.msk.bf16.mxu1 %vm10682_vm0, %v15298_v59  ;;  %9789 = vmatprep.mubr.msk.bf16.mxu0 %vm10682_vm0, %v15298_v59 }
 0x5bb   : > { %v13711_v21 = vadd.f32 %v5454_v31, %v5083_v34  ;;  %v4858_v53 = vpop.f32.mrb[180].mxu1  ;;  %v5246_v3 = vpop.f32.mrb[8].mxu0 }
 0x5bc   : > { %v5000_v57 = vrot.slane %v4858_v53, 6  ;;  %v5388_v45 = vrot.slane %v5246_v3, 7  ;;  %v9467_v26 = vpop.f32.mrb[181].mxu1  ;;  %v9567_v39 = vpop.f32.mrb[9].mxu0 }
 0x5bd   : > { %v4861_v55 = vpop.f32.mrb[182].mxu1  ;;  %v5249_v63 = vpop.f32.mrb[10].mxu0 }
 0x5be   : > { %v5065_v50 = vsel %vm1347_vm2, %v4999_v47, %v5000_v57  ;;  %v5453_v51 = vsel %vm1736_vm3, %v5387_v60, %v5388_v45  ;;  %v5001_v61 = vrot.slane %v4861_v55, 6  ;;  %v5389_v15 = vrot.slane %v5249_v63, 7  ;;  %v9468_v46 = vpop.f32.mrb[183].mxu1  ;;  %v9568_v38 = vpop.f32.mrb[11].mxu0 }
 0x5bf   : > { %v5084_v31 = vadd.f32 %v5065_v50, %v13382_v11 }
 0x5c0   : > { %v5064_v34 = vsel %vm1347_vm2, %v5000_v57, %v5001_v61  ;;  %v5452_v53 = vsel %vm1736_vm3, %v5388_v45, %v5389_v15  ;;  %9690 = vmatmul.mubr.bf16.gmra.mrb[32].mxu1 %v13100_v62  ;;  %9790 = vmatmul.mubr.bf16.gmra.mrb[116].mxu0 %v13100_v62 }
 0x5c1   : > { %v13724_v47 = vadd.f32 %v5453_v51, %v5084_v31  ;;  %v5085_v60 = vadd.f32 %v5064_v34, %v13384_v24  ;;  %9693 = vmatprep.mubr.msk.bf16.mxu1 %vm10682_vm0, %v15298_v59  ;;  %9793 = vmatprep.mubr.msk.bf16.mxu0 %vm10682_vm0, %v15298_v59 }
 0x5c3   : > { %v13731_v11 = vadd.f32 %v5452_v53, %v5085_v60  ;;  %v4866_v3 = vpop.f32.mrb[184].mxu1  ;;  %v5254_v57 = vpop.f32.mrb[12].mxu0 }
 0x5c4   : > { %v5002_v26 = vrot.slane %v4866_v3, 6  ;;  %v5390_v45 = vrot.slane %v5254_v57, 7  ;;  %v9471_v39 = vpop.f32.mrb[185].mxu1  ;;  %v9571_v55 = vpop.f32.mrb[13].mxu0 }
 0x5c5   : > { %v4869_v63 = vpop.f32.mrb[186].mxu1  ;;  %v5257_v50 = vpop.f32.mrb[14].mxu0 }
 0x5c6   : > { %v5063_v51 = vsel %vm1347_vm2, %v5001_v61, %v5002_v26  ;;  %v5451_v24 = vsel %vm1736_vm3, %v5389_v15, %v5390_v45  ;;  %v5003_v46 = vrot.slane %v4869_v63, 6  ;;  %v5391_v38 = vrot.slane %v5257_v50, 7  ;;  %v9472_v31 = vpop.f32.mrb[187].mxu1  ;;  %v9572_v34 = vpop.f32.mrb[15].mxu0 }
 0x5c7   : > { %v5086_v53 = vadd.f32 %v5063_v51, %v13396_v27 }
 0x5c8   : > { %v5062_v60 = vsel %vm1347_vm2, %v5002_v26, %v5003_v46  ;;  %v5450_v3 = vsel %vm1736_vm3, %v5390_v45, %v5391_v38  ;;  %9694 = vmatmul.mubr.bf16.gmra.mrb[36].mxu1 %v13116_v23  ;;  %9794 = vmatmul.mubr.bf16.gmra.mrb[120].mxu0 %v13116_v23 }
 0x5c9   : > { %v13744_v61 = vadd.f32 %v5451_v24, %v5086_v53  ;;  %v5087_v15 = vadd.f32 %v5062_v60, %v13398_v19  ;;  %9697 = vmatprep.mubr.msk.bf16.mxu1 %vm10682_vm0, %v15298_v59  ;;  %9797 = vmatprep.mubr.msk.bf16.mxu0 %vm10682_vm0, %v15298_v59 }
 0x5cb   : > { %v13751_v27 = vadd.f32 %v5450_v3, %v5087_v15  ;;  %v4874_v57 = vpop.f32.mrb[188].mxu1  ;;  %v5262_v26 = vpop.f32.mrb[16].mxu0 }
 0x5cc   : > { %v5004_v39 = vrot.slane %v4874_v57, 6  ;;  %v5392_v45 = vrot.slane %v5262_v26, 7  ;;  %v9475_v55 = vpop.f32.mrb[189].mxu1  ;;  %v9575_v63 = vpop.f32.mrb[17].mxu0 }
 0x5cd   : > { %v4877_v50 = vpop.f32.mrb[190].mxu1  ;;  %v5265_v51 = vpop.f32.mrb[18].mxu0 }
 0x5ce   : > { %v5061_v24 = vsel %vm1347_vm2, %v5003_v46, %v5004_v39  ;;  %v5449_v19 = vsel %vm1736_vm3, %v5391_v38, %v5392_v45  ;;  %v5005_v31 = vrot.slane %v4877_v50, 6  ;;  %v5393_v34 = vrot.slane %v5265_v51, 7  ;;  %v9476_v53 = vpop.f32.mrb[191].mxu1  ;;  %v9576_v60 = vpop.f32.mrb[19].mxu0 }
 0x5cf   : > { %v5088_v3 = vadd.f32 %v5061_v24, %v13410_v8 }
 0x5d0   : > { %v5060_v15 = vsel %vm1347_vm2, %v5004_v39, %v5005_v31  ;;  %v5448_v57 = vsel %vm1736_vm3, %v5392_v45, %v5393_v34  ;;  %9698 = vmatmul.mubr.bf16.gmra.mrb[40].mxu1 %v13132_v52  ;;  %9798 = vmatmul.mubr.bf16.gmra.mrb[124].mxu0 %v13132_v52 }
 0x5d1   : > { %v13764_v46 = vadd.f32 %v5449_v19, %v5088_v3  ;;  %v5089_v38 = vadd.f32 %v5060_v15, %v13412_v13  ;;  %9701 = vmatprep.mubr.msk.bf16.mxu1 %vm10682_vm0, %v15298_v59  ;;  %9801 = vmatprep.mubr.msk.bf16.mxu0 %vm10682_vm0, %v15298_v59 }
 0x5d3   : > { %v13771_v8 = vadd.f32 %v5448_v57, %v5089_v38  ;;  %v4882_v26 = vpop.f32.mrb[192].mxu1  ;;  %v5270_v39 = vpop.f32.mrb[20].mxu0 }
 0x5d4   : > { %v5006_v55 = vrot.slane %v4882_v26, 6  ;;  %v5394_v45 = vrot.slane %v5270_v39, 7  ;;  %v9479_v63 = vpop.f32.mrb[193].mxu1  ;;  %v9579_v50 = vpop.f32.mrb[21].mxu0 }
 0x5d5   : > { %v4885_v51 = vpop.f32.mrb[194].mxu1  ;;  %v5273_v24 = vpop.f32.mrb[22].mxu0 }
 0x5d6   : > { %v5059_v19 = vsel %vm1347_vm2, %v5005_v31, %v5006_v55  ;;  %v5447_v13 = vsel %vm1736_vm3, %v5393_v34, %v5394_v45  ;;  %v5007_v53 = vrot.slane %v4885_v51, 6  ;;  %v5395_v60 = vrot.slane %v5273_v24, 7  ;;  %v9480_v3 = vpop.f32.mrb[195].mxu1  ;;  %v9580_v15 = vpop.f32.mrb[23].mxu0 }
 0x5d7   : > { %v5090_v57 = vadd.f32 %v5059_v19, %v13424_v18 }
 0x5d8   : > { %v5058_v38 = vsel %vm1347_vm2, %v5006_v55, %v5007_v53  ;;  %v5446_v26 = vsel %vm1736_vm3, %v5394_v45, %v5395_v60  ;;  %9702 = vmatmul.mubr.bf16.gmra.mrb[44].mxu1 %v13148_v5  ;;  %9802 = vmatmul.mubr.bf16.gmra.mrb[128].mxu0 %v13148_v5 }
 0x5d9   : > { %v13784_v31 = vadd.f32 %v5447_v13, %v5090_v57  ;;  %v5091_v34 = vadd.f32 %v5058_v38, %v13426_v44  ;;  %9705 = vmatprep.mubr.msk.bf16.mxu1 %vm10682_vm0, %v15298_v59  ;;  %9805 = vmatprep.mubr.msk.bf16.mxu0 %vm10682_vm0, %v15298_v59 }
 0x5db   : > { %v13791_v18 = vadd.f32 %v5446_v26, %v5091_v34  ;;  %v4890_v39 = vpop.f32.mrb[196].mxu1  ;;  %v5278_v55 = vpop.f32.mrb[24].mxu0 }
 0x5dc   : > { %v5008_v63 = vrot.slane %v4890_v39, 6  ;;  %v5396_v45 = vrot.slane %v5278_v55, 7  ;;  %v9483_v50 = vpop.f32.mrb[197].mxu1  ;;  %v9583_v51 = vpop.f32.mrb[25].mxu0 }
 0x5dd   : > { %v4893_v24 = vpop.f32.mrb[198].mxu1  ;;  %v5281_v19 = vpop.f32.mrb[26].mxu0 }
 0x5de   : > { %v5057_v13 = vsel %vm1347_vm2, %v5007_v53, %v5008_v63  ;;  %v5445_v44 = vsel %vm1736_vm3, %v5395_v60, %v5396_v45  ;;  %v5009_v3 = vrot.slane %v4893_v24, 6  ;;  %v5397_v15 = vrot.slane %v5281_v19, 7  ;;  %v9484_v57 = vpop.f32.mrb[199].mxu1  ;;  %v9584_v38 = vpop.f32.mrb[27].mxu0 }
 0x5df   : > { %v5092_v26 = vadd.f32 %v5057_v13, %v13438_v17 }
 0x5e0   : > { %v5056_v34 = vsel %vm1347_vm2, %v5008_v63, %v5009_v3  ;;  %v5444_v39 = vsel %vm1736_vm3, %v5396_v45, %v5397_v15  ;;  %9706 = vmatmul.mubr.bf16.gmra.mrb[48].mxu1 %v13164_v35  ;;  %9806 = vmatmul.mubr.bf16.gmra.mrb[132].mxu0 %v13164_v35 }
 0x5e1   : > { %v13804_v53 = vadd.f32 %v5445_v44, %v5092_v26  ;;  %v5093_v60 = vadd.f32 %v5056_v34, %v13440_v48  ;;  %9709 = vmatprep.mubr.msk.bf16.mxu1 %vm10682_vm0, %v15298_v59  ;;  %9809 = vmatprep.mubr.msk.bf16.mxu0 %vm10682_vm0, %v15298_v59 }
 0x5e3   : > { %v13811_v17 = vadd.f32 %v5444_v39, %v5093_v60  ;;  %v4898_v55 = vpop.f32.mrb[200].mxu1  ;;  %v5286_v63 = vpop.f32.mrb[28].mxu0 }
 0x5e4   : > { %v5010_v50 = vrot.slane %v4898_v55, 6  ;;  %v5398_v45 = vrot.slane %v5286_v63, 7  ;;  %v9487_v51 = vpop.f32.mrb[201].mxu1  ;;  %v9587_v24 = vpop.f32.mrb[29].mxu0 }
 0x5e5   : > { %v4901_v19 = vpop.f32.mrb[202].mxu1  ;;  %v5289_v13 = vpop.f32.mrb[30].mxu0 }
 0x5e6   : > { %v5055_v44 = vsel %vm1347_vm2, %v5009_v3, %v5010_v50  ;;  %v5443_v48 = vsel %vm1736_vm3, %v5397_v15, %v5398_v45  ;;  %v5011_v57 = vrot.slane %v4901_v19, 6  ;;  %v5399_v38 = vrot.slane %v5289_v13, 7  ;;  %v9488_v26 = vpop.f32.mrb[203].mxu1  ;;  %v9588_v34 = vpop.f32.mrb[31].mxu0 }
 0x5e7   : > { %v5094_v39 = vadd.f32 %v5055_v44, %v13452_v40 }
 0x5e8   : > { %v5054_v60 = vsel %vm1347_vm2, %v5010_v50, %v5011_v57  ;;  %v5442_v55 = vsel %vm1736_vm3, %v5398_v45, %v5399_v38  ;;  %9710 = vmatmul.mubr.bf16.gmra.mrb[52].mxu1 %v13180_v29  ;;  %9810 = vmatmul.mubr.bf16.gmra.mrb[136].mxu0 %v13180_v29 }
 0x5e9   : > { %v13824_v3 = vadd.f32 %v5443_v48, %v5094_v39  ;;  %v5095_v15 = vadd.f32 %v5054_v60, %v13454_v25  ;;  %9713 = vmatprep.mubr.msk.bf16.mxu1 %vm10682_vm0, %v15298_v59  ;;  %9813 = vmatprep.mubr.msk.bf16.mxu0 %vm10682_vm0, %v15298_v59 }
 0x5eb   : > { %v13831_v40 = vadd.f32 %v5442_v55, %v5095_v15  ;;  %v4906_v63 = vpop.f32.mrb[204].mxu1  ;;  %v5294_v50 = vpop.f32.mrb[32].mxu0 }
 0x5ec   : > { %v5012_v51 = vrot.slane %v4906_v63, 6  ;;  %v5400_v45 = vrot.slane %v5294_v50, 7  ;;  %v9491_v24 = vpop.f32.mrb[205].mxu1  ;;  %v9591_v19 = vpop.f32.mrb[33].mxu0 }
 0x5ed   : > { %v4909_v13 = vpop.f32.mrb[206].mxu1  ;;  %v5297_v44 = vpop.f32.mrb[34].mxu0 }
 0x5ee   : > { %v5053_v48 = vsel %vm1347_vm2, %v5011_v57, %v5012_v51  ;;  %v5441_v25 = vsel %vm1736_vm3, %v5399_v38, %v5400_v45  ;;  %v5013_v26 = vrot.slane %v4909_v13, 6  ;;  %v5401_v34 = vrot.slane %v5297_v44, 7  ;;  %v9492_v39 = vpop.f32.mrb[207].mxu1  ;;  %v9592_v60 = vpop.f32.mrb[35].mxu0 }
 0x5ef   : > { %v5096_v55 = vadd.f32 %v5053_v48, %v13466_v56 }
 0x5f0   : > { %v5052_v15 = vsel %vm1347_vm2, %v5012_v51, %v5013_v26  ;;  %v5440_v63 = vsel %vm1736_vm3, %v5400_v45, %v5401_v34  ;;  %9714 = vmatmul.mubr.bf16.gmra.mrb[56].mxu1 %v13196_v49  ;;  %9814 = vmatmul.mubr.bf16.gmra.mrb[140].mxu0 %v13196_v49 }
 0x5f1   : > { %v13844_v57 = vadd.f32 %v5441_v25, %v5096_v55  ;;  %v5097_v38 = vadd.f32 %v5052_v15, %v13468_v7  ;;  %9717 = vmatprep.mubr.msk.bf16.mxu1 %vm10682_vm0, %v15298_v59  ;;  %9817 = vmatprep.mubr.msk.bf16.mxu0 %vm10682_vm0, %v15298_v59 }
 0x5f3   : > { %v13851_v56 = vadd.f32 %v5440_v63, %v5097_v38  ;;  %v4914_v50 = vpop.f32.mrb[208].mxu1  ;;  %v5302_v51 = vpop.f32.mrb[36].mxu0 }
 0x5f4   : > { %v5014_v24 = vrot.slane %v4914_v50, 6  ;;  %v5402_v45 = vrot.slane %v5302_v51, 7  ;;  %v9495_v19 = vpop.f32.mrb[209].mxu1  ;;  %v9595_v13 = vpop.f32.mrb[37].mxu0  ;;  %v15431_v51 = vld [vmem:[#allocation15_spill] sm:$0xff] }
 0x5f5   : > { %v4917_v44 = vpop.f32.mrb[210].mxu1  ;;  %v5305_v48 = vpop.f32.mrb[38].mxu0 }
 0x5f6   : > { %v5051_v25 = vsel %vm1347_vm2, %v5013_v26, %v5014_v24  ;;  %v5439_v7 = vsel %vm1736_vm3, %v5401_v34, %v5402_v45  ;;  %v5015_v39 = vrot.slane %v4917_v44, 6  ;;  %v5403_v60 = vrot.slane %v5305_v48, 7  ;;  %v9496_v55 = vpop.f32.mrb[211].mxu1  ;;  %v9596_v15 = vpop.f32.mrb[39].mxu0 }
 0x5f7   : > { %v5098_v63 = vadd.f32 %v5051_v25, %v13480_v22 }
 0x5f8   : > { %v5050_v38 = vsel %vm1347_vm2, %v5014_v24, %v5015_v39  ;;  %v5438_v50 = vsel %vm1736_vm3, %v5402_v45, %v5403_v60  ;;  %9718 = vmatmul.mubr.bf16.gmra.mrb[60].mxu1 %v13217_v54  ;;  %9818 = vmatmul.mubr.bf16.gmra.mrb[144].mxu0 %v13217_v54 }
 0x5f9   : > { %v13864_v26 = vadd.f32 %v5439_v7, %v5098_v63  ;;  %v5099_v34 = vadd.f32 %v5050_v38, %v15431_v51  ;;  %9721 = vmatprep.mubr.msk.bf16.mxu1 %vm10682_vm0, %v15298_v59  ;;  %9821 = vmatprep.mubr.msk.bf16.mxu0 %vm10682_vm0, %v15298_v59 }
 0x5fb   : > { %15430 = vst [vmem:[#allocation23_spill] sm:$0xff] %v13864_v26  ;;  %v13871_v22 = vadd.f32 %v5438_v50, %v5099_v34  ;;  %v4922_v24 = vpop.f32.mrb[212].mxu1  ;;  %v5310_v19 = vpop.f32.mrb[40].mxu0 }
 0x5fc   : > { %v5016_v13 = vrot.slane %v4922_v24, 6  ;;  %v5404_v45 = vrot.slane %v5310_v19, 7  ;;  %v9499_v44 = vpop.f32.mrb[213].mxu1  ;;  %v9599_v48 = vpop.f32.mrb[41].mxu0  ;;  %v15433_v19 = vld [vmem:[#allocation16_spill] sm:$0xff] }
 0x5fd   : > { %15432 = vst [vmem:[#allocation24_spill] sm:$0xff] %v13871_v22  ;;  %v4925_v25 = vpop.f32.mrb[214].mxu1  ;;  %v5313_v55 = vpop.f32.mrb[42].mxu0  ;;  %v15435_v44 = vld [vmem:[#allocation34_spill] sm:$0xff] }
 0x5fe   : > { %v5049_v7 = vsel %vm1347_vm2, %v5015_v39, %v5016_v13  ;;  %v5437_v15 = vsel %vm1736_vm3, %v5403_v60, %v5404_v45  ;;  %v5017_v63 = vrot.slane %v4925_v25, 6  ;;  %v5405_v38 = vrot.slane %v5313_v55, 7  ;;  %v9500_v51 = vpop.f32.mrb[215].mxu1  ;;  %v9600_v26 = vpop.f32.mrb[43].mxu0 }
 0x5ff   : > { %v5100_v50 = vadd.f32 %v5049_v7, %v13494_v30 }
 0x600   : > { %v5048_v34 = vsel %vm1347_vm2, %v5016_v13, %v5017_v63  ;;  %v5436_v24 = vsel %vm1736_vm3, %v5404_v45, %v5405_v38  ;;  %9722 = vmatmul.mubr.bf16.gmra.mrb[64].mxu1 %v15433_v19  ;;  %9822 = vmatmul.mubr.bf16.gmra.mrb[148].mxu0 %v15433_v19 }
 0x601   : > { %v13884_v39 = vadd.f32 %v5437_v15, %v5100_v50  ;;  %v5101_v60 = vadd.f32 %v5048_v34, %v15435_v44  ;;  %9725 = vmatprep.mubr.msk.bf16.mxu1 %vm10682_vm0, %v15298_v59  ;;  %9825 = vmatprep.mubr.msk.bf16.mxu0 %vm10682_vm0, %v15298_v59 }
 0x603   : > { %15434 = vst [vmem:[#allocation25_spill] sm:$0xff] %v13884_v39  ;;  %v13891_v30 = vadd.f32 %v5436_v24, %v5101_v60  ;;  %v4930_v26 = vpop.f32.mrb[216].mxu1  ;;  %v5318_v13 = vpop.f32.mrb[44].mxu0  ;;  %v15437_v24 = vld [vmem:[#allocation35_spill] sm:$0xff] }
 0x604   : > { %v5018_v48 = vrot.slane %v4930_v26, 6  ;;  %v5406_v45 = vrot.slane %v5318_v13, 7  ;;  %v9503_v25 = vpop.f32.mrb[217].mxu1  ;;  %v9603_v55 = vpop.f32.mrb[45].mxu0 }
 0x605   : > { %15436 = vst [vmem:[#allocation15_spill] sm:$0xff] %v13891_v30  ;;  %v4933_v7 = vpop.f32.mrb[218].mxu1  ;;  %v5321_v51 = vpop.f32.mrb[46].mxu0  ;;  %v15438_v25 = vld [vmem:[#allocation17_spill] sm:$0xff]  ;;  %v15440_v55 = vld [vmem:[#allocation44_spill] sm:$0xff] }
 0x606   : > { %v5047_v15 = vsel %vm1347_vm2, %v5017_v63, %v5018_v48  ;;  %v5435_v50 = vsel %vm1736_vm3, %v5405_v38, %v5406_v45  ;;  %v5019_v34 = vrot.slane %v4933_v7, 6  ;;  %v5407_v44 = vrot.slane %v5321_v51, 7  ;;  %v9504_v39 = vpop.f32.mrb[219].mxu1  ;;  %v9604_v22 = vpop.f32.mrb[47].mxu0 }
 0x607   : > { %v5102_v60 = vadd.f32 %v5047_v15, %v15437_v24 }
 0x608   : > { %v5046_v26 = vsel %vm1347_vm2, %v5018_v48, %v5019_v34  ;;  %v5434_v13 = vsel %vm1736_vm3, %v5406_v45, %v5407_v44  ;;  %9726 = vmatmul.mubr.bf16.gmra.mrb[68].mxu1 %v15438_v25  ;;  %9826 = vmatmul.mubr.bf16.gmra.mrb[152].mxu0 %v15438_v25 }
 0x609   : > { %v13904_v63 = vadd.f32 %v5435_v50, %v5102_v60  ;;  %v5103_v38 = vadd.f32 %v5046_v26, %v15440_v55  ;;  %9729 = vmatprep.mubr.msk.bf16.mxu1 %vm10682_vm0, %v15298_v59  ;;  %9829 = vmatprep.mubr.msk.bf16.mxu0 %vm10682_vm0, %v15298_v59 }
 0x60b   : > { %15439 = vst [vmem:[#allocation34_spill] sm:$0xff] %v13904_v63  ;;  %v13911_v22 = vadd.f32 %v5434_v13, %v5103_v38  ;;  %v4938_v39 = vpop.f32.mrb[220].mxu1  ;;  %v5326_v48 = vpop.f32.mrb[48].mxu0  ;;  %v15442_v13 = vld [vmem:[#allocation21_spill] sm:$0xff] }
 0x60c   : > { %v5020_v7 = vrot.slane %v4938_v39, 6  ;;  %v5408_v45 = vrot.slane %v5326_v48, 7  ;;  %v9507_v51 = vpop.f32.mrb[221].mxu1  ;;  %v9607_v15 = vpop.f32.mrb[49].mxu0 }
 0x60d   : > { %15441 = vst [vmem:[#allocation35_spill] sm:$0xff] %v13911_v22  ;;  %v4941_v24 = vpop.f32.mrb[222].mxu1  ;;  %v5329_v30 = vpop.f32.mrb[50].mxu0  ;;  %v15443_v51 = vld [vmem:[#allocation14_spill] sm:$0xff]  ;;  %v15445_v15 = vld [vmem:[#allocation19_spill] sm:$0xff] }
 0x60e   : > { %v5045_v50 = vsel %vm1347_vm2, %v5019_v34, %v5020_v7  ;;  %v5433_v60 = vsel %vm1736_vm3, %v5407_v44, %v5408_v45  ;;  %v5021_v26 = vrot.slane %v4941_v24, 6  ;;  %v5409_v55 = vrot.slane %v5329_v30, 7  ;;  %v9508_v63 = vpop.f32.mrb[223].mxu1  ;;  %v9608_v25 = vpop.f32.mrb[51].mxu0 }
 0x60f   : > { %v5104_v38 = vadd.f32 %v5045_v50, %v15442_v13 }
 0x610   : > { %v5044_v39 = vsel %vm1347_vm2, %v5020_v7, %v5021_v26  ;;  %v5432_v48 = vsel %vm1736_vm3, %v5408_v45, %v5409_v55  ;;  %9730 = vmatmul.mubr.bf16.gmra.mrb[72].mxu1 %v15443_v51  ;;  %9830 = vmatmul.mubr.bf16.gmra.mrb[156].mxu0 %v15443_v51 }
 0x611   : > { %v13924_v34 = vadd.f32 %v5433_v60, %v5104_v38  ;;  %v5105_v44 = vadd.f32 %v5044_v39, %v15445_v15  ;;  %9849 = vmatprep.mubr.msk.bf16.mxu1 %vm10682_vm0, %v15298_v59  ;;  %9949 = vmatprep.mubr.msk.bf16.mxu0 %vm10682_vm0, %v15298_v59  ;;  %v10469_v60 = vld [vmem:[#allocation7 + $0x200] sm:$0xff]  }
 0x613   : > { %15444 = vst [vmem:[#allocation44_spill] sm:$0xff] %v13924_v34  ;;  %v13931_v30 = vadd.f32 %v5432_v48, %v5105_v44  ;;  %v4946_v25 = vpop.f32.mrb[224].mxu1  ;;  %v5334_v63 = vpop.f32.mrb[52].mxu0  ;;  %v15447_v44 = vld [vmem:[#allocation18_spill] sm:$0xff] }
 0x614   : > { %v5022_v7 = vrot.slane %v4946_v25, 6  ;;  %v5410_v45 = vrot.slane %v5334_v63, 7  ;;  %v9511_v24 = vpop.f32.mrb[225].mxu1  ;;  %v9611_v50 = vpop.f32.mrb[53].mxu0 }
 0x615   : > { %15446 = vst [vmem:[#allocation21_spill] sm:$0xff] %v13931_v30  ;;  %v4949_v13 = vpop.f32.mrb[226].mxu1  ;;  %v5337_v22 = vpop.f32.mrb[54].mxu0  ;;  %v15448_v24 = vld [vmem:[#allocation26_spill] sm:$0xff]  ;;  %v15450_v50 = vld [vmem:[#allocation32_spill] sm:$0xff] }
 0x616   : > { %v5043_v38 = vsel %vm1347_vm2, %v5021_v26, %v5022_v7  ;;  %v5431_v39 = vsel %vm1736_vm3, %v5409_v55, %v5410_v45  ;;  %v5023_v15 = vrot.slane %v4949_v13, 6  ;;  %v5411_v34 = vrot.slane %v5337_v22, 7  ;;  %v9512_v51 = vpop.f32.mrb[227].mxu1  ;;  %v9612_v48 = vpop.f32.mrb[55].mxu0  ;;  %v10470_v22 = vld [vmem:[#allocation7 + $0x208] sm:$0xff]  }
 0x617   : > { %v5106_v30 = vadd.f32 %v5043_v38, %v15447_v44 }
 0x618   : > { %v5042_v25 = vsel %vm1347_vm2, %v5022_v7, %v5023_v15  ;;  %v5430_v63 = vsel %vm1736_vm3, %v5410_v45, %v5411_v34  ;;  %9850 = vmatmul.mubr.bf16.vlgmr.msra.gmra.mrb[76].mxu1 %v15448_v24  ;;  %9950 = vmatmul.mubr.bf16.vlgmr.msra.gmra.mrb[160].mxu0 %v15448_v24 }
 0x619   : > { %v13944_v26 = vadd.f32 %v5431_v39, %v5106_v30  ;;  %v5107_v55 = vadd.f32 %v5042_v25, %v15450_v50  ;;  %10034 = vmatpush3.bf16.msra.mxu1 %v10469_v60  ;;  %9853 = vmatprep.mubr.msk.bf16.mxu1 %vm10682_vm0, %v15298_v59 }
 0x61a   : > { %9953 = vmatprep.mubr.msk.bf16.mxu0 %vm10682_vm0, %v15298_v59  ;;  %10035 = vmatprep.subr.bf16.mxu1 %v15298_v59 }
 0x61b   : > { %15449 = vst [vmem:[#allocation19_spill] sm:$0xff] %v13944_v26  ;;  %v13952_v51 = vadd.f32 %v5430_v63, %v5107_v55  ;;  %v4954_v7 = vpop.f32.mrb[228].mxu1  ;;  %v5342_v45 = vpop.f32.mrb[56].mxu0  ;;  %v10471_v55 = vld [vmem:[#allocation7 + $0x210] sm:$0xff]  }
 0x61c   : > { %v5024_v13 = vrot.slane %v4954_v7, 6  ;;  %v5412_v38 = vrot.slane %v5342_v45, 7  ;;  %v9515_v30 = vpop.f32.mrb[229].mxu1  ;;  %v9615_v39 = vpop.f32.mrb[57].mxu0 }
 0x61d   : > { %15451 = vst [vmem:[#allocation18_spill] sm:$0xff] %v13952_v51  ;;  %v4957_v48 = vpop.f32.mrb[230].mxu1  ;;  %v5345_v44 = vpop.f32.mrb[58].mxu0  ;;  %10036 = vmatpush3.bf16.msra.mxu1 %v10470_v22  ;;  %v15452_v30 = vld [vmem:[#allocation27_spill] sm:$0xff] }
 0x61e   : > { %v5041_v60 = vsel %vm1347_vm2, %v5023_v15, %v5024_v13  ;;  %v5429_v25 = vsel %vm1736_vm3, %v5411_v34, %v5412_v38  ;;  %v5025_v50 = vrot.slane %v4957_v48, 6  ;;  %v5413_v26 = vrot.slane %v5345_v44, 7  ;;  %v9516_v24 = vpop.f32.mrb[231].mxu1  ;;  %v9616_v63 = vpop.f32.mrb[59].mxu0  ;;  %10037 = vmatprep.subr.bf16.mxu1 %v15298_v59  ;;  %v15454_v15 = vld [vmem:[#allocation20_spill] sm:$0xff] }
 0x61f   : > { %v5108_v7 = vadd.f32 %v5041_v60, %v13554_v1  ;;  %v10472_v1 = vld [vmem:[#allocation7 + $0x218] sm:$0xff]  }
 0x620   : > { %v5040_v45 = vsel %vm1347_vm2, %v5024_v13, %v5025_v50  ;;  %v5428_v22 = vsel %vm1736_vm3, %v5412_v38, %v5413_v26  ;;  %9854 = vmatmul.mubr.bf16.gmra.mrb[80].mxu1 %v15452_v30  ;;  %9954 = vmatmul.mubr.bf16.gmra.mrb[164].mxu0 %v15452_v30 }
 0x621   : > { %v13966_v34 = vadd.f32 %v5429_v25, %v5108_v7  ;;  %v5109_v24 = vadd.f32 %v5040_v45, %v15454_v15  ;;  %9857 = vmatprep.mubr.msk.bf16.mxu1 %vm10682_vm0, %v15298_v59  ;;  %9957 = vmatprep.mubr.msk.bf16.mxu0 %vm10682_vm0, %v15298_v59 }
 0x622   : > { %10038 = vmatpush3.bf16.msra.mxu1 %v10471_v55 }
 0x623   : > { %15453 = vst [vmem:[#allocation32_spill] sm:$0xff] %v13966_v34  ;;  %v13973_v13 = vadd.f32 %v5428_v22, %v5109_v24  ;;  %v4962_v39 = vpop.f32.mrb[232].mxu1  ;;  %v5350_v38 = vpop.f32.mrb[60].mxu0  ;;  %10039 = vmatprep.subr.bf16.mxu1 %v15298_v59 }
 0x624   : > { %v5026_v48 = vrot.slane %v4962_v39, 6  ;;  %v5414_v44 = vrot.slane %v5350_v38, 7  ;;  %v9519_v60 = vpop.f32.mrb[233].mxu1  ;;  %v9619_v25 = vpop.f32.mrb[61].mxu0 }
 0x625   : > { %15455 = vst [vmem:[#allocation27_spill] sm:$0xff] %v13973_v13  ;;  %v4965_v63 = vpop.f32.mrb[234].mxu1  ;;  %v5353_v7 = vpop.f32.mrb[62].mxu0  ;;  %v10473_v13 = vld [vmem:[#allocation7 + $0x220] sm:$0xff]  }
 0x626   : > { %v5039_v45 = vsel %vm1347_vm2, %v5025_v50, %v5026_v48  ;;  %v5427_v15 = vsel %vm1736_vm3, %v5413_v26, %v5414_v44  ;;  %v5027_v55 = vrot.slane %v4965_v63, 6  ;;  %v5415_v34 = vrot.slane %v5353_v7, 7  ;;  %v9520_v22 = vpop.f32.mrb[235].mxu1  ;;  %v9620_v24 = vpop.f32.mrb[63].mxu0  ;;  %10040 = vmatpush3.bf16.msra.mxu1 %v10472_v1  ;;  %v15456_v50 = vld [vmem:[#allocation12_spill] sm:$0xff] }
 0x627   : > { %v5110_v51 = vadd.f32 %v5039_v45, %v13572_v4  ;;  %10041 = vmatprep.subr.bf16.mxu1 %v15298_v59  ;;  %v10474_v4 = vld [vmem:[#allocation7 + $0x228] sm:$0xff]  }
 0x628   : > { %v5038_v39 = vsel %vm1347_vm2, %v5026_v48, %v5027_v55  ;;  %v5426_v38 = vsel %vm1736_vm3, %v5414_v44, %v5415_v34  ;;  %9858 = vmatmul.mubr.bf16.gmra.mrb[84].mxu1 %v15456_v50  ;;  %9958 = vmatmul.mubr.bf16.gmra.mrb[168].mxu0 %v15456_v50 }
 0x629   : > { %v13988_v26 = vadd.f32 %v5427_v15, %v5110_v51  ;;  %v5111_v60 = vadd.f32 %v5038_v39, %v13574_v20  ;;  %9861 = vmatprep.mubr.msk.bf16.mxu1 %vm10682_vm0, %v15298_v59  ;;  %9961 = vmatprep.mubr.msk.bf16.mxu0 %vm10682_vm0, %v15298_v59 }
 0x62a   : > { %10042 = vmatpush3.bf16.msra.mxu1 %v10473_v13 }
 0x62b   : > { %v13995_v1 = vadd.f32 %v5426_v38, %v5111_v60  ;;  %v4970_v48 = vpop.f32.mrb[236].mxu1  ;;  %v5358_v44 = vpop.f32.mrb[64].mxu0  ;;  %10043 = vmatprep.subr.bf16.mxu1 %v15298_v59  ;;  %v10475_v60 = vld [vmem:[#allocation7 + $0x230] sm:$0xff]  }
 0x62c   : > { %v5028_v25 = vrot.slane %v4970_v48, 6  ;;  %v5416_v63 = vrot.slane %v5358_v44, 7  ;;  %v9523_v51 = vpop.f32.mrb[237].mxu1  ;;  %v9623_v7 = vpop.f32.mrb[65].mxu0 }
 0x62d   : > { %15457 = vst [vmem:[#allocation20_spill] sm:$0xff] %v13995_v1  ;;  %v4973_v45 = vpop.f32.mrb[238].mxu1  ;;  %v5361_v20 = vpop.f32.mrb[66].mxu0 }
 0x62e   : > { %v5037_v15 = vsel %vm1347_vm2, %v5027_v55, %v5028_v25  ;;  %v5425_v22 = vsel %vm1736_vm3, %v5415_v34, %v5416_v63  ;;  %v5029_v13 = vrot.slane %v4973_v45, 6  ;;  %v5417_v24 = vrot.slane %v5361_v20, 7  ;;  %v9524_v39 = vpop.f32.mrb[239].mxu1  ;;  %v9624_v38 = vpop.f32.mrb[67].mxu0  ;;  %10044 = vmatpush3.bf16.msra.mxu1 %v10474_v4  ;;  %v15458_v55 = vld [vmem:[#allocation28_spill] sm:$0xff] }
 0x62f   : > { %v5112_v1 = vadd.f32 %v5037_v15, %v13590_v2  ;;  %10045 = vmatprep.subr.bf16.mxu1 %v15298_v59  ;;  %v10476_v2 = vld [vmem:[#allocation7 + $0x238] sm:$0xff]  }
 0x630   : > { %v5036_v48 = vsel %vm1347_vm2, %v5028_v25, %v5029_v13  ;;  %v5424_v44 = vsel %vm1736_vm3, %v5416_v63, %v5417_v24  ;;  %9862 = vmatmul.mubr.bf16.gmra.mrb[88].mxu1 %v15458_v55  ;;  %9962 = vmatmul.mubr.bf16.gmra.mrb[172].mxu0 %v15458_v55 }
 0x631   : > { %v14010_v34 = vadd.f32 %v5425_v22, %v5112_v1  ;;  %v5113_v51 = vadd.f32 %v5036_v48, %v13592_v36  ;;  %9865 = vmatprep.mubr.msk.bf16.mxu1 %vm10682_vm0, %v15298_v59  ;;  %9965 = vmatprep.mubr.msk.bf16.mxu0 %vm10682_vm0, %v15298_v59 }
 0x632   : > { %10046 = vmatpush3.bf16.msra.mxu1 %v10475_v60 }
 0x633   : > { %v14017_v4 = vadd.f32 %v5424_v44, %v5113_v51  ;;  %v4978_v25 = vpop.f32.mrb[240].mxu1  ;;  %v5366_v63 = vpop.f32.mrb[68].mxu0  ;;  %10047 = vmatprep.subr.bf16.mxu1 %v15298_v59 }
 0x634   : > { %v5030_v7 = vrot.slane %v4978_v25, 6  ;;  %v5418_v45 = vrot.slane %v5366_v63, 7  ;;  %v9527_v1 = vpop.f32.mrb[241].mxu1  ;;  %v9627_v20 = vpop.f32.mrb[69].mxu0 }
 0x635   : > { %v4981_v15 = vpop.f32.mrb[242].mxu1  ;;  %v5369_v36 = vpop.f32.mrb[70].mxu0 }
 0x636   : > { %v5035_v22 = vsel %vm1347_vm2, %v5029_v13, %v5030_v7  ;;  %v5423_v39 = vsel %vm1736_vm3, %v5417_v24, %v5418_v45  ;;  %v5031_v38 = vrot.slane %v4981_v15, 6  ;;  %v5419_v60 = vrot.slane %v5369_v36, 7  ;;  %v9528_v48 = vpop.f32.mrb[243].mxu1  ;;  %v9628_v44 = vpop.f32.mrb[71].mxu0  ;;  %10048 = vmatpush3.bf16.msra.mxu1 %v10476_v2 }
 0x637   : > { %v5114_v51 = vadd.f32 %v5035_v22, %v13610_v43 }
 0x638   : > { %v5034_v25 = vsel %vm1347_vm2, %v5030_v7, %v5031_v38  ;;  %v5422_v63 = vsel %vm1736_vm3, %v5418_v45, %v5419_v60  ;;  %9866 = vmatmul.mubr.bf16.gmra.mrb[92].mxu1 %v13000_v58  ;;  %9966 = vmatmul.mubr.bf16.gmra.mrb[176].mxu0 %v13000_v58 }
 0x639   : > { %v14031_v13 = vadd.f32 %v5423_v39, %v5114_v51  ;;  %v5074_v24 = vadd.f32 %v5034_v25, %v13603_v14  ;;  %9869 = vmatprep.mubr.msk.bf16.mxu1 %vm10682_vm0, %v15298_v59  ;;  %9969 = vmatprep.mubr.msk.bf16.mxu0 %vm10682_vm0, %v15298_v59  ;;  %v15461_v14 = vrot.slane %v13630_v41, 6  ;;  %v15462_v51 = vrot.slane %v13632_v10, 7 }
 0x63b   : > { %15459 = vst [vmem:[#allocation12_spill] sm:$0xff] %v14031_v13  ;;  %v14038_v43 = vadd.f32 %v5422_v63, %v5074_v24  ;;  %v4986_v2 = vpop.f32.mrb[244].mxu1  ;;  %v5374_v7 = vpop.f32.mrb[72].mxu0 }
 0x63c   : > { %v5032_v1 = vrot.slane %v4986_v2, 6  ;;  %v5420_v45 = vrot.slane %v5374_v7, 7  ;;  %v9531_v20 = vpop.f32.mrb[245].mxu1  ;;  %v9631_v15 = vpop.f32.mrb[73].mxu0  ;;  %v15463_v2 = vld [vmem:[#allocation22_spill] sm:$0xff] }
 0x63d   : > { %15460 = vst [vmem:[#allocation28_spill] sm:$0xff] %v14038_v43  ;;  %v4989_v36 = vpop.f32.mrb[246].mxu1  ;;  %v5377_v22 = vpop.f32.mrb[74].mxu0  ;;  %v15464_v20 = vld [vmem:[#allocation33_spill] sm:$0xff] }
 0x63e   : > { %v5033_v39 = vsel %vm1347_vm2, %v5031_v38, %v5032_v1  ;;  %v5073_v48 = vsel %vm1347_vm2, %v5032_v1, %v15461_v14  ;;  %v5421_v44 = vsel %vm1736_vm3, %v5419_v60, %v5420_v45  ;;  %v5461_v25 = vsel %vm1736_vm3, %v5420_v45, %v15462_v51  ;;  %v9532_v63 = vpop.f32.mrb[247].mxu1  ;;  %v9632_v24 = vpop.f32.mrb[75].mxu0  ;;  %v15465_v38 = vld [vmem:[#allocation13_spill] sm:$0xff] }
 0x63f   : > { %v5075_v7 = vadd.f32 %v5033_v39, %v15463_v2  ;;  %v5076_v15 = vadd.f32 %v5073_v48, %v15464_v20 }
 0x640   : > { %9870 = vmatmul.mubr.bf16.gmra.mrb[96].mxu1 %v15465_v38  ;;  %9970 = vmatmul.mubr.bf16.gmra.mrb[180].mxu0 %v15465_v38 }
 0x641   : > { %v5463_v41 = vadd.f32 %v5421_v44, %v5075_v7  ;;  %v5464_v1 = vadd.f32 %v5461_v25, %v5076_v15  ;;  %9873 = vmatprep.mubr.msk.bf16.mxu1 %vm10682_vm0, %v15298_v59  ;;  %9973 = vmatprep.mubr.msk.bf16.mxu0 %vm10682_vm0, %v15298_v59  ;;  %v15467_v7 = vld [vmem:[#allocation29_spill] sm:$0xff] }
 0x643   : > { %v14060_v10 = vpop.f32.mrb[248].mxu1  ;;  %v14062_v60 = vpop.f32.mrb[76].mxu0 }
 0x644   : > { %v9651_v45 = vpop.f32.mrb[249].mxu1  ;;  %v9751_v36 = vpop.f32.mrb[77].mxu0  ;;  %v15259_v14 = vrot.slane %v14060_v10, 7  ;;  %v15258_v48 = vrot.slane %v14062_v60, 1 }
 0x645   : > { %v5605_v22 = vpop.f32.mrb[250].mxu1  ;;  %v5993_v39 = vpop.f32.mrb[78].mxu0 }
 0x646   : > { %v5769_v44 = vrot.slane %v5605_v22, 7  ;;  %v6157_v51 = vrot.slane %v5993_v39, 1  ;;  %v9652_v25 = vpop.f32.mrb[251].mxu1  ;;  %v9752_v63 = vpop.f32.mrb[79].mxu0 }
 0x648   : > { %v5848_v24 = vsel %vm1736_vm3, %v15259_v14, %v5769_v44  ;;  %v14074_v2 = vsel %vm2513_vm4, %v15258_v48, %v6157_v51  ;;  %9874 = vmatmul.mubr.bf16.gmra.mrb[100].mxu1 %v15467_v7  ;;  %9974 = vmatmul.mubr.bf16.gmra.mrb[184].mxu0 %v15467_v7 }
 0x649   : > { %15466 = vst [vmem:[#allocation22_spill] sm:$0xff] %v14074_v2  ;;  %v5851_v20 = vadd.f32 %v5848_v24, %v5463_v41  ;;  %9877 = vmatprep.mubr.msk.bf16.mxu1 %vm10682_vm0, %v15298_v59  ;;  %9977 = vmatprep.mubr.msk.bf16.mxu0 %vm10682_vm0, %v15298_v59 }
 0x64b   : > { %v5610_v15 = vpop.f32.mrb[252].mxu1  ;;  %v5998_v45 = vpop.f32.mrb[80].mxu0 }
 0x64c   : > { %v5770_v36 = vrot.slane %v5610_v15, 7  ;;  %v6158_v22 = vrot.slane %v5998_v45, 1  ;;  %v9655_v39 = vpop.f32.mrb[253].mxu1  ;;  %v9755_v25 = vpop.f32.mrb[81].mxu0 }
 0x64d   : > { %v5613_v63 = vpop.f32.mrb[254].mxu1  ;;  %v6001_v48 = vpop.f32.mrb[82].mxu0 }
 0x64e   : > { %v5847_v14 = vsel %vm1736_vm3, %v5769_v44, %v5770_v36  ;;  %v6235_v41 = vsel %vm2513_vm4, %v6157_v51, %v6158_v22  ;;  %v5771_v24 = vrot.slane %v5613_v63, 7  ;;  %v6159_v7 = vrot.slane %v6001_v48, 1  ;;  %v9656_v2 = vpop.f32.mrb[255].mxu1  ;;  %v9756_v38 = vpop.f32.mrb[83].mxu0 }
 0x64f   : > { %v5852_v13 = vadd.f32 %v5847_v14, %v5464_v1  ;;  %v14086_v43 = vadd.f32 %v6235_v41, %v5851_v20 }
 0x650   : > { %v5846_v15 = vsel %vm1736_vm3, %v5770_v36, %v5771_v24  ;;  %v6234_v45 = vsel %vm2513_vm4, %v6158_v22, %v6159_v7  ;;  %9878 = vmatmul.mubr.bf16.gmra.mrb[104].mxu1 %v13052_v33  ;;  %9978 = vmatmul.mubr.bf16.gmra.mrb[188].mxu0 %v13052_v33 }
 0x651   : > { %v5853_v44 = vadd.f32 %v5846_v15, %v13651_v0  ;;  %v14095_v51 = vadd.f32 %v6234_v45, %v5852_v13  ;;  %9881 = vmatprep.mubr.msk.bf16.mxu1 %vm10682_vm0, %v15298_v59  ;;  %9981 = vmatprep.mubr.msk.bf16.mxu0 %vm10682_vm0, %v15298_v59 }
 0x653   : > { %v5618_v38 = vpop.f32.mrb[0].mxu1  ;;  %v6006_v1 = vpop.f32.mrb[84].mxu0 }
 0x654   : > { %v5772_v14 = vrot.slane %v5618_v38, 7  ;;  %v6160_v48 = vrot.slane %v6006_v1, 1  ;;  %v9659_v2 = vpop.f32.mrb[1].mxu1  ;;  %v9759_v20 = vpop.f32.mrb[85].mxu0 }
 0x655   : > { %v5621_v36 = vpop.f32.mrb[2].mxu1  ;;  %v6009_v22 = vpop.f32.mrb[86].mxu0 }
 0x656   : > { %v5845_v39 = vsel %vm1736_vm3, %v5771_v24, %v5772_v14  ;;  %v6233_v0 = vsel %vm2513_vm4, %v6159_v7, %v6160_v48  ;;  %v5773_v13 = vrot.slane %v5621_v36, 7  ;;  %v6161_v25 = vrot.slane %v6009_v22, 1  ;;  %v9660_v63 = vpop.f32.mrb[3].mxu1  ;;  %v9760_v41 = vpop.f32.mrb[87].mxu0 }
 0x657   : > { %v5854_v15 = vadd.f32 %v5845_v39, %v13664_v37  ;;  %v14106_v45 = vadd.f32 %v6233_v0, %v5853_v44 }
 0x658   : > { %v5844_v38 = vsel %vm1736_vm3, %v5772_v14, %v5773_v13  ;;  %v6232_v1 = vsel %vm2513_vm4, %v6160_v48, %v6161_v25  ;;  %9882 = vmatmul.mubr.bf16.gmra.mrb[108].mxu1 %v13068_v6  ;;  %9982 = vmatmul.mubr.bf16.gmra.mrb[192].mxu0 %v13068_v6 }
 0x659   : > { %v5855_v7 = vadd.f32 %v5844_v38, %v13671_v42  ;;  %v14115_v24 = vadd.f32 %v6232_v1, %v5854_v15  ;;  %9885 = vmatprep.mubr.msk.bf16.mxu1 %vm10682_vm0, %v15298_v59  ;;  %9985 = vmatprep.mubr.msk.bf16.mxu0 %vm10682_vm0, %v15298_v59 }
 0x65b   : > { %v5626_v37 = vpop.f32.mrb[4].mxu1  ;;  %v6014_v44 = vpop.f32.mrb[88].mxu0 }
 0x65c   : > { %v5774_v14 = vrot.slane %v5626_v37, 7  ;;  %v6162_v2 = vrot.slane %v6014_v44, 1  ;;  %v9663_v20 = vpop.f32.mrb[5].mxu1  ;;  %v9763_v48 = vpop.f32.mrb[89].mxu0 }
 0x65d   : > { %v5629_v36 = vpop.f32.mrb[6].mxu1  ;;  %v6017_v22 = vpop.f32.mrb[90].mxu0 }
 0x65e   : > { %v5843_v39 = vsel %vm1736_vm3, %v5773_v13, %v5774_v14  ;;  %v6231_v42 = vsel %vm2513_vm4, %v6161_v25, %v6162_v2  ;;  %v5775_v0 = vrot.slane %v5629_v36, 7  ;;  %v6163_v63 = vrot.slane %v6017_v22, 1  ;;  %v9664_v41 = vpop.f32.mrb[7].mxu1  ;;  %v9764_v15 = vpop.f32.mrb[91].mxu0 }
 0x65f   : > { %v5856_v38 = vadd.f32 %v5843_v39, %v13684_v32  ;;  %v14126_v1 = vadd.f32 %v6231_v42, %v5855_v7 }
 0x660   : > { %v5842_v37 = vsel %vm1736_vm3, %v5774_v14, %v5775_v0  ;;  %v6230_v44 = vsel %vm2513_vm4, %v6162_v2, %v6163_v63  ;;  %9886 = vmatmul.mubr.bf16.gmra.mrb[112].mxu1 %v13084_v12  ;;  %9986 = vmatmul.mubr.bf16.gmra.mrb[196].mxu0 %v13084_v12 }
 0x661   : > { %v5857_v13 = vadd.f32 %v5842_v37, %v13691_v16  ;;  %v14135_v25 = vadd.f32 %v6230_v44, %v5856_v38  ;;  %9889 = vmatprep.mubr.msk.bf16.mxu1 %vm10682_vm0, %v15298_v59  ;;  %9989 = vmatprep.mubr.msk.bf16.mxu0 %vm10682_vm0, %v15298_v59 }
 0x663   : > { %v5634_v32 = vpop.f32.mrb[8].mxu1  ;;  %v6022_v7 = vpop.f32.mrb[92].mxu0 }
 0x664   : > { %v5776_v14 = vrot.slane %v5634_v32, 7  ;;  %v6164_v20 = vrot.slane %v6022_v7, 1  ;;  %v9667_v48 = vpop.f32.mrb[9].mxu1  ;;  %v9767_v2 = vpop.f32.mrb[93].mxu0 }
 0x665   : > { %v5637_v36 = vpop.f32.mrb[10].mxu1  ;;  %v6025_v22 = vpop.f32.mrb[94].mxu0 }
 0x666   : > { %v5841_v39 = vsel %vm1736_vm3, %v5775_v0, %v5776_v14  ;;  %v6229_v16 = vsel %vm2513_vm4, %v6163_v63, %v6164_v20  ;;  %v5777_v42 = vrot.slane %v5637_v36, 7  ;;  %v6165_v41 = vrot.slane %v6025_v22, 1  ;;  %v9668_v15 = vpop.f32.mrb[11].mxu1  ;;  %v9768_v38 = vpop.f32.mrb[95].mxu0 }
 0x667   : > { %v5858_v37 = vadd.f32 %v5841_v39, %v13704_v28  ;;  %v14146_v44 = vadd.f32 %v6229_v16, %v5857_v13 }
 0x668   : > { %v5840_v32 = vsel %vm1736_vm3, %v5776_v14, %v5777_v42  ;;  %v6228_v7 = vsel %vm2513_vm4, %v6164_v20, %v6165_v41  ;;  %9890 = vmatmul.mubr.bf16.gmra.mrb[116].mxu1 %v13100_v62  ;;  %9990 = vmatmul.mubr.bf16.gmra.mrb[200].mxu0 %v13100_v62 }
 0x669   : > { %v5859_v0 = vadd.f32 %v5840_v32, %v13711_v21  ;;  %v14155_v63 = vadd.f32 %v6228_v7, %v5858_v37  ;;  %9893 = vmatprep.mubr.msk.bf16.mxu1 %vm10682_vm0, %v15298_v59  ;;  %9993 = vmatprep.mubr.msk.bf16.mxu0 %vm10682_vm0, %v15298_v59 }
 0x66b   : > { %v5642_v28 = vpop.f32.mrb[12].mxu1  ;;  %v6030_v13 = vpop.f32.mrb[96].mxu0 }
 0x66c   : > { %v5778_v14 = vrot.slane %v5642_v28, 7  ;;  %v6166_v48 = vrot.slane %v6030_v13, 1  ;;  %v9671_v2 = vpop.f32.mrb[13].mxu1  ;;  %v9771_v20 = vpop.f32.mrb[97].mxu0 }
 0x66d   : > { %v5645_v36 = vpop.f32.mrb[14].mxu1  ;;  %v6033_v22 = vpop.f32.mrb[98].mxu0 }
 0x66e   : > { %v5839_v39 = vsel %vm1736_vm3, %v5777_v42, %v5778_v14  ;;  %v6227_v21 = vsel %vm2513_vm4, %v6165_v41, %v6166_v48  ;;  %v5779_v16 = vrot.slane %v5645_v36, 7  ;;  %v6167_v15 = vrot.slane %v6033_v22, 1  ;;  %v9672_v38 = vpop.f32.mrb[15].mxu1  ;;  %v9772_v37 = vpop.f32.mrb[99].mxu0 }
 0x66f   : > { %v5860_v32 = vadd.f32 %v5839_v39, %v13724_v47  ;;  %v14166_v7 = vadd.f32 %v6227_v21, %v5859_v0 }
 0x670   : > { %v5838_v28 = vsel %vm1736_vm3, %v5778_v14, %v5779_v16  ;;  %v6226_v13 = vsel %vm2513_vm4, %v6166_v48, %v6167_v15  ;;  %9894 = vmatmul.mubr.bf16.gmra.mrb[120].mxu1 %v13116_v23  ;;  %9994 = vmatmul.mubr.bf16.gmra.mrb[204].mxu0 %v13116_v23 }
 0x671   : > { %v5861_v42 = vadd.f32 %v5838_v28, %v13731_v11  ;;  %v14175_v41 = vadd.f32 %v6226_v13, %v5860_v32  ;;  %9897 = vmatprep.mubr.msk.bf16.mxu1 %vm10682_vm0, %v15298_v59  ;;  %9997 = vmatprep.mubr.msk.bf16.mxu0 %vm10682_vm0, %v15298_v59 }
 0x673   : > { %v5650_v47 = vpop.f32.mrb[16].mxu1  ;;  %v6038_v0 = vpop.f32.mrb[100].mxu0 }
 0x674   : > { %v5780_v14 = vrot.slane %v5650_v47, 7  ;;  %v6168_v2 = vrot.slane %v6038_v0, 1  ;;  %v9675_v20 = vpop.f32.mrb[17].mxu1  ;;  %v9775_v48 = vpop.f32.mrb[101].mxu0 }
 0x675   : > { %v5653_v36 = vpop.f32.mrb[18].mxu1  ;;  %v6041_v22 = vpop.f32.mrb[102].mxu0 }
 0x676   : > { %v5837_v39 = vsel %vm1736_vm3, %v5779_v16, %v5780_v14  ;;  %v6225_v11 = vsel %vm2513_vm4, %v6167_v15, %v6168_v2  ;;  %v5781_v21 = vrot.slane %v5653_v36, 7  ;;  %v6169_v38 = vrot.slane %v6041_v22, 1  ;;  %v9676_v37 = vpop.f32.mrb[19].mxu1  ;;  %v9776_v32 = vpop.f32.mrb[103].mxu0 }
 0x677   : > { %v5862_v28 = vadd.f32 %v5837_v39, %v13744_v61  ;;  %v14186_v13 = vadd.f32 %v6225_v11, %v5861_v42 }
 0x678   : > { %v5836_v47 = vsel %vm1736_vm3, %v5780_v14, %v5781_v21  ;;  %v6224_v0 = vsel %vm2513_vm4, %v6168_v2, %v6169_v38  ;;  %9898 = vmatmul.mubr.bf16.gmra.mrb[124].mxu1 %v13132_v52  ;;  %9998 = vmatmul.mubr.bf16.gmra.mrb[208].mxu0 %v13132_v52 }
 0x679   : > { %v5863_v16 = vadd.f32 %v5836_v47, %v13751_v27  ;;  %v14195_v15 = vadd.f32 %v6224_v0, %v5862_v28  ;;  %9901 = vmatprep.mubr.msk.bf16.mxu1 %vm10682_vm0, %v15298_v59  ;;  %10001 = vmatprep.mubr.msk.bf16.mxu0 %vm10682_vm0, %v15298_v59 }
 0x67b   : > { %v5658_v61 = vpop.f32.mrb[20].mxu1  ;;  %v6046_v42 = vpop.f32.mrb[104].mxu0 }
 0x67c   : > { %v5782_v14 = vrot.slane %v5658_v61, 7  ;;  %v6170_v20 = vrot.slane %v6046_v42, 1  ;;  %v9679_v48 = vpop.f32.mrb[21].mxu1  ;;  %v9779_v2 = vpop.f32.mrb[105].mxu0 }
 0x67d   : > { %v5661_v36 = vpop.f32.mrb[22].mxu1  ;;  %v6049_v22 = vpop.f32.mrb[106].mxu0 }
 0x67e   : > { %v5835_v39 = vsel %vm1736_vm3, %v5781_v21, %v5782_v14  ;;  %v6223_v27 = vsel %vm2513_vm4, %v6169_v38, %v6170_v20  ;;  %v5783_v11 = vrot.slane %v5661_v36, 7  ;;  %v6171_v37 = vrot.slane %v6049_v22, 1  ;;  %v9680_v32 = vpop.f32.mrb[23].mxu1  ;;  %v9780_v28 = vpop.f32.mrb[107].mxu0 }
 0x67f   : > { %v5864_v47 = vadd.f32 %v5835_v39, %v13764_v46  ;;  %v14206_v0 = vadd.f32 %v6223_v27, %v5863_v16 }
 0x680   : > { %v5834_v61 = vsel %vm1736_vm3, %v5782_v14, %v5783_v11  ;;  %v6222_v42 = vsel %vm2513_vm4, %v6170_v20, %v6171_v37  ;;  %9902 = vmatmul.mubr.bf16.gmra.mrb[128].mxu1 %v13148_v5  ;;  %10002 = vmatmul.mubr.bf16.gmra.mrb[212].mxu0 %v13148_v5 }
 0x681   : > { %v5865_v21 = vadd.f32 %v5834_v61, %v13771_v8  ;;  %v14215_v38 = vadd.f32 %v6222_v42, %v5864_v47  ;;  %9905 = vmatprep.mubr.msk.bf16.mxu1 %vm10682_vm0, %v15298_v59  ;;  %10005 = vmatprep.mubr.msk.bf16.mxu0 %vm10682_vm0, %v15298_v59 }
 0x683   : > { %v5666_v46 = vpop.f32.mrb[24].mxu1  ;;  %v6054_v16 = vpop.f32.mrb[108].mxu0 }
 0x684   : > { %v5784_v14 = vrot.slane %v5666_v46, 7  ;;  %v6172_v48 = vrot.slane %v6054_v16, 1  ;;  %v9683_v2 = vpop.f32.mrb[25].mxu1  ;;  %v9783_v20 = vpop.f32.mrb[109].mxu0 }
 0x685   : > { %v5669_v36 = vpop.f32.mrb[26].mxu1  ;;  %v6057_v22 = vpop.f32.mrb[110].mxu0 }
 0x686   : > { %v5833_v39 = vsel %vm1736_vm3, %v5783_v11, %v5784_v14  ;;  %v6221_v8 = vsel %vm2513_vm4, %v6171_v37, %v6172_v48  ;;  %v5785_v27 = vrot.slane %v5669_v36, 7  ;;  %v6173_v32 = vrot.slane %v6057_v22, 1  ;;  %v9684_v28 = vpop.f32.mrb[27].mxu1  ;;  %v9784_v47 = vpop.f32.mrb[111].mxu0 }
 0x687   : > { %v5866_v61 = vadd.f32 %v5833_v39, %v13784_v31  ;;  %v14226_v42 = vadd.f32 %v6221_v8, %v5865_v21 }
 0x688   : > { %v5832_v46 = vsel %vm1736_vm3, %v5784_v14, %v5785_v27  ;;  %v6220_v16 = vsel %vm2513_vm4, %v6172_v48, %v6173_v32  ;;  %9906 = vmatmul.mubr.bf16.gmra.mrb[132].mxu1 %v13164_v35  ;;  %10006 = vmatmul.mubr.bf16.gmra.mrb[216].mxu0 %v13164_v35 }
 0x689   : > { %v5867_v11 = vadd.f32 %v5832_v46, %v13791_v18  ;;  %v14235_v37 = vadd.f32 %v6220_v16, %v5866_v61  ;;  %9909 = vmatprep.mubr.msk.bf16.mxu1 %vm10682_vm0, %v15298_v59  ;;  %10009 = vmatprep.mubr.msk.bf16.mxu0 %vm10682_vm0, %v15298_v59 }
 0x68b   : > { %v5674_v31 = vpop.f32.mrb[28].mxu1  ;;  %v6062_v21 = vpop.f32.mrb[112].mxu0 }
 0x68c   : > { %v5786_v14 = vrot.slane %v5674_v31, 7  ;;  %v6174_v2 = vrot.slane %v6062_v21, 1  ;;  %v9687_v20 = vpop.f32.mrb[29].mxu1  ;;  %v9787_v48 = vpop.f32.mrb[113].mxu0 }
 0x68d   : > { %v5677_v36 = vpop.f32.mrb[30].mxu1  ;;  %v6065_v22 = vpop.f32.mrb[114].mxu0 }
 0x68e   : > { %v5831_v39 = vsel %vm1736_vm3, %v5785_v27, %v5786_v14  ;;  %v6219_v18 = vsel %vm2513_vm4, %v6173_v32, %v6174_v2  ;;  %v5787_v8 = vrot.slane %v5677_v36, 7  ;;  %v6175_v28 = vrot.slane %v6065_v22, 1  ;;  %v9688_v47 = vpop.f32.mrb[31].mxu1  ;;  %v9788_v61 = vpop.f32.mrb[115].mxu0 }
 0x68f   : > { %v5868_v46 = vadd.f32 %v5831_v39, %v13804_v53  ;;  %v14246_v16 = vadd.f32 %v6219_v18, %v5867_v11 }
 0x690   : > { %v5830_v31 = vsel %vm1736_vm3, %v5786_v14, %v5787_v8  ;;  %v6218_v21 = vsel %vm2513_vm4, %v6174_v2, %v6175_v28  ;;  %9910 = vmatmul.mubr.bf16.gmra.mrb[136].mxu1 %v13180_v29  ;;  %10010 = vmatmul.mubr.bf16.gmra.mrb[220].mxu0 %v13180_v29 }
 0x691   : > { %v5869_v27 = vadd.f32 %v5830_v31, %v13811_v17  ;;  %v14255_v32 = vadd.f32 %v6218_v21, %v5868_v46  ;;  %9913 = vmatprep.mubr.msk.bf16.mxu1 %vm10682_vm0, %v15298_v59  ;;  %10013 = vmatprep.mubr.msk.bf16.mxu0 %vm10682_vm0, %v15298_v59 }
 0x693   : > { %v5682_v53 = vpop.f32.mrb[32].mxu1  ;;  %v6070_v11 = vpop.f32.mrb[116].mxu0 }
 0x694   : > { %v5788_v14 = vrot.slane %v5682_v53, 7  ;;  %v6176_v20 = vrot.slane %v6070_v11, 1  ;;  %v9691_v48 = vpop.f32.mrb[33].mxu1  ;;  %v9791_v2 = vpop.f32.mrb[117].mxu0 }
 0x695   : > { %v5685_v36 = vpop.f32.mrb[34].mxu1  ;;  %v6073_v22 = vpop.f32.mrb[118].mxu0 }
 0x696   : > { %v5829_v39 = vsel %vm1736_vm3, %v5787_v8, %v5788_v14  ;;  %v6217_v17 = vsel %vm2513_vm4, %v6175_v28, %v6176_v20  ;;  %v5789_v18 = vrot.slane %v5685_v36, 7  ;;  %v6177_v47 = vrot.slane %v6073_v22, 1  ;;  %v9692_v61 = vpop.f32.mrb[35].mxu1  ;;  %v9792_v46 = vpop.f32.mrb[119].mxu0 }
 0x697   : > { %v5870_v31 = vadd.f32 %v5829_v39, %v13824_v3  ;;  %v14266_v21 = vadd.f32 %v6217_v17, %v5869_v27 }
 0x698   : > { %v5828_v53 = vsel %vm1736_vm3, %v5788_v14, %v5789_v18  ;;  %v6216_v11 = vsel %vm2513_vm4, %v6176_v20, %v6177_v47  ;;  %9914 = vmatmul.mubr.bf16.gmra.mrb[140].mxu1 %v13196_v49  ;;  %10014 = vmatmul.mubr.bf16.gmra.mrb[224].mxu0 %v13196_v49 }
 0x699   : > { %v5871_v8 = vadd.f32 %v5828_v53, %v13831_v40  ;;  %v14275_v28 = vadd.f32 %v6216_v11, %v5870_v31  ;;  %9917 = vmatprep.mubr.msk.bf16.mxu1 %vm10682_vm0, %v15298_v59  ;;  %10017 = vmatprep.mubr.msk.bf16.mxu0 %vm10682_vm0, %v15298_v59 }
 0x69b   : > { %v5690_v3 = vpop.f32.mrb[36].mxu1  ;;  %v6078_v27 = vpop.f32.mrb[120].mxu0 }
 0x69c   : > { %v5790_v14 = vrot.slane %v5690_v3, 7  ;;  %v6178_v48 = vrot.slane %v6078_v27, 1  ;;  %v9695_v2 = vpop.f32.mrb[37].mxu1  ;;  %v9795_v20 = vpop.f32.mrb[121].mxu0 }
 0x69d   : > { %v5693_v36 = vpop.f32.mrb[38].mxu1  ;;  %v6081_v22 = vpop.f32.mrb[122].mxu0 }
 0x69e   : > { %v5827_v39 = vsel %vm1736_vm3, %v5789_v18, %v5790_v14  ;;  %v6215_v40 = vsel %vm2513_vm4, %v6177_v47, %v6178_v48  ;;  %v5791_v17 = vrot.slane %v5693_v36, 7  ;;  %v6179_v61 = vrot.slane %v6081_v22, 1  ;;  %v9696_v46 = vpop.f32.mrb[39].mxu1  ;;  %v9796_v31 = vpop.f32.mrb[123].mxu0 }
 0x69f   : > { %v5872_v53 = vadd.f32 %v5827_v39, %v13844_v57  ;;  %v14286_v11 = vadd.f32 %v6215_v40, %v5871_v8 }
 0x6a0   : > { %v5826_v3 = vsel %vm1736_vm3, %v5790_v14, %v5791_v17  ;;  %v6214_v27 = vsel %vm2513_vm4, %v6178_v48, %v6179_v61  ;;  %9918 = vmatmul.mubr.bf16.gmra.mrb[144].mxu1 %v13217_v54  ;;  %10018 = vmatmul.mubr.bf16.gmra.mrb[228].mxu0 %v13217_v54 }
 0x6a1   : > { %v5873_v18 = vadd.f32 %v5826_v3, %v13851_v56  ;;  %v14295_v47 = vadd.f32 %v6214_v27, %v5872_v53  ;;  %9921 = vmatprep.mubr.msk.bf16.mxu1 %vm10682_vm0, %v15298_v59  ;;  %10021 = vmatprep.mubr.msk.bf16.mxu0 %vm10682_vm0, %v15298_v59  ;;  %v15469_v3 = vld [vmem:[#allocation23_spill] sm:$0xff] }
 0x6a3   : > { %15468 = vst [vmem:[#allocation33_spill] sm:$0xff] %v14295_v47  ;;  %v5698_v57 = vpop.f32.mrb[40].mxu1  ;;  %v6086_v8 = vpop.f32.mrb[124].mxu0 }
 0x6a4   : > { %v5792_v14 = vrot.slane %v5698_v57, 7  ;;  %v6180_v2 = vrot.slane %v6086_v8, 1  ;;  %v9699_v20 = vpop.f32.mrb[41].mxu1  ;;  %v9799_v48 = vpop.f32.mrb[125].mxu0 }
 0x6a5   : > { %v5701_v36 = vpop.f32.mrb[42].mxu1  ;;  %v6089_v22 = vpop.f32.mrb[126].mxu0 }
 0x6a6   : > { %v5825_v39 = vsel %vm1736_vm3, %v5791_v17, %v5792_v14  ;;  %v6213_v56 = vsel %vm2513_vm4, %v6179_v61, %v6180_v2  ;;  %v5793_v40 = vrot.slane %v5701_v36, 7  ;;  %v6181_v46 = vrot.slane %v6089_v22, 1  ;;  %v9700_v31 = vpop.f32.mrb[43].mxu1  ;;  %v9800_v53 = vpop.f32.mrb[127].mxu0  ;;  %v15471_v17 = vld [vmem:[#allocation24_spill] sm:$0xff] }
 0x6a7   : > { %v5874_v27 = vadd.f32 %v5825_v39, %v15469_v3  ;;  %v14306_v47 = vadd.f32 %v6213_v56, %v5873_v18 }
 0x6a8   : > { %v5824_v57 = vsel %vm1736_vm3, %v5792_v14, %v5793_v40  ;;  %v6212_v8 = vsel %vm2513_vm4, %v6180_v2, %v6181_v46  ;;  %9922 = vmatmul.mubr.bf16.gmra.mrb[148].mxu1 %v15433_v19  ;;  %10022 = vmatmul.mubr.bf16.gmra.mrb[232].mxu0 %v15433_v19 }
 0x6a9   : > { %15470 = vst [vmem:[#allocation23_spill] sm:$0xff] %v14306_v47  ;;  %v5875_v61 = vadd.f32 %v5824_v57, %v15471_v17  ;;  %v14315_v20 = vadd.f32 %v6212_v8, %v5874_v27  ;;  %9925 = vmatprep.mubr.msk.bf16.mxu1 %vm10682_vm0, %v15298_v59  ;;  %10025 = vmatprep.mubr.msk.bf16.mxu0 %vm10682_vm0, %v15298_v59  ;;  %v15473_v17 = vld [vmem:[#allocation25_spill] sm:$0xff] }
 0x6ab   : > { %15472 = vst [vmem:[#allocation24_spill] sm:$0xff] %v14315_v20  ;;  %v5706_v18 = vpop.f32.mrb[44].mxu1  ;;  %v6094_v48 = vpop.f32.mrb[128].mxu0 }
 0x6ac   : > { %v5794_v14 = vrot.slane %v5706_v18, 7  ;;  %v6182_v36 = vrot.slane %v6094_v48, 1  ;;  %v9703_v22 = vpop.f32.mrb[45].mxu1  ;;  %v9803_v2 = vpop.f32.mrb[129].mxu0 }
 0x6ad   : > { %v5709_v39 = vpop.f32.mrb[46].mxu1  ;;  %v6097_v56 = vpop.f32.mrb[130].mxu0  ;;  %v15475_v22 = vld [vmem:[#allocation17_spill] sm:$0xff] }
 0x6ae   : > { %v5823_v31 = vsel %vm1736_vm3, %v5793_v40, %v5794_v14  ;;  %v6211_v53 = vsel %vm2513_vm4, %v6181_v46, %v6182_v36  ;;  %v5795_v3 = vrot.slane %v5709_v39, 7  ;;  %v6183_v27 = vrot.slane %v6097_v56, 1  ;;  %v9704_v57 = vpop.f32.mrb[47].mxu1  ;;  %v9804_v8 = vpop.f32.mrb[131].mxu0  ;;  %v15476_v40 = vld [vmem:[#allocation15_spill] sm:$0xff] }
 0x6af   : > { %v5876_v20 = vadd.f32 %v5823_v31, %v15473_v17  ;;  %v14326_v47 = vadd.f32 %v6211_v53, %v5875_v61 }
 0x6b0   : > { %v5822_v18 = vsel %vm1736_vm3, %v5794_v14, %v5795_v3  ;;  %v6210_v48 = vsel %vm2513_vm4, %v6182_v36, %v6183_v27  ;;  %9926 = vmatmul.mubr.bf16.gmra.mrb[152].mxu1 %v15475_v22  ;;  %10026 = vmatmul.mubr.bf16.gmra.mrb[236].mxu0 %v15475_v22 }
 0x6b1   : > { %15474 = vst [vmem:[#allocation25_spill] sm:$0xff] %v14326_v47  ;;  %v5877_v46 = vadd.f32 %v5822_v18, %v15476_v40  ;;  %v14335_v2 = vadd.f32 %v6210_v48, %v5876_v20  ;;  %9929 = vmatprep.mubr.msk.bf16.mxu1 %vm10682_vm0, %v15298_v59  ;;  %10029 = vmatprep.mubr.msk.bf16.mxu0 %vm10682_vm0, %v15298_v59 }
 0x6b3   : > { %15477 = vst [vmem:[#allocation15_spill] sm:$0xff] %v14335_v2  ;;  %v5714_v61 = vpop.f32.mrb[48].mxu1  ;;  %v6102_v39 = vpop.f32.mrb[132].mxu0  ;;  %v15478_v2 = vld [vmem:[#allocation34_spill] sm:$0xff] }
 0x6b4   : > { %v5796_v14 = vrot.slane %v5714_v61, 7  ;;  %v6184_v56 = vrot.slane %v6102_v39, 1  ;;  %v9707_v31 = vpop.f32.mrb[49].mxu1  ;;  %v9807_v36 = vpop.f32.mrb[133].mxu0 }
 0x6b5   : > { %v5717_v53 = vpop.f32.mrb[50].mxu1  ;;  %v6105_v57 = vpop.f32.mrb[134].mxu0  ;;  %v15480_v31 = vld [vmem:[#allocation14_spill] sm:$0xff] }
 0x6b6   : > { %v5821_v8 = vsel %vm1736_vm3, %v5795_v3, %v5796_v14  ;;  %v6209_v20 = vsel %vm2513_vm4, %v6183_v27, %v6184_v56  ;;  %v5797_v17 = vrot.slane %v5717_v53, 7  ;;  %v6185_v18 = vrot.slane %v6105_v57, 1  ;;  %v9708_v48 = vpop.f32.mrb[51].mxu1  ;;  %v9808_v40 = vpop.f32.mrb[135].mxu0  ;;  %v15481_v3 = vld [vmem:[#allocation35_spill] sm:$0xff] }
 0x6b7   : > { %v5878_v47 = vadd.f32 %v5821_v8, %v15478_v2  ;;  %v14346_v22 = vadd.f32 %v6209_v20, %v5877_v46 }
 0x6b8   : > { %v5820_v61 = vsel %vm1736_vm3, %v5796_v14, %v5797_v17  ;;  %v6208_v39 = vsel %vm2513_vm4, %v6184_v56, %v6185_v18  ;;  %9930 = vmatmul.mubr.bf16.gmra.mrb[156].mxu1 %v15480_v31  ;;  %10030 = vmatmul.mubr.bf16.gmra.mrb[240].mxu0 %v15480_v31 }
 0x6b9   : > { %15479 = vst [vmem:[#allocation34_spill] sm:$0xff] %v14346_v22  ;;  %v5879_v27 = vadd.f32 %v5820_v61, %v15481_v3  ;;  %v14355_v36 = vadd.f32 %v6208_v39, %v5878_v47  ;;  %10049 = vmatprep.mubr.msk.bf16.mxu1 %vm10682_vm0, %v15298_v59 }
 0x6bb   : > { %15482 = vst [vmem:[#allocation35_spill] sm:$0xff] %v14355_v36  ;;  %v5722_v2 = vpop.f32.mrb[52].mxu1  ;;  %v6110_v46 = vpop.f32.mrb[136].mxu0  ;;  %v15483_v36 = vld [vmem:[#allocation44_spill] sm:$0xff] }
 0x6bc   : > { %v5798_v53 = vrot.slane %v5722_v2, 7  ;;  %v6186_v57 = vrot.slane %v6110_v46, 1  ;;  %v9711_v8 = vpop.f32.mrb[53].mxu1  ;;  %v9811_v14 = vpop.f32.mrb[137].mxu0 }
 0x6bd   : > { %v5725_v20 = vpop.f32.mrb[54].mxu1  ;;  %v6113_v48 = vpop.f32.mrb[138].mxu0  ;;  %v15484_v8 = vld [vmem:[#allocation26_spill] sm:$0xff] }
 0x6be   : > { %v5819_v56 = vsel %vm1736_vm3, %v5797_v17, %v5798_v53  ;;  %v6207_v40 = vsel %vm2513_vm4, %v6185_v18, %v6186_v57  ;;  %v5799_v61 = vrot.slane %v5725_v20, 7  ;;  %v6187_v47 = vrot.slane %v6113_v48, 1  ;;  %v9712_v39 = vpop.f32.mrb[55].mxu1  ;;  %v9812_v3 = vpop.f32.mrb[139].mxu0  ;;  %v15485_v17 = vld [vmem:[#allocation21_spill] sm:$0xff] }
 0x6bf   : > { %v5880_v22 = vadd.f32 %v5819_v56, %v15483_v36  ;;  %v14364_v31 = vadd.f32 %v6207_v40, %v5879_v27 }
 0x6c0   : > { %v5818_v2 = vsel %vm1736_vm3, %v5798_v53, %v5799_v61  ;;  %v6206_v46 = vsel %vm2513_vm4, %v6186_v57, %v6187_v47  ;;  %10050 = vmatmul.mubr.bf16.vlgmr.msra.gmra.mrb[160].mxu1 %v15484_v8  ;;  %v15487_v8 = vld [vmem:[#allocation19_spill] sm:$0xff] }
 0x6c1   : > { %v5881_v14 = vadd.f32 %v5818_v2, %v15485_v17  ;;  %v14372_v19 = vadd.f32 %v6206_v46, %v5880_v22  ;;  %10053 = vmatprep.mubr.msk.bf16.mxu1 %vm10682_vm0, %v15298_v59 }
 0x6c3   : > { %15486 = vst [vmem:[#allocation44_spill] sm:$0xff] %v14372_v19  ;;  %v5730_v18 = vpop.f32.mrb[56].mxu1  ;;  %v6118_v20 = vpop.f32.mrb[140].mxu0 }
 0x6c4   : > { %v5800_v36 = vrot.slane %v5730_v18, 7  ;;  %v6188_v27 = vrot.slane %v6118_v20, 1  ;;  %v9715_v48 = vpop.f32.mrb[57].mxu1  ;;  %v9815_v56 = vpop.f32.mrb[141].mxu0 }
 0x6c5   : > { %v5733_v40 = vpop.f32.mrb[58].mxu1  ;;  %v6121_v53 = vpop.f32.mrb[142].mxu0 }
 0x6c6   : > { %v5817_v57 = vsel %vm1736_vm3, %v5799_v61, %v5800_v36  ;;  %v6205_v39 = vsel %vm2513_vm4, %v6187_v47, %v6188_v27  ;;  %v5801_v3 = vrot.slane %v5733_v40, 7  ;;  %v6189_v22 = vrot.slane %v6121_v53, 1  ;;  %v9716_v2 = vpop.f32.mrb[59].mxu1  ;;  %v9816_v46 = vpop.f32.mrb[143].mxu0  ;;  %v15488_v61 = vld [vmem:[#allocation18_spill] sm:$0xff] }
 0x6c7   : > { %v5882_v17 = vadd.f32 %v5817_v57, %v15487_v8  ;;  %v14381_v19 = vadd.f32 %v6205_v39, %v5881_v14 }
 0x6c8   : > { %v5816_v18 = vsel %vm1736_vm3, %v5800_v36, %v5801_v3  ;;  %v6204_v20 = vsel %vm2513_vm4, %v6188_v27, %v6189_v22  ;;  %10054 = vmatmul.mubr.bf16.gmra.mrb[164].mxu1 %v15452_v30 }
 0x6c9   : > { %v5883_v48 = vadd.f32 %v5816_v18, %v15488_v61  ;;  %v14389_v56 = vadd.f32 %v6204_v20, %v5882_v17  ;;  %10057 = vmatprep.mubr.msk.bf16.mxu1 %vm10682_vm0, %v15298_v59  ;;  %v15490_v20 = vld [vmem:[#allocation32_spill] sm:$0xff] }
 0x6cb   : > { %15489 = vst [vmem:[#allocation26_spill] sm:$0xff] %v14389_v56  ;;  %v5738_v47 = vpop.f32.mrb[60].mxu1  ;;  %v6126_v40 = vpop.f32.mrb[144].mxu0 }
 0x6cc   : > { %v5802_v53 = vrot.slane %v5738_v47, 7  ;;  %v6190_v14 = vrot.slane %v6126_v40, 1  ;;  %v9719_v57 = vpop.f32.mrb[61].mxu1  ;;  %v9819_v39 = vpop.f32.mrb[145].mxu0 }
 0x6cd   : > { %v5741_v2 = vpop.f32.mrb[62].mxu1  ;;  %v6129_v36 = vpop.f32.mrb[146].mxu0 }
 0x6ce   : > { %v5815_v27 = vsel %vm1736_vm3, %v5801_v3, %v5802_v53  ;;  %v6203_v30 = vsel %vm2513_vm4, %v6189_v22, %v6190_v14  ;;  %v5803_v46 = vrot.slane %v5741_v2, 7  ;;  %v6191_v8 = vrot.slane %v6129_v36, 1  ;;  %v9720_v17 = vpop.f32.mrb[63].mxu1  ;;  %v9820_v18 = vpop.f32.mrb[147].mxu0  ;;  %v15491_v3 = vld [vmem:[#allocation27_spill] sm:$0xff] }
 0x6cf   : > { %v5884_v61 = vadd.f32 %v5815_v27, %v15490_v20  ;;  %v14398_v56 = vadd.f32 %v6203_v30, %v5883_v48 }
 0x6d0   : > { %v5814_v47 = vsel %vm1736_vm3, %v5802_v53, %v5803_v46  ;;  %v6202_v40 = vsel %vm2513_vm4, %v6190_v14, %v6191_v8  ;;  %10058 = vmatmul.mubr.bf16.gmra.mrb[168].mxu1 %v15456_v50 }
 0x6d1   : > { %v5885_v57 = vadd.f32 %v5814_v47, %v15491_v3  ;;  %v14406_v39 = vadd.f32 %v6202_v40, %v5884_v61  ;;  %10061 = vmatprep.mubr.msk.bf16.mxu1 %vm10682_vm0, %v15298_v59 }
 0x6d3   : > { %v5746_v22 = vpop.f32.mrb[64].mxu1  ;;  %v6134_v2 = vpop.f32.mrb[148].mxu0 }
 0x6d4   : > { %v5804_v36 = vrot.slane %v5746_v22, 7  ;;  %v6192_v48 = vrot.slane %v6134_v2, 1  ;;  %v9723_v27 = vpop.f32.mrb[65].mxu1  ;;  %v9823_v30 = vpop.f32.mrb[149].mxu0 }
 0x6d5   : > { %v5749_v17 = vpop.f32.mrb[66].mxu1  ;;  %v6137_v53 = vpop.f32.mrb[150].mxu0 }
 0x6d6   : > { %v5813_v14 = vsel %vm1736_vm3, %v5803_v46, %v5804_v36  ;;  %v6201_v50 = vsel %vm2513_vm4, %v6191_v8, %v6192_v48  ;;  %v5805_v18 = vrot.slane %v5749_v17, 7  ;;  %v6193_v20 = vrot.slane %v6137_v53, 1  ;;  %v9724_v61 = vpop.f32.mrb[67].mxu1  ;;  %v9824_v47 = vpop.f32.mrb[151].mxu0  ;;  %v15492_v46 = vld [vmem:[#allocation20_spill] sm:$0xff] }
 0x6d7   : > { %v5886_v40 = vadd.f32 %v5813_v14, %v13988_v26  ;;  %v14415_v3 = vadd.f32 %v6201_v50, %v5885_v57 }
 0x6d8   : > { %v5812_v22 = vsel %vm1736_vm3, %v5804_v36, %v5805_v18  ;;  %v6200_v2 = vsel %vm2513_vm4, %v6192_v48, %v6193_v20  ;;  %10062 = vmatmul.mubr.bf16.gmra.mrb[172].mxu1 %v15458_v55 }
 0x6d9   : > { %v5887_v27 = vadd.f32 %v5812_v22, %v15492_v46  ;;  %v14423_v30 = vadd.f32 %v6200_v2, %v5886_v40  ;;  %10065 = vmatprep.mubr.msk.bf16.mxu1 %vm10682_vm0, %v15298_v59 }
 0x6db   : > { %v5754_v8 = vpop.f32.mrb[68].mxu1  ;;  %v6142_v17 = vpop.f32.mrb[152].mxu0 }
 0x6dc   : > { %v5806_v26 = vrot.slane %v5754_v8, 7  ;;  %v6194_v57 = vrot.slane %v6142_v17, 1  ;;  %v9727_v53 = vpop.f32.mrb[69].mxu1  ;;  %v9827_v14 = vpop.f32.mrb[153].mxu0 }
 0x6dd   : > { %v5757_v50 = vpop.f32.mrb[70].mxu1  ;;  %v6145_v36 = vpop.f32.mrb[154].mxu0 }
 0x6de   : > { %v5811_v48 = vsel %vm1736_vm3, %v5805_v18, %v5806_v26  ;;  %v6199_v55 = vsel %vm2513_vm4, %v6193_v20, %v6194_v57  ;;  %v5807_v61 = vrot.slane %v5757_v50, 7  ;;  %v6195_v47 = vrot.slane %v6145_v36, 1  ;;  %v9728_v40 = vpop.f32.mrb[71].mxu1  ;;  %v9828_v22 = vpop.f32.mrb[155].mxu0 }
 0x6df   : > { %v5888_v2 = vadd.f32 %v5811_v48, %v14010_v34  ;;  %v14432_v46 = vadd.f32 %v6199_v55, %v5887_v27  ;;  %v15494_v40 = vrot.slane %v14062_v60, 1 }
 0x6e0   : > { %v5810_v8 = vsel %vm1736_vm3, %v5806_v26, %v5807_v61  ;;  %v6198_v17 = vsel %vm2513_vm4, %v6194_v57, %v6195_v47  ;;  %10066 = vmatmul.mubr.bf16.gmra.mrb[176].mxu1 %v13000_v58  ;;  %v15493_v58 = vrot.slane %v14060_v10, 7 }
 0x6e1   : > { %v5889_v18 = vadd.f32 %v5810_v8, %v14017_v4  ;;  %v14440_v53 = vadd.f32 %v6198_v17, %v5888_v2  ;;  %10069 = vmatprep.mubr.msk.bf16.mxu1 %vm10682_vm0, %v15298_v59  ;;  %v15495_v17 = vld [vmem:[#allocation28_spill] sm:$0xff] }
 0x6e3   : > { %v5762_v20 = vpop.f32.mrb[72].mxu1  ;;  %v6150_v14 = vpop.f32.mrb[156].mxu0 }
 0x6e4   : > { %v5808_v34 = vrot.slane %v5762_v20, 7  ;;  %v6196_v27 = vrot.slane %v6150_v14, 1  ;;  %v9731_v50 = vpop.f32.mrb[73].mxu1  ;;  %v9831_v36 = vpop.f32.mrb[157].mxu0  ;;  %v15496_v14 = vld [vmem:[#allocation12_spill] sm:$0xff] }
 0x6e5   : > { %v5765_v48 = vpop.f32.mrb[74].mxu1  ;;  %v6153_v26 = vpop.f32.mrb[158].mxu0  ;;  %v15497_v36 = vld [vmem:[#allocation13_spill] sm:$0xff] }
 0x6e6   : > { %v5809_v57 = vsel %vm1736_vm3, %v5807_v61, %v5808_v34  ;;  %v5849_v4 = vsel %vm1736_vm3, %v5808_v34, %v15493_v58  ;;  %v6197_v55 = vsel %vm2513_vm4, %v6195_v47, %v6196_v27  ;;  %v6237_v22 = vsel %vm2513_vm4, %v6196_v27, %v15494_v40  ;;  %v9732_v2 = vpop.f32.mrb[75].mxu1  ;;  %v9832_v8 = vpop.f32.mrb[159].mxu0  ;;  %v15498_v34 = vld [vmem:[#allocation22_spill] sm:$0xff] }
 0x6e7   : > { %v5850_v20 = vadd.f32 %v5849_v4, %v15495_v17  ;;  %v5890_v50 = vadd.f32 %v5809_v57, %v15496_v14  ;;  %v6277_v61 = vadd.f32 %v6197_v55, %v5889_v18  ;;  %v15500_v17 = vld [vmem:[#allocation29_spill] sm:$0xff] }
 0x6e8   : > { %10070 = vmatmul.mubr.bf16.gmra.mrb[180].mxu1 %v15497_v36 }
 0x6e9   : > { %v6278_v10 = vadd.f32 %v6237_v22, %v5890_v50  ;;  %10073 = vmatprep.mubr.msk.bf16.mxu1 %vm10682_vm0, %v15298_v59  ;;  %v6238_v47 = vadd.f32 %v15498_v34, %v5850_v20 }
 0x6eb   : > { %v14462_v48 = vpop.f32.mrb[76].mxu1  ;;  %v14464_v60 = vpop.f32.mrb[160].mxu0 }
 0x6ec   : > { %15499 = vst [vmem:[#allocation21_spill] sm:$0xff] %v14464_v60  ;;  %v9851_v27 = vpop.f32.mrb[77].mxu1  ;;  %v9951_v26 = vpop.f32.mrb[161].mxu0  ;;  %v15265_v4 = vrot.slane %v14462_v48, 1  ;;  %v15267_v22 = vrot.slane %v14464_v60, 2 }
 0x6ed   : > { %v6381_v58 = vpop.f32.mrb[78].mxu1  ;;  %v6769_v40 = vpop.f32.mrb[162].mxu0 }
 0x6ee   : > { %v6545_v57 = vrot.slane %v6381_v58, 1  ;;  %v6933_v18 = vrot.slane %v6769_v40, 2  ;;  %v9852_v55 = vpop.f32.mrb[79].mxu1  ;;  %v9952_v2 = vpop.f32.mrb[163].mxu0 }
 0x6f0   : > { %v6624_v8 = vsel %vm2513_vm4, %v15265_v4, %v6545_v57  ;;  %10074 = vmatmul.mubr.bf16.gmra.mrb[184].mxu1 %v15500_v17  ;;  %v7012_v14 = vsel %vm3290_vm5, %v15267_v22, %v6933_v18 }
 0x6f1   : > { %v6665_v20 = vadd.f32 %v6624_v8, %v6277_v61  ;;  %10077 = vmatprep.mubr.msk.bf16.mxu1 %vm10682_vm0, %v15298_v59 }
 0x6f3   : > { %v14479_v50 = vadd.f32 %v7012_v14, %v6665_v20  ;;  %v6386_v36 = vpop.f32.mrb[80].mxu1  ;;  %v6774_v34 = vpop.f32.mrb[164].mxu0 }
 0x6f4   : > { %v6546_v27 = vrot.slane %v6386_v36, 1  ;;  %v6934_v26 = vrot.slane %v6774_v34, 2  ;;  %v9855_v58 = vpop.f32.mrb[81].mxu1  ;;  %v9955_v40 = vpop.f32.mrb[165].mxu0 }
 0x6f5   : > { %v6389_v55 = vpop.f32.mrb[82].mxu1  ;;  %v6777_v2 = vpop.f32.mrb[166].mxu0 }
 0x6f6   : > { %v6623_v61 = vsel %vm2513_vm4, %v6545_v57, %v6546_v27  ;;  %v7011_v8 = vsel %vm3290_vm5, %v6933_v18, %v6934_v26  ;;  %v6547_v17 = vrot.slane %v6389_v55, 1  ;;  %v6935_v4 = vrot.slane %v6777_v2, 2  ;;  %v9856_v60 = vpop.f32.mrb[83].mxu1  ;;  %v9956_v22 = vpop.f32.mrb[167].mxu0 }
 0x6f7   : > { %v6666_v20 = vadd.f32 %v6623_v61, %v6278_v10 }
 0x6f8   : > { %v6622_v14 = vsel %vm2513_vm4, %v6546_v27, %v6547_v17  ;;  %v7010_v36 = vsel %vm3290_vm5, %v6934_v26, %v6935_v4  ;;  %10078 = vmatmul.mubr.bf16.gmra.mrb[188].mxu1 %v13052_v33 }
 0x6f9   : > { %v14490_v34 = vadd.f32 %v7011_v8, %v6666_v20  ;;  %v6626_v58 = vadd.f32 %v6622_v14, %v6238_v47  ;;  %10081 = vmatprep.mubr.msk.bf16.mxu1 %vm10682_vm0, %v15298_v59 }
 0x6fb   : > { %v14494_v57 = vadd.f32 %v7010_v36, %v6626_v58  ;;  %v6394_v18 = vpop.f32.mrb[84].mxu1  ;;  %v6782_v60 = vpop.f32.mrb[168].mxu0 }
 0x6fc   : > { %v6548_v22 = vrot.slane %v6394_v18, 1  ;;  %v6936_v10 = vrot.slane %v6782_v60, 2  ;;  %v9859_v40 = vpop.f32.mrb[85].mxu1  ;;  %v9959_v55 = vpop.f32.mrb[169].mxu0 }
 0x6fd   : > { %v6397_v27 = vpop.f32.mrb[86].mxu1  ;;  %v6785_v2 = vpop.f32.mrb[170].mxu0 }
 0x6fe   : > { %v6621_v26 = vsel %vm2513_vm4, %v6547_v17, %v6548_v22  ;;  %v7009_v33 = vsel %vm3290_vm5, %v6935_v4, %v6936_v10  ;;  %v6549_v47 = vrot.slane %v6397_v27, 1  ;;  %v6937_v61 = vrot.slane %v6785_v2, 2  ;;  %v9860_v8 = vpop.f32.mrb[87].mxu1  ;;  %v9960_v20 = vpop.f32.mrb[171].mxu0 }
 0x6ff   : > { %v6627_v14 = vadd.f32 %v6621_v26, %v14086_v43 }
 0x700   : > { %v6620_v36 = vsel %vm2513_vm4, %v6548_v22, %v6549_v47  ;;  %v7008_v58 = vsel %vm3290_vm5, %v6936_v10, %v6937_v61  ;;  %10082 = vmatmul.mubr.bf16.gmra.mrb[192].mxu1 %v13068_v6 }
 0x701   : > { %v14506_v18 = vadd.f32 %v7009_v33, %v6627_v14  ;;  %v6628_v17 = vadd.f32 %v6620_v36, %v14095_v51  ;;  %10085 = vmatprep.mubr.msk.bf16.mxu1 %vm10682_vm0, %v15298_v59 }
 0x703   : > { %v14511_v4 = vadd.f32 %v7008_v58, %v6628_v17  ;;  %v6402_v60 = vpop.f32.mrb[88].mxu1  ;;  %v6790_v40 = vpop.f32.mrb[172].mxu0 }
 0x704   : > { %v6550_v43 = vrot.slane %v6402_v60, 1  ;;  %v6938_v55 = vrot.slane %v6790_v40, 2  ;;  %v9863_v27 = vpop.f32.mrb[89].mxu1  ;;  %v9963_v22 = vpop.f32.mrb[173].mxu0 }
 0x705   : > { %v6405_v2 = vpop.f32.mrb[90].mxu1  ;;  %v6793_v26 = vpop.f32.mrb[174].mxu0 }
 0x706   : > { %v6619_v6 = vsel %vm2513_vm4, %v6549_v47, %v6550_v43  ;;  %v7007_v10 = vsel %vm3290_vm5, %v6937_v61, %v6938_v55  ;;  %v6551_v51 = vrot.slane %v6405_v2, 1  ;;  %v6939_v33 = vrot.slane %v6793_v26, 2  ;;  %v9864_v8 = vpop.f32.mrb[91].mxu1  ;;  %v9964_v20 = vpop.f32.mrb[175].mxu0 }
 0x707   : > { %v6629_v14 = vadd.f32 %v6619_v6, %v14106_v45 }
 0x708   : > { %v6618_v36 = vsel %vm2513_vm4, %v6550_v43, %v6551_v51  ;;  %v7006_v58 = vsel %vm3290_vm5, %v6938_v55, %v6939_v33  ;;  %10086 = vmatmul.mubr.bf16.gmra.mrb[196].mxu1 %v13084_v12 }
 0x709   : > { %v14523_v17 = vadd.f32 %v7007_v10, %v6629_v14  ;;  %v6630_v47 = vadd.f32 %v6618_v36, %v14115_v24  ;;  %10089 = vmatprep.mubr.msk.bf16.mxu1 %vm10682_vm0, %v15298_v59 }
 0x70b   : > { %v14528_v61 = vadd.f32 %v7006_v58, %v6630_v47  ;;  %v6410_v60 = vpop.f32.mrb[92].mxu1  ;;  %v6798_v40 = vpop.f32.mrb[176].mxu0 }
 0x70c   : > { %v6552_v45 = vrot.slane %v6410_v60, 1  ;;  %v6940_v27 = vrot.slane %v6798_v40, 2  ;;  %v9867_v22 = vpop.f32.mrb[93].mxu1  ;;  %v9967_v43 = vpop.f32.mrb[177].mxu0 }
 0x70d   : > { %v6413_v2 = vpop.f32.mrb[94].mxu1  ;;  %v6801_v26 = vpop.f32.mrb[178].mxu0 }
 0x70e   : > { %v6617_v12 = vsel %vm2513_vm4, %v6551_v51, %v6552_v45  ;;  %v7005_v55 = vsel %vm3290_vm5, %v6939_v33, %v6940_v27  ;;  %v6553_v24 = vrot.slane %v6413_v2, 1  ;;  %v6941_v6 = vrot.slane %v6801_v26, 2  ;;  %v9868_v10 = vpop.f32.mrb[95].mxu1  ;;  %v9968_v8 = vpop.f32.mrb[179].mxu0 }
 0x70f   : > { %v6631_v20 = vadd.f32 %v6617_v12, %v14126_v1 }
 0x710   : > { %v6616_v14 = vsel %vm2513_vm4, %v6552_v45, %v6553_v24  ;;  %v7004_v36 = vsel %vm3290_vm5, %v6940_v27, %v6941_v6  ;;  %10090 = vmatmul.mubr.bf16.gmra.mrb[200].mxu1 %v13100_v62 }
 0x711   : > { %v14540_v58 = vadd.f32 %v7005_v55, %v6631_v20  ;;  %v6632_v51 = vadd.f32 %v6616_v14, %v14135_v25  ;;  %10093 = vmatprep.mubr.msk.bf16.mxu1 %vm10682_vm0, %v15298_v59 }
 0x713   : > { %v14545_v33 = vadd.f32 %v7004_v36, %v6632_v51  ;;  %v6418_v47 = vpop.f32.mrb[96].mxu1  ;;  %v6806_v60 = vpop.f32.mrb[180].mxu0 }
 0x714   : > { %v6554_v1 = vrot.slane %v6418_v47, 1  ;;  %v6942_v40 = vrot.slane %v6806_v60, 2  ;;  %v9871_v22 = vpop.f32.mrb[97].mxu1  ;;  %v9971_v45 = vpop.f32.mrb[181].mxu0 }
 0x715   : > { %v6421_v43 = vpop.f32.mrb[98].mxu1  ;;  %v6809_v2 = vpop.f32.mrb[182].mxu0 }
 0x716   : > { %v6615_v62 = vsel %vm2513_vm4, %v6553_v24, %v6554_v1  ;;  %v7003_v27 = vsel %vm3290_vm5, %v6941_v6, %v6942_v40  ;;  %v6555_v25 = vrot.slane %v6421_v43, 1  ;;  %v6943_v26 = vrot.slane %v6809_v2, 2  ;;  %v9872_v12 = vpop.f32.mrb[99].mxu1  ;;  %v9972_v55 = vpop.f32.mrb[183].mxu0 }
 0x717   : > { %v6633_v10 = vadd.f32 %v6615_v62, %v14146_v44 }
 0x718   : > { %v6614_v8 = vsel %vm2513_vm4, %v6554_v1, %v6555_v25  ;;  %v7002_v20 = vsel %vm3290_vm5, %v6942_v40, %v6943_v26  ;;  %10094 = vmatmul.mubr.bf16.gmra.mrb[204].mxu1 %v13116_v23 }
 0x719   : > { %v14557_v14 = vadd.f32 %v7003_v27, %v6633_v10  ;;  %v6634_v24 = vadd.f32 %v6614_v8, %v14155_v63  ;;  %10097 = vmatprep.mubr.msk.bf16.mxu1 %vm10682_vm0, %v15298_v59 }
 0x71b   : > { %v14562_v6 = vadd.f32 %v7002_v20, %v6634_v24  ;;  %v6426_v36 = vpop.f32.mrb[100].mxu1  ;;  %v6814_v51 = vpop.f32.mrb[184].mxu0 }
 0x71c   : > { %v6556_v44 = vrot.slane %v6426_v36, 1  ;;  %v6944_v47 = vrot.slane %v6814_v51, 2  ;;  %v9875_v60 = vpop.f32.mrb[101].mxu1  ;;  %v9975_v1 = vpop.f32.mrb[185].mxu0 }
 0x71d   : > { %v6429_v22 = vpop.f32.mrb[102].mxu1  ;;  %v6817_v45 = vpop.f32.mrb[186].mxu0 }
 0x71e   : > { %v6613_v23 = vsel %vm2513_vm4, %v6555_v25, %v6556_v44  ;;  %v7001_v40 = vsel %vm3290_vm5, %v6943_v26, %v6944_v47  ;;  %v6557_v63 = vrot.slane %v6429_v22, 1  ;;  %v6945_v43 = vrot.slane %v6817_v45, 2  ;;  %v9876_v2 = vpop.f32.mrb[103].mxu1  ;;  %v9976_v62 = vpop.f32.mrb[187].mxu0 }
 0x71f   : > { %v6635_v27 = vadd.f32 %v6613_v23, %v14166_v7 }
 0x720   : > { %v6612_v12 = vsel %vm2513_vm4, %v6556_v44, %v6557_v63  ;;  %v7000_v55 = vsel %vm3290_vm5, %v6944_v47, %v6945_v43  ;;  %10098 = vmatmul.mubr.bf16.gmra.mrb[208].mxu1 %v13132_v52 }
 0x721   : > { %v14574_v10 = vadd.f32 %v7001_v40, %v6635_v27  ;;  %v6636_v25 = vadd.f32 %v6612_v12, %v14175_v41  ;;  %10101 = vmatprep.mubr.msk.bf16.mxu1 %vm10682_vm0, %v15298_v59 }
 0x723   : > { %v14579_v26 = vadd.f32 %v7000_v55, %v6636_v25  ;;  %v6434_v8 = vpop.f32.mrb[104].mxu1  ;;  %v6822_v20 = vpop.f32.mrb[188].mxu0 }
 0x724   : > { %v6558_v7 = vrot.slane %v6434_v8, 1  ;;  %v6946_v24 = vrot.slane %v6822_v20, 2  ;;  %v9879_v36 = vpop.f32.mrb[105].mxu1  ;;  %v9979_v51 = vpop.f32.mrb[189].mxu0 }
 0x725   : > { %v6437_v44 = vpop.f32.mrb[106].mxu1  ;;  %v6825_v60 = vpop.f32.mrb[190].mxu0 }
 0x726   : > { %v6611_v52 = vsel %vm2513_vm4, %v6557_v63, %v6558_v7  ;;  %v6999_v47 = vsel %vm3290_vm5, %v6945_v43, %v6946_v24  ;;  %v6559_v41 = vrot.slane %v6437_v44, 1  ;;  %v6947_v1 = vrot.slane %v6825_v60, 2  ;;  %v9880_v22 = vpop.f32.mrb[107].mxu1  ;;  %v9980_v45 = vpop.f32.mrb[191].mxu0 }
 0x727   : > { %v6637_v23 = vadd.f32 %v6611_v52, %v14186_v13 }
 0x728   : > { %v6610_v40 = vsel %vm2513_vm4, %v6558_v7, %v6559_v41  ;;  %v6998_v2 = vsel %vm3290_vm5, %v6946_v24, %v6947_v1  ;;  %10102 = vmatmul.mubr.bf16.gmra.mrb[212].mxu1 %v13148_v5 }
 0x729   : > { %v14591_v62 = vadd.f32 %v6999_v47, %v6637_v23  ;;  %v6638_v63 = vadd.f32 %v6610_v40, %v14195_v15  ;;  %10105 = vmatprep.mubr.msk.bf16.mxu1 %vm10682_vm0, %v15298_v59 }
 0x72b   : > { %v14596_v43 = vadd.f32 %v6998_v2, %v6638_v63  ;;  %v6442_v27 = vpop.f32.mrb[108].mxu1  ;;  %v6830_v12 = vpop.f32.mrb[192].mxu0 }
 0x72c   : > { %v6560_v13 = vrot.slane %v6442_v27, 1  ;;  %v6948_v55 = vrot.slane %v6830_v12, 2  ;;  %v9883_v25 = vpop.f32.mrb[109].mxu1  ;;  %v9983_v8 = vpop.f32.mrb[193].mxu0 }
 0x72d   : > { %v6445_v20 = vpop.f32.mrb[110].mxu1  ;;  %v6833_v7 = vpop.f32.mrb[194].mxu0 }
 0x72e   : > { %v6609_v5 = vsel %vm2513_vm4, %v6559_v41, %v6560_v13  ;;  %v6997_v24 = vsel %vm3290_vm5, %v6947_v1, %v6948_v55  ;;  %v6561_v15 = vrot.slane %v6445_v20, 1  ;;  %v6949_v36 = vrot.slane %v6833_v7, 2  ;;  %v9884_v51 = vpop.f32.mrb[111].mxu1  ;;  %v9984_v44 = vpop.f32.mrb[195].mxu0 }
 0x72f   : > { %v6639_v60 = vadd.f32 %v6609_v5, %v14206_v0 }
 0x730   : > { %v6608_v52 = vsel %vm2513_vm4, %v6560_v13, %v6561_v15  ;;  %v6996_v47 = vsel %vm3290_vm5, %v6948_v55, %v6949_v36  ;;  %10106 = vmatmul.mubr.bf16.gmra.mrb[216].mxu1 %v13164_v35 }
 0x731   : > { %v14608_v22 = vadd.f32 %v6997_v24, %v6639_v60  ;;  %v6640_v41 = vadd.f32 %v6608_v52, %v14215_v38  ;;  %10109 = vmatprep.mubr.msk.bf16.mxu1 %vm10682_vm0, %v15298_v59 }
 0x733   : > { %v14613_v1 = vadd.f32 %v6996_v47, %v6640_v41  ;;  %v6450_v45 = vpop.f32.mrb[112].mxu1  ;;  %v6838_v23 = vpop.f32.mrb[196].mxu0 }
 0x734   : > { %v6562_v0 = vrot.slane %v6450_v45, 1  ;;  %v6950_v40 = vrot.slane %v6838_v23, 2  ;;  %v9887_v2 = vpop.f32.mrb[113].mxu1  ;;  %v9987_v63 = vpop.f32.mrb[197].mxu0 }
 0x735   : > { %v6453_v27 = vpop.f32.mrb[114].mxu1  ;;  %v6841_v12 = vpop.f32.mrb[198].mxu0 }
 0x736   : > { %v6607_v35 = vsel %vm2513_vm4, %v6561_v15, %v6562_v0  ;;  %v6995_v13 = vsel %vm3290_vm5, %v6949_v36, %v6950_v40  ;;  %v6563_v38 = vrot.slane %v6453_v27, 1  ;;  %v6951_v55 = vrot.slane %v6841_v12, 2  ;;  %v9888_v25 = vpop.f32.mrb[115].mxu1  ;;  %v9988_v8 = vpop.f32.mrb[199].mxu0 }
 0x737   : > { %v6641_v20 = vadd.f32 %v6607_v35, %v14226_v42 }
 0x738   : > { %v6606_v7 = vsel %vm2513_vm4, %v6562_v0, %v6563_v38  ;;  %v6994_v5 = vsel %vm3290_vm5, %v6950_v40, %v6951_v55  ;;  %10110 = vmatmul.mubr.bf16.gmra.mrb[220].mxu1 %v13180_v29 }
 0x739   : > { %v14625_v24 = vadd.f32 %v6995_v13, %v6641_v20  ;;  %v6642_v15 = vadd.f32 %v6606_v7, %v14235_v37  ;;  %10113 = vmatprep.mubr.msk.bf16.mxu1 %vm10682_vm0, %v15298_v59 }
 0x73b   : > { %v14630_v36 = vadd.f32 %v6994_v5, %v6642_v15  ;;  %v6458_v51 = vpop.f32.mrb[116].mxu1  ;;  %v6846_v44 = vpop.f32.mrb[200].mxu0 }
 0x73c   : > { %v6564_v42 = vrot.slane %v6458_v51, 1  ;;  %v6952_v60 = vrot.slane %v6846_v44, 2  ;;  %v9891_v52 = vpop.f32.mrb[117].mxu1  ;;  %v9991_v47 = vpop.f32.mrb[201].mxu0 }
 0x73d   : > { %v6461_v41 = vpop.f32.mrb[118].mxu1  ;;  %v6849_v45 = vpop.f32.mrb[202].mxu0 }
 0x73e   : > { %v6605_v29 = vsel %vm2513_vm4, %v6563_v38, %v6564_v42  ;;  %v6993_v23 = vsel %vm3290_vm5, %v6951_v55, %v6952_v60  ;;  %v6565_v37 = vrot.slane %v6461_v41, 1  ;;  %v6953_v0 = vrot.slane %v6849_v45, 2  ;;  %v9892_v40 = vpop.f32.mrb[119].mxu1  ;;  %v9992_v2 = vpop.f32.mrb[203].mxu0 }
 0x73f   : > { %v6643_v63 = vadd.f32 %v6605_v29, %v14246_v16 }
 0x740   : > { %v6604_v27 = vsel %vm2513_vm4, %v6564_v42, %v6565_v37  ;;  %v6992_v12 = vsel %vm3290_vm5, %v6952_v60, %v6953_v0  ;;  %10114 = vmatmul.mubr.bf16.gmra.mrb[224].mxu1 %v13196_v49 }
 0x741   : > { %v14642_v35 = vadd.f32 %v6993_v23, %v6643_v63  ;;  %v6644_v13 = vadd.f32 %v6604_v27, %v14255_v32  ;;  %10117 = vmatprep.mubr.msk.bf16.mxu1 %vm10682_vm0, %v15298_v59 }
 0x743   : > { %v14647_v38 = vadd.f32 %v6992_v12, %v6644_v13  ;;  %v6466_v55 = vpop.f32.mrb[120].mxu1  ;;  %v6854_v25 = vpop.f32.mrb[204].mxu0 }
 0x744   : > { %v6566_v16 = vrot.slane %v6466_v55, 1  ;;  %v6954_v8 = vrot.slane %v6854_v25, 2  ;;  %v9895_v20 = vpop.f32.mrb[121].mxu1  ;;  %v9995_v7 = vpop.f32.mrb[205].mxu0 }
 0x745   : > { %v6469_v5 = vpop.f32.mrb[122].mxu1  ;;  %v6857_v15 = vpop.f32.mrb[206].mxu0 }
 0x746   : > { %v6603_v49 = vsel %vm2513_vm4, %v6565_v37, %v6566_v16  ;;  %v6991_v51 = vsel %vm3290_vm5, %v6953_v0, %v6954_v8  ;;  %v6567_v32 = vrot.slane %v6469_v5, 1  ;;  %v6955_v44 = vrot.slane %v6857_v15, 2  ;;  %v9896_v42 = vpop.f32.mrb[123].mxu1  ;;  %v9996_v60 = vpop.f32.mrb[207].mxu0  ;;  %v15501_v5 = vld [vmem:[#allocation16_spill] sm:$0xff] }
 0x747   : > { %v6645_v52 = vadd.f32 %v6603_v49, %v14266_v21  ;;  %v15502_v49 = vld [vmem:[#allocation33_spill] sm:$0xff] }
 0x748   : > { %v6602_v47 = vsel %vm2513_vm4, %v6566_v16, %v6567_v32  ;;  %v6990_v41 = vsel %vm3290_vm5, %v6954_v8, %v6955_v44  ;;  %10118 = vmatmul.mubr.bf16.gmra.mrb[228].mxu1 %v13217_v54 }
 0x749   : > { %v14659_v45 = vadd.f32 %v6991_v51, %v6645_v52  ;;  %v6646_v29 = vadd.f32 %v6602_v47, %v14275_v28  ;;  %10121 = vmatprep.mubr.msk.bf16.mxu1 %vm10682_vm0, %v15298_v59 }
 0x74b   : > { %v14664_v23 = vadd.f32 %v6990_v41, %v6646_v29  ;;  %v6474_v37 = vpop.f32.mrb[124].mxu1  ;;  %v6862_v0 = vpop.f32.mrb[208].mxu0 }
 0x74c   : > { %v6568_v21 = vrot.slane %v6474_v37, 1  ;;  %v6956_v40 = vrot.slane %v6862_v0, 2  ;;  %v9899_v2 = vpop.f32.mrb[125].mxu1  ;;  %v9999_v63 = vpop.f32.mrb[209].mxu0 }
 0x74d   : > { %v6477_v27 = vpop.f32.mrb[126].mxu1  ;;  %v6865_v12 = vpop.f32.mrb[210].mxu0 }
 0x74e   : > { %v6601_v54 = vsel %vm2513_vm4, %v6567_v32, %v6568_v21  ;;  %v6989_v13 = vsel %vm3290_vm5, %v6955_v44, %v6956_v40  ;;  %v6569_v28 = vrot.slane %v6477_v27, 1  ;;  %v6957_v55 = vrot.slane %v6865_v12, 2  ;;  %v9900_v25 = vpop.f32.mrb[127].mxu1  ;;  %v10000_v16 = vpop.f32.mrb[211].mxu0  ;;  %v15503_v27 = vld [vmem:[#allocation23_spill] sm:$0xff] }
 0x74f   : > { %v6647_v8 = vadd.f32 %v6601_v54, %v14286_v11  ;;  %v15504_v25 = vld [vmem:[#allocation17_spill] sm:$0xff] }
 0x750   : > { %v6600_v20 = vsel %vm2513_vm4, %v6568_v21, %v6569_v28  ;;  %v6988_v7 = vsel %vm3290_vm5, %v6956_v40, %v6957_v55  ;;  %10122 = vmatmul.mubr.bf16.gmra.mrb[232].mxu1 %v15501_v5 }
 0x751   : > { %v14676_v15 = vadd.f32 %v6989_v13, %v6647_v8  ;;  %v6648_v51 = vadd.f32 %v6600_v20, %v15502_v49  ;;  %10125 = vmatprep.mubr.msk.bf16.mxu1 %vm10682_vm0, %v15298_v59 }
 0x753   : > { %v14681_v32 = vadd.f32 %v6988_v7, %v6648_v51  ;;  %v6482_v44 = vpop.f32.mrb[128].mxu1  ;;  %v6870_v42 = vpop.f32.mrb[212].mxu0 }
 0x754   : > { %v6570_v11 = vrot.slane %v6482_v44, 1  ;;  %v6958_v60 = vrot.slane %v6870_v42, 2  ;;  %v9903_v52 = vpop.f32.mrb[129].mxu1  ;;  %v10003_v47 = vpop.f32.mrb[213].mxu0 }
 0x755   : > { %v6485_v41 = vpop.f32.mrb[130].mxu1  ;;  %v6873_v29 = vpop.f32.mrb[214].mxu0 }
 0x756   : > { %v6599_v37 = vsel %vm2513_vm4, %v6569_v28, %v6570_v11  ;;  %v6987_v0 = vsel %vm3290_vm5, %v6957_v55, %v6958_v60  ;;  %v6571_v21 = vrot.slane %v6485_v41, 1  ;;  %v6959_v40 = vrot.slane %v6873_v29, 2  ;;  %v9904_v2 = vpop.f32.mrb[131].mxu1  ;;  %v10004_v63 = vpop.f32.mrb[215].mxu0  ;;  %v15505_v28 = vld [vmem:[#allocation24_spill] sm:$0xff] }
 0x757   : > { %v6649_v12 = vadd.f32 %v6599_v37, %v15503_v27  ;;  %v15506_v37 = vld [vmem:[#allocation25_spill] sm:$0xff]  ;;  %v15507_v27 = vld [vmem:[#allocation14_spill] sm:$0xff] }
 0x758   : > { %v6598_v54 = vsel %vm2513_vm4, %v6570_v11, %v6571_v21  ;;  %v6986_v13 = vsel %vm3290_vm5, %v6958_v60, %v6959_v40  ;;  %10126 = vmatmul.mubr.bf16.gmra.mrb[236].mxu1 %v15504_v25 }
 0x759   : > { %v14693_v16 = vadd.f32 %v6987_v0, %v6649_v12  ;;  %v6650_v8 = vadd.f32 %v6598_v54, %v15505_v28  ;;  %10129 = vmatprep.mubr.msk.bf16.mxu1 %vm10682_vm0, %v15298_v59 }
 0x75b   : > { %v14698_v55 = vadd.f32 %v6986_v13, %v6650_v8  ;;  %v6490_v20 = vpop.f32.mrb[132].mxu1  ;;  %v6878_v7 = vpop.f32.mrb[216].mxu0 }
 0x75c   : > { %v6572_v5 = vrot.slane %v6490_v20, 1  ;;  %v6960_v49 = vrot.slane %v6878_v7, 2  ;;  %v9907_v51 = vpop.f32.mrb[133].mxu1  ;;  %v10007_v44 = vpop.f32.mrb[217].mxu0 }
 0x75d   : > { %v6493_v42 = vpop.f32.mrb[134].mxu1  ;;  %v6881_v11 = vpop.f32.mrb[218].mxu0 }
 0x75e   : > { %v6597_v60 = vsel %vm2513_vm4, %v6571_v21, %v6572_v5  ;;  %v6985_v52 = vsel %vm3290_vm5, %v6959_v40, %v6960_v49  ;;  %v6573_v47 = vrot.slane %v6493_v42, 1  ;;  %v6961_v41 = vrot.slane %v6881_v11, 2  ;;  %v9908_v29 = vpop.f32.mrb[135].mxu1  ;;  %v10008_v59 = vpop.f32.mrb[219].mxu0  ;;  %v15508_v21 = vld [vmem:[#allocation15_spill] sm:$0xff] }
 0x75f   : > { %v6651_v0 = vadd.f32 %v6597_v60, %v15506_v37  ;;  %v15509_v29 = vld [vmem:[#allocation34_spill] sm:$0xff] }
 0x760   : > { %v6596_v2 = vsel %vm2513_vm4, %v6572_v5, %v6573_v47  ;;  %v6984_v63 = vsel %vm3290_vm5, %v6960_v49, %v6961_v41  ;;  %10130 = vmatmul.mubr.bf16.gmra.mrb[240].mxu1 %v15507_v27 }
 0x761   : > { %v14710_v12 = vadd.f32 %v6985_v52, %v6651_v0  ;;  %v6652_v54 = vadd.f32 %v6596_v2, %v15508_v21 }
 0x763   : > { %v14713_v13 = vadd.f32 %v6984_v63, %v6652_v54  ;;  %v6498_v40 = vpop.f32.mrb[136].mxu1  ;;  %v6886_v25 = vpop.f32.mrb[220].mxu0  ;;  %v15510_v63 = vld [vmem:[#allocation35_spill] sm:$0xff] }
 0x764   : > { %v6574_v28 = vrot.slane %v6498_v40, 1  ;;  %v6962_v8 = vrot.slane %v6886_v25, 2  ;;  %v9911_v20 = vpop.f32.mrb[137].mxu1  ;;  %v10011_v7 = vpop.f32.mrb[221].mxu0 }
 0x765   : > { %v6501_v51 = vpop.f32.mrb[138].mxu1  ;;  %v6889_v44 = vpop.f32.mrb[222].mxu0 }
 0x766   : > { %v6595_v5 = vsel %vm2513_vm4, %v6573_v47, %v6574_v28  ;;  %v6983_v49 = vsel %vm3290_vm5, %v6961_v41, %v6962_v8  ;;  %v6575_v42 = vrot.slane %v6501_v51, 1  ;;  %v6963_v11 = vrot.slane %v6889_v44, 2  ;;  %v9912_v60 = vpop.f32.mrb[139].mxu1  ;;  %v10012_v52 = vpop.f32.mrb[223].mxu0 }
 0x767   : > { %v6653_v59 = vadd.f32 %v6595_v5, %v15509_v29 }
 0x768   : > { %v6594_v37 = vsel %vm2513_vm4, %v6574_v28, %v6575_v42  ;;  %v6982_v0 = vsel %vm3290_vm5, %v6962_v8, %v6963_v11 }
 0x769   : > { %v14724_v2 = vadd.f32 %v6983_v49, %v6653_v59  ;;  %v6654_v27 = vadd.f32 %v6594_v37, %v15510_v63 }
 0x76b   : > { %v14727_v47 = vadd.f32 %v6982_v0, %v6654_v27  ;;  %v6506_v21 = vpop.f32.mrb[140].mxu1  ;;  %v6894_v41 = vpop.f32.mrb[224].mxu0  ;;  %v15511_v0 = vld [vmem:[#allocation44_spill] sm:$0xff] }
 0x76c   : > { %v6576_v54 = vrot.slane %v6506_v21, 1  ;;  %v6964_v40 = vrot.slane %v6894_v41, 2  ;;  %v9915_v25 = vpop.f32.mrb[141].mxu1  ;;  %v10015_v20 = vpop.f32.mrb[225].mxu0 }
 0x76d   : > { %v6509_v7 = vpop.f32.mrb[142].mxu1  ;;  %v6897_v51 = vpop.f32.mrb[226].mxu0 }
 0x76e   : > { %v6593_v28 = vsel %vm2513_vm4, %v6575_v42, %v6576_v54  ;;  %v6981_v8 = vsel %vm3290_vm5, %v6963_v11, %v6964_v40  ;;  %v6577_v44 = vrot.slane %v6509_v7, 1  ;;  %v6965_v5 = vrot.slane %v6897_v51, 2  ;;  %v9916_v49 = vpop.f32.mrb[143].mxu1  ;;  %v10016_v60 = vpop.f32.mrb[227].mxu0 }
 0x76f   : > { %v6655_v52 = vadd.f32 %v6593_v28, %v14364_v31 }
 0x770   : > { %v6592_v29 = vsel %vm2513_vm4, %v6576_v54, %v6577_v44  ;;  %v6980_v59 = vsel %vm3290_vm5, %v6964_v40, %v6965_v5 }
 0x771   : > { %v14738_v37 = vadd.f32 %v6981_v8, %v6655_v52  ;;  %v6656_v63 = vadd.f32 %v6592_v29, %v15511_v0  ;;  %v15512_v0 = vld [vmem:[#allocation26_spill] sm:$0xff] }
 0x773   : > { %v14741_v42 = vadd.f32 %v6980_v59, %v6656_v63  ;;  %v6514_v27 = vpop.f32.mrb[144].mxu1  ;;  %v6902_v11 = vpop.f32.mrb[228].mxu0 }
 0x774   : > { %v6578_v21 = vrot.slane %v6514_v27, 1  ;;  %v6966_v41 = vrot.slane %v6902_v11, 2  ;;  %v9919_v25 = vpop.f32.mrb[145].mxu1  ;;  %v10019_v20 = vpop.f32.mrb[229].mxu0 }
 0x775   : > { %v6517_v7 = vpop.f32.mrb[146].mxu1  ;;  %v6905_v31 = vpop.f32.mrb[230].mxu0 }
 0x776   : > { %v6591_v54 = vsel %vm2513_vm4, %v6577_v44, %v6578_v21  ;;  %v6979_v40 = vsel %vm3290_vm5, %v6965_v5, %v6966_v41  ;;  %v6579_v51 = vrot.slane %v6517_v7, 1  ;;  %v6967_v28 = vrot.slane %v6905_v31, 2  ;;  %v9920_v8 = vpop.f32.mrb[147].mxu1  ;;  %v10020_v49 = vpop.f32.mrb[231].mxu0 }
 0x777   : > { %v6657_v60 = vadd.f32 %v6591_v54, %v14381_v19 }
 0x778   : > { %v6590_v52 = vsel %vm2513_vm4, %v6578_v21, %v6579_v51  ;;  %v6978_v29 = vsel %vm3290_vm5, %v6966_v41, %v6967_v28 }
 0x779   : > { %v14752_v59 = vadd.f32 %v6979_v40, %v6657_v60  ;;  %v6658_v63 = vadd.f32 %v6590_v52, %v15512_v0 }
 0x77b   : > { %v14755_v44 = vadd.f32 %v6978_v29, %v6658_v63  ;;  %v6522_v27 = vpop.f32.mrb[148].mxu1  ;;  %v6910_v5 = vpop.f32.mrb[232].mxu0 }
 0x77c   : > { %v6580_v11 = vrot.slane %v6522_v27, 1  ;;  %v6968_v25 = vrot.slane %v6910_v5, 2  ;;  %v9923_v20 = vpop.f32.mrb[149].mxu1  ;;  %v10023_v7 = vpop.f32.mrb[233].mxu0 }
 0x77d   : > { %v6525_v31 = vpop.f32.mrb[150].mxu1  ;;  %v6913_v19 = vpop.f32.mrb[234].mxu0 }
 0x77e   : > { %v6589_v21 = vsel %vm2513_vm4, %v6579_v51, %v6580_v11  ;;  %v6977_v41 = vsel %vm3290_vm5, %v6967_v28, %v6968_v25  ;;  %v6581_v54 = vrot.slane %v6525_v31, 1  ;;  %v6969_v40 = vrot.slane %v6913_v19, 2  ;;  %v9924_v8 = vpop.f32.mrb[151].mxu1  ;;  %v10024_v49 = vpop.f32.mrb[235].mxu0 }
 0x77f   : > { %v6659_v60 = vadd.f32 %v6589_v21, %v14398_v56 }
 0x780   : > { %v6588_v52 = vsel %vm2513_vm4, %v6580_v11, %v6581_v54  ;;  %v6976_v29 = vsel %vm3290_vm5, %v6968_v25, %v6969_v40 }
 0x781   : > { %v14766_v0 = vadd.f32 %v6977_v41, %v6659_v60  ;;  %v6660_v63 = vadd.f32 %v6588_v52, %v14406_v39 }
 0x783   : > { %v14769_v51 = vadd.f32 %v6976_v29, %v6660_v63  ;;  %v6530_v27 = vpop.f32.mrb[152].mxu1  ;;  %v6918_v28 = vpop.f32.mrb[236].mxu0 }
 0x784   : > { %v6582_v5 = vrot.slane %v6530_v27, 1  ;;  %v6970_v20 = vrot.slane %v6918_v28, 2  ;;  %v9927_v7 = vpop.f32.mrb[153].mxu1  ;;  %v10027_v31 = vpop.f32.mrb[237].mxu0 }
 0x785   : > { %v6533_v19 = vpop.f32.mrb[154].mxu1  ;;  %v6921_v56 = vpop.f32.mrb[238].mxu0 }
 0x786   : > { %v6587_v11 = vsel %vm2513_vm4, %v6581_v54, %v6582_v5  ;;  %v6975_v25 = vsel %vm3290_vm5, %v6969_v40, %v6970_v20  ;;  %v6583_v21 = vrot.slane %v6533_v19, 1  ;;  %v6971_v41 = vrot.slane %v6921_v56, 2  ;;  %v9928_v8 = vpop.f32.mrb[155].mxu1  ;;  %v10028_v39 = vpop.f32.mrb[239].mxu0 }
 0x787   : > { %v6661_v49 = vadd.f32 %v6587_v11, %v14415_v3 }
 0x788   : > { %v6586_v60 = vsel %vm2513_vm4, %v6582_v5, %v6583_v21  ;;  %v6974_v52 = vsel %vm3290_vm5, %v6970_v20, %v6971_v41  ;;  %v15513_v20 = vrot.slane %v14462_v48, 1 }
 0x789   : > { %v14780_v29 = vadd.f32 %v6975_v25, %v6661_v49  ;;  %v6662_v63 = vadd.f32 %v6586_v60, %v14423_v30  ;;  %v15514_v60 = vld [vmem:[#allocation21_spill] sm:$0xff] }
 0x78b   : > { %v14783_v54 = vadd.f32 %v6974_v52, %v6662_v63  ;;  %v6538_v27 = vpop.f32.mrb[156].mxu1  ;;  %v6926_v40 = vpop.f32.mrb[240].mxu0  ;;  %v15515_v52 = vrot.slane %v15514_v60, 2  ;;  %v15518_v60 = vld [vmem:[#allocation31_spill] sm:$0xff] }
 0x78c   : > { %v6584_v28 = vrot.slane %v6538_v27, 1  ;;  %v6972_v7 = vrot.slane %v6926_v40, 2  ;;  %v9931_v31 = vpop.f32.mrb[157].mxu1  ;;  %v10031_v19 = vpop.f32.mrb[241].mxu0 }
 0x78d   : > { %v6541_v56 = vpop.f32.mrb[158].mxu1  ;;  %v6929_v3 = vpop.f32.mrb[242].mxu0  ;;  %v15516_v19 = vld [vmem:[#allocation53_spill] sm:$0xff] }
 0x78e   : > { %v6585_v5 = vsel %vm2513_vm4, %v6583_v21, %v6584_v28  ;;  %v6625_v11 = vsel %vm2513_vm4, %v6584_v28, %v15513_v20  ;;  %v6973_v30 = vsel %vm3290_vm5, %v6971_v41, %v6972_v7  ;;  %v9932_v25 = vpop.f32.mrb[159].mxu1  ;;  %v10032_v8 = vpop.f32.mrb[243].mxu0  ;;  %v7013_v63 = vsel %vm3290_vm5, %v6972_v7, %v15515_v52 }
 0x78f   : > { %v6663_v39 = vadd.f32 %v6585_v5, %v14432_v46  ;;  %v6664_v49 = vadd.f32 %v6625_v11, %v14440_v53  ;;  %v15517_v56 = vunpack.c.h.bf16 %v15516_v19  ;;  %v15519_v52 = vunpack.c.l.bf16 %v15518_v60 }
 0x790   : > { %v15577_v9 = vunpack.c.l.bf16 %v15516_v19 }
 0x791   : > { %v14799_v21 = vadd.f32 %v6973_v30, %v6663_v39  ;;  %v14801_v48 = vadd.f32 %v7013_v63, %v6664_v49 }
 0x793   : > { %v14803_v27 = vpop.f32.mrb[160].mxu1 }
 0x794   : > { %v10051_v40 = vpop.f32.mrb[161].mxu1  ;;  %v7320_v41 = vrot.slane %v14803_v27, 3 }
 0x795   : > { %v7157_v28 = vpop.f32.mrb[162].mxu1 }
 0x796   : > { %v7321_v31 = vrot.slane %v7157_v28, 3  ;;  %v10052_v46 = vpop.f32.mrb[163].mxu1  ;;  %v15520_v28 = vld [vmem:[#allocation37_spill] sm:$0xff] }
 0x797   : > { %v15521_v46 = vunpack.c.l.bf16 %v15520_v28 }
 0x798   : > { %v7400_v53 = vsel %vm3679_vm6, %v7320_v41, %v7321_v31 }
 0x799   : > { %v7441_v7 = vadd.f32 %v7400_v53, %v14479_v50 }
 0x79b   : > { %v7482_v3 = vadd.f32 %v7441_v7, %v15517_v56  ;;  %v7162_v5 = vpop.f32.mrb[164].mxu1 }
 0x79c   : > { %v7322_v20 = vrot.slane %v7162_v5, 3  ;;  %v10055_v11 = vpop.f32.mrb[165].mxu1 }
 0x79d   : > { %7523 = vst [vmem:[%s14814_s20 + $0x138] sm:$0xff] %v7482_v3  ;;  %v7165_v30 = vpop.f32.mrb[166].mxu1 }
 0x79e   : > { %v7399_v25 = vsel %vm3679_vm6, %v7321_v31, %v7322_v20  ;;  %v7323_v8 = vrot.slane %v7165_v30, 3  ;;  %v10056_v39 = vpop.f32.mrb[167].mxu1  ;;  %v15522_v30 = vunpack.c.h.bf16 %v15520_v28 }
 0x79f   : > { %v7442_v50 = vadd.f32 %v7399_v25, %v14490_v34 }
 0x7a0   : > { %v7398_v49 = vsel %vm3679_vm6, %v7322_v20, %v7323_v8 }
 0x7a1   : > { %v7483_v63 = vadd.f32 %v7442_v50, %v15519_v52  ;;  %v7402_v40 = vadd.f32 %v7398_v49, %v14494_v57  ;;  %v15523_v50 = vld [vmem:[#allocation39_spill] sm:$0xff] }
 0x7a2   : > { %v15524_v49 = vunpack.c.l.bf16 %v15523_v50 }
 0x7a3   : > { %7524 = vst [vmem:[%s14814_s20 + $0x140] sm:$0xff] %v7483_v63  ;;  %v7443_v53 = vadd.f32 %v7402_v40, %v15521_v46  ;;  %v7170_v7 = vpop.f32.mrb[168].mxu1 }
 0x7a4   : > { %v7324_v56 = vrot.slane %v7170_v7, 3  ;;  %v10059_v31 = vpop.f32.mrb[169].mxu1  ;;  %v15525_v7 = vunpack.c.h.bf16 %v15523_v50 }
 0x7a5   : > { %7484 = vst [vmem:[%s14814_s20] sm:$0xff] %v7443_v53  ;;  %v7173_v3 = vpop.f32.mrb[170].mxu1 }
 0x7a6   : > { %v7397_v34 = vsel %vm3679_vm6, %v7323_v8, %v7324_v56  ;;  %v7325_v5 = vrot.slane %v7173_v3, 3  ;;  %v10060_v20 = vpop.f32.mrb[171].mxu1  ;;  %v15526_v3 = vld [vmem:[#allocation30_spill] sm:$0xff] }
 0x7a7   : > { %v7403_v11 = vadd.f32 %v7397_v34, %v14506_v18  ;;  %v15527_v34 = vunpack.c.l.bf16 %v15526_v3 }
 0x7a8   : > { %v7396_v57 = vsel %vm3679_vm6, %v7324_v56, %v7325_v5 }
 0x7a9   : > { %v7444_v25 = vadd.f32 %v7403_v11, %v15522_v30  ;;  %v7404_v39 = vadd.f32 %v7396_v57, %v14511_v4 }
 0x7ab   : > { %7485 = vst [vmem:[%s14814_s20 + $0x8] sm:$0xff] %v7444_v25  ;;  %v7445_v60 = vadd.f32 %v7404_v39, %v15524_v49  ;;  %v7178_v52 = vpop.f32.mrb[172].mxu1  ;;  %v15528_v49 = vunpack.c.h.bf16 %v15526_v3 }
 0x7ac   : > { %v7326_v63 = vrot.slane %v7178_v52, 3  ;;  %v10063_v8 = vpop.f32.mrb[173].mxu1 }
 0x7ad   : > { %7486 = vst [vmem:[%s14814_s20 + $0x10] sm:$0xff] %v7445_v60  ;;  %v7181_v40 = vpop.f32.mrb[174].mxu1 }
 0x7ae   : > { %v7395_v18 = vsel %vm3679_vm6, %v7325_v5, %v7326_v63  ;;  %v7327_v46 = vrot.slane %v7181_v40, 3  ;;  %v10064_v53 = vpop.f32.mrb[175].mxu1 }
 0x7af   : > { %v7405_v28 = vadd.f32 %v7395_v18, %v14523_v17 }
 0x7b0   : > { %v7394_v4 = vsel %vm3679_vm6, %v7326_v63, %v7327_v46  ;;  %v15529_v63 = vld [vmem:[#allocation36_spill] sm:$0xff] }
 0x7b1   : > { %v7446_v56 = vadd.f32 %v7405_v28, %v15525_v7  ;;  %v7406_v31 = vadd.f32 %v7394_v4, %v14528_v61  ;;  %v15530_v8 = vunpack.c.l.bf16 %v15529_v63 }
 0x7b3   : > { %7487 = vst [vmem:[%s14814_s20 + $0x18] sm:$0xff] %v7446_v56  ;;  %v7447_v20 = vadd.f32 %v7406_v31, %v15527_v34  ;;  %v7186_v11 = vpop.f32.mrb[176].mxu1  ;;  %v15531_v31 = vunpack.c.h.bf16 %v15529_v63  ;;  %v15535_v63 = vld [vmem:[#allocation38_spill] sm:$0xff] }
 0x7b4   : > { %v7328_v57 = vrot.slane %v7186_v11, 3  ;;  %v10067_v5 = vpop.f32.mrb[177].mxu1 }
 0x7b5   : > { %7488 = vst [vmem:[%s14814_s20 + $0x20] sm:$0xff] %v7447_v20  ;;  %v7189_v30 = vpop.f32.mrb[178].mxu1  ;;  %v15532_v20 = vld [vmem:[#allocation41_spill] sm:$0xff] }
 0x7b6   : > { %v7393_v17 = vsel %vm3679_vm6, %v7327_v46, %v7328_v57  ;;  %v7329_v25 = vrot.slane %v7189_v30, 3  ;;  %v10068_v39 = vpop.f32.mrb[179].mxu1  ;;  %v15533_v11 = vunpack.c.l.bf16 %v15532_v20 }
 0x7b7   : > { %v7407_v50 = vadd.f32 %v7393_v17, %v14540_v58 }
 0x7b8   : > { %v7392_v61 = vsel %vm3679_vm6, %v7328_v57, %v7329_v25 }
 0x7b9   : > { %v7448_v60 = vadd.f32 %v7407_v50, %v15528_v49  ;;  %v7408_v52 = vadd.f32 %v7392_v61, %v14545_v33  ;;  %v15534_v49 = vunpack.c.h.bf16 %v15532_v20 }
 0x7bb   : > { %7489 = vst [vmem:[%s14814_s20 + $0x28] sm:$0xff] %v7448_v60  ;;  %v7449_v40 = vadd.f32 %v7408_v52, %v15530_v8  ;;  %v7194_v18 = vpop.f32.mrb[180].mxu1  ;;  %v15536_v8 = vunpack.c.l.bf16 %v15535_v63 }
 0x7bc   : > { %v7330_v53 = vrot.slane %v7194_v18, 3  ;;  %v10071_v46 = vpop.f32.mrb[181].mxu1 }
 0x7bd   : > { %7490 = vst [vmem:[%s14814_s20 + $0x30] sm:$0xff] %v7449_v40  ;;  %v7197_v28 = vpop.f32.mrb[182].mxu1 }
 0x7be   : > { %v7391_v58 = vsel %vm3679_vm6, %v7329_v25, %v7330_v53  ;;  %v7331_v4 = vrot.slane %v7197_v28, 3  ;;  %v10072_v7 = vpop.f32.mrb[183].mxu1 }
 0x7bf   : > { %v7409_v56 = vadd.f32 %v7391_v58, %v14557_v14 }
 0x7c0   : > { %v7390_v33 = vsel %vm3679_vm6, %v7330_v53, %v7331_v4 }
 0x7c1   : > { %v7450_v3 = vadd.f32 %v7409_v56, %v15531_v31  ;;  %v7410_v34 = vadd.f32 %v7390_v33, %v14562_v6  ;;  %v15537_v56 = vunpack.c.h.bf16 %v15535_v63 }
 0x7c3   : > { %7491 = vst [vmem:[%s14814_s20 + $0x38] sm:$0xff] %v7450_v3  ;;  %v7451_v57 = vadd.f32 %v7410_v34, %v15533_v11  ;;  %v7202_v5 = vpop.f32.mrb[184].mxu1  ;;  %v15538_v3 = vld [vmem:[#allocation43_spill] sm:$0xff] }
 0x7c4   : > { %v7332_v30 = vrot.slane %v7202_v5, 3  ;;  %v10075_v17 = vpop.f32.mrb[185].mxu1  ;;  %v15539_v34 = vunpack.c.l.bf16 %v15538_v3 }
 0x7c5   : > { %7492 = vst [vmem:[%s14814_s20 + $0x40] sm:$0xff] %v7451_v57  ;;  %v7205_v25 = vpop.f32.mrb[186].mxu1 }
 0x7c6   : > { %v7389_v14 = vsel %vm3679_vm6, %v7331_v4, %v7332_v30  ;;  %v7333_v39 = vrot.slane %v7205_v25, 3  ;;  %v10076_v50 = vpop.f32.mrb[187].mxu1 }
 0x7c7   : > { %v7411_v61 = vadd.f32 %v7389_v14, %v14574_v10 }
 0x7c8   : > { %v7388_v6 = vsel %vm3679_vm6, %v7332_v30, %v7333_v39 }
 0x7c9   : > { %v7452_v60 = vadd.f32 %v7411_v61, %v15534_v49  ;;  %v7412_v52 = vadd.f32 %v7388_v6, %v14579_v26  ;;  %v15541_v6 = vld [vmem:[#allocation40_spill] sm:$0xff] }
 0x7ca   : > { %v15542_v49 = vunpack.c.l.bf16 %v15541_v6 }
 0x7cb   : > { %7493 = vst [vmem:[%s14814_s20 + $0x48] sm:$0xff] %v7452_v60  ;;  %v7453_v40 = vadd.f32 %v7412_v52, %v15536_v8  ;;  %v7210_v18 = vpop.f32.mrb[188].mxu1 }
 0x7cc   : > { %v7334_v53 = vrot.slane %v7210_v18, 3  ;;  %v10079_v46 = vpop.f32.mrb[189].mxu1 }
 0x7cd   : > { %7494 = vst [vmem:[%s14814_s20 + $0x50] sm:$0xff] %v7453_v40  ;;  %v7213_v28 = vpop.f32.mrb[190].mxu1 }
 0x7ce   : > { %v7387_v10 = vsel %vm3679_vm6, %v7333_v39, %v7334_v53  ;;  %v7335_v58 = vrot.slane %v7213_v28, 3  ;;  %v10080_v4 = vpop.f32.mrb[191].mxu1  ;;  %v15540_v39 = vunpack.c.h.bf16 %v15538_v3  ;;  %v15543_v28 = vunpack.c.h.bf16 %v15541_v6 }
 0x7cf   : > { %v7413_v7 = vadd.f32 %v7387_v10, %v14591_v62  ;;  %v15544_v4 = vld [vmem:[#allocation46_spill] sm:$0xff] }
 0x7d0   : > { %v7386_v26 = vsel %vm3679_vm6, %v7334_v53, %v7335_v58 }
 0x7d1   : > { %v7454_v33 = vadd.f32 %v7413_v7, %v15537_v56  ;;  %v7414_v31 = vadd.f32 %v7386_v26, %v14596_v43  ;;  %v15545_v7 = vunpack.c.l.bf16 %v15544_v4 }
 0x7d3   : > { %7495 = vst [vmem:[%s14814_s20 + $0x58] sm:$0xff] %v7454_v33  ;;  %v7455_v20 = vadd.f32 %v7414_v31, %v15539_v34  ;;  %v7218_v11 = vpop.f32.mrb[192].mxu1 }
 0x7d4   : > { %v7336_v57 = vrot.slane %v7218_v11, 3  ;;  %v10083_v5 = vpop.f32.mrb[193].mxu1 }
 0x7d5   : > { %7496 = vst [vmem:[%s14814_s20 + $0x60] sm:$0xff] %v7455_v20  ;;  %v7221_v30 = vpop.f32.mrb[194].mxu1 }
 0x7d6   : > { %v7385_v62 = vsel %vm3679_vm6, %v7335_v58, %v7336_v57  ;;  %v7337_v17 = vrot.slane %v7221_v30, 3  ;;  %v10084_v25 = vpop.f32.mrb[195].mxu1 }
 0x7d7   : > { %v7415_v14 = vadd.f32 %v7385_v62, %v14608_v22  ;;  %v15547_v62 = vld [vmem:[#allocation42_spill] sm:$0xff] }
 0x7d8   : > { %v7384_v43 = vsel %vm3679_vm6, %v7336_v57, %v7337_v17  ;;  %v15546_v57 = vunpack.c.h.bf16 %v15544_v4 }
 0x7d9   : > { %v7456_v50 = vadd.f32 %v7415_v14, %v15540_v39  ;;  %v7416_v61 = vadd.f32 %v7384_v43, %v14613_v1 }
 0x7db   : > { %7497 = vst [vmem:[%s14814_s20 + $0x68] sm:$0xff] %v7456_v50  ;;  %v7457_v60 = vadd.f32 %v7416_v61, %v15542_v49  ;;  %v7226_v52 = vpop.f32.mrb[196].mxu1 }
 0x7dc   : > { %v7338_v63 = vrot.slane %v7226_v52, 3  ;;  %v10087_v8 = vpop.f32.mrb[197].mxu1 }
 0x7dd   : > { %7498 = vst [vmem:[%s14814_s20 + $0x70] sm:$0xff] %v7457_v60  ;;  %v7229_v40 = vpop.f32.mrb[198].mxu1  ;;  %v15549_v60 = vunpack.c.h.bf16 %v15547_v62  ;;  %v15550_v8 = vld [vmem:[#allocation48_spill] sm:$0xff] }
 0x7de   : > { %v7383_v22 = vsel %vm3679_vm6, %v7337_v17, %v7338_v63  ;;  %v7339_v18 = vrot.slane %v7229_v40, 3  ;;  %v10088_v53 = vpop.f32.mrb[199].mxu1  ;;  %v15548_v17 = vunpack.c.l.bf16 %v15547_v62  ;;  %v15551_v40 = vunpack.c.l.bf16 %v15550_v8 }
 0x7df   : > { %v7417_v46 = vadd.f32 %v7383_v22, %v14625_v24  ;;  %v15552_v4 = vunpack.c.h.bf16 %v15550_v8 }
 0x7e0   : > { %v7382_v1 = vsel %vm3679_vm6, %v7338_v63, %v7339_v18 }
 0x7e1   : > { %v7458_v10 = vadd.f32 %v7417_v46, %v15543_v28  ;;  %v7418_v58 = vadd.f32 %v7382_v1, %v14630_v36 }
 0x7e3   : > { %7499 = vst [vmem:[%s14814_s20 + $0x78] sm:$0xff] %v7458_v10  ;;  %v7459_v26 = vadd.f32 %v7418_v58, %v15545_v7  ;;  %v7234_v56 = vpop.f32.mrb[200].mxu1 }
 0x7e4   : > { %v7340_v33 = vrot.slane %v7234_v56, 3  ;;  %v10091_v31 = vpop.f32.mrb[201].mxu1  ;;  %v15553_v56 = vld [vmem:[#allocation45_spill] sm:$0xff] }
 0x7e5   : > { %7500 = vst [vmem:[%s14814_s20 + $0x80] sm:$0xff] %v7459_v26  ;;  %v7237_v3 = vpop.f32.mrb[202].mxu1 }
 0x7e6   : > { %v7381_v24 = vsel %vm3679_vm6, %v7339_v18, %v7340_v33  ;;  %v7341_v34 = vrot.slane %v7237_v3, 3  ;;  %v10092_v20 = vpop.f32.mrb[203].mxu1 }
 0x7e7   : > { %v7419_v11 = vadd.f32 %v7381_v24, %v14642_v35 }
 0x7e8   : > { %v7380_v36 = vsel %vm3679_vm6, %v7340_v33, %v7341_v34  ;;  %v15554_v33 = vunpack.c.l.bf16 %v15553_v56 }
 0x7e9   : > { %v7460_v5 = vadd.f32 %v7419_v11, %v15546_v57  ;;  %v7420_v30 = vadd.f32 %v7380_v36, %v14647_v38 }
 0x7eb   : > { %7501 = vst [vmem:[%s14814_s20 + $0x88] sm:$0xff] %v7460_v5  ;;  %v7461_v25 = vadd.f32 %v7420_v30, %v15548_v17  ;;  %v7242_v14 = vpop.f32.mrb[204].mxu1  ;;  %v15555_v5 = vunpack.c.h.bf16 %v15553_v56  ;;  %v15556_v17 = vld [vmem:[#allocation50_spill] sm:$0xff] }
 0x7ec   : > { %v7342_v43 = vrot.slane %v7242_v14, 3  ;;  %v10095_v39 = vpop.f32.mrb[205].mxu1 }
 0x7ed   : > { %7502 = vst [vmem:[%s14814_s20 + $0x90] sm:$0xff] %v7461_v25  ;;  %v7245_v50 = vpop.f32.mrb[206].mxu1  ;;  %v15557_v25 = vunpack.c.l.bf16 %v15556_v17 }
 0x7ee   : > { %v7379_v35 = vsel %vm3679_vm6, %v7341_v34, %v7342_v43  ;;  %v7343_v61 = vrot.slane %v7245_v50, 3  ;;  %v10096_v6 = vpop.f32.mrb[207].mxu1 }
 0x7ef   : > { %v7421_v49 = vadd.f32 %v7379_v35, %v14659_v45 }
 0x7f0   : > { %v7378_v38 = vsel %vm3679_vm6, %v7342_v43, %v7343_v61 }
 0x7f1   : > { %v7462_v52 = vadd.f32 %v7421_v49, %v15549_v60  ;;  %v7422_v63 = vadd.f32 %v7378_v38, %v14664_v23  ;;  %v15558_v38 = vunpack.c.h.bf16 %v15556_v17 }
 0x7f3   : > { %7503 = vst [vmem:[%s14814_s20 + $0x98] sm:$0xff] %v7462_v52  ;;  %v7463_v22 = vadd.f32 %v7422_v63, %v15551_v40  ;;  %v7250_v18 = vpop.f32.mrb[208].mxu1  ;;  %v15559_v63 = vld [vmem:[#allocation47_spill] sm:$0xff] }
 0x7f4   : > { %v7344_v53 = vrot.slane %v7250_v18, 3  ;;  %v10099_v46 = vpop.f32.mrb[209].mxu1  ;;  %v15560_v8 = vunpack.c.l.bf16 %v15559_v63 }
 0x7f5   : > { %7504 = vst [vmem:[%s14814_s20 + $0xa0] sm:$0xff] %v7463_v22  ;;  %v7253_v1 = vpop.f32.mrb[210].mxu1 }
 0x7f6   : > { %v7377_v45 = vsel %vm3679_vm6, %v7343_v61, %v7344_v53  ;;  %v7345_v28 = vrot.slane %v7253_v1, 3  ;;  %v10100_v10 = vpop.f32.mrb[211].mxu1 }
 0x7f7   : > { %v7423_v58 = vadd.f32 %v7377_v45, %v14676_v15  ;;  %v15561_v10 = vunpack.c.h.bf16 %v15559_v63 }
 0x7f8   : > { %v7376_v23 = vsel %vm3679_vm6, %v7344_v53, %v7345_v28 }
 0x7f9   : > { %v7464_v7 = vadd.f32 %v7423_v58, %v15552_v4  ;;  %v7424_v26 = vadd.f32 %v7376_v23, %v14681_v32  ;;  %v15562_v4 = vld [vmem:[#allocation52_spill] sm:$0xff] }
 0x7fb   : > { %7505 = vst [vmem:[%s14814_s20 + $0xa8] sm:$0xff] %v7464_v7  ;;  %v7465_v31 = vadd.f32 %v7424_v26, %v15554_v33  ;;  %v7258_v3 = vpop.f32.mrb[212].mxu1  ;;  %v15563_v7 = vunpack.c.l.bf16 %v15562_v4 }
 0x7fc   : > { %v7346_v24 = vrot.slane %v7258_v3, 3  ;;  %v10103_v34 = vpop.f32.mrb[213].mxu1 }
 0x7fd   : > { %7506 = vst [vmem:[%s14814_s20 + $0xb0] sm:$0xff] %v7465_v31  ;;  %v7261_v20 = vpop.f32.mrb[214].mxu1 }
 0x7fe   : > { %v7375_v15 = vsel %vm3679_vm6, %v7345_v28, %v7346_v24  ;;  %v7347_v11 = vrot.slane %v7261_v20, 3  ;;  %v10104_v36 = vpop.f32.mrb[215].mxu1 }
 0x7ff   : > { %v7425_v57 = vadd.f32 %v7375_v15, %v14693_v16  ;;  %v15564_v15 = vunpack.c.h.bf16 %v15562_v4 }
 0x800   : > { %v7374_v32 = vsel %vm3679_vm6, %v7346_v24, %v7347_v11 }
 0x801   : > { %v7466_v30 = vadd.f32 %v7425_v57, %v15555_v5  ;;  %v7426_v62 = vadd.f32 %v7374_v32, %v14698_v55  ;;  %v15565_v57 = vld [vmem:[#allocation49_spill] sm:$0xff] }
 0x802   : > { %v15566_v32 = vunpack.c.l.bf16 %v15565_v57 }
 0x803   : > { %7507 = vst [vmem:[%s14814_s20 + $0xb8] sm:$0xff] %v7466_v30  ;;  %v7467_v14 = vadd.f32 %v7426_v62, %v15557_v25  ;;  %v7266_v43 = vpop.f32.mrb[216].mxu1 }
 0x804   : > { %v7348_v39 = vrot.slane %v7266_v43, 3  ;;  %v10107_v50 = vpop.f32.mrb[217].mxu1 }
 0x805   : > { %7508 = vst [vmem:[%s14814_s20 + $0xc0] sm:$0xff] %v7467_v14  ;;  %v7269_v35 = vpop.f32.mrb[218].mxu1  ;;  %v15567_v50 = vunpack.c.h.bf16 %v15565_v57 }
 0x806   : > { %v7373_v16 = vsel %vm3679_vm6, %v7347_v11, %v7348_v39  ;;  %v7349_v61 = vrot.slane %v7269_v35, 3  ;;  %v10108_v6 = vpop.f32.mrb[219].mxu1 }
 0x807   : > { %v7427_v49 = vadd.f32 %v7373_v16, %v14710_v12 }
 0x808   : > { %v7372_v55 = vsel %vm3679_vm6, %v7348_v39, %v7349_v61 }
 0x809   : > { %v7468_v60 = vadd.f32 %v7427_v49, %v15558_v38  ;;  %v7428_v52 = vadd.f32 %v7372_v55, %v14713_v13 }
 0x80b   : > { %7509 = vst [vmem:[%s14814_s20 + $0xc8] sm:$0xff] %v7468_v60  ;;  %v7469_v40 = vadd.f32 %v7428_v52, %v15560_v8  ;;  %v7274_v22 = vpop.f32.mrb[220].mxu1 }
 0x80c   : > { %v7350_v18 = vrot.slane %v7274_v22, 3  ;;  %v10111_v53 = vpop.f32.mrb[221].mxu1 }
 0x80d   : > { %7510 = vst [vmem:[%s14814_s20 + $0xd0] sm:$0xff] %v7469_v40  ;;  %v7277_v46 = vpop.f32.mrb[222].mxu1 }
 0x80e   : > { %v7371_v12 = vsel %vm3679_vm6, %v7349_v61, %v7350_v18  ;;  %v7351_v1 = vrot.slane %v7277_v46, 3  ;;  %v10112_v45 = vpop.f32.mrb[223].mxu1  ;;  %v15568_v61 = vld [vmem:[#allocation54_spill] sm:$0xff]  ;;  %v15571_v46 = vld [vmem:[#allocation51_spill] sm:$0xff] }
 0x80f   : > { %v7429_v28 = vadd.f32 %v7371_v12, %v14724_v2  ;;  %v15569_v6 = vunpack.c.l.bf16 %v15568_v61  ;;  %v15570_v22 = vunpack.c.h.bf16 %v15568_v61  ;;  %v15572_v12 = vunpack.c.l.bf16 %v15571_v46 }
 0x810   : > { %v7370_v13 = vsel %vm3679_vm6, %v7350_v18, %v7351_v1 }
 0x811   : > { %v7470_v58 = vadd.f32 %v7429_v28, %v15561_v10  ;;  %v7430_v23 = vadd.f32 %v7370_v13, %v14727_v47 }
 0x813   : > { %7511 = vst [vmem:[%s14814_s20 + $0xd8] sm:$0xff] %v7470_v58  ;;  %v7471_v26 = vadd.f32 %v7430_v23, %v15563_v7  ;;  %v7282_v56 = vpop.f32.mrb[224].mxu1  ;;  %v15573_v7 = vunpack.c.h.bf16 %v15571_v46 }
 0x814   : > { %v7352_v33 = vrot.slane %v7282_v56, 3  ;;  %v10115_v31 = vpop.f32.mrb[225].mxu1 }
 0x815   : > { %7512 = vst [vmem:[%s14814_s20 + $0xe0] sm:$0xff] %v7471_v26  ;;  %v7285_v3 = vpop.f32.mrb[226].mxu1 }
 0x816   : > { %v7369_v2 = vsel %vm3679_vm6, %v7351_v1, %v7352_v33  ;;  %v7353_v24 = vrot.slane %v7285_v3, 3  ;;  %v10116_v34 = vpop.f32.mrb[227].mxu1 }
 0x817   : > { %v7431_v20 = vadd.f32 %v7369_v2, %v14738_v37 }
 0x818   : > { %v7368_v47 = vsel %vm3679_vm6, %v7352_v33, %v7353_v24  ;;  %v15574_v33 = vld [vmem:[#allocation55_spill] sm:$0xff] }
 0x819   : > { %v7472_v11 = vadd.f32 %v7431_v20, %v15564_v15  ;;  %v7432_v36 = vadd.f32 %v7368_v47, %v14741_v42  ;;  %v15575_v31 = vunpack.c.l.bf16 %v15574_v33 }
 0x81b   : > { %7513 = vst [vmem:[%s14814_s20 + $0xe8] sm:$0xff] %v7472_v11  ;;  %v7473_v5 = vadd.f32 %v7432_v36, %v15566_v32  ;;  %v7290_v30 = vpop.f32.mrb[228].mxu1  ;;  %v15576_v36 = vunpack.c.h.bf16 %v15574_v33 }
 0x81c   : > { %v7354_v62 = vrot.slane %v7290_v30, 3  ;;  %v10119_v17 = vpop.f32.mrb[229].mxu1 }
 0x81d   : > { %7514 = vst [vmem:[%s14814_s20 + $0xf0] sm:$0xff] %v7473_v5  ;;  %v7293_v25 = vpop.f32.mrb[230].mxu1 }
 0x81e   : > { %v7367_v37 = vsel %vm3679_vm6, %v7353_v24, %v7354_v62  ;;  %v7355_v14 = vrot.slane %v7293_v25, 3  ;;  %v10120_v43 = vpop.f32.mrb[231].mxu1 }
 0x81f   : > { %v7433_v39 = vadd.f32 %v7367_v37, %v14752_v59 }
 0x820   : > { %v7366_v42 = vsel %vm3679_vm6, %v7354_v62, %v7355_v14 }
 0x821   : > { %v7474_v35 = vadd.f32 %v7433_v39, %v15567_v50  ;;  %v7434_v16 = vadd.f32 %v7366_v42, %v14755_v44 }
 0x823   : > { %7515 = vst [vmem:[%s14814_s20 + $0xf8] sm:$0xff] %v7474_v35  ;;  %v7475_v49 = vadd.f32 %v7434_v16, %v15569_v6  ;;  %v7298_v55 = vpop.f32.mrb[232].mxu1 }
 0x824   : > { %v7356_v38 = vrot.slane %v7298_v55, 3  ;;  %v10123_v60 = vpop.f32.mrb[233].mxu1 }
 0x825   : > { %7516 = vst [vmem:[%s14814_s20 + $0x100] sm:$0xff] %v7475_v49  ;;  %v7301_v52 = vpop.f32.mrb[234].mxu1 }
 0x826   : > { %v7365_v59 = vsel %vm3679_vm6, %v7355_v14, %v7356_v38  ;;  %v7357_v63 = vrot.slane %v7301_v52, 3  ;;  %v10124_v8 = vpop.f32.mrb[235].mxu1 }
 0x827   : > { %v7435_v40 = vadd.f32 %v7365_v59, %v14766_v0 }
 0x828   : > { %v7364_v44 = vsel %vm3679_vm6, %v7356_v38, %v7357_v63 }
 0x829   : > { %v7476_v18 = vadd.f32 %v7435_v40, %v15570_v22  ;;  %v7436_v53 = vadd.f32 %v7364_v44, %v14769_v51 }
 0x82b   : > { %7517 = vst [vmem:[%s14814_s20 + $0x108] sm:$0xff] %v7476_v18  ;;  %v7477_v1 = vadd.f32 %v7436_v53, %v15572_v12  ;;  %v7306_v45 = vpop.f32.mrb[236].mxu1 }
 0x82c   : > { %v7358_v28 = vrot.slane %v7306_v45, 3  ;;  %v10127_v13 = vpop.f32.mrb[237].mxu1 }
 0x82d   : > { %7518 = vst [vmem:[%s14814_s20 + $0x110] sm:$0xff] %v7477_v1  ;;  %v7309_v0 = vpop.f32.mrb[238].mxu1 }
 0x82e   : > { %v7363_v10 = vsel %vm3679_vm6, %v7357_v63, %v7358_v28  ;;  %v7359_v58 = vrot.slane %v7309_v0, 3  ;;  %v10128_v23 = vpop.f32.mrb[239].mxu1 }
 0x82f   : > { %v7437_v4 = vadd.f32 %v7363_v10, %v14780_v29 }
 0x830   : > { %v7362_v51 = vsel %vm3679_vm6, %v7358_v28, %v7359_v58 }
 0x831   : > { %v7478_v26 = vadd.f32 %v7437_v4, %v15573_v7  ;;  %v7438_v56 = vadd.f32 %v7362_v51, %v14783_v54 }
 0x833   : > { %7519 = vst [vmem:[%s14814_s20 + $0x118] sm:$0xff] %v7478_v26  ;;  %v7479_v3 = vadd.f32 %v7438_v56, %v15575_v31  ;;  %v7314_v2 = vpop.f32.mrb[240].mxu1 }
 0x834   : > { %v7360_v24 = vrot.slane %v7314_v2, 3  ;;  %v10131_v34 = vpop.f32.mrb[241].mxu1 }
 0x835   : > { %7520 = vst [vmem:[%s14814_s20 + $0x120] sm:$0xff] %v7479_v3  ;;  %v7317_v29 = vpop.f32.mrb[242].mxu1 }
 0x836   : > { %v7361_v20 = vsel %vm3679_vm6, %v7359_v58, %v7360_v24  ;;  %v7401_v54 = vsel %vm3679_vm6, %v7360_v24, %v7320_v41  ;;  %v10132_v47 = vpop.f32.mrb[243].mxu1 }
 0x837   : > { %v7439_v15 = vadd.f32 %v7361_v20, %v14799_v21  ;;  %v7440_v11 = vadd.f32 %v7401_v54, %v14801_v48 }
 0x839   : > { %v7480_v27 = vadd.f32 %v7439_v15, %v15576_v36  ;;  %v7481_v41 = vadd.f32 %v7440_v11, %v15577_v9 }
 0x83b   : > { %7521 = vst [vmem:[%s14814_s20 + $0x128] sm:$0xff] %v7480_v27  ;;  %7522 = vst [vmem:[%s14814_s20 + $0x130] sm:$0xff] %v7481_v41 }
 0x83c   : > { %10617 = shalt.err (!%p10614_p1)
}
 0x83d   : > { %s10618_s11 = scalar_lea.hbm %s15058_s16, 5248  ;;  %s10622_s30 = scalar_lea.hbm %s15113_s3, 10496 }
 0x83e   : > { %p10619_p13 = scmp.ne.s32.totalorder %s15058_s16, %s10618_s11  ;;  %p10623_p4 = scmp.lt.u32.totalorder %s15058_s16, %s15113_s3 }
 0x83f   : > { %p10624_p5 = scmp.lt.u32.totalorder %s10622_s30, %s10618_s11  ;;  %p10626_p11 = scmp.lt.u32.totalorder %s10618_s11, %s15058_s16 }
 0x840   : > { %p10620_p6 = pnand %p10619_p13, %p15578_p0 }
 0x841   : > { %p10625_p8 = por %p10624_p5, %p10623_p4 }
 0x842   : > { %p10621_p10 = pneg %p10620_p6 }
 0x843   : > { %p10627_p2 = por %p10626_p11, %p10625_p8 }
 0x845   : > { %p10628_p3 = pnand %p10627_p2, %p10621_p10 }
 0x847   : > { %10631 = shalt.err (!%p10628_p3)
}
 0x848   : > { %s10685_s18 = smov 128   ;;  %s10686_s20 = smov 8  }
 0x849   : > { %10146 = dma.vmem_to_hbm [thread:$0]  (%p15578_p0), %s15060_s8, 5248, %s15058_s16, %s7526_s28, %s10685_s18, %s10685_s18, %s10686_s20  }
 0x84a PF: > { %s7554_s7 = sand.u32 1, %s10662_s12   ;;  %p15579_p7 = scmp.ne.s32.totalorder %s15269_s19, 0 }
 0x84b   : > { %p15580_p9 = scmp.ge.s32.totalorder %s10674_s15, 2  ;;  %s7555_s17 = scalar_lea.sflag [#allocation4], %s7554_s7 }
 0x84d   : > { %p10160_p12 = pnand %p15580_p9, %p15579_p7 }
 0x84f   : > { %10657 = dma.done.wait (!%p10160_p12), %s7555_s17, 5248  }
 0x850   : > { %10659 = vsyncadd (!%p10160_p12), %s7555_s17, 4294962048  ;;  %p17_p1 = scmp.ge.s32.totalorder %s10823_s23, 4   ;;  %s15581_s12 = smov %s10666_s13 }
 0x851   : > { %s15582_s13 = smov %s10670_s14  ;;  %s15583_s14 = smov %s10839_s9 }
 0x852   : > { %s15584_s15 = smov %s10823_s23  ;;  %19 = sbr.rel (!%p17_p1) target bundleno = 6 (0x6), region = 101 }
 0x859   :  { %7560 = vsyncpa [#allocation3], 1 }
 0x85a   :  { %7562 = vsyncpa [#allocation3 + $0x1], 1 }
 0x85b   :  { %7563 = vsyncpa [#allocation6], 1 }
 0x85c   :  { %7564 = vsyncpa [#allocation4], 1 }
 0x85d   :  { %7566 = vsyncpa [#allocation4 + $0x1], 1 }

</bundles_post_ra>
